<compile_context>
chip_gen: v6e
topology: v6e:2x2x1
jax: 0.10.0
libtpu: 0.0.40
codegen_flags: <defaults>
</compile_context>

<pallas_src>
import numpy as np
import jax
import jax.numpy as jnp
from jax import lax
from jax.experimental import pallas as pl
from jax.experimental.pallas import tpu as pltpu

KSZ = 5        # ConvTranspose2d kernel size
STRIDE = 2     # stride
PAD = 3        # padding
OUTPAD = 1     # output_padding


# ----------------------------- Pallas kernel ---------------------------------
def _make_stage_kernel(cin, cout, h, w):
    """One (batch, phase) grid step.

    Refs:
      w_ref    (9, Cout, Cin)  per-tap weights of this phase (zero rows for unused taps)
      b_ref    (Cout, 1)       ConvTranspose2d bias
      g_ref    (Cout, Cout)    IGDN 1x1 conv weights
      beta_ref (Cout, 1)       IGDN bias
      x_ref    (Cin, H*W)      input image of this batch element (pixels in lanes)
      o_ref    (Cout, H*W)     this phase's output plane
    """
    p = h * w

    def kernel(w_ref, b_ref, g_ref, beta_ref, x_ref, o_ref):
        xv = x_ref[...]                                          # (Cin, P) resident image
        lane = lax.broadcasted_iota(jnp.int32, (1, p), 1)        # flat pixel index eh*W + ew
        col = lane % w                                           # pixel column ew

        # Output pixel (2*eh+a, 2*ew+b) of phase (a,b) reads the ((1,1),(1,1))-padded input at
        # (eh+dh, ew+dw), dh,dw in 0..2.  In flattened pixel coordinates that is a constant
        # shift of (dh-1)*W + (dw-1): pltpu.roll supplies the shift and the iota masks supply
        # the zero padding (they also kill every wrapped-around lane, since a wrap implies an
        # out-of-range tap).
        y = jnp.zeros((cout, p), jnp.float32)
        tap_id = 0
        for dh in range(3):
            for dw in range(3):
                shift = (dh - 1) * w + (dw - 1)
                tap = xv if shift == 0 else pltpu.roll(xv, (-shift) % p, axis=1)
                mask = None
                if dh == 0:
                    mask = lane >= w                             # needs input row eh-1 >= 0
                elif dh == 2:
                    mask = lane < (h - 1) * w                    # needs input row eh+1 <= H-1
                if dw == 0:
                    cmask = col >= 1                             # needs input col ew-1 >= 0
                    mask = cmask if mask is None else mask & cmask
                elif dw == 2:
                    cmask = col < (w - 1)                        # needs input col ew+1 <= W-1
                    mask = cmask if mask is None else mask & cmask
                if mask is not None:
                    tap = jnp.where(mask, tap, 0.0)
                y = y + jnp.dot(w_ref[tap_id], tap, preferred_element_type=jnp.float32)
                tap_id += 1

        y = y + b_ref[...]                                       # conv bias (VPU broadcast add)
        # IGDN: out = y * sqrt(beta + gamma @ y^2)   (1x1 conv over channels)
        norm = jnp.dot(g_ref[...], y * y, preferred_element_type=jnp.float32) + beta_ref[...]
        o_ref[...] = y * jnp.sqrt(norm)

    return kernel


def _stage_pallas(xf, w_ph, b_col, gamma, beta_col, h, w):
    """xf: (N, Cin, H*W) f32 -> phase-major (N, 4, Cout, H*W); phase 2a+b is output pixel
    (2*eh+a, 2*ew+b)."""
    n, cin, p = xf.shape
    cout = gamma.shape[0]
    kernel = _make_stage_kernel(cin, cout, h, w)
    # TODO(synk): for images where Cin*H*W*4 exceeds a few MiB, add a pixel-tile grid axis with
    # halo handling (manual DMA) instead of keeping the whole image resident in VMEM.
    flops = 2 * n * 4 * p * cout * (9 * cin + cout)
    bytes_accessed = 4 * (xf.size + n * 4 * cout * p + w_ph.size + gamma.size + 2 * cout)
    return pl.pallas_call(
        kernel,
        out_shape=jax.ShapeDtypeStruct((n, 4, cout, p), jnp.float32),
        grid=(n, 4),
        in_specs=[
            pl.BlockSpec((None, 9, cout, cin), lambda i, j: (j, 0, 0, 0)),   # phase tap weights
            pl.BlockSpec((cout, 1), lambda i, j: (0, 0)),                    # conv bias
            pl.BlockSpec((cout, cout), lambda i, j: (0, 0)),                 # IGDN gamma
            pl.BlockSpec((cout, 1), lambda i, j: (0, 0)),                    # IGDN beta
            pl.BlockSpec((None, cin, p), lambda i, j: (i, 0, 0)),            # image, resident across phases
        ],
        out_specs=pl.BlockSpec((None, None, cout, p), lambda i, j: (i, j, 0, 0)),
        compiler_params=pltpu.CompilerParams(
            dimension_semantics=("parallel", "parallel")),
        cost_estimate=pl.CostEstimate(flops=flops, transcendentals=n * 4 * cout * p,
                                      bytes_accessed=bytes_accessed),
    )(w_ph, b_col, gamma, beta_col, xf)


# ------------------------------ JAX glue --------------------------------------
def synthesis_transform(x_nchw, packed):
    """Forward pass: (N, in_dim, H, W) -> (N, num_filters[-1], 8H, 8W), NCHW in/out."""
    x = x_nchw
    for (w_ph, b_col, gamma, beta_col) in packed:
        n, cin, h, w = x.shape
        cout = gamma.shape[0]
        y = _stage_pallas(x.reshape(n, cin, h * w), w_ph, b_col, gamma, beta_col, h, w)
        # Interleave the 4 phases into the 2x-upsampled NCHW feature map (kept in XLA).
        y = y.reshape(n, 2, 2, cout, h, w)                       # (n, a, b, c, eh, ew)
        x = jnp.transpose(y, (0, 3, 4, 1, 5, 2)).reshape(n, cout, 2 * h, 2 * w)
    return x


def prepack_params(params):
    """Hoisted, one-time (numpy) parameter preprocessing.

    PyTorch ConvTranspose2d weight (Cin, Cout, 5, 5) -> per-phase 3x3-tap weights
    (4, 9, Cout, Cin).  Output pixel (2*eh+a, 2*ew+b) only sees the 5x5 taps whose dilated
    position lands on a real input sample: for parity a=0 these are kernel rows {3,1}
    (taps dh={0,1}), for a=1 rows {4,2,0} (dh={0,1,2}); same for columns.  Those taps read
    padded-input pixels (eh+dh, ew+dw); unused taps keep zero weights."""
    packed = []
    for (wt, bias, gamma, beta) in params:
        wt = np.asarray(wt, np.float32)
        cin, cout = wt.shape[0], wt.shape[1]
        w = np.zeros((4, 3, 3, cout, cin), np.float32)
        for a in range(2):                        # output-row parity
            for b in range(2):                    # output-col parity
                ph = a * 2 + b
                n_dh = 2 if a == 0 else 3
                n_dw = 2 if b == 0 else 3
                for dh in range(n_dh):
                    kr = (3 - 2 * dh) if a == 0 else (4 - 2 * dh)
                    for dw in range(n_dw):
                        kc = (3 - 2 * dw) if b == 0 else (4 - 2 * dw)
                        w[ph, dh, dw, :, :] = wt[:, :, kr, kc].T
        packed.append((
            jnp.asarray(w.reshape(4, 9, cout, cin)),
            jnp.asarray(np.asarray(bias, np.float32).reshape(cout, 1)),
            jnp.asarray(np.asarray(gamma, np.float32)),
            jnp.asarray(np.asarray(beta, np.float32).reshape(cout, 1)),
        ))
    return packed


# --------------------------- pure-JAX reference --------------------------------
def synthesis_transform_ref(x_nchw, params):
    x = jnp.transpose(x_nchw, (0, 2, 3, 1))
    for (wt, b, gamma, beta) in params:
        cout = wt.shape[1]
        xp = jnp.pad(x, ((0, 0), (1, 0), (1, 0), (0, 0)))        # ZeroPad2d((1,0,1,0))
        wconv = jnp.transpose(wt[:, :, ::-1, ::-1], (2, 3, 0, 1))
        y = lax.conv_general_dilated(
            xp, wconv, window_strides=(1, 1),
            padding=((1, 2), (1, 2)), lhs_dilation=(2, 2), rhs_dilation=(1, 1),
            dimension_numbers=("NHWC", "HWIO", "NHWC"))
        y = y + b.reshape(1, 1, 1, cout)
        norm = jnp.einsum("nhwc,dc->nhwd", y * y, gamma) + beta.reshape(1, 1, 1, cout)
        x = y * jnp.sqrt(norm)
    return jnp.transpose(x, (0, 3, 1, 2))


# ---------------------------------- main ---------------------------------------
if __name__ == "__main__":
    key = jax.random.PRNGKey(0)
    N, IN_DIM, H, W = 2, 4, 16, 16
    num_filters = (8, 8, 4)

    # Deterministic synthetic parameters (shapes follow nn.ConvTranspose2d / IGDN).
    # gamma is intentionally NON-symmetric so the IGDN matmul orientation is exercised.
    params = []
    cin = IN_DIM
    for cout in num_filters:
        key, k1, k2, k3 = jax.random.split(key, 4)
        wt = 0.1 * jax.random.normal(k1, (cin, cout, KSZ, KSZ), jnp.float32)   # (Cin,Cout,5,5)
        b = 0.01 * jax.random.normal(k2, (cout,), jnp.float32)
        gamma = (0.1 * jnp.eye(cout, dtype=jnp.float32)
                 + 0.02 * jax.random.uniform(k3, (cout, cout), jnp.float32))   # IGDN 1x1 weight
        beta = jnp.ones((cout,), jnp.float32)                                  # IGDN bias
        params.append((wt, b, gamma, beta))
        cin = cout

    key, kx = jax.random.split(key)
    x = jax.random.normal(kx, (N, IN_DIM, H, W), jnp.float32)

    packed = prepack_params(params)                      # one-time numpy prepack (hoisted)
    fwd = jax.jit(synthesis_transform)

    out = jax.block_until_ready(fwd(x, packed))
    ref = jax.block_until_ready(synthesis_transform_ref(x, params))

    assert out.shape == (N, num_filters[-1], 8 * H, 8 * W), out.shape
    err = float(jnp.max(jnp.abs(out - ref)))
    assert jnp.allclose(out, ref, atol=1e-4, rtol=1e-4), err
    print("KERNEL_OK")
</pallas_src>

<mosaic_0001>
module attributes {stable_mosaic.version = 11 : i64} {
  func.func @kernel(%arg0: i32, %arg1: i32, %arg2: memref<1x9x8x4xf32, #tpu.memory_space<vmem>>, %arg3: memref<8x1xf32, #tpu.memory_space<vmem>>, %arg4: memref<8x8xf32, #tpu.memory_space<vmem>>, %arg5: memref<8x1xf32, #tpu.memory_space<vmem>>, %arg6: memref<1x4x256xf32, #tpu.memory_space<vmem>>, %arg7: memref<1x1x8x256xf32, #tpu.memory_space<vmem>>) attributes {dimension_semantics = [#tpu.dimension_semantics<parallel>, #tpu.dimension_semantics<parallel>], iteration_bounds = array<i64: 2, 4>, scalar_prefetch = 0 : i64, scratch_operands = 0 : i64, tpu.core_type = #tpu.core_type<tc>, window_params = [{transform_indices = @transform_0, window_bounds = array<i64: 1, 9, 8, 4>}, {pipeline_mode = #tpu.pipeline_mode<synchronous>, transform_indices = @transform_1, window_bounds = array<i64: 8, 1>}, {pipeline_mode = #tpu.pipeline_mode<synchronous>, transform_indices = @transform_2, window_bounds = array<i64: 8, 8>}, {pipeline_mode = #tpu.pipeline_mode<synchronous>, transform_indices = @transform_3, window_bounds = array<i64: 8, 1>}, {transform_indices = @transform_4, window_bounds = array<i64: 1, 4, 256>}, {transform_indices = @transform_5, window_bounds = array<i64: 1, 1, 8, 256>}]} {
    %c0 = arith.constant 0 : index
    %c0_0 = arith.constant 0 : index
    %c0_1 = arith.constant 0 : index
    %0 = vector.load %arg6[%c0, %c0_0, %c0_1] : memref<1x4x256xf32, #tpu.memory_space<vmem>>, vector<1x4x256xf32>
    %1 = vector.shape_cast %0 : vector<1x4x256xf32> to vector<4x256xf32>
    %2 = tpu.iota {dimensions = array<i32: 1>} : vector<1x256xi32>
    %c16_i32 = arith.constant 16 : i32
    %c0_i32 = arith.constant 0 : i32
    %3 = arith.cmpi eq, %c16_i32, %c0_i32 : i32
    %c1_i32 = arith.constant 1 : i32
    %4 = arith.select %3, %c1_i32, %c16_i32 : i32
    %5 = vector.broadcast %4 : i32 to vector<1x256xi32>
    %6 = arith.remsi %2, %5 : vector<1x256xi32>
    %c0_i32_2 = arith.constant 0 : i32
    %7 = vector.broadcast %c0_i32_2 : i32 to vector<1x256xi32>
    %8 = arith.cmpi ne, %6, %7 : vector<1x256xi32>
    %c0_i32_3 = arith.constant 0 : i32
    %9 = vector.broadcast %c0_i32_3 : i32 to vector<1x256xi32>
    %10 = arith.cmpi slt, %6, %9 : vector<1x256xi32>
    %c0_i32_4 = arith.constant 0 : i32
    %11 = arith.cmpi slt, %4, %c0_i32_4 : i32
    %12 = vector.broadcast %11 : i1 to vector<1x256xi1>
    %13 = vector.broadcast %12 : vector<1x256xi1> to vector<1x256xi1>
    %14 = arith.xori %10, %13 : vector<1x256xi1>
    %15 = arith.andi %14, %8 : vector<1x256xi1>
    %16 = vector.broadcast %4 : i32 to vector<1x256xi32>
    %17 = arith.addi %6, %16 : vector<1x256xi32>
    %18 = arith.select %15, %17, %6 : vector<1x256xi1>, vector<1x256xi32>
    %cst = arith.constant 0.000000e+00 : f32
    %19 = vector.broadcast %cst : f32 to vector<8x256xf32>
    %c17_i32 = arith.constant 17 : i32
    %20 = tpu.dynamic_rotate %1 by %c17_i32 dim 1 : vector<4x256xf32>, i32 -> vector<4x256xf32>
    %c16_i32_5 = arith.constant 16 : i32
    %21 = vector.broadcast %c16_i32_5 : i32 to vector<1x256xi32>
    %22 = arith.cmpi sge, %2, %21 : vector<1x256xi32>
    %c1_i32_6 = arith.constant 1 : i32
    %23 = vector.broadcast %c1_i32_6 : i32 to vector<1x256xi32>
    %24 = arith.cmpi sge, %18, %23 : vector<1x256xi32>
    %25 = arith.andi %22, %24 : vector<1x256xi1>
    %cst_7 = arith.constant 0.000000e+00 : f32
    %26 = vector.shape_cast %25 : vector<1x256xi1> to vector<1x256xi1>
    %27 = vector.broadcast %26 : vector<1x256xi1> to vector<4x256xi1>
    %28 = vector.broadcast %cst_7 : f32 to vector<4x256xf32>
    %29 = arith.select %27, %20, %28 : vector<4x256xi1>, vector<4x256xf32>
    %c0_8 = arith.constant 0 : index
    %c0_9 = arith.constant 0 : index
    %c0_10 = arith.constant 0 : index
    %c0_11 = arith.constant 0 : index
    %30 = vector.load %arg2[%c0_8, %c0_9, %c0_10, %c0_11] : memref<1x9x8x4xf32, #tpu.memory_space<vmem>>, vector<1x1x8x4xf32>
    %31 = vector.shape_cast %30 : vector<1x1x8x4xf32> to vector<8x4xf32>
    %cst_12 = arith.constant dense<0.000000e+00> : vector<8x256xf32>
    %32 = tpu.matmul %31, %29, %cst_12 {dimension_numbers = #tpu.dot_dimension_numbers<[1], [0], [0], [1], [0, 0, 1, 1], [], []>} : vector<8x4xf32>, vector<4x256xf32>, vector<8x256xf32> -> vector<8x256xf32>
    %33 = arith.addf %19, %32 : vector<8x256xf32>
    %c16_i32_13 = arith.constant 16 : i32
    %34 = tpu.dynamic_rotate %1 by %c16_i32_13 dim 1 : vector<4x256xf32>, i32 -> vector<4x256xf32>
    %c16_i32_14 = arith.constant 16 : i32
    %35 = vector.broadcast %c16_i32_14 : i32 to vector<1x256xi32>
    %36 = arith.cmpi sge, %2, %35 : vector<1x256xi32>
    %cst_15 = arith.constant 0.000000e+00 : f32
    %37 = vector.shape_cast %36 : vector<1x256xi1> to vector<1x256xi1>
    %38 = vector.broadcast %37 : vector<1x256xi1> to vector<4x256xi1>
    %39 = vector.broadcast %cst_15 : f32 to vector<4x256xf32>
    %40 = arith.select %38, %34, %39 : vector<4x256xi1>, vector<4x256xf32>
    %c0_16 = arith.constant 0 : index
    %c1 = arith.constant 1 : index
    %c0_17 = arith.constant 0 : index
    %c0_18 = arith.constant 0 : index
    %41 = vector.load %arg2[%c0_16, %c1, %c0_17, %c0_18] : memref<1x9x8x4xf32, #tpu.memory_space<vmem>>, vector<1x1x8x4xf32>
    %42 = vector.shape_cast %41 : vector<1x1x8x4xf32> to vector<8x4xf32>
    %cst_19 = arith.constant dense<0.000000e+00> : vector<8x256xf32>
    %43 = tpu.matmul %42, %40, %cst_19 {dimension_numbers = #tpu.dot_dimension_numbers<[1], [0], [0], [1], [0, 0, 1, 1], [], []>} : vector<8x4xf32>, vector<4x256xf32>, vector<8x256xf32> -> vector<8x256xf32>
    %44 = arith.addf %33, %43 : vector<8x256xf32>
    %c15_i32 = arith.constant 15 : i32
    %45 = tpu.dynamic_rotate %1 by %c15_i32 dim 1 : vector<4x256xf32>, i32 -> vector<4x256xf32>
    %c16_i32_20 = arith.constant 16 : i32
    %46 = vector.broadcast %c16_i32_20 : i32 to vector<1x256xi32>
    %47 = arith.cmpi sge, %2, %46 : vector<1x256xi32>
    %c15_i32_21 = arith.constant 15 : i32
    %48 = vector.broadcast %c15_i32_21 : i32 to vector<1x256xi32>
    %49 = arith.cmpi slt, %18, %48 : vector<1x256xi32>
    %50 = arith.andi %47, %49 : vector<1x256xi1>
    %cst_22 = arith.constant 0.000000e+00 : f32
    %51 = vector.shape_cast %50 : vector<1x256xi1> to vector<1x256xi1>
    %52 = vector.broadcast %51 : vector<1x256xi1> to vector<4x256xi1>
    %53 = vector.broadcast %cst_22 : f32 to vector<4x256xf32>
    %54 = arith.select %52, %45, %53 : vector<4x256xi1>, vector<4x256xf32>
    %c0_23 = arith.constant 0 : index
    %c2 = arith.constant 2 : index
    %c0_24 = arith.constant 0 : index
    %c0_25 = arith.constant 0 : index
    %55 = vector.load %arg2[%c0_23, %c2, %c0_24, %c0_25] : memref<1x9x8x4xf32, #tpu.memory_space<vmem>>, vector<1x1x8x4xf32>
    %56 = vector.shape_cast %55 : vector<1x1x8x4xf32> to vector<8x4xf32>
    %cst_26 = arith.constant dense<0.000000e+00> : vector<8x256xf32>
    %57 = tpu.matmul %56, %54, %cst_26 {dimension_numbers = #tpu.dot_dimension_numbers<[1], [0], [0], [1], [0, 0, 1, 1], [], []>} : vector<8x4xf32>, vector<4x256xf32>, vector<8x256xf32> -> vector<8x256xf32>
    %58 = arith.addf %44, %57 : vector<8x256xf32>
    %c1_i32_27 = arith.constant 1 : i32
    %59 = tpu.dynamic_rotate %1 by %c1_i32_27 dim 1 : vector<4x256xf32>, i32 -> vector<4x256xf32>
    %c1_i32_28 = arith.constant 1 : i32
    %60 = vector.broadcast %c1_i32_28 : i32 to vector<1x256xi32>
    %61 = arith.cmpi sge, %18, %60 : vector<1x256xi32>
    %cst_29 = arith.constant 0.000000e+00 : f32
    %62 = vector.shape_cast %61 : vector<1x256xi1> to vector<1x256xi1>
    %63 = vector.broadcast %62 : vector<1x256xi1> to vector<4x256xi1>
    %64 = vector.broadcast %cst_29 : f32 to vector<4x256xf32>
    %65 = arith.select %63, %59, %64 : vector<4x256xi1>, vector<4x256xf32>
    %c0_30 = arith.constant 0 : index
    %c3 = arith.constant 3 : index
    %c0_31 = arith.constant 0 : index
    %c0_32 = arith.constant 0 : index
    %66 = vector.load %arg2[%c0_30, %c3, %c0_31, %c0_32] : memref<1x9x8x4xf32, #tpu.memory_space<vmem>>, vector<1x1x8x4xf32>
    %67 = vector.shape_cast %66 : vector<1x1x8x4xf32> to vector<8x4xf32>
    %cst_33 = arith.constant dense<0.000000e+00> : vector<8x256xf32>
    %68 = tpu.matmul %67, %65, %cst_33 {dimension_numbers = #tpu.dot_dimension_numbers<[1], [0], [0], [1], [0, 0, 1, 1], [], []>} : vector<8x4xf32>, vector<4x256xf32>, vector<8x256xf32> -> vector<8x256xf32>
    %69 = arith.addf %58, %68 : vector<8x256xf32>
    %c0_34 = arith.constant 0 : index
    %c4 = arith.constant 4 : index
    %c0_35 = arith.constant 0 : index
    %c0_36 = arith.constant 0 : index
    %70 = vector.load %arg2[%c0_34, %c4, %c0_35, %c0_36] : memref<1x9x8x4xf32, #tpu.memory_space<vmem>>, vector<1x1x8x4xf32>
    %71 = vector.shape_cast %70 : vector<1x1x8x4xf32> to vector<8x4xf32>
    %cst_37 = arith.constant dense<0.000000e+00> : vector<8x256xf32>
    %72 = tpu.matmul %71, %1, %cst_37 {dimension_numbers = #tpu.dot_dimension_numbers<[1], [0], [0], [1], [0, 0, 1, 1], [], []>} : vector<8x4xf32>, vector<4x256xf32>, vector<8x256xf32> -> vector<8x256xf32>
    %73 = arith.addf %69, %72 : vector<8x256xf32>
    %c255_i32 = arith.constant 255 : i32
    %74 = tpu.dynamic_rotate %1 by %c255_i32 dim 1 : vector<4x256xf32>, i32 -> vector<4x256xf32>
    %c15_i32_38 = arith.constant 15 : i32
    %75 = vector.broadcast %c15_i32_38 : i32 to vector<1x256xi32>
    %76 = arith.cmpi slt, %18, %75 : vector<1x256xi32>
    %cst_39 = arith.constant 0.000000e+00 : f32
    %77 = vector.shape_cast %76 : vector<1x256xi1> to vector<1x256xi1>
    %78 = vector.broadcast %77 : vector<1x256xi1> to vector<4x256xi1>
    %79 = vector.broadcast %cst_39 : f32 to vector<4x256xf32>
    %80 = arith.select %78, %74, %79 : vector<4x256xi1>, vector<4x256xf32>
    %c0_40 = arith.constant 0 : index
    %c5 = arith.constant 5 : index
    %c0_41 = arith.constant 0 : index
    %c0_42 = arith.constant 0 : index
    %81 = vector.load %arg2[%c0_40, %c5, %c0_41, %c0_42] : memref<1x9x8x4xf32, #tpu.memory_space<vmem>>, vector<1x1x8x4xf32>
    %82 = vector.shape_cast %81 : vector<1x1x8x4xf32> to vector<8x4xf32>
    %cst_43 = arith.constant dense<0.000000e+00> : vector<8x256xf32>
    %83 = tpu.matmul %82, %80, %cst_43 {dimension_numbers = #tpu.dot_dimension_numbers<[1], [0], [0], [1], [0, 0, 1, 1], [], []>} : vector<8x4xf32>, vector<4x256xf32>, vector<8x256xf32> -> vector<8x256xf32>
    %84 = arith.addf %73, %83 : vector<8x256xf32>
    %c241_i32 = arith.constant 241 : i32
    %85 = tpu.dynamic_rotate %1 by %c241_i32 dim 1 : vector<4x256xf32>, i32 -> vector<4x256xf32>
    %c240_i32 = arith.constant 240 : i32
    %86 = vector.broadcast %c240_i32 : i32 to vector<1x256xi32>
    %87 = arith.cmpi slt, %2, %86 : vector<1x256xi32>
    %c1_i32_44 = arith.constant 1 : i32
    %88 = vector.broadcast %c1_i32_44 : i32 to vector<1x256xi32>
    %89 = arith.cmpi sge, %18, %88 : vector<1x256xi32>
    %90 = arith.andi %87, %89 : vector<1x256xi1>
    %cst_45 = arith.constant 0.000000e+00 : f32
    %91 = vector.shape_cast %90 : vector<1x256xi1> to vector<1x256xi1>
    %92 = vector.broadcast %91 : vector<1x256xi1> to vector<4x256xi1>
    %93 = vector.broadcast %cst_45 : f32 to vector<4x256xf32>
    %94 = arith.select %92, %85, %93 : vector<4x256xi1>, vector<4x256xf32>
    %c0_46 = arith.constant 0 : index
    %c6 = arith.constant 6 : index
    %c0_47 = arith.constant 0 : index
    %c0_48 = arith.constant 0 : index
    %95 = vector.load %arg2[%c0_46, %c6, %c0_47, %c0_48] : memref<1x9x8x4xf32, #tpu.memory_space<vmem>>, vector<1x1x8x4xf32>
    %96 = vector.shape_cast %95 : vector<1x1x8x4xf32> to vector<8x4xf32>
    %cst_49 = arith.constant dense<0.000000e+00> : vector<8x256xf32>
    %97 = tpu.matmul %96, %94, %cst_49 {dimension_numbers = #tpu.dot_dimension_numbers<[1], [0], [0], [1], [0, 0, 1, 1], [], []>} : vector<8x4xf32>, vector<4x256xf32>, vector<8x256xf32> -> vector<8x256xf32>
    %98 = arith.addf %84, %97 : vector<8x256xf32>
    %c240_i32_50 = arith.constant 240 : i32
    %99 = tpu.dynamic_rotate %1 by %c240_i32_50 dim 1 : vector<4x256xf32>, i32 -> vector<4x256xf32>
    %c240_i32_51 = arith.constant 240 : i32
    %100 = vector.broadcast %c240_i32_51 : i32 to vector<1x256xi32>
    %101 = arith.cmpi slt, %2, %100 : vector<1x256xi32>
    %cst_52 = arith.constant 0.000000e+00 : f32
    %102 = vector.shape_cast %101 : vector<1x256xi1> to vector<1x256xi1>
    %103 = vector.broadcast %102 : vector<1x256xi1> to vector<4x256xi1>
    %104 = vector.broadcast %cst_52 : f32 to vector<4x256xf32>
    %105 = arith.select %103, %99, %104 : vector<4x256xi1>, vector<4x256xf32>
    %c0_53 = arith.constant 0 : index
    %c7 = arith.constant 7 : index
    %c0_54 = arith.constant 0 : index
    %c0_55 = arith.constant 0 : index
    %106 = vector.load %arg2[%c0_53, %c7, %c0_54, %c0_55] : memref<1x9x8x4xf32, #tpu.memory_space<vmem>>, vector<1x1x8x4xf32>
    %107 = vector.shape_cast %106 : vector<1x1x8x4xf32> to vector<8x4xf32>
    %cst_56 = arith.constant dense<0.000000e+00> : vector<8x256xf32>
    %108 = tpu.matmul %107, %105, %cst_56 {dimension_numbers = #tpu.dot_dimension_numbers<[1], [0], [0], [1], [0, 0, 1, 1], [], []>} : vector<8x4xf32>, vector<4x256xf32>, vector<8x256xf32> -> vector<8x256xf32>
    %109 = arith.addf %98, %108 : vector<8x256xf32>
    %c239_i32 = arith.constant 239 : i32
    %110 = tpu.dynamic_rotate %1 by %c239_i32 dim 1 : vector<4x256xf32>, i32 -> vector<4x256xf32>
    %c240_i32_57 = arith.constant 240 : i32
    %111 = vector.broadcast %c240_i32_57 : i32 to vector<1x256xi32>
    %112 = arith.cmpi slt, %2, %111 : vector<1x256xi32>
    %c15_i32_58 = arith.constant 15 : i32
    %113 = vector.broadcast %c15_i32_58 : i32 to vector<1x256xi32>
    %114 = arith.cmpi slt, %18, %113 : vector<1x256xi32>
    %115 = arith.andi %112, %114 : vector<1x256xi1>
    %cst_59 = arith.constant 0.000000e+00 : f32
    %116 = vector.shape_cast %115 : vector<1x256xi1> to vector<1x256xi1>
    %117 = vector.broadcast %116 : vector<1x256xi1> to vector<4x256xi1>
    %118 = vector.broadcast %cst_59 : f32 to vector<4x256xf32>
    %119 = arith.select %117, %110, %118 : vector<4x256xi1>, vector<4x256xf32>
    %c0_60 = arith.constant 0 : index
    %c8 = arith.constant 8 : index
    %c0_61 = arith.constant 0 : index
    %c0_62 = arith.constant 0 : index
    %120 = vector.load %arg2[%c0_60, %c8, %c0_61, %c0_62] : memref<1x9x8x4xf32, #tpu.memory_space<vmem>>, vector<1x1x8x4xf32>
    %121 = vector.shape_cast %120 : vector<1x1x8x4xf32> to vector<8x4xf32>
    %cst_63 = arith.constant dense<0.000000e+00> : vector<8x256xf32>
    %122 = tpu.matmul %121, %119, %cst_63 {dimension_numbers = #tpu.dot_dimension_numbers<[1], [0], [0], [1], [0, 0, 1, 1], [], []>} : vector<8x4xf32>, vector<4x256xf32>, vector<8x256xf32> -> vector<8x256xf32>
    %123 = arith.addf %109, %122 : vector<8x256xf32>
    %c0_64 = arith.constant 0 : index
    %c0_65 = arith.constant 0 : index
    %124 = vector.load %arg3[%c0_64, %c0_65] : memref<8x1xf32, #tpu.memory_space<vmem>>, vector<8x1xf32>
    %125 = vector.broadcast %124 : vector<8x1xf32> to vector<8x256xf32>
    %126 = arith.addf %123, %125 : vector<8x256xf32>
    %c0_66 = arith.constant 0 : index
    %c0_67 = arith.constant 0 : index
    %127 = vector.load %arg4[%c0_66, %c0_67] : memref<8x8xf32, #tpu.memory_space<vmem>>, vector<8x8xf32>
    %128 = arith.mulf %126, %126 : vector<8x256xf32>
    %cst_68 = arith.constant dense<0.000000e+00> : vector<8x256xf32>
    %129 = tpu.matmul %127, %128, %cst_68 {dimension_numbers = #tpu.dot_dimension_numbers<[1], [0], [0], [1], [0, 0, 1, 1], [], []>} : vector<8x8xf32>, vector<8x256xf32>, vector<8x256xf32> -> vector<8x256xf32>
    %c0_69 = arith.constant 0 : index
    %c0_70 = arith.constant 0 : index
    %130 = vector.load %arg5[%c0_69, %c0_70] : memref<8x1xf32, #tpu.memory_space<vmem>>, vector<8x1xf32>
    %131 = vector.broadcast %130 : vector<8x1xf32> to vector<8x256xf32>
    %132 = arith.addf %129, %131 : vector<8x256xf32>
    %133 = math.sqrt %132 : vector<8x256xf32>
    %134 = arith.mulf %126, %133 : vector<8x256xf32>
    %c0_71 = arith.constant 0 : index
    %c0_72 = arith.constant 0 : index
    %c0_73 = arith.constant 0 : index
    %c0_74 = arith.constant 0 : index
    %135 = vector.load %arg7[%c0_71, %c0_72, %c0_73, %c0_74] : memref<1x1x8x256xf32, #tpu.memory_space<vmem>>, vector<1x1x8x256xf32>
    %136 = vector.shape_cast %135 : vector<1x1x8x256xf32> to vector<8x256xf32>
    %137 = vector.shape_cast %134 : vector<8x256xf32> to vector<1x1x8x256xf32>
    tpu.vector_store %arg7[%c0_71, %c0_72, %c0_73, %c0_74], %137 {strides = array<i32>} : memref<1x1x8x256xf32, #tpu.memory_space<vmem>>, vector<1x1x8x256xf32>,
    return
  }
  func.func @transform_0(%arg0: i32, %arg1: i32) -> (i32, i32, i32, i32) {
    %c0_i32 = arith.constant 0 : i32
    %c0_i32_0 = arith.constant 0 : i32
    %c0_i32_1 = arith.constant 0 : i32
    %c0_i32_2 = arith.constant 0 : i32
    return %arg1, %c0_i32, %c0_i32_0, %c0_i32_1 : i32, i32, i32, i32
  }
  func.func @transform_1(%arg0: i32, %arg1: i32) -> (i32, i32) {
    %c0_i32 = arith.constant 0 : i32
    %c0_i32_0 = arith.constant 0 : i32
    %c0_i32_1 = arith.constant 0 : i32
    return %c0_i32, %c0_i32_0 : i32, i32
  }
  func.func @transform_2(%arg0: i32, %arg1: i32) -> (i32, i32) {
    %c0_i32 = arith.constant 0 : i32
    %c0_i32_0 = arith.constant 0 : i32
    %c0_i32_1 = arith.constant 0 : i32
    return %c0_i32, %c0_i32_0 : i32, i32
  }
  func.func @transform_3(%arg0: i32, %arg1: i32) -> (i32, i32) {
    %c0_i32 = arith.constant 0 : i32
    %c0_i32_0 = arith.constant 0 : i32
    %c0_i32_1 = arith.constant 0 : i32
    return %c0_i32, %c0_i32_0 : i32, i32
  }
  func.func @transform_4(%arg0: i32, %arg1: i32) -> (i32, i32, i32) {
    %c0_i32 = arith.constant 0 : i32
    %c0_i32_0 = arith.constant 0 : i32
    %c0_i32_1 = arith.constant 0 : i32
    return %arg0, %c0_i32, %c0_i32_0 : i32, i32, i32
  }
  func.func @transform_5(%arg0: i32, %arg1: i32) -> (i32, i32, i32, i32) {
    %c0_i32 = arith.constant 0 : i32
    %c0_i32_0 = arith.constant 0 : i32
    %c0_i32_1 = arith.constant 0 : i32
    return %arg0, %arg1, %c0_i32, %c0_i32_0 : i32, i32, i32, i32
  }
}

module attributes {stable_mosaic.version = 11 : i64} {
  func.func @kernel(%arg0: i32, %arg1: i32, %arg2: memref<1x9x8x8xf32, #tpu.memory_space<vmem>>, %arg3: memref<8x1xf32, #tpu.memory_space<vmem>>, %arg4: memref<8x8xf32, #tpu.memory_space<vmem>>, %arg5: memref<8x1xf32, #tpu.memory_space<vmem>>, %arg6: memref<1x8x1024xf32, #tpu.memory_space<vmem>>, %arg7: memref<1x1x8x1024xf32, #tpu.memory_space<vmem>>) attributes {dimension_semantics = [#tpu.dimension_semantics<parallel>, #tpu.dimension_semantics<parallel>], iteration_bounds = array<i64: 2, 4>, scalar_prefetch = 0 : i64, scratch_operands = 0 : i64, tpu.core_type = #tpu.core_type<tc>, window_params = [{transform_indices = @transform_0, window_bounds = array<i64: 1, 9, 8, 8>}, {pipeline_mode = #tpu.pipeline_mode<synchronous>, transform_indices = @transform_1, window_bounds = array<i64: 8, 1>}, {pipeline_mode = #tpu.pipeline_mode<synchronous>, transform_indices = @transform_2, window_bounds = array<i64: 8, 8>}, {pipeline_mode = #tpu.pipeline_mode<synchronous>, transform_indices = @transform_3, window_bounds = array<i64: 8, 1>}, {transform_indices = @transform_4, window_bounds = array<i64: 1, 8, 1024>}, {transform_indices = @transform_5, window_bounds = array<i64: 1, 1, 8, 1024>}]} {
    %c0 = arith.constant 0 : index
    %c0_0 = arith.constant 0 : index
    %c0_1 = arith.constant 0 : index
    %0 = vector.load %arg6[%c0, %c0_0, %c0_1] : memref<1x8x1024xf32, #tpu.memory_space<vmem>>, vector<1x8x1024xf32>
    %1 = vector.shape_cast %0 : vector<1x8x1024xf32> to vector<8x1024xf32>
    %2 = tpu.iota {dimensions = array<i32: 1>} : vector<1x1024xi32>
    %c32_i32 = arith.constant 32 : i32
    %c0_i32 = arith.constant 0 : i32
    %3 = arith.cmpi eq, %c32_i32, %c0_i32 : i32
    %c1_i32 = arith.constant 1 : i32
    %4 = arith.select %3, %c1_i32, %c32_i32 : i32
    %5 = vector.broadcast %4 : i32 to vector<1x1024xi32>
    %6 = arith.remsi %2, %5 : vector<1x1024xi32>
    %c0_i32_2 = arith.constant 0 : i32
    %7 = vector.broadcast %c0_i32_2 : i32 to vector<1x1024xi32>
    %8 = arith.cmpi ne, %6, %7 : vector<1x1024xi32>
    %c0_i32_3 = arith.constant 0 : i32
    %9 = vector.broadcast %c0_i32_3 : i32 to vector<1x1024xi32>
    %10 = arith.cmpi slt, %6, %9 : vector<1x1024xi32>
    %c0_i32_4 = arith.constant 0 : i32
    %11 = arith.cmpi slt, %4, %c0_i32_4 : i32
    %12 = vector.broadcast %11 : i1 to vector<1x1024xi1>
    %13 = vector.broadcast %12 : vector<1x1024xi1> to vector<1x1024xi1>
    %14 = arith.xori %10, %13 : vector<1x1024xi1>
    %15 = arith.andi %14, %8 : vector<1x1024xi1>
    %16 = vector.broadcast %4 : i32 to vector<1x1024xi32>
    %17 = arith.addi %6, %16 : vector<1x1024xi32>
    %18 = arith.select %15, %17, %6 : vector<1x1024xi1>, vector<1x1024xi32>
    %cst = arith.constant 0.000000e+00 : f32
    %19 = vector.broadcast %cst : f32 to vector<8x1024xf32>
    %c33_i32 = arith.constant 33 : i32
    %20 = tpu.dynamic_rotate %1 by %c33_i32 dim 1 : vector<8x1024xf32>, i32 -> vector<8x1024xf32>
    %c32_i32_5 = arith.constant 32 : i32
    %21 = vector.broadcast %c32_i32_5 : i32 to vector<1x1024xi32>
    %22 = arith.cmpi sge, %2, %21 : vector<1x1024xi32>
    %c1_i32_6 = arith.constant 1 : i32
    %23 = vector.broadcast %c1_i32_6 : i32 to vector<1x1024xi32>
    %24 = arith.cmpi sge, %18, %23 : vector<1x1024xi32>
    %25 = arith.andi %22, %24 : vector<1x1024xi1>
    %cst_7 = arith.constant 0.000000e+00 : f32
    %26 = vector.shape_cast %25 : vector<1x1024xi1> to vector<1x1024xi1>
    %27 = vector.broadcast %26 : vector<1x1024xi1> to vector<8x1024xi1>
    %28 = vector.broadcast %cst_7 : f32 to vector<8x1024xf32>
    %29 = arith.select %27, %20, %28 : vector<8x1024xi1>, vector<8x1024xf32>
    %c0_8 = arith.constant 0 : index
    %c0_9 = arith.constant 0 : index
    %c0_10 = arith.constant 0 : index
    %c0_11 = arith.constant 0 : index
    %30 = vector.load %arg2[%c0_8, %c0_9, %c0_10, %c0_11] : memref<1x9x8x8xf32, #tpu.memory_space<vmem>>, vector<1x1x8x8xf32>
    %31 = vector.shape_cast %30 : vector<1x1x8x8xf32> to vector<8x8xf32>
    %cst_12 = arith.constant dense<0.000000e+00> : vector<8x1024xf32>
    %32 = tpu.matmul %31, %29, %cst_12 {dimension_numbers = #tpu.dot_dimension_numbers<[1], [0], [0], [1], [0, 0, 1, 1], [], []>} : vector<8x8xf32>, vector<8x1024xf32>, vector<8x1024xf32> -> vector<8x1024xf32>
    %33 = arith.addf %19, %32 : vector<8x1024xf32>
    %c32_i32_13 = arith.constant 32 : i32
    %34 = tpu.dynamic_rotate %1 by %c32_i32_13 dim 1 : vector<8x1024xf32>, i32 -> vector<8x1024xf32>
    %c32_i32_14 = arith.constant 32 : i32
    %35 = vector.broadcast %c32_i32_14 : i32 to vector<1x1024xi32>
    %36 = arith.cmpi sge, %2, %35 : vector<1x1024xi32>
    %cst_15 = arith.constant 0.000000e+00 : f32
    %37 = vector.shape_cast %36 : vector<1x1024xi1> to vector<1x1024xi1>
    %38 = vector.broadcast %37 : vector<1x1024xi1> to vector<8x1024xi1>
    %39 = vector.broadcast %cst_15 : f32 to vector<8x1024xf32>
    %40 = arith.select %38, %34, %39 : vector<8x1024xi1>, vector<8x1024xf32>
    %c0_16 = arith.constant 0 : index
    %c1 = arith.constant 1 : index
    %c0_17 = arith.constant 0 : index
    %c0_18 = arith.constant 0 : index
    %41 = vector.load %arg2[%c0_16, %c1, %c0_17, %c0_18] : memref<1x9x8x8xf32, #tpu.memory_space<vmem>>, vector<1x1x8x8xf32>
    %42 = vector.shape_cast %41 : vector<1x1x8x8xf32> to vector<8x8xf32>
    %cst_19 = arith.constant dense<0.000000e+00> : vector<8x1024xf32>
    %43 = tpu.matmul %42, %40, %cst_19 {dimension_numbers = #tpu.dot_dimension_numbers<[1], [0], [0], [1], [0, 0, 1, 1], [], []>} : vector<8x8xf32>, vector<8x1024xf32>, vector<8x1024xf32> -> vector<8x1024xf32>
    %44 = arith.addf %33, %43 : vector<8x1024xf32>
    %c31_i32 = arith.constant 31 : i32
    %45 = tpu.dynamic_rotate %1 by %c31_i32 dim 1 : vector<8x1024xf32>, i32 -> vector<8x1024xf32>
    %c32_i32_20 = arith.constant 32 : i32
    %46 = vector.broadcast %c32_i32_20 : i32 to vector<1x1024xi32>
    %47 = arith.cmpi sge, %2, %46 : vector<1x1024xi32>
    %c31_i32_21 = arith.constant 31 : i32
    %48 = vector.broadcast %c31_i32_21 : i32 to vector<1x1024xi32>
    %49 = arith.cmpi slt, %18, %48 : vector<1x1024xi32>
    %50 = arith.andi %47, %49 : vector<1x1024xi1>
    %cst_22 = arith.constant 0.000000e+00 : f32
    %51 = vector.shape_cast %50 : vector<1x1024xi1> to vector<1x1024xi1>
    %52 = vector.broadcast %51 : vector<1x1024xi1> to vector<8x1024xi1>
    %53 = vector.broadcast %cst_22 : f32 to vector<8x1024xf32>
    %54 = arith.select %52, %45, %53 : vector<8x1024xi1>, vector<8x1024xf32>
    %c0_23 = arith.constant 0 : index
    %c2 = arith.constant 2 : index
    %c0_24 = arith.constant 0 : index
    %c0_25 = arith.constant 0 : index
    %55 = vector.load %arg2[%c0_23, %c2, %c0_24, %c0_25] : memref<1x9x8x8xf32, #tpu.memory_space<vmem>>, vector<1x1x8x8xf32>
    %56 = vector.shape_cast %55 : vector<1x1x8x8xf32> to vector<8x8xf32>
    %cst_26 = arith.constant dense<0.000000e+00> : vector<8x1024xf32>
    %57 = tpu.matmul %56, %54, %cst_26 {dimension_numbers = #tpu.dot_dimension_numbers<[1], [0], [0], [1], [0, 0, 1, 1], [], []>} : vector<8x8xf32>, vector<8x1024xf32>, vector<8x1024xf32> -> vector<8x1024xf32>
    %58 = arith.addf %44, %57 : vector<8x1024xf32>
    %c1_i32_27 = arith.constant 1 : i32
    %59 = tpu.dynamic_rotate %1 by %c1_i32_27 dim 1 : vector<8x1024xf32>, i32 -> vector<8x1024xf32>
    %c1_i32_28 = arith.constant 1 : i32
    %60 = vector.broadcast %c1_i32_28 : i32 to vector<1x1024xi32>
    %61 = arith.cmpi sge, %18, %60 : vector<1x1024xi32>
    %cst_29 = arith.constant 0.000000e+00 : f32
    %62 = vector.shape_cast %61 : vector<1x1024xi1> to vector<1x1024xi1>
    %63 = vector.broadcast %62 : vector<1x1024xi1> to vector<8x1024xi1>
    %64 = vector.broadcast %cst_29 : f32 to vector<8x1024xf32>
    %65 = arith.select %63, %59, %64 : vector<8x1024xi1>, vector<8x1024xf32>
    %c0_30 = arith.constant 0 : index
    %c3 = arith.constant 3 : index
    %c0_31 = arith.constant 0 : index
    %c0_32 = arith.constant 0 : index
    %66 = vector.load %arg2[%c0_30, %c3, %c0_31, %c0_32] : memref<1x9x8x8xf32, #tpu.memory_space<vmem>>, vector<1x1x8x8xf32>
    %67 = vector.shape_cast %66 : vector<1x1x8x8xf32> to vector<8x8xf32>
    %cst_33 = arith.constant dense<0.000000e+00> : vector<8x1024xf32>
    %68 = tpu.matmul %67, %65, %cst_33 {dimension_numbers = #tpu.dot_dimension_numbers<[1], [0], [0], [1], [0, 0, 1, 1], [], []>} : vector<8x8xf32>, vector<8x1024xf32>, vector<8x1024xf32> -> vector<8x1024xf32>
    %69 = arith.addf %58, %68 : vector<8x1024xf32>
    %c0_34 = arith.constant 0 : index
    %c4 = arith.constant 4 : index
    %c0_35 = arith.constant 0 : index
    %c0_36 = arith.constant 0 : index
    %70 = vector.load %arg2[%c0_34, %c4, %c0_35, %c0_36] : memref<1x9x8x8xf32, #tpu.memory_space<vmem>>, vector<1x1x8x8xf32>
    %71 = vector.shape_cast %70 : vector<1x1x8x8xf32> to vector<8x8xf32>
    %cst_37 = arith.constant dense<0.000000e+00> : vector<8x1024xf32>
    %72 = tpu.matmul %71, %1, %cst_37 {dimension_numbers = #tpu.dot_dimension_numbers<[1], [0], [0], [1], [0, 0, 1, 1], [], []>} : vector<8x8xf32>, vector<8x1024xf32>, vector<8x1024xf32> -> vector<8x1024xf32>
    %73 = arith.addf %69, %72 : vector<8x1024xf32>
    %c1023_i32 = arith.constant 1023 : i32
    %74 = tpu.dynamic_rotate %1 by %c1023_i32 dim 1 : vector<8x1024xf32>, i32 -> vector<8x1024xf32>
    %c31_i32_38 = arith.constant 31 : i32
    %75 = vector.broadcast %c31_i32_38 : i32 to vector<1x1024xi32>
    %76 = arith.cmpi slt, %18, %75 : vector<1x1024xi32>
    %cst_39 = arith.constant 0.000000e+00 : f32
    %77 = vector.shape_cast %76 : vector<1x1024xi1> to vector<1x1024xi1>
    %78 = vector.broadcast %77 : vector<1x1024xi1> to vector<8x1024xi1>
    %79 = vector.broadcast %cst_39 : f32 to vector<8x1024xf32>
    %80 = arith.select %78, %74, %79 : vector<8x1024xi1>, vector<8x1024xf32>
    %c0_40 = arith.constant 0 : index
    %c5 = arith.constant 5 : index
    %c0_41 = arith.constant 0 : index
    %c0_42 = arith.constant 0 : index
    %81 = vector.load %arg2[%c0_40, %c5, %c0_41, %c0_42] : memref<1x9x8x8xf32, #tpu.memory_space<vmem>>, vector<1x1x8x8xf32>
    %82 = vector.shape_cast %81 : vector<1x1x8x8xf32> to vector<8x8xf32>
    %cst_43 = arith.constant dense<0.000000e+00> : vector<8x1024xf32>
    %83 = tpu.matmul %82, %80, %cst_43 {dimension_numbers = #tpu.dot_dimension_numbers<[1], [0], [0], [1], [0, 0, 1, 1], [], []>} : vector<8x8xf32>, vector<8x1024xf32>, vector<8x1024xf32> -> vector<8x1024xf32>
    %84 = arith.addf %73, %83 : vector<8x1024xf32>
    %c993_i32 = arith.constant 993 : i32
    %85 = tpu.dynamic_rotate %1 by %c993_i32 dim 1 : vector<8x1024xf32>, i32 -> vector<8x1024xf32>
    %c992_i32 = arith.constant 992 : i32
    %86 = vector.broadcast %c992_i32 : i32 to vector<1x1024xi32>
    %87 = arith.cmpi slt, %2, %86 : vector<1x1024xi32>
    %c1_i32_44 = arith.constant 1 : i32
    %88 = vector.broadcast %c1_i32_44 : i32 to vector<1x1024xi32>
    %89 = arith.cmpi sge, %18, %88 : vector<1x1024xi32>
    %90 = arith.andi %87, %89 : vector<1x1024xi1>
    %cst_45 = arith.constant 0.000000e+00 : f32
    %91 = vector.shape_cast %90 : vector<1x1024xi1> to vector<1x1024xi1>
    %92 = vector.broadcast %91 : vector<1x1024xi1> to vector<8x1024xi1>
    %93 = vector.broadcast %cst_45 : f32 to vector<8x1024xf32>
    %94 = arith.select %92, %85, %93 : vector<8x1024xi1>, vector<8x1024xf32>
    %c0_46 = arith.constant 0 : index
    %c6 = arith.constant 6 : index
    %c0_47 = arith.constant 0 : index
    %c0_48 = arith.constant 0 : index
    %95 = vector.load %arg2[%c0_46, %c6, %c0_47, %c0_48] : memref<1x9x8x8xf32, #tpu.memory_space<vmem>>, vector<1x1x8x8xf32>
    %96 = vector.shape_cast %95 : vector<1x1x8x8xf32> to vector<8x8xf32>
    %cst_49 = arith.constant dense<0.000000e+00> : vector<8x1024xf32>
    %97 = tpu.matmul %96, %94, %cst_49 {dimension_numbers = #tpu.dot_dimension_numbers<[1], [0], [0], [1], [0, 0, 1, 1], [], []>} : vector<8x8xf32>, vector<8x1024xf32>, vector<8x1024xf32> -> vector<8x1024xf32>
    %98 = arith.addf %84, %97 : vector<8x1024xf32>
    %c992_i32_50 = arith.constant 992 : i32
    %99 = tpu.dynamic_rotate %1 by %c992_i32_50 dim 1 : vector<8x1024xf32>, i32 -> vector<8x1024xf32>
    %c992_i32_51 = arith.constant 992 : i32
    %100 = vector.broadcast %c992_i32_51 : i32 to vector<1x1024xi32>
    %101 = arith.cmpi slt, %2, %100 : vector<1x1024xi32>
    %cst_52 = arith.constant 0.000000e+00 : f32
    %102 = vector.shape_cast %101 : vector<1x1024xi1> to vector<1x1024xi1>
    %103 = vector.broadcast %102 : vector<1x1024xi1> to vector<8x1024xi1>
    %104 = vector.broadcast %cst_52 : f32 to vector<8x1024xf32>
    %105 = arith.select %103, %99, %104 : vector<8x1024xi1>, vector<8x1024xf32>
    %c0_53 = arith.constant 0 : index
    %c7 = arith.constant 7 : index
    %c0_54 = arith.constant 0 : index
    %c0_55 = arith.constant 0 : index
    %106 = vector.load %arg2[%c0_53, %c7, %c0_54, %c0_55] : memref<1x9x8x8xf32, #tpu.memory_space<vmem>>, vector<1x1x8x8xf32>
    %107 = vector.shape_cast %106 : vector<1x1x8x8xf32> to vector<8x8xf32>
    %cst_56 = arith.constant dense<0.000000e+00> : vector<8x1024xf32>
    %108 = tpu.matmul %107, %105, %cst_56 {dimension_numbers = #tpu.dot_dimension_numbers<[1], [0], [0], [1], [0, 0, 1, 1], [], []>} : vector<8x8xf32>, vector<8x1024xf32>, vector<8x1024xf32> -> vector<8x1024xf32>
    %109 = arith.addf %98, %108 : vector<8x1024xf32>
    %c991_i32 = arith.constant 991 : i32
    %110 = tpu.dynamic_rotate %1 by %c991_i32 dim 1 : vector<8x1024xf32>, i32 -> vector<8x1024xf32>
    %c992_i32_57 = arith.constant 992 : i32
    %111 = vector.broadcast %c992_i32_57 : i32 to vector<1x1024xi32>
    %112 = arith.cmpi slt, %2, %111 : vector<1x1024xi32>
    %c31_i32_58 = arith.constant 31 : i32
    %113 = vector.broadcast %c31_i32_58 : i32 to vector<1x1024xi32>
    %114 = arith.cmpi slt, %18, %113 : vector<1x1024xi32>
    %115 = arith.andi %112, %114 : vector<1x1024xi1>
    %cst_59 = arith.constant 0.000000e+00 : f32
    %116 = vector.shape_cast %115 : vector<1x1024xi1> to vector<1x1024xi1>
    %117 = vector.broadcast %116 : vector<1x1024xi1> to vector<8x1024xi1>
    %118 = vector.broadcast %cst_59 : f32 to vector<8x1024xf32>
    %119 = arith.select %117, %110, %118 : vector<8x1024xi1>, vector<8x1024xf32>
    %c0_60 = arith.constant 0 : index
    %c8 = arith.constant 8 : index
    %c0_61 = arith.constant 0 : index
    %c0_62 = arith.constant 0 : index
    %120 = vector.load %arg2[%c0_60, %c8, %c0_61, %c0_62] : memref<1x9x8x8xf32, #tpu.memory_space<vmem>>, vector<1x1x8x8xf32>
    %121 = vector.shape_cast %120 : vector<1x1x8x8xf32> to vector<8x8xf32>
    %cst_63 = arith.constant dense<0.000000e+00> : vector<8x1024xf32>
    %122 = tpu.matmul %121, %119, %cst_63 {dimension_numbers = #tpu.dot_dimension_numbers<[1], [0], [0], [1], [0, 0, 1, 1], [], []>} : vector<8x8xf32>, vector<8x1024xf32>, vector<8x1024xf32> -> vector<8x1024xf32>
    %123 = arith.addf %109, %122 : vector<8x1024xf32>
    %c0_64 = arith.constant 0 : index
    %c0_65 = arith.constant 0 : index
    %124 = vector.load %arg3[%c0_64, %c0_65] : memref<8x1xf32, #tpu.memory_space<vmem>>, vector<8x1xf32>
    %125 = vector.broadcast %124 : vector<8x1xf32> to vector<8x1024xf32>
    %126 = arith.addf %123, %125 : vector<8x1024xf32>
    %c0_66 = arith.constant 0 : index
    %c0_67 = arith.constant 0 : index
    %127 = vector.load %arg4[%c0_66, %c0_67] : memref<8x8xf32, #tpu.memory_space<vmem>>, vector<8x8xf32>
    %128 = arith.mulf %126, %126 : vector<8x1024xf32>
    %cst_68 = arith.constant dense<0.000000e+00> : vector<8x1024xf32>
    %129 = tpu.matmul %127, %128, %cst_68 {dimension_numbers = #tpu.dot_dimension_numbers<[1], [0], [0], [1], [0, 0, 1, 1], [], []>} : vector<8x8xf32>, vector<8x1024xf32>, vector<8x1024xf32> -> vector<8x1024xf32>
    %c0_69 = arith.constant 0 : index
    %c0_70 = arith.constant 0 : index
    %130 = vector.load %arg5[%c0_69, %c0_70] : memref<8x1xf32, #tpu.memory_space<vmem>>, vector<8x1xf32>
    %131 = vector.broadcast %130 : vector<8x1xf32> to vector<8x1024xf32>
    %132 = arith.addf %129, %131 : vector<8x1024xf32>
    %133 = math.sqrt %132 : vector<8x1024xf32>
    %134 = arith.mulf %126, %133 : vector<8x1024xf32>
    %c0_71 = arith.constant 0 : index
    %c0_72 = arith.constant 0 : index
    %c0_73 = arith.constant 0 : index
    %c0_74 = arith.constant 0 : index
    %135 = vector.load %arg7[%c0_71, %c0_72, %c0_73, %c0_74] : memref<1x1x8x1024xf32, #tpu.memory_space<vmem>>, vector<1x1x8x1024xf32>
    %136 = vector.shape_cast %135 : vector<1x1x8x1024xf32> to vector<8x1024xf32>
    %137 = vector.shape_cast %134 : vector<8x1024xf32> to vector<1x1x8x1024xf32>
    tpu.vector_store %arg7[%c0_71, %c0_72, %c0_73, %c0_74], %137 {strides = array<i32>} : memref<1x1x8x1024xf32, #tpu.memory_space<vmem>>, vector<1x1x8x1024xf32>,
    return
  }
  func.func @transform_0(%arg0: i32, %arg1: i32) -> (i32, i32, i32, i32) {
    %c0_i32 = arith.constant 0 : i32
    %c0_i32_0 = arith.constant 0 : i32
    %c0_i32_1 = arith.constant 0 : i32
    %c0_i32_2 = arith.constant 0 : i32
    return %arg1, %c0_i32, %c0_i32_0, %c0_i32_1 : i32, i32, i32, i32
  }
  func.func @transform_1(%arg0: i32, %arg1: i32) -> (i32, i32) {
    %c0_i32 = arith.constant 0 : i32
    %c0_i32_0 = arith.constant 0 : i32
    %c0_i32_1 = arith.constant 0 : i32
    return %c0_i32, %c0_i32_0 : i32, i32
  }
  func.func @transform_2(%arg0: i32, %arg1: i32) -> (i32, i32) {
    %c0_i32 = arith.constant 0 : i32
    %c0_i32_0 = arith.constant 0 : i32
    %c0_i32_1 = arith.constant 0 : i32
    return %c0_i32, %c0_i32_0 : i32, i32
  }
  func.func @transform_3(%arg0: i32, %arg1: i32) -> (i32, i32) {
    %c0_i32 = arith.constant 0 : i32
    %c0_i32_0 = arith.constant 0 : i32
    %c0_i32_1 = arith.constant 0 : i32
    return %c0_i32, %c0_i32_0 : i32, i32
  }
  func.func @transform_4(%arg0: i32, %arg1: i32) -> (i32, i32, i32) {
    %c0_i32 = arith.constant 0 : i32
    %c0_i32_0 = arith.constant 0 : i32
    %c0_i32_1 = arith.constant 0 : i32
    return %arg0, %c0_i32, %c0_i32_0 : i32, i32, i32
  }
  func.func @transform_5(%arg0: i32, %arg1: i32) -> (i32, i32, i32, i32) {
    %c0_i32 = arith.constant 0 : i32
    %c0_i32_0 = arith.constant 0 : i32
    %c0_i32_1 = arith.constant 0 : i32
    return %arg0, %arg1, %c0_i32, %c0_i32_0 : i32, i32, i32, i32
  }
}

module attributes {stable_mosaic.version = 11 : i64} {
  func.func @kernel(%arg0: i32, %arg1: i32, %arg2: memref<1x9x4x8xf32, #tpu.memory_space<vmem>>, %arg3: memref<4x1xf32, #tpu.memory_space<vmem>>, %arg4: memref<4x4xf32, #tpu.memory_space<vmem>>, %arg5: memref<4x1xf32, #tpu.memory_space<vmem>>, %arg6: memref<1x8x4096xf32, #tpu.memory_space<vmem>>, %arg7: memref<1x1x4x4096xf32, #tpu.memory_space<vmem>>) attributes {dimension_semantics = [#tpu.dimension_semantics<parallel>, #tpu.dimension_semantics<parallel>], iteration_bounds = array<i64: 2, 4>, scalar_prefetch = 0 : i64, scratch_operands = 0 : i64, tpu.core_type = #tpu.core_type<tc>, window_params = [{transform_indices = @transform_0, window_bounds = array<i64: 1, 9, 4, 8>}, {pipeline_mode = #tpu.pipeline_mode<synchronous>, transform_indices = @transform_1, window_bounds = array<i64: 4, 1>}, {pipeline_mode = #tpu.pipeline_mode<synchronous>, transform_indices = @transform_2, window_bounds = array<i64: 4, 4>}, {pipeline_mode = #tpu.pipeline_mode<synchronous>, transform_indices = @transform_3, window_bounds = array<i64: 4, 1>}, {transform_indices = @transform_4, window_bounds = array<i64: 1, 8, 4096>}, {transform_indices = @transform_5, window_bounds = array<i64: 1, 1, 4, 4096>}]} {
    %c0 = arith.constant 0 : index
    %c0_0 = arith.constant 0 : index
    %c0_1 = arith.constant 0 : index
    %0 = vector.load %arg6[%c0, %c0_0, %c0_1] : memref<1x8x4096xf32, #tpu.memory_space<vmem>>, vector<1x8x4096xf32>
    %1 = vector.shape_cast %0 : vector<1x8x4096xf32> to vector<8x4096xf32>
    %2 = tpu.iota {dimensions = array<i32: 1>} : vector<1x4096xi32>
    %c64_i32 = arith.constant 64 : i32
    %c0_i32 = arith.constant 0 : i32
    %3 = arith.cmpi eq, %c64_i32, %c0_i32 : i32
    %c1_i32 = arith.constant 1 : i32
    %4 = arith.select %3, %c1_i32, %c64_i32 : i32
    %5 = vector.broadcast %4 : i32 to vector<1x4096xi32>
    %6 = arith.remsi %2, %5 : vector<1x4096xi32>
    %c0_i32_2 = arith.constant 0 : i32
    %7 = vector.broadcast %c0_i32_2 : i32 to vector<1x4096xi32>
    %8 = arith.cmpi ne, %6, %7 : vector<1x4096xi32>
    %c0_i32_3 = arith.constant 0 : i32
    %9 = vector.broadcast %c0_i32_3 : i32 to vector<1x4096xi32>
    %10 = arith.cmpi slt, %6, %9 : vector<1x4096xi32>
    %c0_i32_4 = arith.constant 0 : i32
    %11 = arith.cmpi slt, %4, %c0_i32_4 : i32
    %12 = vector.broadcast %11 : i1 to vector<1x4096xi1>
    %13 = vector.broadcast %12 : vector<1x4096xi1> to vector<1x4096xi1>
    %14 = arith.xori %10, %13 : vector<1x4096xi1>
    %15 = arith.andi %14, %8 : vector<1x4096xi1>
    %16 = vector.broadcast %4 : i32 to vector<1x4096xi32>
    %17 = arith.addi %6, %16 : vector<1x4096xi32>
    %18 = arith.select %15, %17, %6 : vector<1x4096xi1>, vector<1x4096xi32>
    %cst = arith.constant 0.000000e+00 : f32
    %19 = vector.broadcast %cst : f32 to vector<4x4096xf32>
    %c65_i32 = arith.constant 65 : i32
    %20 = tpu.dynamic_rotate %1 by %c65_i32 dim 1 : vector<8x4096xf32>, i32 -> vector<8x4096xf32>
    %c64_i32_5 = arith.constant 64 : i32
    %21 = vector.broadcast %c64_i32_5 : i32 to vector<1x4096xi32>
    %22 = arith.cmpi sge, %2, %21 : vector<1x4096xi32>
    %c1_i32_6 = arith.constant 1 : i32
    %23 = vector.broadcast %c1_i32_6 : i32 to vector<1x4096xi32>
    %24 = arith.cmpi sge, %18, %23 : vector<1x4096xi32>
    %25 = arith.andi %22, %24 : vector<1x4096xi1>
    %cst_7 = arith.constant 0.000000e+00 : f32
    %26 = vector.shape_cast %25 : vector<1x4096xi1> to vector<1x4096xi1>
    %27 = vector.broadcast %26 : vector<1x4096xi1> to vector<8x4096xi1>
    %28 = vector.broadcast %cst_7 : f32 to vector<8x4096xf32>
    %29 = arith.select %27, %20, %28 : vector<8x4096xi1>, vector<8x4096xf32>
    %c0_8 = arith.constant 0 : index
    %c0_9 = arith.constant 0 : index
    %c0_10 = arith.constant 0 : index
    %c0_11 = arith.constant 0 : index
    %30 = vector.load %arg2[%c0_8, %c0_9, %c0_10, %c0_11] : memref<1x9x4x8xf32, #tpu.memory_space<vmem>>, vector<1x1x4x8xf32>
    %31 = vector.shape_cast %30 : vector<1x1x4x8xf32> to vector<4x8xf32>
    %cst_12 = arith.constant dense<0.000000e+00> : vector<4x4096xf32>
    %32 = tpu.matmul %31, %29, %cst_12 {dimension_numbers = #tpu.dot_dimension_numbers<[1], [0], [0], [1], [0, 0, 1, 1], [], []>} : vector<4x8xf32>, vector<8x4096xf32>, vector<4x4096xf32> -> vector<4x4096xf32>
    %33 = arith.addf %19, %32 : vector<4x4096xf32>
    %c64_i32_13 = arith.constant 64 : i32
    %34 = tpu.dynamic_rotate %1 by %c64_i32_13 dim 1 : vector<8x4096xf32>, i32 -> vector<8x4096xf32>
    %c64_i32_14 = arith.constant 64 : i32
    %35 = vector.broadcast %c64_i32_14 : i32 to vector<1x4096xi32>
    %36 = arith.cmpi sge, %2, %35 : vector<1x4096xi32>
    %cst_15 = arith.constant 0.000000e+00 : f32
    %37 = vector.shape_cast %36 : vector<1x4096xi1> to vector<1x4096xi1>
    %38 = vector.broadcast %37 : vector<1x4096xi1> to vector<8x4096xi1>
    %39 = vector.broadcast %cst_15 : f32 to vector<8x4096xf32>
    %40 = arith.select %38, %34, %39 : vector<8x4096xi1>, vector<8x4096xf32>
    %c0_16 = arith.constant 0 : index
    %c1 = arith.constant 1 : index
    %c0_17 = arith.constant 0 : index
    %c0_18 = arith.constant 0 : index
    %41 = vector.load %arg2[%c0_16, %c1, %c0_17, %c0_18] : memref<1x9x4x8xf32, #tpu.memory_space<vmem>>, vector<1x1x4x8xf32>
    %42 = vector.shape_cast %41 : vector<1x1x4x8xf32> to vector<4x8xf32>
    %cst_19 = arith.constant dense<0.000000e+00> : vector<4x4096xf32>
    %43 = tpu.matmul %42, %40, %cst_19 {dimension_numbers = #tpu.dot_dimension_numbers<[1], [0], [0], [1], [0, 0, 1, 1], [], []>} : vector<4x8xf32>, vector<8x4096xf32>, vector<4x4096xf32> -> vector<4x4096xf32>
    %44 = arith.addf %33, %43 : vector<4x4096xf32>
    %c63_i32 = arith.constant 63 : i32
    %45 = tpu.dynamic_rotate %1 by %c63_i32 dim 1 : vector<8x4096xf32>, i32 -> vector<8x4096xf32>
    %c64_i32_20 = arith.constant 64 : i32
    %46 = vector.broadcast %c64_i32_20 : i32 to vector<1x4096xi32>
    %47 = arith.cmpi sge, %2, %46 : vector<1x4096xi32>
    %c63_i32_21 = arith.constant 63 : i32
    %48 = vector.broadcast %c63_i32_21 : i32 to vector<1x4096xi32>
    %49 = arith.cmpi slt, %18, %48 : vector<1x4096xi32>
    %50 = arith.andi %47, %49 : vector<1x4096xi1>
    %cst_22 = arith.constant 0.000000e+00 : f32
    %51 = vector.shape_cast %50 : vector<1x4096xi1> to vector<1x4096xi1>
    %52 = vector.broadcast %51 : vector<1x4096xi1> to vector<8x4096xi1>
    %53 = vector.broadcast %cst_22 : f32 to vector<8x4096xf32>
    %54 = arith.select %52, %45, %53 : vector<8x4096xi1>, vector<8x4096xf32>
    %c0_23 = arith.constant 0 : index
    %c2 = arith.constant 2 : index
    %c0_24 = arith.constant 0 : index
    %c0_25 = arith.constant 0 : index
    %55 = vector.load %arg2[%c0_23, %c2, %c0_24, %c0_25] : memref<1x9x4x8xf32, #tpu.memory_space<vmem>>, vector<1x1x4x8xf32>
    %56 = vector.shape_cast %55 : vector<1x1x4x8xf32> to vector<4x8xf32>
    %cst_26 = arith.constant dense<0.000000e+00> : vector<4x4096xf32>
    %57 = tpu.matmul %56, %54, %cst_26 {dimension_numbers = #tpu.dot_dimension_numbers<[1], [0], [0], [1], [0, 0, 1, 1], [], []>} : vector<4x8xf32>, vector<8x4096xf32>, vector<4x4096xf32> -> vector<4x4096xf32>
    %58 = arith.addf %44, %57 : vector<4x4096xf32>
    %c1_i32_27 = arith.constant 1 : i32
    %59 = tpu.dynamic_rotate %1 by %c1_i32_27 dim 1 : vector<8x4096xf32>, i32 -> vector<8x4096xf32>
    %c1_i32_28 = arith.constant 1 : i32
    %60 = vector.broadcast %c1_i32_28 : i32 to vector<1x4096xi32>
    %61 = arith.cmpi sge, %18, %60 : vector<1x4096xi32>
    %cst_29 = arith.constant 0.000000e+00 : f32
    %62 = vector.shape_cast %61 : vector<1x4096xi1> to vector<1x4096xi1>
    %63 = vector.broadcast %62 : vector<1x4096xi1> to vector<8x4096xi1>
    %64 = vector.broadcast %cst_29 : f32 to vector<8x4096xf32>
    %65 = arith.select %63, %59, %64 : vector<8x4096xi1>, vector<8x4096xf32>
    %c0_30 = arith.constant 0 : index
    %c3 = arith.constant 3 : index
    %c0_31 = arith.constant 0 : index
    %c0_32 = arith.constant 0 : index
    %66 = vector.load %arg2[%c0_30, %c3, %c0_31, %c0_32] : memref<1x9x4x8xf32, #tpu.memory_space<vmem>>, vector<1x1x4x8xf32>
    %67 = vector.shape_cast %66 : vector<1x1x4x8xf32> to vector<4x8xf32>
    %cst_33 = arith.constant dense<0.000000e+00> : vector<4x4096xf32>
    %68 = tpu.matmul %67, %65, %cst_33 {dimension_numbers = #tpu.dot_dimension_numbers<[1], [0], [0], [1], [0, 0, 1, 1], [], []>} : vector<4x8xf32>, vector<8x4096xf32>, vector<4x4096xf32> -> vector<4x4096xf32>
    %69 = arith.addf %58, %68 : vector<4x4096xf32>
    %c0_34 = arith.constant 0 : index
    %c4 = arith.constant 4 : index
    %c0_35 = arith.constant 0 : index
    %c0_36 = arith.constant 0 : index
    %70 = vector.load %arg2[%c0_34, %c4, %c0_35, %c0_36] : memref<1x9x4x8xf32, #tpu.memory_space<vmem>>, vector<1x1x4x8xf32>
    %71 = vector.shape_cast %70 : vector<1x1x4x8xf32> to vector<4x8xf32>
    %cst_37 = arith.constant dense<0.000000e+00> : vector<4x4096xf32>
    %72 = tpu.matmul %71, %1, %cst_37 {dimension_numbers = #tpu.dot_dimension_numbers<[1], [0], [0], [1], [0, 0, 1, 1], [], []>} : vector<4x8xf32>, vector<8x4096xf32>, vector<4x4096xf32> -> vector<4x4096xf32>
    %73 = arith.addf %69, %72 : vector<4x4096xf32>
    %c4095_i32 = arith.constant 4095 : i32
    %74 = tpu.dynamic_rotate %1 by %c4095_i32 dim 1 : vector<8x4096xf32>, i32 -> vector<8x4096xf32>
    %c63_i32_38 = arith.constant 63 : i32
    %75 = vector.broadcast %c63_i32_38 : i32 to vector<1x4096xi32>
    %76 = arith.cmpi slt, %18, %75 : vector<1x4096xi32>
    %cst_39 = arith.constant 0.000000e+00 : f32
    %77 = vector.shape_cast %76 : vector<1x4096xi1> to vector<1x4096xi1>
    %78 = vector.broadcast %77 : vector<1x4096xi1> to vector<8x4096xi1>
    %79 = vector.broadcast %cst_39 : f32 to vector<8x4096xf32>
    %80 = arith.select %78, %74, %79 : vector<8x4096xi1>, vector<8x4096xf32>
    %c0_40 = arith.constant 0 : index
    %c5 = arith.constant 5 : index
    %c0_41 = arith.constant 0 : index
    %c0_42 = arith.constant 0 : index
    %81 = vector.load %arg2[%c0_40, %c5, %c0_41, %c0_42] : memref<1x9x4x8xf32, #tpu.memory_space<vmem>>, vector<1x1x4x8xf32>
    %82 = vector.shape_cast %81 : vector<1x1x4x8xf32> to vector<4x8xf32>
    %cst_43 = arith.constant dense<0.000000e+00> : vector<4x4096xf32>
    %83 = tpu.matmul %82, %80, %cst_43 {dimension_numbers = #tpu.dot_dimension_numbers<[1], [0], [0], [1], [0, 0, 1, 1], [], []>} : vector<4x8xf32>, vector<8x4096xf32>, vector<4x4096xf32> -> vector<4x4096xf32>
    %84 = arith.addf %73, %83 : vector<4x4096xf32>
    %c4033_i32 = arith.constant 4033 : i32
    %85 = tpu.dynamic_rotate %1 by %c4033_i32 dim 1 : vector<8x4096xf32>, i32 -> vector<8x4096xf32>
    %c4032_i32 = arith.constant 4032 : i32
    %86 = vector.broadcast %c4032_i32 : i32 to vector<1x4096xi32>
    %87 = arith.cmpi slt, %2, %86 : vector<1x4096xi32>
    %c1_i32_44 = arith.constant 1 : i32
    %88 = vector.broadcast %c1_i32_44 : i32 to vector<1x4096xi32>
    %89 = arith.cmpi sge, %18, %88 : vector<1x4096xi32>
    %90 = arith.andi %87, %89 : vector<1x4096xi1>
    %cst_45 = arith.constant 0.000000e+00 : f32
    %91 = vector.shape_cast %90 : vector<1x4096xi1> to vector<1x4096xi1>
    %92 = vector.broadcast %91 : vector<1x4096xi1> to vector<8x4096xi1>
    %93 = vector.broadcast %cst_45 : f32 to vector<8x4096xf32>
    %94 = arith.select %92, %85, %93 : vector<8x4096xi1>, vector<8x4096xf32>
    %c0_46 = arith.constant 0 : index
    %c6 = arith.constant 6 : index
    %c0_47 = arith.constant 0 : index
    %c0_48 = arith.constant 0 : index
    %95 = vector.load %arg2[%c0_46, %c6, %c0_47, %c0_48] : memref<1x9x4x8xf32, #tpu.memory_space<vmem>>, vector<1x1x4x8xf32>
    %96 = vector.shape_cast %95 : vector<1x1x4x8xf32> to vector<4x8xf32>
    %cst_49 = arith.constant dense<0.000000e+00> : vector<4x4096xf32>
    %97 = tpu.matmul %96, %94, %cst_49 {dimension_numbers = #tpu.dot_dimension_numbers<[1], [0], [0], [1], [0, 0, 1, 1], [], []>} : vector<4x8xf32>, vector<8x4096xf32>, vector<4x4096xf32> -> vector<4x4096xf32>
    %98 = arith.addf %84, %97 : vector<4x4096xf32>
    %c4032_i32_50 = arith.constant 4032 : i32
    %99 = tpu.dynamic_rotate %1 by %c4032_i32_50 dim 1 : vector<8x4096xf32>, i32 -> vector<8x4096xf32>
    %c4032_i32_51 = arith.constant 4032 : i32
    %100 = vector.broadcast %c4032_i32_51 : i32 to vector<1x4096xi32>
    %101 = arith.cmpi slt, %2, %100 : vector<1x4096xi32>
    %cst_52 = arith.constant 0.000000e+00 : f32
    %102 = vector.shape_cast %101 : vector<1x4096xi1> to vector<1x4096xi1>
    %103 = vector.broadcast %102 : vector<1x4096xi1> to vector<8x4096xi1>
    %104 = vector.broadcast %cst_52 : f32 to vector<8x4096xf32>
    %105 = arith.select %103, %99, %104 : vector<8x4096xi1>, vector<8x4096xf32>
    %c0_53 = arith.constant 0 : index
    %c7 = arith.constant 7 : index
    %c0_54 = arith.constant 0 : index
    %c0_55 = arith.constant 0 : index
    %106 = vector.load %arg2[%c0_53, %c7, %c0_54, %c0_55] : memref<1x9x4x8xf32, #tpu.memory_space<vmem>>, vector<1x1x4x8xf32>
    %107 = vector.shape_cast %106 : vector<1x1x4x8xf32> to vector<4x8xf32>
    %cst_56 = arith.constant dense<0.000000e+00> : vector<4x4096xf32>
    %108 = tpu.matmul %107, %105, %cst_56 {dimension_numbers = #tpu.dot_dimension_numbers<[1], [0], [0], [1], [0, 0, 1, 1], [], []>} : vector<4x8xf32>, vector<8x4096xf32>, vector<4x4096xf32> -> vector<4x4096xf32>
    %109 = arith.addf %98, %108 : vector<4x4096xf32>
    %c4031_i32 = arith.constant 4031 : i32
    %110 = tpu.dynamic_rotate %1 by %c4031_i32 dim 1 : vector<8x4096xf32>, i32 -> vector<8x4096xf32>
    %c4032_i32_57 = arith.constant 4032 : i32
    %111 = vector.broadcast %c4032_i32_57 : i32 to vector<1x4096xi32>
    %112 = arith.cmpi slt, %2, %111 : vector<1x4096xi32>
    %c63_i32_58 = arith.constant 63 : i32
    %113 = vector.broadcast %c63_i32_58 : i32 to vector<1x4096xi32>
    %114 = arith.cmpi slt, %18, %113 : vector<1x4096xi32>
    %115 = arith.andi %112, %114 : vector<1x4096xi1>
    %cst_59 = arith.constant 0.000000e+00 : f32
    %116 = vector.shape_cast %115 : vector<1x4096xi1> to vector<1x4096xi1>
    %117 = vector.broadcast %116 : vector<1x4096xi1> to vector<8x4096xi1>
    %118 = vector.broadcast %cst_59 : f32 to vector<8x4096xf32>
    %119 = arith.select %117, %110, %118 : vector<8x4096xi1>, vector<8x4096xf32>
    %c0_60 = arith.constant 0 : index
    %c8 = arith.constant 8 : index
    %c0_61 = arith.constant 0 : index
    %c0_62 = arith.constant 0 : index
    %120 = vector.load %arg2[%c0_60, %c8, %c0_61, %c0_62] : memref<1x9x4x8xf32, #tpu.memory_space<vmem>>, vector<1x1x4x8xf32>
    %121 = vector.shape_cast %120 : vector<1x1x4x8xf32> to vector<4x8xf32>
    %cst_63 = arith.constant dense<0.000000e+00> : vector<4x4096xf32>
    %122 = tpu.matmul %121, %119, %cst_63 {dimension_numbers = #tpu.dot_dimension_numbers<[1], [0], [0], [1], [0, 0, 1, 1], [], []>} : vector<4x8xf32>, vector<8x4096xf32>, vector<4x4096xf32> -> vector<4x4096xf32>
    %123 = arith.addf %109, %122 : vector<4x4096xf32>
    %c0_64 = arith.constant 0 : index
    %c0_65 = arith.constant 0 : index
    %124 = vector.load %arg3[%c0_64, %c0_65] : memref<4x1xf32, #tpu.memory_space<vmem>>, vector<4x1xf32>
    %125 = vector.broadcast %124 : vector<4x1xf32> to vector<4x4096xf32>
    %126 = arith.addf %123, %125 : vector<4x4096xf32>
    %c0_66 = arith.constant 0 : index
    %c0_67 = arith.constant 0 : index
    %127 = vector.load %arg4[%c0_66, %c0_67] : memref<4x4xf32, #tpu.memory_space<vmem>>, vector<4x4xf32>
    %128 = arith.mulf %126, %126 : vector<4x4096xf32>
    %cst_68 = arith.constant dense<0.000000e+00> : vector<4x4096xf32>
    %129 = tpu.matmul %127, %128, %cst_68 {dimension_numbers = #tpu.dot_dimension_numbers<[1], [0], [0], [1], [0, 0, 1, 1], [], []>} : vector<4x4xf32>, vector<4x4096xf32>, vector<4x4096xf32> -> vector<4x4096xf32>
    %c0_69 = arith.constant 0 : index
    %c0_70 = arith.constant 0 : index
    %130 = vector.load %arg5[%c0_69, %c0_70] : memref<4x1xf32, #tpu.memory_space<vmem>>, vector<4x1xf32>
    %131 = vector.broadcast %130 : vector<4x1xf32> to vector<4x4096xf32>
    %132 = arith.addf %129, %131 : vector<4x4096xf32>
    %133 = math.sqrt %132 : vector<4x4096xf32>
    %134 = arith.mulf %126, %133 : vector<4x4096xf32>
    %c0_71 = arith.constant 0 : index
    %c0_72 = arith.constant 0 : index
    %c0_73 = arith.constant 0 : index
    %c0_74 = arith.constant 0 : index
    %135 = vector.load %arg7[%c0_71, %c0_72, %c0_73, %c0_74] : memref<1x1x4x4096xf32, #tpu.memory_space<vmem>>, vector<1x1x4x4096xf32>
    %136 = vector.shape_cast %135 : vector<1x1x4x4096xf32> to vector<4x4096xf32>
    %137 = vector.shape_cast %134 : vector<4x4096xf32> to vector<1x1x4x4096xf32>
    tpu.vector_store %arg7[%c0_71, %c0_72, %c0_73, %c0_74], %137 {strides = array<i32>} : memref<1x1x4x4096xf32, #tpu.memory_space<vmem>>, vector<1x1x4x4096xf32>,
    return
  }
  func.func @transform_0(%arg0: i32, %arg1: i32) -> (i32, i32, i32, i32) {
    %c0_i32 = arith.constant 0 : i32
    %c0_i32_0 = arith.constant 0 : i32
    %c0_i32_1 = arith.constant 0 : i32
    %c0_i32_2 = arith.constant 0 : i32
    return %arg1, %c0_i32, %c0_i32_0, %c0_i32_1 : i32, i32, i32, i32
  }
  func.func @transform_1(%arg0: i32, %arg1: i32) -> (i32, i32) {
    %c0_i32 = arith.constant 0 : i32
    %c0_i32_0 = arith.constant 0 : i32
    %c0_i32_1 = arith.constant 0 : i32
    return %c0_i32, %c0_i32_0 : i32, i32
  }
  func.func @transform_2(%arg0: i32, %arg1: i32) -> (i32, i32) {
    %c0_i32 = arith.constant 0 : i32
    %c0_i32_0 = arith.constant 0 : i32
    %c0_i32_1 = arith.constant 0 : i32
    return %c0_i32, %c0_i32_0 : i32, i32
  }
  func.func @transform_3(%arg0: i32, %arg1: i32) -> (i32, i32) {
    %c0_i32 = arith.constant 0 : i32
    %c0_i32_0 = arith.constant 0 : i32
    %c0_i32_1 = arith.constant 0 : i32
    return %c0_i32, %c0_i32_0 : i32, i32
  }
  func.func @transform_4(%arg0: i32, %arg1: i32) -> (i32, i32, i32) {
    %c0_i32 = arith.constant 0 : i32
    %c0_i32_0 = arith.constant 0 : i32
    %c0_i32_1 = arith.constant 0 : i32
    return %arg0, %c0_i32, %c0_i32_0 : i32, i32, i32
  }
  func.func @transform_5(%arg0: i32, %arg1: i32) -> (i32, i32, i32, i32) {
    %c0_i32 = arith.constant 0 : i32
    %c0_i32_0 = arith.constant 0 : i32
    %c0_i32_1 = arith.constant 0 : i32
    return %arg0, %arg1, %c0_i32, %c0_i32_0 : i32, i32, i32, i32
  }
}

</mosaic_0001>

<bundles_post_ra>
// kernel: synthesis_transform.3
= control target key start
LH: loop header
LB: loop body
LE: loop exit
PB: predicated region body
PF: predicated region fallthrough
CT: control target
= control target key end

     0   :  { %10 = vsyncpa [#allocation3], 0  ;;  %s1635_s18 = smov 0   ;;  %s1637_s19 = smov 0   ;;  %s1889_s0 = inlined_call_operand.vmem [shape: f32[4,9,8,4], index: 0, kind: input, shape index: {}]   ;;  %s1890_s1 = inlined_call_operand.vmem [shape: f32[8,1], index: 1, kind: input, shape index: {}]   ;;  %s1891_s2 = inlined_call_operand.hbm [shape: f32[8,8], index: 2, kind: input, shape index: {}]   ;;  %s1892_s3 = inlined_call_operand.vmem [shape: f32[8,1], index: 3, kind: input, shape index: {}]   ;;  %s1893_s4 = inlined_call_operand.vmem [shape: f32[2,4,256], index: 4, kind: input, shape index: {}]   ;;  %s1894_s5 = inlined_call_operand.vmem [shape: f32[2,4,8,256], index: 5, kind: output, shape index: {}]  }
   0x1   :  { %s1639_s20 = smov 0   ;;  %s1641_s21 = smov 0  }
   0x2   :  { %s1643_s22 = smov 0  }
   0x3 LB: > { %s1403_s23 = sadd.s32 4294967295, %s1592_s22   ;;  %s25_s24 = sadd.s32 1, %s1584_s20  ;;  %s1592_s22 = sphi %s1643_s22, %s16_s22   ;;  %s1588_s21 = sphi %s1641_s21, %s1912_s21   ;;  %s1584_s20 = sphi %s1639_s20, %s1911_s20   ;;  %s1580_s19 = sphi %s1637_s19, %s1910_s19   ;;  %s1576_s18 = sphi %s1635_s18, %s1909_s18  }
   0x4   : > { %p26_p0 = scmp.ge.s32.totalorder %s25_s24, 4  ;;  %s28_s25 = sadd.s32 1, %s1588_s21 }
   0x5   : > { %p1405_p1 = scmp.ge.s32.totalorder %s1592_s22, 1  ;;  %p176_p2 = scmp.lt.s32.totalorder %s1592_s22, 9 }
   0x6   : > { %s1914_s24 = smov (%p26_p0, %s25_s24), 0  ;;  %s1916_s25 = smov (!%p26_p0, %s28_s25), %s1588_s21 }
   0x7   : > { %p1668_p3 = pnand %p1405_p1, %p176_p2  ;;  %p30_p4 = scmp.ge.s32.totalorder %s1916_s25, 2 }
   0x8   : > { %p1672_p5 = scmp.eq.s32.totalorder %s1403_s23, 0  ;;  %s1594_s28 = smov [#allocation2]  }
   0x9   : > { %p1460_p6 = pneg %p1668_p3  ;;  %s1918_s25 = smov (%p30_p4, %s1916_s25), 0 }
   0xa   : > { %s192_s29 = sshll.u32 %s1594_s28, 4  ;;  %s193_s29 = int_to_ptr.vmem [resolvable:$true] %s192_s29 }
   0xb   : > { %p1461_p7 = pnand %p1672_p5, %p1460_p6  ;;  %s1535_s30 = scalar_lea.vmem %s193_s29, 128 }
   0xc   : > { %p1536_p9 = scmp.ne.s32.totalorder %s193_s29, %s1535_s30  ;;  %p1543_p12 = scmp.lt.s32.totalorder %s193_s29, %s193_s29 }
   0xd   : > { %p1526_p8 = pneg %p1461_p7  ;;  %p1544_p13 = scmp.lt.s32.totalorder %s1535_s30, %s1535_s30 }
   0xf   : > { %p1538_p10 = pnand %p1536_p9, %p1526_p8  ;;  %p1545_p0 = por %p1544_p13, %p1543_p12 }
  0x11   : > { %p1539_p11 = pneg %p1538_p10 }
  0x13   : > { %p1546_p1 = pnand %p1545_p0, %p1539_p11 }
  0x15   : > { %1549 = shalt.err (!%p1546_p1)
}
  0x16   : > { %1463 = dma.hbm_to_vmem [thread:$0]  (!%p1461_p7), %s1891_s2, 128, %s193_s29, [#allocation3]  }
  0x17   : > { %224 = sbr.rel (%p1668_p3) target bundleno = 603 (0x25b), region = 40 }
  0x1c   : > { %1571 = dma.done.wait (%p1672_p5), [#allocation3], 128  }
  0x1d   : > { %1573 = vsyncadd (%p1672_p5), [#allocation3], 4294967168  ;;  %p266_p2 = scmp.lt.s32.totalorder %s1580_s19, 1  ;;  %v1595_v0 = vmov 0.0   ;;  %s1596_s12 = smov 17   ;;  %v1602_v3 = vmov 0   ;;  %v281_v5 = vlaneseq }
  0x1e   : > { %421 = vmatprep.mubr.f32.mxu0 %v1595_v0  ;;  %501 = vmatprep.mubr.f32.mxu1 %v1595_v0  ;;  %s1597_s13 = smov 16   ;;  %s1598_s14 = smov 15   ;;  %v1182_v4 = vld [vmem:[%s1890_s1] sm:$0xff]  ;;  %vm350_vm5 = vcmask 1043456   ;;  %vm346_vm10 = vcmask 31744  }
  0x1f   : > { %s1920_s19 = smov (!%p266_p2, %s1580_s19), 1  ;;  %s1599_s15 = smov 1   ;;  %1517 = vset.pattern.permute.xlu0 %v1602_v3  ;;  %1518 = vset.pattern.permute.xlu1 %v1602_v3  ;;  %v1728_v6 = vand.u32 127, %v281_v5 }
  0x20   : > { %s1454_s8 = sshll.u32 %s1920_s19, 3  ;;  %s1600_s16 = smov 127  }
  0x21   : > { %s270_s11 = scalar_lea.vmem %s1893_s4, %s1454_s8  ;;  %s1601_s17 = smov 113   ;;  %v1732_v7 = vadd.s32 128, %v1728_v6  ;;  %v288_v8 = vand.u32 15, %v1728_v6  ;;  %vm318_vm0 = vcmp.ge.s32.totalorder %v1728_v6, 16  ;;  %vm315_vm2 = vcmp.lt.s32.totalorder %v1728_v6, 17 }
  0x22   : > { %v1703_v1 = vld [vmem:[%s270_s11] sm:$0xff]  ;;  %s1603_s23 = smov 112   ;;  %s1604_s26 = smov 111   ;;  %vm512_vm6 = vcmp.lt.s32.totalorder %v1728_v6, 15  ;;  %vm335_vm8 = vcmp.lt.s32.totalorder %v1728_v6, 16  ;;  %vm613_vm12 = vcmp.lt.s32.totalorder %v1728_v6, 1 }
  0x23   : > { %311 = vrot.lane.b32.xlu1 %v1703_v1, %s1596_s12  ;;  %331 = vrot.lane.b32.xlu0 %v1703_v1, %s1597_s13  ;;  %v1709_v2 = vcombine.high %v1703_v1, %v1703_v1  ;;  %p261_p3 = scmp.lt.s32.totalorder %s1576_s18, 3  ;;  %v295_v9 = vand.u32 15, %v1732_v7  ;;  %vm1740_vm1 = vcmp.ge.s32.totalorder %v288_v8, 1  ;;  %vm1768_vm7 = vcmp.lt.s32.totalorder %v288_v8, 15 }
  0x24   : > { %vm1754_vm4 = vmand %vm318_vm0, %vm1740_vm1  ;;  %vm792_vm13 = vcmp.lt.s32.totalorder %v1728_v6, 127  ;;  %vm893_vm14 = vcmp.lt.s32.totalorder %v1732_v7, 240  ;;  %vm889_vm15 = vcmp.lt.s32.totalorder %v1728_v6, 113  ;;  %v1193_v7 = vld [vmem:[%s1892_s3] sm:$0xff] }
  0x25   : > { %s1922_s18 = smov (!%p261_p3, %s1576_s18), 3  ;;  %vm1746_vm3 = vcmp.ge.s32.totalorder %v295_v9, 1  ;;  %vm1775_vm9 = vcmp.lt.s32.totalorder %v295_v9, 15  ;;  %vm1784_vm11 = vmand %vm318_vm0, %vm1768_vm7 }
  0x26   : > { %s1455_s29 = smul.u32 72, %s1922_s18  ;;  %s1413_s11 = sshll.u32 %s1922_s18, 1 }
  0x27   : > { %508 = vrot.lane.b32.xlu0 %v1703_v1, %s1598_s14  ;;  %313 = vrot.lane.b32.xlu1 %v1709_v2, %s1596_s12  ;;  %s277_s12 = sadd.s32 %s1454_s8, %s1413_s11 }
  0x28   : > { %s1762_s7 = scalar_lea.vmem %s1889_s0, %s1455_s29 }
  0x29   : > { %v330_v22 = vld [vmem:[%s1762_s7] sm:$0xff]  ;;  %v1416_v31 = vld [vmem:[%s1762_s7 + $0x8] sm:$0xff]  ;;  %v1423_v39 = vld [vmem:[%s1762_s7 + $0x10] sm:$0xff] }
  0x2a   : > { %v1427_v42 = vld [vmem:[%s1762_s7 + $0x18] sm:$0xff]  ;;  %v1431_v47 = vld [vmem:[%s1762_s7 + $0x20] sm:$0xff]  ;;  %v1435_v50 = vld [vmem:[%s1762_s7 + $0x28] sm:$0xff] }
  0x2b   : > { %510 = vrot.lane.b32.xlu1 %v1709_v2, %s1598_s14  ;;  %333 = vrot.lane.b32.xlu0 %v1709_v2, %s1597_s13  ;;  %v1439_v57 = vld [vmem:[%s1762_s7 + $0x30] sm:$0xff]  ;;  %v1443_v62 = vld [vmem:[%s1762_s7 + $0x38] sm:$0xff]  ;;  %s1415_s13 = sshll.u32 %s277_s12, 3 }
  0x2c   : > { %v1447_v8 = vld [vmem:[%s1762_s7 + $0x40] sm:$0xff] }
  0x2f   : > { %611 = vrot.lane.b32.xlu1 %v1709_v2, %s1599_s15  ;;  %609 = vrot.lane.b32.xlu0 %v1703_v1, %s1599_s15 }
  0x33   : > { %790 = vrot.lane.b32.xlu1 %v1709_v2, %s1600_s16  ;;  %788 = vrot.lane.b32.xlu0 %v1703_v1, %s1600_s16  ;;  %s279_s16 = scalar_lea.vmem %s1894_s5, %s1415_s13 }
  0x37   : > { %887 = vrot.lane.b32.xlu1 %v1709_v2, %s1601_s17  ;;  %885 = vrot.lane.b32.xlu0 %v1703_v1, %s1601_s17 }
  0x3b   : > { %988 = vrot.lane.b32.xlu1 %v1709_v2, %s1603_s23  ;;  %986 = vrot.lane.b32.xlu0 %v1703_v1, %s1603_s23 }
  0x3f   : > { %1085 = vrot.lane.b32.xlu1 %v1709_v2, %s1604_s26  ;;  %1083 = vrot.lane.b32.xlu0 %v1703_v1, %s1604_s26 }
  0x43   : > { %1185 = vperm.xlu0 %1517, %v1182_v4   ;;  %1196 = vperm.xlu1 %1518, %v1193_v7  }
  0x95   : > { %v312_v10 = vpop.permute.xlu1 %311  ;;  %v332_v11 = vpop.permute.xlu0 %331 }
  0x99   : > { %v509_v15 = vpop.permute.xlu0 %508  ;;  %v314_v16 = vpop.permute.xlu1 %313 }
  0x9a   : > { %v317_v17 = vsel %vm315_vm2, %v314_v16, %v312_v10  ;;  %v316_v18 = vsel %vm315_vm2, %v312_v10, %v314_v16  ;;  %vm990_vm2 = vcmp.lt.s32.totalorder %v1728_v6, 112 }
  0x9b   : > { %v329_v19 = vsel %vm1746_vm3, %v316_v18, 0.0  ;;  %v328_v20 = vsel %vm1754_vm4, %v317_v17, 0.0  ;;  %vm1199_vm4 = vcmask 64512  }
  0x9c   : > { %1420 = vmatprep.subr.msk.mxu1 %vm350_vm5, %v329_v19 }
  0x9d   : > { %1421 = vmatpush1.msk.msra.mxu1 %vm350_vm5, %v328_v20  ;;  %v511_v24 = vpop.permute.xlu1 %510  ;;  %v334_v25 = vpop.permute.xlu0 %333 }
  0x9e   : > { %v513_v27 = vsel %vm512_vm6, %v509_v15, %v511_v24  ;;  %v514_v28 = vsel %vm512_vm6, %v511_v24, %v509_v15  ;;  %v337_v29 = vsel %vm335_vm8, %v334_v25, %v332_v11  ;;  %v336_v30 = vsel %vm335_vm8, %v332_v11, %v334_v25  ;;  %1422 = vmatmul.mubr.msk.f32.vlgmr.msra.gmra.mxu1 %vm346_vm10, %v330_v22 }
  0x9f   : > { %v524_v32 = vsel %vm1775_vm9, %v513_v27, 0.0  ;;  %1417 = vmatprep.subr.msk.mxu0 %vm350_vm5, %v336_v30  ;;  %v342_v33 = vsel %vm318_vm0, %v337_v29, 0.0  ;;  %697 = vmatprep.mubr.f32.mxu1 %v1595_v0  ;;  %v523_v34 = vsel %vm1784_vm11, %v514_v28, 0.0  ;;  %vm895_vm0 = vmand %vm893_vm14, %vm1746_vm3 }
  0xa0   : > { %1418 = vmatpush1.msk.msra.mxu0 %vm350_vm5, %v342_v33 }
  0xa1   : > { %v612_v35 = vpop.permute.xlu1 %611  ;;  %1424 = vmatprep.subr.msk.mxu0 %vm350_vm5, %v524_v32  ;;  %v610_v36 = vpop.permute.xlu0 %609  ;;  %1419 = vmatmul.mubr.msk.f32.vlgmr.msra.gmra.mxu0 %vm346_vm10, %v1416_v31 }
  0xa2   : > { %v614_v37 = vsel %vm613_vm12, %v610_v36, %v612_v35  ;;  %v615_v38 = vsel %vm613_vm12, %v612_v35, %v610_v36  ;;  %1425 = vmatpush1.msk.msra.mxu0 %vm350_vm5, %v523_v34  ;;  %600 = vmatprep.mubr.f32.mxu0 %v1595_v0 }
  0xa3   : > { %v620_v40 = vsel %vm1740_vm1, %v615_v38, 0.0  ;;  %v621_v41 = vsel %vm1746_vm3, %v614_v37, 0.0  ;;  %1432 = vmatprep.subr.msk.mxu0 %vm350_vm5, %v1709_v2  ;;  %vm1091_vm3 = vmand %vm893_vm14, %vm1775_vm9 }
  0xa4   : > { %1428 = vmatprep.subr.msk.mxu1 %vm350_vm5, %v621_v41 }
  0xa5   : > { %v791_v43 = vpop.permute.xlu1 %790  ;;  %1429 = vmatpush1.msk.msra.mxu1 %vm350_vm5, %v620_v40  ;;  %v789_v44 = vpop.permute.xlu0 %788  ;;  %1426 = vmatmul.mubr.msk.f32.vlgmr.msra.gmra.mxu0 %vm346_vm10, %v1423_v39 }
  0xa6   : > { %v793_v45 = vsel %vm792_vm13, %v789_v44, %v791_v43  ;;  %v794_v46 = vsel %vm792_vm13, %v791_v43, %v789_v44  ;;  %1430 = vmatmul.mubr.msk.f32.vlgmr.msra.gmra.mxu1 %vm346_vm10, %v1427_v42  ;;  %1433 = vmatpush1.msk.msra.mxu0 %vm350_vm5, %v1703_v1 }
  0xa7   : > { %v799_v48 = vsel %vm1768_vm7, %v793_v45, 0.0  ;;  %v800_v49 = vsel %vm1775_vm9, %v794_v46, 0.0  ;;  %779 = vmatprep.mubr.f32.mxu0 %v1595_v0  ;;  %876 = vmatprep.mubr.f32.mxu1 %v1595_v0 }
  0xa8   : > { %1436 = vmatprep.subr.msk.mxu1 %vm350_vm5, %v800_v49 }
  0xa9   : > { %v888_v51 = vpop.permute.xlu1 %887  ;;  %1437 = vmatpush1.msk.msra.mxu1 %vm350_vm5, %v799_v48  ;;  %v886_v52 = vpop.permute.xlu0 %885  ;;  %1434 = vmatmul.mubr.msk.f32.vlgmr.msra.gmra.mxu0 %vm346_vm10, %v1431_v47  ;;  %v1190_v47 = vld [vmem:[#allocation2] sm:$0xff] }
  0xaa   : > { %v890_v53 = vsel %vm889_vm15, %v886_v52, %v888_v51  ;;  %v891_v54 = vsel %vm889_vm15, %v888_v51, %v886_v52  ;;  %1438 = vmatmul.mubr.msk.f32.vlgmr.msra.gmra.mxu1 %vm346_vm10, %v1435_v50  ;;  %977 = vmatprep.mubr.f32.mxu0 %v1595_v0 }
  0xab   : > { %v900_v55 = vsel %vm1740_vm1, %v890_v53, 0.0  ;;  %v901_v56 = vsel %vm895_vm0, %v891_v54, 0.0  ;;  %1074 = vmatprep.mubr.f32.mxu1 %v1595_v0  ;;  %vm1087_vm1 = vcmp.lt.s32.totalorder %v1728_v6, 111 }
  0xac   : > { %1440 = vmatprep.subr.msk.mxu0 %vm350_vm5, %v901_v56 }
  0xad   : > { %v989_v58 = vpop.permute.xlu1 %988  ;;  %1441 = vmatpush1.msk.msra.mxu0 %vm350_vm5, %v900_v55  ;;  %v987_v59 = vpop.permute.xlu0 %986 }
  0xae   : > { %v992_v60 = vsel %vm990_vm2, %v989_v58, %v987_v59  ;;  %1442 = vmatmul.mubr.msk.f32.vlgmr.msra.gmra.mxu0 %vm346_vm10, %v1439_v57  ;;  %v991_v63 = vsel %vm990_vm2, %v987_v59, %v989_v58 }
  0xaf   : > { %v998_v61 = vsel %vm893_vm14, %v992_v60, 0.0  ;;  %1173 = vmatprep.mubr.f32.mxu0 %v1595_v0 }
  0xb0   : > { %1444 = vmatprep.subr.msk.mxu1 %vm350_vm5, %v998_v61 }
  0xb1   : > { %v1086_v1 = vpop.permute.xlu1 %1085  ;;  %1445 = vmatpush1.msk.msra.mxu1 %vm350_vm5, %v991_v63  ;;  %v1084_v2 = vpop.permute.xlu0 %1083 }
  0xb2   : > { %v1088_v3 = vsel %vm1087_vm1, %v1084_v2, %v1086_v1  ;;  %v1089_v4 = vsel %vm1087_vm1, %v1086_v1, %v1084_v2  ;;  %1446 = vmatmul.mubr.msk.f32.vlgmr.msra.gmra.mxu1 %vm346_vm10, %v1443_v62 }
  0xb3   : > { %v1096_v5 = vsel %vm1768_vm7, %v1088_v3, 0.0  ;;  %v1097_v6 = vsel %vm1091_vm3, %v1089_v4, 0.0  ;;  %1267 = vmatprep.mubr.f32.mxu1 %v1595_v0 }
  0xb4   : > { %1448 = vmatprep.subr.msk.mxu0 %vm350_vm5, %v1097_v6 }
  0xb5   : > { %1449 = vmatpush1.msk.msra.mxu0 %vm350_vm5, %v1096_v5 }
  0xb6   : > { %1450 = vmatmul.mubr.msk.f32.vlgmr.msra.gmra.mxu0 %vm346_vm10, %v1447_v8 }
  0xbe   : > { %v1186_v40 = vpop.permute.xlu0 %1185  ;;  %v1197_v48 = vpop.permute.xlu1 %1196 }
 0x15e   : > { %v503_v9 = vpop.f32.mrf.mxu1 }
 0x160   : > { %v505_v11 = vpop.f32.mrf.mxu1 }
 0x161   : > { %v423_v10 = vpop.f32.mrf.mxu0 }
 0x162   : > { %v504_v12 = vadd.f32 %v503_v9, %v423_v10 }
 0x163   : > { %v425_v13 = vpop.f32.mrf.mxu0 }
 0x164   : > { %v506_v14 = vadd.f32 %v505_v11, %v425_v13 }
 0x165   : > { %v602_v15 = vpop.f32.mrf.mxu0 }
 0x166   : > { %v607_v16 = vadd.f32 %v602_v15, %v504_v12  ;;  %v699_v0 = vpop.f32.mrf.mxu1 }
 0x167   : > { %v604_v17 = vpop.f32.mrf.mxu0 }
 0x168   : > { %v608_v18 = vadd.f32 %v604_v17, %v506_v14  ;;  %v704_v19 = vadd.f32 %v699_v0, %v607_v16  ;;  %v701_v20 = vpop.f32.mrf.mxu1 }
 0x169   : > { %v781_v21 = vpop.f32.mrf.mxu0 }
 0x16a   : > { %v705_v22 = vadd.f32 %v701_v20, %v608_v18  ;;  %v786_v23 = vadd.f32 %v781_v21, %v704_v19  ;;  %v878_v24 = vpop.f32.mrf.mxu1 }
 0x16b   : > { %v783_v25 = vpop.f32.mrf.mxu0 }
 0x16c   : > { %v787_v26 = vadd.f32 %v783_v25, %v705_v22  ;;  %v883_v27 = vadd.f32 %v878_v24, %v786_v23  ;;  %v880_v28 = vpop.f32.mrf.mxu1 }
 0x16e   : > { %v979_v29 = vpop.f32.mrf.mxu0  ;;  %v884_v30 = vadd.f32 %v880_v28, %v787_v26 }
 0x16f   : > { %v984_v31 = vadd.f32 %v979_v29, %v883_v27 }
 0x170   : > { %v981_v32 = vpop.f32.mrf.mxu0 }
 0x171   : > { %v985_v35 = vadd.f32 %v981_v32, %v884_v30 }
 0x172   : > { %v1076_v33 = vpop.f32.mrf.mxu1 }
 0x173   : > { %v1081_v36 = vadd.f32 %v1076_v33, %v984_v31 }
 0x174   : > { %v1078_v34 = vpop.f32.mrf.mxu1 }
 0x175   : > { %v1082_v38 = vadd.f32 %v1078_v34, %v985_v35 }
 0x176   : > { %v1175_v37 = vpop.f32.mrf.mxu0 }
 0x177   : > { %v1180_v39 = vadd.f32 %v1175_v37, %v1081_v36 }
 0x178   : > { %v1177_v41 = vpop.f32.mrf.mxu0 }
 0x179   : > { %v1181_v42 = vadd.f32 %v1177_v41, %v1082_v38  ;;  %v1188_v43 = vadd.f32 %v1186_v40, %v1180_v39 }
 0x17b   : > { %v1189_v44 = vadd.f32 %v1186_v40, %v1181_v42  ;;  %v1191_v46 = vmul.f32 %v1188_v43, %v1188_v43 }
 0x17d   : > { %v1192_v45 = vmul.f32 %v1189_v44, %v1189_v44 }
 0x17f   : > { %1233 = vmatprep.subr.mxu1 %v1192_v45 }
 0x180   : > { %1234 = vmatpush1.msra.mxu1 %v1191_v46 }
 0x181   : > { %1451 = vmatmul.mubr.msk.f32.vlgmr.msra.gmra.mxu1 %vm1199_vm4, %v1190_v47 }
 0x241   : > { %v1269_v49 = vpop.f32.mrf.mxu1 }
 0x242   : > { %v1270_v50 = vadd.f32 %v1269_v49, %v1197_v48 }
 0x243   : > { %v1271_v51 = vpop.f32.mrf.mxu1 }
 0x244   : > { %1520 = vrsqrt.f32 %v1270_v50  ;;  %v1272_v52 = vadd.f32 %v1271_v51, %v1197_v48  ;;  %vm1276_vm5 = vcmp.eq.f32.partialorder %v1270_v50, inf  ;;  %v1279_v55 = vand.u32 2147483648, %v1270_v50 }
 0x245   : > { %vm1278_vm6 = vcmp.eq.f32.partialorder %v1270_v50, 0.0 }
 0x246   : > { %1522 = vrsqrt.f32 %v1272_v52  ;;  %vm1283_vm7 = vcmp.eq.f32.partialorder %v1272_v52, inf  ;;  %v1286_v61 = vand.u32 2147483648, %v1272_v52  ;;  %vm1285_vm8 = vcmp.eq.f32.partialorder %v1272_v52, 0.0 }
 0x251   : > { %v1521_v53 = vpop.eup %1520 }
 0x252   : > { %v1275_v54 = vmul.f32 %v1521_v53, %v1270_v50 }
 0x253   : > { %v1523_v56 = vpop.eup %1522 }
 0x254   : > { %v1277_v57 = vsel %vm1276_vm5, %v1270_v50, %v1275_v54  ;;  %v1282_v59 = vmul.f32 %v1523_v56, %v1272_v52 }
 0x255   : > { %v1280_v58 = vsel %vm1278_vm6, %v1279_v55, %v1277_v57 }
 0x256   : > { %v1288_v60 = vmul.f32 %v1280_v58, %v1188_v43  ;;  %v1284_v62 = vsel %vm1283_vm7, %v1272_v52, %v1282_v59 }
 0x257   : > { %v1287_v63 = vsel %vm1285_vm8, %v1286_v61, %v1284_v62 }
 0x258   : > { %1290 = vst [vmem:[%s279_s16] sm:$0xff] %v1288_v60  ;;  %v1289_v1 = vmul.f32 %v1287_v63, %v1189_v44 }
 0x25a   : > { %1291 = vst [vmem:[%s279_s16 + $0x8] sm:$0xff] %v1289_v1 }
 0x25b PF: > { %s16_s22 = sadd.s32 1, %s1592_s22   ;;  %s1909_s18 = smov %s1584_s20 }
 0x25c   : > { %p13_p4 = scmp.ge.s32.totalorder %s16_s22, 10   ;;  %s1910_s19 = smov %s1588_s21 }
 0x25d   : > { %s1911_s20 = smov %s1914_s24  ;;  %s1912_s21 = smov %s1918_s25 }
 0x25e   :  { %15 = sbr.rel (!%p13_p4) target bundleno = 3 (0x3), region = 86 }
 0x263   :  { %1321 = vsyncpa [#allocation3], 1 }
 0x264   :  { %1323 = vsyncpa [#allocation3 + $0x1], 1 }

// kernel: synthesis_transform.4
= control target key start
LH: loop header
LB: loop body
LE: loop exit
PB: predicated region body
PF: predicated region fallthrough
CT: control target
= control target key end

     0   :  { %10 = vsyncpa [#allocation3], 0  ;;  %s4310_s18 = smov 0   ;;  %s4312_s19 = smov 0   ;;  %s5079_s0 = inlined_call_operand.vmem [shape: f32[4,9,8,8], index: 0, kind: input, shape index: {}]   ;;  %s5080_s1 = inlined_call_operand.vmem [shape: f32[8,1], index: 1, kind: input, shape index: {}]   ;;  %s5081_s2 = inlined_call_operand.hbm [shape: f32[8,8], index: 2, kind: input, shape index: {}]   ;;  %s5082_s3 = inlined_call_operand.vmem [shape: f32[8,1], index: 3, kind: input, shape index: {}]   ;;  %s5083_s4 = inlined_call_operand.vmem [shape: f32[2,8,1024], index: 4, kind: input, shape index: {}]   ;;  %s5084_s5 = inlined_call_operand.vmem [shape: f32[2,4,8,1024], index: 5, kind: output, shape index: {}]  }
   0x1   :  { %s4314_s20 = smov 0   ;;  %s4316_s21 = smov 0  }
   0x2   :  { %s4318_s22 = smov 0  }
   0x3 LB: > { %s4005_s23 = sadd.s32 4294967295, %s4267_s22   ;;  %s25_s24 = sadd.s32 1, %s4259_s20  ;;  %s4267_s22 = sphi %s4318_s22, %s16_s22   ;;  %s4263_s21 = sphi %s4316_s21, %s5191_s21   ;;  %s4259_s20 = sphi %s4314_s20, %s5190_s20   ;;  %s4255_s19 = sphi %s4312_s19, %s5189_s19   ;;  %s4251_s18 = sphi %s4310_s18, %s5188_s18  }
   0x4   : > { %p26_p0 = scmp.ge.s32.totalorder %s25_s24, 4  ;;  %s28_s25 = sadd.s32 1, %s4263_s21 }
   0x5   : > { %p4007_p1 = scmp.ge.s32.totalorder %s4267_s22, 1  ;;  %p176_p2 = scmp.lt.s32.totalorder %s4267_s22, 9 }
   0x6   : > { %s5193_s24 = smov (%p26_p0, %s25_s24), 0  ;;  %s5195_s25 = smov (!%p26_p0, %s28_s25), %s4263_s21 }
   0x7   : > { %p4343_p3 = pnand %p4007_p1, %p176_p2  ;;  %p30_p4 = scmp.ge.s32.totalorder %s5195_s25, 2 }
   0x8   : > { %p4347_p5 = scmp.eq.s32.totalorder %s4005_s23, 0  ;;  %s4269_s28 = smov [#allocation2]  }
   0x9   : > { %p4124_p6 = pneg %p4343_p3  ;;  %s5197_s25 = smov (%p30_p4, %s5195_s25), 0 }
   0xa   : > { %s192_s29 = sshll.u32 %s4269_s28, 4  ;;  %s193_s29 = int_to_ptr.vmem [resolvable:$true] %s192_s29 }
   0xb   : > { %p4125_p7 = pnand %p4347_p5, %p4124_p6  ;;  %s4210_s30 = scalar_lea.vmem %s193_s29, 128 }
   0xc   : > { %p4211_p9 = scmp.ne.s32.totalorder %s193_s29, %s4210_s30  ;;  %p4218_p12 = scmp.lt.s32.totalorder %s193_s29, %s193_s29 }
   0xd   : > { %p4201_p8 = pneg %p4125_p7  ;;  %p4219_p13 = scmp.lt.s32.totalorder %s4210_s30, %s4210_s30 }
   0xf   : > { %p4213_p10 = pnand %p4211_p9, %p4201_p8  ;;  %p4220_p0 = por %p4219_p13, %p4218_p12 }
  0x11   : > { %p4214_p11 = pneg %p4213_p10 }
  0x13   : > { %p4221_p1 = pnand %p4220_p0, %p4214_p11 }
  0x15   : > { %4224 = shalt.err (!%p4221_p1)
}
  0x16   : > { %4127 = dma.hbm_to_vmem [thread:$0]  (!%p4125_p7), %s5081_s2, 128, %s193_s29, [#allocation3]  }
  0x17   : > { %224 = sbr.rel (%p4343_p3) target bundleno = 700 (0x2bc), region = 40 }
  0x1c   : > { %4246 = dma.done.wait (%p4347_p5), [#allocation3], 128  }
  0x1d   : > { %4248 = vsyncadd (%p4347_p5), [#allocation3], 4294967168  ;;  %p266_p2 = scmp.lt.s32.totalorder %s4255_s19, 1  ;;  %p261_p4 = scmp.lt.s32.totalorder %s4251_s18, 3  ;;  %v5098_v4 = vmov 0.0   ;;  %v288_v9 = vlaneseq  ;;  %v4279_v13 = vmov 0  }
  0x1e   : > { %s4270_s12 = smov 32   ;;  %586 = vmatprep.mubr.f32.mxu0 %v5098_v4  ;;  %657 = vmatprep.mubr.f32.mxu1 %v5098_v4  ;;  %s4272_s16 = smov 33   ;;  %vm5092_vm1 = vcmask 64512   ;;  %v3506_v35 = vld [vmem:[%s5080_s1] sm:$0xff] }
  0x1f   : > { %s5199_s19 = smov (!%p266_p2, %s4255_s19), 1  ;;  %s5201_s18 = smov (!%p261_p4, %s4251_s18), 3  ;;  %v4456_v10 = vand.u32 127, %v288_v9  ;;  %4181 = vset.pattern.permute.xlu0 %v4279_v13  ;;  %4182 = vset.pattern.permute.xlu1 %v4279_v13  ;;  %v5114_v9 = vmov 0 }
  0x20   : > { %s4118_s8 = sshll.u32 %s5199_s19, 6  ;;  %s4016_s13 = sshll.u32 %s5199_s19, 5 }
  0x21   : > { %s270_s11 = scalar_lea.vmem %s5083_s4, %s4118_s8  ;;  %s4015_s14 = sshll.u32 %s5201_s18, 3  ;;  %vm483_vm0 = vcmp.lt.s32.totalorder %v4456_v10, 32  ;;  %vm418_vm2 = vcmp.ge.s32.totalorder %v4456_v10, 32  ;;  %v4482_v20 = vadd.s32 128, %v4456_v10  ;;  %v4496_v25 = vadd.s32 384, %v4456_v10 }
  0x22   : > { %v4372_v0 = vld [vmem:[%s270_s11 + $0x10] sm:$0xff]  ;;  %v4374_v1 = vld [vmem:[%s270_s11] sm:$0xff]  ;;  %v4381_v2 = vld [vmem:[%s270_s11 + $0x18] sm:$0xff]  ;;  %s4388_s15 = sadd.s32 %s4016_s13, %s4015_s14  ;;  %s4273_s17 = smov 31   ;;  %v4500_v28 = vadd.s32 256, %v4456_v10  ;;  %vm409_vm3 = vcmp.lt.s32.totalorder %v4456_v10, 33 }
  0x23   : > { %471 = vrot.lane.b32.xlu1 %v4372_v0, %s4270_s12  ;;  %467 = vrot.lane.b32.xlu0 %v4374_v1, %s4270_s12  ;;  %v4383_v3 = vld [vmem:[%s270_s11 + $0x8] sm:$0xff]  ;;  %v4392_v5 = vld [vmem:[%s270_s11 + $0x20] sm:$0xff]  ;;  %s4274_s19 = smov 1   ;;  %s4275_s23 = smov 127   ;;  %v308_v24 = vand.u32 31, %v4482_v20  ;;  %v322_v34 = vand.u32 31, %v4496_v25 }
  0x24   : > { %v4394_v6 = vld [vmem:[%s270_s11 + $0x38] sm:$0xff]  ;;  %v4398_v7 = vld [vmem:[%s270_s11 + $0x30] sm:$0xff]  ;;  %v4400_v8 = vld [vmem:[%s270_s11 + $0x28] sm:$0xff]  ;;  %s4276_s26 = smov 97   ;;  %s4277_s27 = smov 96   ;;  %v301_v36 = vand.u32 31, %v4456_v10 }
  0x25   : > { %s4278_s28 = smov 95   ;;  %s4119_s29 = smul.u32 72, %s5201_s18  ;;  %vm4514_vm4 = vcmp.ge.s32.totalorder %v308_v24, 1  ;;  %v315_v39 = vand.u32 31, %v4500_v28  ;;  %vm4534_vm5 = vcmp.ge.s32.totalorder %v322_v34, 1  ;;  %v4539_v42 = vadd.s32 640, %v4456_v10 }
  0x26   : > { %v4542_v43 = vadd.s32 896, %v4456_v10  ;;  %vm4544_vm6 = vcmp.ge.s32.totalorder %v301_v36, 1  ;;  %v4553_v48 = vadd.s32 512, %v4456_v10  ;;  %v4556_v49 = vadd.s32 768, %v4456_v10  ;;  %s4017_s11 = sshll.u32 %s4388_s15, 3 }
  0x27   : > { %473 = vrot.lane.b32.xlu1 %v4381_v2, %s4270_s12  ;;  %469 = vrot.lane.b32.xlu0 %v4383_v3, %s4270_s12  ;;  %s4467_s7 = scalar_lea.vmem %s5079_s0, %s4119_s29  ;;  %vm4548_vm7 = vcmp.ge.s32.totalorder %v315_v39, 1  ;;  %vm434_vm8 = vmand %vm418_vm2, %vm4544_vm6  ;;  %v336_v53 = vand.u32 31, %v4539_v42  ;;  %vm5089_vm13 = vcmp.lt.s32.totalorder %v4456_v10, 31  ;;  %vm4616_vm14 = vcmp.lt.s32.totalorder %v308_v24, 31  ;;  %s5020_s14 = scalar_lea.vmem %s5084_s5, %s4017_s11 }
  0x28   : > { %v4018_v19 = vld [vmem:[%s4467_s7 + $0x8] sm:$0xff]  ;;  %v466_v52 = vld [vmem:[%s4467_s7] sm:$0xff]  ;;  %v350_v54 = vand.u32 31, %v4542_v43  ;;  %v329_v57 = vand.u32 31, %v4553_v48  ;;  %v343_v58 = vand.u32 31, %v4556_v49  ;;  %vm4630_vm15 = vcmp.lt.s32.totalorder %v322_v34, 31 }
  0x29   : > { %vm4579_vm9 = vcmp.ge.s32.totalorder %v336_v53, 1  ;;  %v5120_v20 = vmov 0  ;;  %v5124_v24 = vmov 0 }
  0x2a   : > { %vm4583_vm10 = vcmp.ge.s32.totalorder %v350_v54, 1  ;;  %vm4588_vm11 = vcmp.ge.s32.totalorder %v329_v57, 1  ;;  %vm4592_vm12 = vcmp.ge.s32.totalorder %v343_v58, 1  ;;  %v5121_v20 = vsel %vm4630_vm15, 4294967295, %v5120_v20 }
  0x2b   : > { %475 = vrot.lane.b32.xlu1 %v4392_v5, %s4270_s12  ;;  %481 = vrot.lane.b32.xlu0 %v4394_v6, %s4270_s12  ;;  %v5115_v9 = vsel %vm4588_vm11, 4294967295, %v5114_v9 }
  0x2f   : > { %479 = vrot.lane.b32.xlu1 %v4398_v7, %s4270_s12  ;;  %477 = vrot.lane.b32.xlu0 %v4400_v8, %s4270_s12 }
  0x33   : > { %395 = vrot.lane.b32.xlu1 %v4383_v3, %s4272_s16  ;;  %393 = vrot.lane.b32.xlu0 %v4374_v1, %s4272_s16 }
  0x37   : > { %399 = vrot.lane.b32.xlu1 %v4381_v2, %s4272_s16  ;;  %397 = vrot.lane.b32.xlu0 %v4372_v0, %s4272_s16 }
  0x3b   : > { %401 = vrot.lane.b32.xlu1 %v4392_v5, %s4272_s16  ;;  %407 = vrot.lane.b32.xlu0 %v4394_v6, %s4272_s16 }
  0x3f   : > { %405 = vrot.lane.b32.xlu1 %v4398_v7, %s4272_s16  ;;  %403 = vrot.lane.b32.xlu0 %v4400_v8, %s4272_s16 }
  0x43   : > { %1095 = vrot.lane.b32.xlu1 %v4383_v3, %s4273_s17  ;;  %1093 = vrot.lane.b32.xlu0 %v4374_v1, %s4273_s17 }
  0x47   : > { %1099 = vrot.lane.b32.xlu1 %v4381_v2, %s4273_s17  ;;  %1097 = vrot.lane.b32.xlu0 %v4372_v0, %s4273_s17 }
  0x4b   : > { %1101 = vrot.lane.b32.xlu1 %v4392_v5, %s4273_s17  ;;  %1107 = vrot.lane.b32.xlu0 %v4394_v6, %s4273_s17 }
  0x4f   : > { %1105 = vrot.lane.b32.xlu1 %v4398_v7, %s4273_s17  ;;  %1103 = vrot.lane.b32.xlu0 %v4400_v8, %s4273_s17 }
  0x53   : > { %1457 = vrot.lane.b32.xlu1 %v4383_v3, %s4274_s19  ;;  %1455 = vrot.lane.b32.xlu0 %v4374_v1, %s4274_s19 }
  0x57   : > { %1461 = vrot.lane.b32.xlu1 %v4381_v2, %s4274_s19  ;;  %1459 = vrot.lane.b32.xlu0 %v4372_v0, %s4274_s19 }
  0x5b   : > { %1463 = vrot.lane.b32.xlu1 %v4392_v5, %s4274_s19  ;;  %1469 = vrot.lane.b32.xlu0 %v4394_v6, %s4274_s19 }
  0x5f   : > { %1467 = vrot.lane.b32.xlu1 %v4398_v7, %s4274_s19  ;;  %1465 = vrot.lane.b32.xlu0 %v4400_v8, %s4274_s19 }
  0x63   : > { %2102 = vrot.lane.b32.xlu1 %v4372_v0, %s4275_s23  ;;  %2100 = vrot.lane.b32.xlu0 %v4383_v3, %s4275_s23 }
  0x67   : > { %2106 = vrot.lane.b32.xlu1 %v4392_v5, %s4275_s23  ;;  %2104 = vrot.lane.b32.xlu0 %v4381_v2, %s4275_s23 }
  0x6b   : > { %2108 = vrot.lane.b32.xlu1 %v4400_v8, %s4275_s23  ;;  %2098 = vrot.lane.b32.xlu0 %v4374_v1, %s4275_s23 }
  0x6f   : > { %2112 = vrot.lane.b32.xlu1 %v4394_v6, %s4275_s23  ;;  %2110 = vrot.lane.b32.xlu0 %v4398_v7, %s4275_s23 }
  0x73   : > { %2448 = vrot.lane.b32.xlu1 %v4372_v0, %s4276_s26  ;;  %2446 = vrot.lane.b32.xlu0 %v4383_v3, %s4276_s26 }
  0x77   : > { %2452 = vrot.lane.b32.xlu1 %v4392_v5, %s4276_s26  ;;  %2450 = vrot.lane.b32.xlu0 %v4381_v2, %s4276_s26 }
  0x7b   : > { %2454 = vrot.lane.b32.xlu1 %v4400_v8, %s4276_s26  ;;  %2444 = vrot.lane.b32.xlu0 %v4374_v1, %s4276_s26 }
  0x7f   : > { %2458 = vrot.lane.b32.xlu1 %v4394_v6, %s4276_s26  ;;  %2456 = vrot.lane.b32.xlu0 %v4398_v7, %s4276_s26 }
  0x83   : > { %2810 = vrot.lane.b32.xlu1 %v4372_v0, %s4277_s27  ;;  %2808 = vrot.lane.b32.xlu0 %v4383_v3, %s4277_s27 }
  0x87   : > { %2814 = vrot.lane.b32.xlu1 %v4392_v5, %s4277_s27  ;;  %2812 = vrot.lane.b32.xlu0 %v4381_v2, %s4277_s27 }
  0x8b   : > { %2816 = vrot.lane.b32.xlu1 %v4400_v8, %s4277_s27  ;;  %2806 = vrot.lane.b32.xlu0 %v4374_v1, %s4277_s27 }
  0x8f   : > { %2820 = vrot.lane.b32.xlu1 %v4394_v6, %s4277_s27  ;;  %2818 = vrot.lane.b32.xlu0 %v4398_v7, %s4277_s27 }
  0x93   : > { %3156 = vrot.lane.b32.xlu1 %v4372_v0, %s4278_s28  ;;  %3154 = vrot.lane.b32.xlu0 %v4383_v3, %s4278_s28 }
  0x95   : > { %v472_v11 = vpop.permute.xlu1 %471  ;;  %v468_v12 = vpop.permute.xlu0 %467 }
  0x97   : > { %3160 = vrot.lane.b32.xlu1 %v4392_v5, %s4278_s28  ;;  %3158 = vrot.lane.b32.xlu0 %v4381_v2, %s4278_s28 }
  0x99   : > { %v474_v14 = vpop.permute.xlu1 %473  ;;  %v470_v15 = vpop.permute.xlu0 %469 }
  0x9a   : > { %v488_v16 = vsel %vm483_vm0, %v472_v11, %v474_v14  ;;  %v490_v17 = vsel %vm483_vm0, %v468_v12, %v470_v15  ;;  %v489_v18 = vsel %vm483_vm0, %v470_v15, %v472_v11  ;;  %v5116_v11 = vmov 0 }
  0x9b   : > { %623 = vmatprep.subr.mxu1 %v488_v16  ;;  %3162 = vrot.lane.b32.xlu1 %v4400_v8, %s4278_s28  ;;  %v5117_v11 = vsel %vm4592_vm12, 4294967295, %v5116_v11  ;;  %v5118_v16 = vmov 0 }
  0x9c   : > { %3152 = vrot.lane.b32.xlu0 %v4374_v1, %s4278_s28  ;;  %552 = vmatprep.subr.mxu0 %v490_v17  ;;  %v5119_v16 = vsel %vm4616_vm14, 4294967295, %v5118_v16 }
  0x9d   : > { %624 = vmatpush1.msra.mxu1 %v489_v18  ;;  %v476_v21 = vpop.permute.xlu1 %475  ;;  %v482_v22 = vpop.permute.xlu0 %481 }
  0x9e   : > { %v491_v23 = vsel %vm483_vm0, %v482_v22, %v468_v12  ;;  %4021 = vmatmul.mubr.msk.f32.vlgmr.msra.gmra.mxu1 %vm5092_vm1, %v4018_v19  ;;  %v487_v32 = vsel %vm483_vm0, %v474_v14, %v476_v21 }
  0x9f   : > { %3166 = vrot.lane.b32.xlu1 %v4394_v6, %s4278_s28  ;;  %4019 = vmatpush1.msk.msra.mxu0 %vm418_vm2, %v491_v23 }
  0xa0   : > { %3164 = vrot.lane.b32.xlu0 %v4398_v7, %s4278_s28  ;;  %4020 = vmatmul.mubr.msk.f32.vlgmr.msra.gmra.mxu0 %vm5092_vm1, %v4018_v19 }
  0xa1   : > { %v480_v26 = vpop.permute.xlu1 %479  ;;  %v478_v27 = vpop.permute.xlu0 %477  ;;  %799 = vmatprep.mubr.f32.mxu1 %v5098_v4  ;;  %728 = vmatprep.mubr.f32.mxu0 %v5098_v4 }
  0xa2   : > { %v485_v29 = vsel %vm483_vm0, %v478_v27, %v480_v26  ;;  %v486_v30 = vsel %vm483_vm0, %v476_v21, %v478_v27  ;;  %v484_v31 = vsel %vm483_vm0, %v480_v26, %v482_v22  ;;  %vm4634_vm0 = vcmp.lt.s32.totalorder %v301_v36, 31  ;;  %v4036_v27 = vld [vmem:[%s4467_s7 + $0x10] sm:$0xff] }
  0xa3   : > { %694 = vmatprep.subr.mxu0 %v486_v30  ;;  %765 = vmatprep.subr.mxu1 %v484_v31  ;;  %v5122_v21 = vmov 0  ;;  %v3529_v31 = vld [vmem:[%s5082_s3] sm:$0xff] }
  0xa4   : > { %695 = vmatpush1.msra.mxu0 %v487_v32  ;;  %766 = vmatpush1.msra.mxu1 %v485_v29  ;;  %v5123_v21 = vsel %vm4634_vm0, 4294967295, %v5122_v21 }
  0xa5   : > { %v396_v37 = vpop.permute.xlu1 %395  ;;  %v394_v38 = vpop.permute.xlu0 %393  ;;  %4023 = vmatmul.mubr.msk.f32.vlgmr.msra.gmra.mxu1 %vm5092_vm1, %v4018_v19  ;;  %4022 = vmatmul.mubr.msk.f32.vlgmr.msra.gmra.mxu0 %vm5092_vm1, %v4018_v19 }
  0xa6   : > { %v416_v40 = vsel %vm409_vm3, %v394_v38, %v396_v37  ;;  %873 = vmatprep.mubr.f32.mxu0 %v5098_v4  ;;  %944 = vmatprep.mubr.f32.mxu1 %v5098_v4 }
  0xa7   : > { %4024 = vmatprep.subr.msk.mxu0 %vm4514_vm4, %v416_v40  ;;  %3509 = vperm.xlu0 %4181, %v3506_v35  }
  0xa8   : > { %3532 = vperm.xlu1 %4182, %v3529_v31  }
  0xa9   : > { %v400_v45 = vpop.permute.xlu1 %399  ;;  %v398_v46 = vpop.permute.xlu0 %397 }
  0xaa   : > { %v414_v50 = vsel %vm409_vm3, %v398_v46, %v400_v45  ;;  %v415_v51 = vsel %vm409_vm3, %v396_v37, %v398_v46 }
  0xab   : > { %4027 = vmatprep.subr.msk.mxu1 %vm4534_vm5, %v414_v50 }
  0xac   : > { %4028 = vmatpush1.msk.msra.mxu1 %vm4548_vm7, %v415_v51 }
  0xad   : > { %v402_v55 = vpop.permute.xlu1 %401  ;;  %v408_v56 = vpop.permute.xlu0 %407  ;;  %4029 = vmatmul.mubr.msk.f32.vlgmr.msra.gmra.mxu1 %vm5092_vm1, %v466_v52 }
  0xae   : > { %v417_v59 = vsel %vm409_vm3, %v408_v56, %v394_v38  ;;  %1086 = vmatprep.mubr.f32.mxu1 %v5098_v4  ;;  %v413_v15 = vsel %vm409_vm3, %v400_v45, %v402_v55 }
  0xaf   : > { %4025 = vmatpush1.msk.msra.mxu0 %vm434_vm8, %v417_v59  ;;  %vm1126_vm8 = vmand %vm418_vm2, %vm4634_vm0  ;;  %vm4668_vm2 = vcmp.lt.s32.totalorder %v329_v57, 31 }
  0xb0   : > { %4026 = vmatmul.mubr.msk.f32.vlgmr.msra.gmra.mxu0 %vm5092_vm1, %v466_v52 }
  0xb1   : > { %v406_v62 = vpop.permute.xlu1 %405  ;;  %v404_v63 = vpop.permute.xlu0 %403  ;;  %1015 = vmatprep.mubr.f32.mxu0 %v5098_v4 }
  0xb2   : > { %v410_v12 = vsel %vm409_vm3, %v406_v62, %v408_v56  ;;  %v411_v13 = vsel %vm409_vm3, %v404_v63, %v406_v62  ;;  %v412_v14 = vsel %vm409_vm3, %v402_v55, %v404_v63  ;;  %vm4638_vm3 = vcmp.lt.s32.totalorder %v315_v39, 31 }
  0xb3   : > { %4030 = vmatprep.subr.msk.mxu0 %vm4579_vm9, %v412_v14  ;;  %4033 = vmatprep.subr.msk.mxu1 %vm4583_vm10, %v410_v12  ;;  %v5125_v24 = vsel %vm4638_vm3, 4294967295, %v5124_v24 }
  0xb4   : > { %4031 = vmatpush1.msk.msra.mxu0 %vm4588_vm11, %v413_v15  ;;  %4034 = vmatpush1.msk.msra.mxu1 %vm4592_vm12, %v411_v13  ;;  %vm1471_vm12 = vcmp.lt.s32.totalorder %v4456_v10, 1  ;;  %v4062_v15 = vld [vmem:[%s4467_s7 + $0x20] sm:$0xff] }
  0xb5   : > { %v1096_v17 = vpop.permute.xlu1 %1095  ;;  %v1094_v18 = vpop.permute.xlu0 %1093  ;;  %4035 = vmatmul.mubr.msk.f32.vlgmr.msra.gmra.mxu1 %vm5092_vm1, %v466_v52  ;;  %4032 = vmatmul.mubr.msk.f32.vlgmr.msra.gmra.mxu0 %vm5092_vm1, %v466_v52 }
  0xb6   : > { %v1116_v19 = vsel %vm5089_vm13, %v1094_v18, %v1096_v17  ;;  %1227 = vmatprep.mubr.f32.mxu0 %v5098_v4  ;;  %1298 = vmatprep.mubr.f32.mxu1 %v5098_v4 }
  0xb7   : > { %4037 = vmatprep.subr.msk.mxu0 %vm4616_vm14, %v1116_v19  ;;  %vm4659_vm14 = vcmp.lt.s32.totalorder %v336_v53, 31  ;;  %v4049_v53 = vld [vmem:[%s4467_s7 + $0x18] sm:$0xff] }
  0xb9   : > { %v1100_v22 = vpop.permute.xlu1 %1099  ;;  %v1098_v23 = vpop.permute.xlu0 %1097 }
  0xba   : > { %v1114_v26 = vsel %vm5089_vm13, %v1098_v23, %v1100_v22  ;;  %v1115_v25 = vsel %vm5089_vm13, %v1096_v17, %v1098_v23 }
  0xbb   : > { %4040 = vmatprep.subr.msk.mxu1 %vm4630_vm15, %v1114_v26  ;;  %vm4663_vm15 = vcmp.lt.s32.totalorder %v350_v54, 31 }
  0xbc   : > { %4041 = vmatpush1.msk.msra.mxu1 %vm4638_vm3, %v1115_v25 }
  0xbd   : > { %v1102_v28 = vpop.permute.xlu1 %1101  ;;  %v1108_v29 = vpop.permute.xlu0 %1107  ;;  %4042 = vmatmul.mubr.msk.f32.vlgmr.msra.gmra.mxu1 %vm5092_vm1, %v4036_v27 }
  0xbe   : > { %v1117_v30 = vsel %vm5089_vm13, %v1108_v29, %v1094_v18  ;;  %1440 = vmatprep.mubr.f32.mxu1 %v5098_v4  ;;  %vm4672_vm13 = vcmp.lt.s32.totalorder %v343_v58, 31 }
  0xbf   : > { %4038 = vmatpush1.msk.msra.mxu0 %vm1126_vm8, %v1117_v30  ;;  %vm5134_vm8 = vcmp.lt.s32.totalorder %v4456_v10, 31 }
  0xc0   : > { %4039 = vmatmul.mubr.msk.f32.vlgmr.msra.gmra.mxu0 %vm5092_vm1, %v4036_v27  ;;  %vm5135_vm0 = vmmov %vm5134_vm8 }
  0xc1   : > { %v1106_v34 = vpop.permute.xlu1 %1105  ;;  %v1104_v35 = vpop.permute.xlu0 %1103  ;;  %1369 = vmatprep.mubr.f32.mxu0 %v5098_v4  ;;  %vm5136_vm1 = vmmov %vm5135_vm0 }
  0xc2   : > { %v1110_v38 = vsel %vm5134_vm8, %v1106_v34, %v1108_v29  ;;  %v1111_v39 = vsel %vm5135_vm0, %v1104_v35, %v1106_v34  ;;  %v1112_v40 = vsel %vm5136_vm1, %v1102_v28, %v1104_v35  ;;  %vm5137_vm3 = vmmov %vm5135_vm0  ;;  %vm5138_vm1 = vcmask 64512  }
  0xc3   : > { %v1113_v42 = vsel %vm5137_vm3, %v1100_v22, %v1102_v28  ;;  %4043 = vmatprep.subr.msk.mxu0 %vm4659_vm14, %v1112_v40  ;;  %4046 = vmatprep.subr.msk.mxu1 %vm4663_vm15, %v1110_v38  ;;  %vm5139_vm0 = vmmov %vm5138_vm1 }
  0xc4   : > { %4044 = vmatpush1.msk.msra.mxu0 %vm4668_vm2, %v1113_v42  ;;  %4047 = vmatpush1.msk.msra.mxu1 %vm4672_vm13, %v1111_v39  ;;  %vm5140_vm3 = vmmov %vm5139_vm0  ;;  %v4080_v39 = vld [vmem:[%s4467_s7 + $0x30] sm:$0xff] }
  0xc5   : > { %v1458_v45 = vpop.permute.xlu1 %1457  ;;  %v1456_v46 = vpop.permute.xlu0 %1455  ;;  %4048 = vmatmul.mubr.msk.f32.vlgmr.msra.gmra.mxu1 %vm5138_vm1, %v4036_v27  ;;  %4045 = vmatmul.mubr.msk.f32.vlgmr.msra.gmra.mxu0 %vm5139_vm0, %v4036_v27  ;;  %vm5141_vm8 = vmmov %vm5139_vm0  ;;  %vm5142_vm1 = vnez %v5117_v11 }
  0xc6   : > { %v1478_v48 = vsel %vm1471_vm12, %v1456_v46, %v1458_v45  ;;  %1573 = vmatprep.mubr.f32.mxu0 %v5098_v4  ;;  %1644 = vmatprep.mubr.f32.mxu1 %v5098_v4 }
  0xc7   : > { %4050 = vmatprep.subr.msk.mxu0 %vm4514_vm4, %v1478_v48 }
  0xc9   : > { %v1462_v49 = vpop.permute.xlu1 %1461  ;;  %v1460_v50 = vpop.permute.xlu0 %1459 }
  0xca   : > { %v1476_v51 = vsel %vm1471_vm12, %v1460_v50, %v1462_v49  ;;  %v1477_v52 = vsel %vm1471_vm12, %v1458_v45, %v1460_v50 }
  0xcb   : > { %4053 = vmatprep.subr.msk.mxu1 %vm4534_vm5, %v1476_v51 }
  0xcc   : > { %4054 = vmatpush1.msk.msra.mxu1 %vm4548_vm7, %v1477_v52  ;;  %v4093_v52 = vld [vmem:[%s4467_s7 + $0x38] sm:$0xff] }
  0xcd   : > { %v1464_v54 = vpop.permute.xlu1 %1463  ;;  %v1470_v55 = vpop.permute.xlu0 %1469  ;;  %4055 = vmatmul.mubr.msk.f32.vlgmr.msra.gmra.mxu1 %vm5140_vm3, %v4049_v53  ;;  %vm5143_vm3 = vmmov %vm5139_vm0 }
  0xce   : > { %v1479_v56 = vsel %vm1471_vm12, %v1470_v55, %v1456_v46  ;;  %1786 = vmatprep.mubr.f32.mxu1 %v5098_v4  ;;  %v1475_v12 = vsel %vm1471_vm12, %v1462_v49, %v1464_v54 }
  0xcf   : > { %4051 = vmatpush1.msk.msra.mxu0 %vm4544_vm6, %v1479_v56 }
  0xd0   : > { %4052 = vmatmul.mubr.msk.f32.vlgmr.msra.gmra.mxu0 %vm5141_vm8, %v4049_v53  ;;  %vm5144_vm8 = vmmov %vm5139_vm0 }
  0xd1   : > { %v1468_v57 = vpop.permute.xlu1 %1467  ;;  %v1466_v58 = vpop.permute.xlu0 %1465  ;;  %1715 = vmatprep.mubr.f32.mxu0 %v5098_v4 }
  0xd2   : > { %v1472_v59 = vsel %vm1471_vm12, %v1468_v57, %v1470_v55  ;;  %v1473_v62 = vsel %vm1471_vm12, %v1466_v58, %v1468_v57  ;;  %v1474_v63 = vsel %vm1471_vm12, %v1464_v54, %v1466_v58  ;;  %vm2114_vm12 = vcmp.lt.s32.totalorder %v4456_v10, 127 }
  0xd3   : > { %4056 = vmatprep.subr.msk.mxu0 %vm4579_vm9, %v1474_v63  ;;  %4059 = vmatprep.subr.msk.mxu1 %vm4583_vm10, %v1472_v59 }
  0xd4   : > { %4057 = vmatpush1.msk.msra.mxu0 %vm4588_vm11, %v1475_v12  ;;  %4060 = vmatpush1.msk.msra.mxu1 %vm5142_vm1, %v1473_v62  ;;  %vm5147_vm1 = vmmov %vm5139_vm0  ;;  %vm5149_vm11 = vnez %v5123_v21 }
  0xd5   : > { %v2103_v13 = vpop.permute.xlu1 %2102  ;;  %4058 = vmatmul.mubr.msk.f32.vlgmr.msra.gmra.mxu0 %vm5139_vm0, %v4049_v53  ;;  %4061 = vmatmul.mubr.msk.f32.vlgmr.msra.gmra.mxu1 %vm5143_vm3, %v4049_v53  ;;  %v2101_v14 = vpop.permute.xlu0 %2100  ;;  %vm5145_vm3 = vnez %v5119_v16 }
  0xd6   : > { %1836 = vmatprep.subr.mxu0 %v4383_v3  ;;  %1907 = vmatprep.subr.mxu1 %v4381_v2  ;;  %v2120_v2 = vsel %vm2114_vm12, %v2101_v14, %v2103_v13 }
  0xd7   : > { %1837 = vmatpush1.msra.mxu0 %v4374_v1  ;;  %1870 = vmatprep.mubr.f32.mxu0 %v5098_v4 }
  0xd8   : > { %1908 = vmatpush1.msra.mxu1 %v4372_v0  ;;  %1941 = vmatprep.mubr.f32.mxu1 %v5098_v4 }
  0xd9   : > { %1978 = vmatprep.subr.mxu0 %v4400_v8  ;;  %v2107_v17 = vpop.permute.xlu1 %2106  ;;  %4063 = vmatmul.mubr.msk.f32.vlgmr.msra.gmra.mxu0 %vm5144_vm8, %v4062_v15  ;;  %v2105_v18 = vpop.permute.xlu0 %2104  ;;  %vm5146_vm8 = vnez %v5121_v20 }
  0xda   : > { %4064 = vmatmul.mubr.msk.f32.vlgmr.msra.gmra.mxu1 %vm5139_vm0, %v4062_v15  ;;  %1979 = vmatpush1.msra.mxu0 %v4392_v5  ;;  %v2118_v1 = vsel %vm2114_vm12, %v2105_v18, %v2107_v17  ;;  %v2119_v5 = vsel %vm2114_vm12, %v2103_v13, %v2105_v18 }
  0xdb   : > { %2049 = vmatprep.subr.mxu1 %v4394_v6  ;;  %4068 = vmatprep.subr.msk.mxu0 %vm5145_vm3, %v2120_v2  ;;  %vm5148_vm3 = vnez %v5125_v24 }
  0xdc   : > { %2050 = vmatpush1.msra.mxu1 %v4398_v7  ;;  %2012 = vmatprep.mubr.f32.mxu0 %v5098_v4  ;;  %v4067_v7 = vld [vmem:[%s4467_s7 + $0x28] sm:$0xff] }
  0xdd   : > { %4071 = vmatprep.subr.msk.mxu1 %vm5146_vm8, %v2118_v1  ;;  %2083 = vmatprep.mubr.f32.mxu1 %v5098_v4  ;;  %v2109_v0 = vpop.permute.xlu1 %2108  ;;  %v2099_v3 = vpop.permute.xlu0 %2098  ;;  %v4099_v1 = vld [vmem:[%s4467_s7 + $0x40] sm:$0xff] }
  0xde   : > { %4065 = vmatmul.mubr.msk.f32.vlgmr.msra.gmra.mxu0 %vm5139_vm0, %v4062_v15  ;;  %4066 = vmatmul.mubr.msk.f32.vlgmr.msra.gmra.mxu1 %vm5147_vm1, %v4062_v15  ;;  %v2121_v6 = vsel %vm2114_vm12, %v2099_v3, %v2101_v14  ;;  %vm5150_vm1 = vmmov %vm5139_vm0  ;;  %v2117_v25 = vsel %vm2114_vm12, %v2107_v17, %v2109_v0 }
  0xdf   : > { %4072 = vmatpush1.msk.msra.mxu1 %vm5148_vm3, %v2119_v5  ;;  %4069 = vmatpush1.msk.msra.mxu0 %vm5149_vm11, %v2121_v6  ;;  %vm2460_vm11 = vcmp.lt.s32.totalorder %v4456_v10, 97 }
  0xe0   : > { %2216 = vmatprep.mubr.f32.mxu0 %v5098_v4  ;;  %2287 = vmatprep.mubr.f32.mxu1 %v5098_v4 }
  0xe1   : > { %v2113_v8 = vpop.permute.xlu1 %2112  ;;  %v2111_v19 = vpop.permute.xlu0 %2110 }
  0xe2   : > { %v2122_v22 = vsel %vm2114_vm12, %v2113_v8, %v2099_v3  ;;  %4070 = vmatmul.mubr.msk.f32.vlgmr.msra.gmra.mxu0 %vm5150_vm1, %v4067_v7  ;;  %4073 = vmatmul.mubr.msk.f32.vlgmr.msra.gmra.mxu1 %vm5139_vm0, %v4067_v7  ;;  %v2115_v23 = vsel %vm2114_vm12, %v2111_v19, %v2113_v8  ;;  %v2116_v26 = vsel %vm2114_vm12, %v2109_v0, %v2111_v19  ;;  %vm5151_vm12 = vmmov %vm5139_vm0 }
  0xe3   : > { %4074 = vmatprep.subr.msk.mxu0 %vm4659_vm14, %v2116_v26  ;;  %4077 = vmatprep.subr.msk.mxu1 %vm4663_vm15, %v2122_v22  ;;  %vm5152_vm1 = vmmov %vm5139_vm0 }
  0xe4   : > { %4075 = vmatpush1.msk.msra.mxu0 %vm4668_vm2, %v2117_v25  ;;  %2358 = vmatprep.mubr.f32.mxu0 %v5098_v4 }
  0xe5   : > { %4078 = vmatpush1.msk.msra.mxu1 %vm4672_vm13, %v2115_v23  ;;  %2429 = vmatprep.mubr.f32.mxu1 %v5098_v4  ;;  %v2449_v27 = vpop.permute.xlu1 %2448  ;;  %v2447_v28 = vpop.permute.xlu0 %2446 }
  0xe6   : > { %4076 = vmatmul.mubr.msk.f32.vlgmr.msra.gmra.mxu0 %vm5151_vm12, %v4067_v7  ;;  %4079 = vmatmul.mubr.msk.f32.vlgmr.msra.gmra.mxu1 %vm5152_vm1, %v4067_v7  ;;  %v2466_v29 = vsel %vm2460_vm11, %v2447_v28, %v2449_v27  ;;  %vm5154_vm12 = vmmov %vm5152_vm1 }
  0xe7   : > { %4081 = vmatprep.subr.msk.mxu0 %vm4514_vm4, %v2466_v29  ;;  %2649 = vmatprep.mubr.f32.mxu1 %v5098_v4  ;;  %vm5153_vm4 = vmmov %vm5139_vm0  ;;  %vm2476_vm0 = vcmp.lt.s32.totalorder %v4542_v43, 992 }
  0xe8   : > { %2578 = vmatprep.mubr.f32.mxu0 %v5098_v4 }
  0xe9   : > { %v2453_v30 = vpop.permute.xlu1 %2452  ;;  %v2451_v34 = vpop.permute.xlu0 %2450 }
  0xea   : > { %v2464_v35 = vsel %vm2460_vm11, %v2451_v34, %v2453_v30  ;;  %v2465_v38 = vsel %vm2460_vm11, %v2449_v27, %v2451_v34 }
  0xeb   : > { %4084 = vmatprep.subr.msk.mxu1 %vm4534_vm5, %v2464_v35  ;;  %vm2484_vm5 = vmand %vm2476_vm0, %vm4583_vm10  ;;  %vm5156_vm10 = vnez %v5117_v11 }
  0xec   : > { %4085 = vmatpush1.msk.msra.mxu1 %vm4548_vm7, %v2465_v38  ;;  %vm5155_vm7 = vnez %v5115_v9 }
  0xed   : > { %v2455_v33 = vpop.permute.xlu1 %2454  ;;  %4086 = vmatmul.mubr.msk.f32.vlgmr.msra.gmra.mxu1 %vm5153_vm4, %v4080_v39  ;;  %v2445_v40 = vpop.permute.xlu0 %2444  ;;  %vm5157_vm4 = vmmov %vm5152_vm1 }
  0xee   : > { %v2467_v42 = vsel %vm2460_vm11, %v2445_v40, %v2447_v28  ;;  %2791 = vmatprep.mubr.f32.mxu1 %v5098_v4  ;;  %v2463_v48 = vsel %vm2460_vm11, %v2453_v30, %v2455_v33 }
  0xef   : > { %4082 = vmatpush1.msk.msra.mxu0 %vm4544_vm6, %v2467_v42  ;;  %vm2822_vm6 = vcmp.lt.s32.totalorder %v4456_v10, 96 }
  0xf0   : > { %4083 = vmatmul.mubr.msk.f32.vlgmr.msra.gmra.mxu0 %vm5154_vm12, %v4080_v39  ;;  %vm3168_vm12 = vcmp.lt.s32.totalorder %v4456_v10, 95 }
  0xf1   : > { %v2459_v41 = vpop.permute.xlu1 %2458  ;;  %v2457_v47 = vpop.permute.xlu0 %2456  ;;  %2720 = vmatprep.mubr.f32.mxu0 %v5098_v4 }
  0xf2   : > { %v2468_v45 = vsel %vm2460_vm11, %v2459_v41, %v2445_v40  ;;  %v2461_v46 = vsel %vm2460_vm11, %v2457_v47, %v2459_v41  ;;  %v2462_v44 = vsel %vm2460_vm11, %v2455_v33, %v2457_v47  ;;  %vm5159_vm11 = vmmov %vm5152_vm1 }
  0xf3   : > { %4087 = vmatprep.subr.msk.mxu0 %vm4579_vm9, %v2462_v44  ;;  %4090 = vmatprep.subr.msk.mxu1 %vm2484_vm5, %v2468_v45  ;;  %vm5158_vm9 = vmmov %vm5152_vm1 }
  0xf4   : > { %4088 = vmatpush1.msk.msra.mxu0 %vm5155_vm7, %v2463_v48  ;;  %4091 = vmatpush1.msk.msra.mxu1 %vm5156_vm10, %v2461_v46  ;;  %vm5160_vm5 = vmmov %vm5152_vm1 }
  0xf5   : > { %v2811_v61 = vpop.permute.xlu1 %2810  ;;  %4089 = vmatmul.mubr.msk.f32.vlgmr.msra.gmra.mxu0 %vm5152_vm1, %v4080_v39  ;;  %4092 = vmatmul.mubr.msk.f32.vlgmr.msra.gmra.mxu1 %vm5157_vm4, %v4080_v39  ;;  %v2809_v49 = vpop.permute.xlu0 %2808  ;;  %vm5161_vm7 = vmmov %vm5152_vm1 }
  0xf6   : > { %v2828_v60 = vsel %vm2822_vm6, %v2809_v49, %v2811_v61  ;;  %2995 = vmatprep.mubr.f32.mxu1 %v5098_v4  ;;  %2924 = vmatprep.mubr.f32.mxu0 %v5098_v4  ;;  %vm5163_vm10 = vmmov %vm5152_vm1  ;;  %vm5164_vm1 = vnez %v5123_v21 }
  0xf7   : > { %2890 = vmatprep.subr.mxu0 %v2828_v60 }
  0xf9   : > { %v2815_v50 = vpop.permute.xlu1 %2814  ;;  %v2813_v9 = vpop.permute.xlu0 %2812 }
  0xfa   : > { %v2827_v11 = vsel %vm2822_vm6, %v2811_v61, %v2813_v9  ;;  %v2826_v51 = vsel %vm2822_vm6, %v2813_v9, %v2815_v50 }
  0xfb   : > { %2961 = vmatprep.subr.mxu1 %v2826_v51 }
  0xfc   : > { %2962 = vmatpush1.msra.mxu1 %v2827_v11 }
  0xfd   : > { %v2817_v53 = vpop.permute.xlu1 %2816  ;;  %4095 = vmatmul.mubr.msk.f32.vlgmr.msra.gmra.mxu1 %vm5158_vm9, %v4093_v52  ;;  %v2807_v54 = vpop.permute.xlu0 %2806 }
  0xfe   : > { %v2829_v55 = vsel %vm2822_vm6, %v2807_v54, %v2809_v49  ;;  %3137 = vmatprep.mubr.f32.mxu1 %v5098_v4  ;;  %v2825_v63 = vsel %vm2822_vm6, %v2815_v50, %v2817_v53 }
  0xff   : > { %2891 = vmatpush1.msra.mxu0 %v2829_v55 }
 0x100   : > { %4094 = vmatmul.mubr.msk.f32.vlgmr.msra.gmra.mxu0 %vm5159_vm11, %v4093_v52 }
 0x101   : > { %v2821_v56 = vpop.permute.xlu1 %2820  ;;  %v2819_v57 = vpop.permute.xlu0 %2818  ;;  %3066 = vmatprep.mubr.f32.mxu0 %v5098_v4 }
 0x102   : > { %v2830_v58 = vsel %vm2822_vm6, %v2821_v56, %v2807_v54  ;;  %v2823_v59 = vsel %vm2822_vm6, %v2819_v57, %v2821_v56  ;;  %v2824_v62 = vsel %vm2822_vm6, %v2817_v53, %v2819_v57  ;;  %vm5162_vm6 = vnez %v5119_v16 }
 0x103   : > { %3032 = vmatprep.subr.mxu0 %v2824_v62  ;;  %4097 = vmatprep.subr.msk.mxu1 %vm2476_vm0, %v2830_v58 }
 0x104   : > { %3033 = vmatpush1.msra.mxu0 %v2825_v63  ;;  %3104 = vmatpush1.msra.mxu1 %v2823_v59 }
 0x105   : > { %v3157_v12 = vpop.permute.xlu1 %3156  ;;  %4096 = vmatmul.mubr.msk.f32.vlgmr.msra.gmra.mxu0 %vm5160_vm5, %v4093_v52  ;;  %4098 = vmatmul.mubr.msk.f32.vlgmr.msra.gmra.mxu1 %vm5161_vm7, %v4093_v52  ;;  %v3155_v13 = vpop.permute.xlu0 %3154 }
 0x106   : > { %v3174_v14 = vsel %vm3168_vm12, %v3155_v13, %v3157_v12  ;;  %3349 = vmatprep.mubr.f32.mxu1 %v5098_v4  ;;  %3278 = vmatprep.mubr.f32.mxu0 %v5098_v4 }
 0x107   : > { %4100 = vmatprep.subr.msk.mxu0 %vm5162_vm6, %v3174_v14 }
 0x109   : > { %v3161_v15 = vpop.permute.xlu1 %3160  ;;  %v3159_v17 = vpop.permute.xlu0 %3158 }
 0x10a   : > { %v3172_v18 = vsel %vm3168_vm12, %v3159_v17, %v3161_v15  ;;  %v3173_v2 = vsel %vm3168_vm12, %v3157_v12, %v3159_v17 }
 0x10b   : > { %4103 = vmatprep.subr.msk.mxu1 %vm5146_vm8, %v3172_v18  ;;  %vm3184_vm8 = vmand %vm2476_vm0, %vm4663_vm15 }
 0x10c   : > { %4104 = vmatpush1.msk.msra.mxu1 %vm5148_vm3, %v3173_v2  ;;  %vm5165_vm15 = vmmov %vm5157_vm4 }
 0x10d   : > { %v3163_v0 = vpop.permute.xlu1 %3162  ;;  %4105 = vmatmul.mubr.msk.f32.vlgmr.msra.gmra.mxu1 %vm5163_vm10, %v4099_v1  ;;  %vm5166_vm3 = vmmov %vm5157_vm4 }
 0x10e   : > { %v3153_v16 = vpop.permute.xlu0 %3152  ;;  %3491 = vmatprep.mubr.f32.mxu1 %v5098_v4  ;;  %v3171_v43 = vsel %vm3168_vm12, %v3161_v15, %v3163_v0 }
 0x10f   : > { %v3175_v3 = vsel %vm3168_vm12, %v3153_v16, %v3155_v13 }
 0x110   : > { %4101 = vmatpush1.msk.msra.mxu0 %vm5164_vm1, %v3175_v3 }
 0x111   : > { %4102 = vmatmul.mubr.msk.f32.vlgmr.msra.gmra.mxu0 %vm5157_vm4, %v4099_v1  ;;  %v3167_v20 = vpop.permute.xlu1 %3166 }
 0x112   : > { %v3176_v24 = vsel %vm3168_vm12, %v3167_v20, %v3153_v16  ;;  %v3165_v5 = vpop.permute.xlu0 %3164  ;;  %3420 = vmatprep.mubr.f32.mxu0 %v5098_v4 }
 0x113   : > { %v3169_v6 = vsel %vm3168_vm12, %v3165_v5, %v3167_v20  ;;  %v3170_v21 = vsel %vm3168_vm12, %v3163_v0, %v3165_v5  ;;  %4109 = vmatprep.subr.msk.mxu1 %vm3184_vm8, %v3176_v24 }
 0x114   : > { %4106 = vmatprep.subr.msk.mxu0 %vm4659_vm14, %v3170_v21  ;;  %4110 = vmatpush1.msk.msra.mxu1 %vm4672_vm13, %v3169_v6  ;;  %vm5183_vm13 = vmmov %vm5166_vm3 }
 0x115   : > { %4107 = vmatpush1.msk.msra.mxu0 %vm4668_vm2, %v3171_v43  ;;  %4111 = vmatmul.mubr.msk.f32.vlgmr.msra.gmra.mxu1 %vm5165_vm15, %v4099_v1  ;;  %vm5185_vm14 = vmmov %vm5166_vm3 }
 0x116   : > { %4108 = vmatmul.mubr.msk.f32.vlgmr.msra.gmra.mxu0 %vm5166_vm3, %v4099_v1  ;;  %3673 = vmatprep.mubr.f32.mxu1 %v5098_v4  ;;  %vm5186_vm2 = vmmov %vm5166_vm3 }
 0x117   : > { %3602 = vmatprep.mubr.f32.mxu0 %v5098_v4  ;;  %vm5187_vm0 = vmmov %vm5186_vm2 }
 0x15e   : > { %v659_v32 = vpop.f32.mrf.mxu1 }
 0x160   : > { %v588_v10 = vpop.f32.mrf.mxu0  ;;  %v661_v7 = vpop.f32.mrf.mxu1 }
 0x162   : > { %v590_v37 = vpop.f32.mrf.mxu0 }
 0x165   : > { %v801_v8 = vpop.f32.mrf.mxu1  ;;  %v730_v36 = vpop.f32.mrf.mxu0 }
 0x167   : > { %v803_v19 = vpop.f32.mrf.mxu1  ;;  %v4918_v22 = vpop.f32.mrf.mxu0 }
 0x16d   : > { %v946_v23 = vpop.f32.mrf.mxu1 }
 0x16e   : > { %v947_v0 = vadd.f32 %v946_v23, %v659_v32 }
 0x16f   : > { %v948_v25 = vpop.f32.mrf.mxu1 }
 0x170   : > { %v875_v26 = vpop.f32.mrf.mxu0  ;;  %v949_v3 = vadd.f32 %v948_v25, %v661_v7 }
 0x171   : > { %v876_v24 = vadd.f32 %v875_v26, %v588_v10 }
 0x172   : > { %v877_v27 = vpop.f32.mrf.mxu0 }
 0x173   : > { %v878_v43 = vadd.f32 %v877_v27, %v590_v37 }
 0x175   : > { %v1088_v28 = vpop.f32.mrf.mxu1  ;;  %v1017_v29 = vpop.f32.mrf.mxu0 }
 0x176   : > { %v1089_v4 = vadd.f32 %v1088_v28, %v801_v8 }
 0x177   : > { %v1090_v30 = vpop.f32.mrf.mxu1  ;;  %v1019_v34 = vpop.f32.mrf.mxu0 }
 0x178   : > { %v1020_v7 = vadd.f32 %v1019_v34, %v4918_v22 }
 0x17d   : > { %v1300_v35 = vpop.f32.mrf.mxu1 }
 0x17e   : > { %v1449_v5 = vadd.f32 %v1300_v35, %v947_v0 }
 0x17f   : > { %v1302_v39 = vpop.f32.mrf.mxu1 }
 0x180   : > { %v1229_v38 = vpop.f32.mrf.mxu0  ;;  %v1450_v31 = vadd.f32 %v1302_v39, %v949_v3 }
 0x182   : > { %v1231_v33 = vpop.f32.mrf.mxu0 }
 0x183   : > { %v1448_v32 = vadd.f32 %v1231_v33, %v878_v43 }
 0x185   : > { %v1442_v40 = vpop.f32.mrf.mxu1  ;;  %v1371_v42 = vpop.f32.mrf.mxu0 }
 0x186   : > { %v1453_v25 = vadd.f32 %v1442_v40, %v1089_v4 }
 0x187   : > { %v1444_v41 = vpop.f32.mrf.mxu1  ;;  %v4920_v47 = vpop.f32.mrf.mxu0 }
 0x18d   : > { %v1646_v45 = vpop.f32.mrf.mxu1 }
 0x18f   : > { %v1648_v44 = vpop.f32.mrf.mxu1 }
 0x190   : > { %v1575_v46 = vpop.f32.mrf.mxu0  ;;  %v1796_v23 = vadd.f32 %v1648_v44, %v1450_v31 }
 0x192   : > { %v1577_v48 = vpop.f32.mrf.mxu0 }
 0x193   : > { %v1794_v8 = vadd.f32 %v1577_v48, %v1448_v32 }
 0x195   : > { %v4922_v61 = vpop.f32.mrf.mxu0  ;;  %v1788_v49 = vpop.f32.mrf.mxu1 }
 0x197   : > { %v4924_v60 = vpop.f32.mrf.mxu0  ;;  %v4926_v50 = vpop.f32.mrf.mxu1 }
 0x199   : > { %v1872_v9 = vpop.f32.mrf.mxu0 }
 0x19a   : > { %v1943_v11 = vpop.f32.mrf.mxu1 }
 0x19b   : > { %v1874_v51 = vpop.f32.mrf.mxu0 }
 0x19c   : > { %v1945_v52 = vpop.f32.mrf.mxu1  ;;  %v2091_v33 = vadd.f32 %v1874_v51, %v1794_v8 }
 0x19d   : > { %v2093_v0 = vadd.f32 %v1945_v52, %v1796_v23 }
 0x19e   : > { %v4928_v53 = vpop.f32.mrf.mxu0  ;;  %v2085_v54 = vpop.f32.mrf.mxu1 }
 0x1a0   : > { %v4930_v55 = vpop.f32.mrf.mxu0  ;;  %v4932_v56 = vpop.f32.mrf.mxu1 }
 0x1a1   : > { %5167 = vst [vmem:[#allocation5_spill] sm:$0xff] %v4930_v55  ;;  %v1018_v55 = vadd.f32 %v1017_v29, %v730_v36  ;;  %v1452_v36 = vadd.f32 %v4920_v47, %v1020_v7 }
 0x1a2   : > { %v2218_v57 = vpop.f32.mrf.mxu0  ;;  %v2289_v58 = vpop.f32.mrf.mxu1 }
 0x1a3   : > { %v1451_v37 = vadd.f32 %v1371_v42, %v1018_v55  ;;  %v1798_v47 = vadd.f32 %v4924_v60, %v1452_v36 }
 0x1a4   : > { %v2220_v59 = vpop.f32.mrf.mxu0  ;;  %v2291_v62 = vpop.f32.mrf.mxu1 }
 0x1a5   : > { %v1797_v34 = vadd.f32 %v4922_v61, %v1451_v37 }
 0x1a6   : > { %v4934_v63 = vpop.f32.mrf.mxu0  ;;  %v4936_v12 = vpop.f32.mrf.mxu1 }
 0x1a7   : > { %5168 = vst [vmem:[#allocation6_spill] sm:$0xff] %v4934_v63  ;;  %5169 = vst [vmem:[#allocation7_spill] sm:$0xff] %v4936_v12  ;;  %v1795_v63 = vadd.f32 %v1646_v45, %v1449_v5  ;;  %v1091_v12 = vadd.f32 %v1090_v30, %v803_v19  ;;  %v1799_v19 = vadd.f32 %v1788_v49, %v1453_v25 }
 0x1a8   : > { %v4938_v13 = vpop.f32.mrf.mxu0  ;;  %v4940_v14 = vpop.f32.mrf.mxu1  ;;  %v2094_v49 = vadd.f32 %v4928_v53, %v1797_v34 }
 0x1a9   : > { %5170 = vst [vmem:[#allocation8_spill] sm:$0xff] %v4938_v13  ;;  %5171 = vst [vmem:[#allocation9_spill] sm:$0xff] %v4940_v14  ;;  %v1447_v14 = vadd.f32 %v1229_v38, %v876_v24  ;;  %v1454_v27 = vadd.f32 %v1444_v41, %v1091_v12  ;;  %v2439_v38 = vadd.f32 %v2291_v62, %v2093_v0  ;;  %v3520_v0 = vld [vmem:[#allocation2] sm:$0xff] }
 0x1aa   : > { %v2437_v41 = vadd.f32 %v2220_v59, %v2091_v33 }
 0x1ab   : > { %v1793_v35 = vadd.f32 %v1575_v46, %v1447_v14  ;;  %v1800_v40 = vadd.f32 %v4926_v50, %v1454_v27  ;;  %v2096_v46 = vadd.f32 %v2085_v54, %v1799_v19  ;;  %v5176_v54 = vld [vmem:[#allocation5_spill] sm:$0xff] }
 0x1ad   : > { %v2651_v15 = vpop.f32.mrf.mxu1  ;;  %v2090_v28 = vadd.f32 %v1872_v9, %v1793_v35  ;;  %v2097_v51 = vadd.f32 %v4932_v56, %v1800_v40 }
 0x1ae   : > { %v5177_v59 = vld [vmem:[#allocation6_spill] sm:$0xff] }
 0x1af   : > { %v2653_v18 = vpop.f32.mrf.mxu1  ;;  %v2436_v45 = vadd.f32 %v2218_v57, %v2090_v28  ;;  %v5175_v57 = vld [vmem:[#allocation7_spill] sm:$0xff]  ;;  %v2440_v12 = vadd.f32 %v5177_v59, %v2094_v49 }
 0x1b0   : > { %v2580_v17 = vpop.f32.mrf.mxu0  ;;  %v2801_v22 = vadd.f32 %v2653_v18, %v2439_v38  ;;  %v5178_v14 = vld [vmem:[#allocation9_spill] sm:$0xff]  ;;  %v5180_v3 = vld [vmem:[#allocation8_spill] sm:$0xff] }
 0x1b1   : > { %v2798_v44 = vadd.f32 %v2580_v17, %v2436_v45  ;;  %v5184_v45 = vmov 0.0  }
 0x1b2   : > { %v2582_v2 = vpop.f32.mrf.mxu0 }
 0x1b3   : > { %v2799_v61 = vadd.f32 %v2582_v2, %v2437_v41 }
 0x1b5   : > { %v4942_v1 = vpop.f32.mrf.mxu1  ;;  %v4944_v16 = vpop.f32.mrf.mxu0 }
 0x1b6   : > { %5172 = vst [vmem:[#allocation10_spill] sm:$0xff] %v4942_v1  ;;  %5173 = vst [vmem:[#allocation11_spill] sm:$0xff] %v4944_v16  ;;  %v2092_v16 = vadd.f32 %v1943_v11, %v1795_v63  ;;  %v3510_v11 = vpop.permute.xlu0 %3509  ;;  %v2095_v63 = vadd.f32 %v5176_v54, %v1798_v47 }
 0x1b7   : > { %v4946_v20 = vpop.f32.mrf.mxu1  ;;  %v4948_v6 = vpop.f32.mrf.mxu0 }
 0x1b8   : > { %5174 = vst [vmem:[#allocation12_spill] sm:$0xff] %v4948_v6  ;;  %v2438_v6 = vadd.f32 %v2289_v58, %v2092_v16  ;;  %v2442_v58 = vadd.f32 %v5175_v57, %v2096_v46  ;;  %v2441_v24 = vadd.f32 %v5180_v3, %v2095_v63 }
 0x1ba   : > { %v2800_v39 = vadd.f32 %v2651_v15, %v2438_v6  ;;  %v2443_v15 = vadd.f32 %v5178_v14, %v2097_v51 }
 0x1bc   : > { %v2805_v6 = vadd.f32 %v4946_v20, %v2443_v15 }
 0x1bd   : > { %v2997_v21 = vpop.f32.mrf.mxu1  ;;  %v5179_v60 = vld [vmem:[#allocation10_spill] sm:$0xff]  ;;  %v5181_v2 = vld [vmem:[#allocation11_spill] sm:$0xff] }
 0x1be   : > { %v3146_v4 = vadd.f32 %v2997_v21, %v2800_v39  ;;  %v2804_v53 = vadd.f32 %v5179_v60, %v2442_v58 }
 0x1bf   : > { %v2999_v1 = vpop.f32.mrf.mxu1  ;;  %v5182_v32 = vld [vmem:[#allocation12_spill] sm:$0xff] }
 0x1c0   : > { %v2926_v13 = vpop.f32.mrf.mxu0  ;;  %v3147_v48 = vadd.f32 %v2999_v1, %v2801_v22  ;;  %v2803_v23 = vadd.f32 %v5182_v32, %v2441_v24 }
 0x1c1   : > { %v3144_v62 = vadd.f32 %v2926_v13, %v2798_v44  ;;  %v2802_v13 = vadd.f32 %v5181_v2, %v2440_v12  ;;  %v3533_v44 = vpop.permute.xlu1 %3532 }
 0x1c2   : > { %v2928_v10 = vpop.f32.mrf.mxu0 }
 0x1c3   : > { %v3145_v1 = vadd.f32 %v2928_v10, %v2799_v61 }
 0x1c5   : > { %v3139_v26 = vpop.f32.mrf.mxu1  ;;  %v3068_v29 = vpop.f32.mrf.mxu0 }
 0x1c6   : > { %v3150_v21 = vadd.f32 %v3139_v26, %v2804_v53  ;;  %v3148_v7 = vadd.f32 %v3068_v29, %v2802_v13 }
 0x1c7   : > { %v3141_v30 = vpop.f32.mrf.mxu1  ;;  %v3070_v52 = vpop.f32.mrf.mxu0 }
 0x1c8   : > { %v3151_v37 = vadd.f32 %v3141_v30, %v2805_v6  ;;  %v3149_v26 = vadd.f32 %v3070_v52, %v2803_v23 }
 0x1cd   : > { %v3351_v42 = vpop.f32.mrf.mxu1 }
 0x1ce   : > { %v3500_v9 = vadd.f32 %v3351_v42, %v3146_v4 }
 0x1cf   : > { %v3353_v55 = vpop.f32.mrf.mxu1 }
 0x1d0   : > { %v3501_v50 = vadd.f32 %v3353_v55, %v3147_v48  ;;  %v4961_v18 = vadd.f32 %v3510_v11, %v3500_v9 }
 0x1d1   : > { %v3280_v17 = vpop.f32.mrf.mxu0 }
 0x1d2   : > { %v3498_v56 = vadd.f32 %v3280_v17, %v3144_v62  ;;  %v4964_v16 = vadd.f32 %v3510_v11, %v3501_v50  ;;  %v3523_v35 = vmul.f32 %v4961_v18, %v4961_v18 }
 0x1d3   : > { %v3282_v5 = vpop.f32.mrf.mxu0 }
 0x1d4   : > { %v3499_v43 = vadd.f32 %v3282_v5, %v3145_v1  ;;  %v3524_v31 = vmul.f32 %v4964_v16, %v4964_v16  ;;  %v4972_v25 = vadd.f32 %v3510_v11, %v3498_v56 }
 0x1d5   : > { %v3493_v10 = vpop.f32.mrf.mxu1 }
 0x1d6   : > { %v4976_v27 = vadd.f32 %v3510_v11, %v3499_v43  ;;  %v3422_v8 = vpop.f32.mrf.mxu0  ;;  %v3504_v20 = vadd.f32 %v3493_v10, %v3150_v21  ;;  %3639 = vmatprep.subr.mxu1 %v3524_v31  ;;  %v3521_v29 = vmul.f32 %v4972_v25, %v4972_v25 }
 0x1d7   : > { %v3502_v28 = vadd.f32 %v3422_v8, %v3148_v7  ;;  %v3495_v38 = vpop.f32.mrf.mxu1  ;;  %3640 = vmatpush1.msra.mxu1 %v3523_v35 }
 0x1d8   : > { %v3424_v39 = vpop.f32.mrf.mxu0  ;;  %v3505_v36 = vadd.f32 %v3495_v38, %v3151_v37  ;;  %4113 = vmatmul.mubr.msk.f32.vlgmr.msra.gmra.mxu1 %vm5183_vm13, %v3520_v0  ;;  %v3522_v19 = vmul.f32 %v4976_v27, %v4976_v27  ;;  %v4983_v30 = vadd.f32 %v3510_v11, %v3504_v20 }
 0x1d9   : > { %v3503_v33 = vadd.f32 %v3424_v39, %v3149_v26  ;;  %3815 = vmatprep.mubr.f32.mxu1 %v5184_v45  ;;  %v4986_v22 = vadd.f32 %v3510_v11, %v3502_v28 }
 0x1da   : > { %v4988_v4 = vadd.f32 %v3510_v11, %v3505_v36  ;;  %3568 = vmatprep.subr.mxu0 %v3522_v19  ;;  %v3527_v46 = vmul.f32 %v4983_v30, %v4983_v30 }
 0x1db   : > { %v4990_v34 = vadd.f32 %v3510_v11, %v3503_v33  ;;  %3569 = vmatpush1.msra.mxu0 %v3521_v29  ;;  %v3525_v41 = vmul.f32 %v4986_v22, %v4986_v22 }
 0x1dc   : > { %4112 = vmatmul.mubr.msk.f32.vlgmr.msra.gmra.mxu0 %vm5185_vm14, %v3520_v0  ;;  %v3528_v40 = vmul.f32 %v4988_v4, %v4988_v4 }
 0x1dd   : > { %v3526_v42 = vmul.f32 %v4990_v34, %v4990_v34  ;;  %3744 = vmatprep.mubr.f32.mxu0 %v5184_v45 }
 0x1de   : > { %3781 = vmatprep.subr.mxu1 %v3528_v40 }
 0x1df   : > { %3710 = vmatprep.subr.mxu0 %v3526_v42  ;;  %3782 = vmatpush1.msra.mxu1 %v3527_v46 }
 0x1e0   : > { %3711 = vmatpush1.msra.mxu0 %v3525_v41  ;;  %4115 = vmatmul.mubr.msk.f32.vlgmr.msra.gmra.mxu1 %vm5186_vm2, %v3520_v0 }
 0x1e1   : > { %4114 = vmatmul.mubr.msk.f32.vlgmr.msra.gmra.mxu0 %vm5187_vm0, %v3520_v0 }
 0x298   : > { %v3675_v48 = vpop.f32.mrf.mxu1 }
 0x299   : > { %v3676_v9 = vadd.f32 %v3675_v48, %v3533_v44 }
 0x29a   : > { %v3677_v11 = vpop.f32.mrf.mxu1 }
 0x29b   : > { %4183 = vrsqrt.f32 %v3676_v9  ;;  %v3678_v47 = vadd.f32 %v3677_v11, %v3533_v44  ;;  %vm3838_vm9 = vcmp.eq.f32.partialorder %v3676_v9, inf  ;;  %v3841_v15 = vand.u32 2147483648, %v3676_v9 }
 0x29c   : > { %v3604_v49 = vpop.f32.mrf.mxu0  ;;  %vm3840_vm11 = vcmp.eq.f32.partialorder %v3676_v9, 0.0 }
 0x29d   : > { %v3605_v51 = vadd.f32 %v3604_v49, %v3533_v44  ;;  %4185 = vrsqrt.f32 %v3678_v47  ;;  %vm3845_vm12 = vcmp.eq.f32.partialorder %v3678_v47, inf  ;;  %vm3847_vm5 = vcmp.eq.f32.partialorder %v3678_v47, 0.0 }
 0x29e   : > { %v3606_v52 = vpop.f32.mrf.mxu0  ;;  %v3848_v24 = vand.u32 2147483648, %v3678_v47 }
 0x29f   : > { %4187 = vrsqrt.f32 %v3605_v51  ;;  %v3607_v55 = vadd.f32 %v3606_v52, %v3533_v44  ;;  %vm3824_vm7 = vcmp.eq.f32.partialorder %v3605_v51, inf  ;;  %vm3826_vm6 = vcmp.eq.f32.partialorder %v3605_v51, 0.0 }
 0x2a0   : > { %v3817_v57 = vpop.f32.mrf.mxu1  ;;  %v3827_v5 = vand.u32 2147483648, %v3605_v51 }
 0x2a1   : > { %v3746_v58 = vpop.f32.mrf.mxu0  ;;  %v5004_v61 = vadd.f32 %v3817_v57, %v3533_v44  ;;  %4189 = vrsqrt.f32 %v3607_v55  ;;  %vm3831_vm10 = vcmp.eq.f32.partialorder %v3607_v55, inf  ;;  %vm3833_vm1 = vcmp.eq.f32.partialorder %v3607_v55, 0.0 }
 0x2a2   : > { %v3819_v62 = vpop.f32.mrf.mxu1  ;;  %v5006_v50 = vadd.f32 %v3746_v58, %v3533_v44  ;;  %v3834_v31 = vand.u32 2147483648, %v3607_v55 }
 0x2a3   : > { %4191 = vrsqrt.f32 %v5004_v61  ;;  %v3748_v54 = vpop.f32.mrf.mxu0  ;;  %v5011_v59 = vadd.f32 %v3819_v62, %v3533_v44  ;;  %vm3866_vm8 = vcmp.eq.f32.partialorder %v5004_v61, inf  ;;  %vm3868_vm4 = vcmp.eq.f32.partialorder %v5004_v61, 0.0 }
 0x2a4   : > { %v5009_v63 = vadd.f32 %v3748_v54, %v3533_v44  ;;  %4193 = vrsqrt.f32 %v5006_v50  ;;  %v3869_v0 = vand.u32 2147483648, %v5004_v61  ;;  %vm3852_vm15 = vcmp.eq.f32.partialorder %v5006_v50, inf }
 0x2a5   : > { %vm3854_vm3 = vcmp.eq.f32.partialorder %v5006_v50, 0.0  ;;  %vm3873_vm2 = vcmp.eq.f32.partialorder %v5011_v59, inf  ;;  %v3876_v42 = vand.u32 2147483648, %v5011_v59  ;;  %vm3875_vm0 = vcmp.eq.f32.partialorder %v5011_v59, 0.0 }
 0x2a6   : > { %4195 = vrsqrt.f32 %v5009_v63  ;;  %vm3859_vm13 = vcmp.eq.f32.partialorder %v5009_v63, inf  ;;  %vm3861_vm14 = vcmp.eq.f32.partialorder %v5009_v63, 0.0  ;;  %v3862_v45 = vand.u32 2147483648, %v5009_v63 }
 0x2a7   : > { %4197 = vrsqrt.f32 %v5011_v59 }
 0x2a8   : > { %v4184_v12 = vpop.eup %4183 }
 0x2a9   : > { %v3837_v14 = vmul.f32 %v4184_v12, %v3676_v9 }
 0x2aa   : > { %v4186_v17 = vpop.eup %4185 }
 0x2ab   : > { %v3839_v60 = vsel %vm3838_vm9, %v3676_v9, %v3837_v14  ;;  %v3844_v56 = vmul.f32 %v4186_v17, %v3678_v47 }
 0x2ac   : > { %v4188_v53 = vpop.eup %4187  ;;  %v3842_v1 = vsel %vm3840_vm11, %v3841_v15, %v3839_v60 }
 0x2ad   : > { %v3880_v3 = vmul.f32 %v3842_v1, %v4961_v18  ;;  %v3823_v2 = vmul.f32 %v4188_v53, %v3605_v51  ;;  %v3846_v13 = vsel %vm3845_vm12, %v3678_v47, %v3844_v56 }
 0x2ae   : > { %v4190_v6 = vpop.eup %4189  ;;  %v3849_v21 = vsel %vm3847_vm5, %v3848_v24, %v3846_v13 }
 0x2af   : > { %3888 = vst [vmem:[%s5020_s14 + $0x10] sm:$0xff] %v3880_v3  ;;  %v3825_v43 = vsel %vm3824_vm7, %v3605_v51, %v3823_v2  ;;  %v3881_v23 = vmul.f32 %v3849_v21, %v4964_v16  ;;  %v3830_v18 = vmul.f32 %v4190_v6, %v3607_v55  ;;  %v3855_v16 = vand.u32 2147483648, %v5006_v50 }
 0x2b0   : > { %v4192_v32 = vpop.eup %4191  ;;  %v3828_v7 = vsel %vm3826_vm6, %v3827_v5, %v3825_v43 }
 0x2b1   : > { %v3878_v10 = vmul.f32 %v3828_v7, %v4972_v25  ;;  %v3865_v35 = vmul.f32 %v4192_v32, %v5004_v61  ;;  %v4194_v37 = vpop.eup %4193  ;;  %3889 = vst [vmem:[%s5020_s14 + $0x18] sm:$0xff] %v3881_v23  ;;  %v3832_v8 = vsel %vm3831_vm10, %v3607_v55, %v3830_v18 }
 0x2b2   : > { %v3835_v25 = vsel %vm3833_vm1, %v3834_v31, %v3832_v8  ;;  %v3851_v26 = vmul.f32 %v4194_v37, %v5006_v50 }
 0x2b3   : > { %v4196_v20 = vpop.eup %4195  ;;  %3886 = vst [vmem:[%s5020_s14] sm:$0xff] %v3878_v10  ;;  %v3867_v28 = vsel %vm3866_vm8, %v5004_v61, %v3865_v35  ;;  %v3879_v39 = vmul.f32 %v3835_v25, %v4976_v27 }
 0x2b4   : > { %v4198_v38 = vpop.eup %4197  ;;  %v3870_v36 = vsel %vm3868_vm4, %v3869_v0, %v3867_v28  ;;  %v3858_v19 = vmul.f32 %v4196_v20, %v5009_v63  ;;  %v3853_v29 = vsel %vm3852_vm15, %v5006_v50, %v3851_v26 }
 0x2b5   : > { %v3884_v33 = vmul.f32 %v3870_v36, %v4983_v30  ;;  %v3872_v40 = vmul.f32 %v4198_v38, %v5011_v59  ;;  %3887 = vst [vmem:[%s5020_s14 + $0x8] sm:$0xff] %v3879_v39  ;;  %v3856_v27 = vsel %vm3854_vm3, %v3855_v16, %v3853_v29 }
 0x2b6   : > { %v3860_v46 = vsel %vm3859_vm13, %v5009_v63, %v3858_v19  ;;  %v3882_v41 = vmul.f32 %v3856_v27, %v4986_v22 }
 0x2b7   : > { %3892 = vst [vmem:[%s5020_s14 + $0x30] sm:$0xff] %v3884_v33  ;;  %v3863_v30 = vsel %vm3861_vm14, %v3862_v45, %v3860_v46  ;;  %v3874_v44 = vsel %vm3873_vm2, %v5011_v59, %v3872_v40 }
 0x2b8   : > { %v3883_v48 = vmul.f32 %v3863_v30, %v4990_v34  ;;  %v3877_v9 = vsel %vm3875_vm0, %v3876_v42, %v3874_v44  ;;  %3890 = vst [vmem:[%s5020_s14 + $0x20] sm:$0xff] %v3882_v41 }
 0x2b9   : > { %v3885_v11 = vmul.f32 %v3877_v9, %v4988_v4 }
 0x2ba   : > { %3891 = vst [vmem:[%s5020_s14 + $0x28] sm:$0xff] %v3883_v48 }
 0x2bb   : > { %3893 = vst [vmem:[%s5020_s14 + $0x38] sm:$0xff] %v3885_v11 }
 0x2bc PF: > { %s16_s22 = sadd.s32 1, %s4267_s22   ;;  %s5188_s18 = smov %s4259_s20 }
 0x2bd   : > { %p13_p3 = scmp.ge.s32.totalorder %s16_s22, 10   ;;  %s5189_s19 = smov %s4263_s21 }
 0x2be   : > { %s5190_s20 = smov %s5193_s24  ;;  %s5191_s21 = smov %s5197_s25 }
 0x2bf   :  { %15 = sbr.rel (!%p13_p3) target bundleno = 3 (0x3), region = 86 }
 0x2c4   :  { %3923 = vsyncpa [#allocation3], 1 }
 0x2c5   :  { %3925 = vsyncpa [#allocation3 + $0x1], 1 }

// kernel: synthesis_transform.5
= control target key start
LH: loop header
LB: loop body
LE: loop exit
PB: predicated region body
PF: predicated region fallthrough
CT: control target
= control target key end

     0   :  { %10 = vsyncpa [#allocation3], 0  ;;  %s15167_s18 = smov 0   ;;  %s15169_s19 = smov 0   ;;  %s19333_s0 = inlined_call_operand.vmem [shape: f32[4,9,4,8], index: 0, kind: input, shape index: {}]   ;;  %s19334_s1 = inlined_call_operand.vmem [shape: f32[4,1], index: 1, kind: input, shape index: {}]   ;;  %s19335_s2 = inlined_call_operand.hbm [shape: f32[4,4], index: 2, kind: input, shape index: {}]   ;;  %s19336_s3 = inlined_call_operand.vmem [shape: f32[4,1], index: 3, kind: input, shape index: {}]   ;;  %s19337_s4 = inlined_call_operand.vmem [shape: f32[2,8,4096], index: 4, kind: input, shape index: {}]   ;;  %s19338_s5 = inlined_call_operand.vmem [shape: f32[2,4,4,4096], index: 5, kind: output, shape index: {}]  }
   0x1   :  { %s15171_s20 = smov 0   ;;  %s15173_s21 = smov 0  }
   0x2   :  { %s15175_s22 = smov 0  }
   0x3 LB: > { %s14492_s23 = sadd.s32 4294967295, %s15127_s22   ;;  %s25_s24 = sadd.s32 1, %s15119_s20  ;;  %s15127_s22 = sphi %s15175_s22, %s16_s22   ;;  %s15123_s21 = sphi %s15173_s21, %s20574_s21   ;;  %s15119_s20 = sphi %s15171_s20, %s20573_s20   ;;  %s15115_s19 = sphi %s15169_s19, %s20572_s19   ;;  %s15111_s18 = sphi %s15167_s18, %s20571_s18  }
   0x4   : > { %p26_p0 = scmp.ge.s32.totalorder %s25_s24, 4  ;;  %s28_s25 = sadd.s32 1, %s15123_s21 }
   0x5   : > { %p14494_p1 = scmp.ge.s32.totalorder %s15127_s22, 1  ;;  %p176_p2 = scmp.lt.s32.totalorder %s15127_s22, 9 }
   0x6   : > { %s20576_s24 = smov (%p26_p0, %s25_s24), 0  ;;  %s20578_s25 = smov (!%p26_p0, %s28_s25), %s15123_s21 }
   0x7   : > { %p15200_p3 = pnand %p14494_p1, %p176_p2  ;;  %p30_p4 = scmp.ge.s32.totalorder %s20578_s25, 2 }
   0x8   : > { %p15204_p5 = scmp.eq.s32.totalorder %s14492_s23, 0  ;;  %s15129_s28 = smov [#allocation2]  }
   0x9   : > { %p14907_p6 = pneg %p15200_p3  ;;  %s20580_s25 = smov (%p30_p4, %s20578_s25), 0 }
   0xa   : > { %s192_s29 = sshll.u32 %s15129_s28, 4  ;;  %s193_s29 = int_to_ptr.vmem [resolvable:$true] %s192_s29 }
   0xb   : > { %p14908_p7 = pnand %p15204_p5, %p14907_p6  ;;  %s15070_s30 = scalar_lea.vmem %s193_s29, 64 }
   0xc   : > { %p15071_p9 = scmp.ne.s32.totalorder %s193_s29, %s15070_s30  ;;  %p15078_p12 = scmp.lt.s32.totalorder %s193_s29, %s193_s29 }
   0xd   : > { %p15061_p8 = pneg %p14908_p7  ;;  %p15079_p13 = scmp.lt.s32.totalorder %s15070_s30, %s15070_s30 }
   0xf   : > { %p15073_p10 = pnand %p15071_p9, %p15061_p8  ;;  %p15080_p0 = por %p15079_p13, %p15078_p12 }
  0x11   : > { %p15074_p11 = pneg %p15073_p10 }
  0x13   : > { %p15081_p1 = pnand %p15080_p0, %p15074_p11 }
  0x15   : > { %15084 = shalt.err (!%p15081_p1)
}
  0x16   : > { %14910 = dma.hbm_to_vmem [thread:$0]  (!%p14908_p7), %s19335_s2, 64, %s193_s29, [#allocation3]  }
  0x17   : > { %224 = sbr.rel (%p15200_p3) target bundleno = 1030 (0x406), region = 40 }
  0x1c   : > { %15106 = dma.done.wait (%p15204_p5), [#allocation3], 64  }
  0x1d   : > { %15108 = vsyncadd (%p15204_p5), [#allocation3], 4294967232  ;;  %p266_p2 = scmp.lt.s32.totalorder %s15115_s19, 1  ;;  %p261_p4 = scmp.lt.s32.totalorder %s15111_s18, 3  ;;  %v19339_v2 = vmov 0.0   ;;  %v312_v33 = vlaneseq  ;;  %vm19392_vm2 = vcmask 64512  }
  0x1e   : > { %1282 = vmatprep.mubr.f32.mxu0 %v19339_v2  ;;  %1353 = vmatprep.mubr.f32.mxu1 %v19339_v2  ;;  %s15131_s12 = smov 64   ;;  %s15132_s16 = smov 65  }
  0x1f   : > { %s20582_s19 = smov (!%p266_p2, %s15115_s19), 1  ;;  %s20584_s18 = smov (!%p261_p4, %s15111_s18), 3  ;;  %v15451_v34 = vand.u32 127, %v312_v33 }
  0x20   : > { %s14901_s8 = sshll.u32 %s20582_s19, 8  ;;  %s14502_s13 = sshll.u32 %s20584_s18, 5 }
  0x21   : > { %s15229_s11 = scalar_lea.vmem %s19337_s4, %s14901_s8  ;;  %s14503_s14 = sshll.u32 %s20582_s19, 7  ;;  %vm1083_vm0 = vcmp.lt.s32.totalorder %v15451_v34, 64  ;;  %vm19390_vm1 = vcmp.ge.s32.totalorder %v15451_v34, 64  ;;  %vm19398_vm3 = vcmp.lt.s32.totalorder %v15451_v34, 65 }
  0x22   : > { %v15232_v0 = vld [vmem:[%s15229_s11 + $0x10] sm:$0xff]  ;;  %v15235_v1 = vld [vmem:[%s15229_s11] sm:$0xff]  ;;  %v15247_v3 = vld [vmem:[%s15229_s11 + $0x18] sm:$0xff]  ;;  %s15253_s15 = sadd.s32 %s14503_s14, %s14502_s13  ;;  %s14902_s17 = smul.u32 36, %s20584_s18 }
  0x23   : > { %1023 = vrot.lane.b32.xlu1 %v15232_v0, %s15131_s12  ;;  %1019 = vrot.lane.b32.xlu0 %v15235_v1, %s15131_s12  ;;  %v15250_v4 = vld [vmem:[%s15229_s11 + $0x8] sm:$0xff]  ;;  %v15260_v5 = vld [vmem:[%s15229_s11 + $0x20] sm:$0xff]  ;;  %s15133_s26 = smov 63   ;;  %s15134_s27 = smov 1  }
  0x24   : > { %v15263_v6 = vld [vmem:[%s15229_s11 + $0xf8] sm:$0xff]  ;;  %v15270_v7 = vld [vmem:[%s15229_s11 + $0x30] sm:$0xff]  ;;  %v15273_v8 = vld [vmem:[%s15229_s11 + $0x28] sm:$0xff]  ;;  %s15474_s23 = scalar_lea.vmem %s19333_s0, %s14902_s17  ;;  %s15135_s28 = smov 127  }
  0x25   : > { %v15280_v9 = vld [vmem:[%s15229_s11 + $0x40] sm:$0xff]  ;;  %v15283_v10 = vld [vmem:[%s15229_s11 + $0x38] sm:$0xff]  ;;  %v15290_v11 = vld [vmem:[%s15229_s11 + $0x50] sm:$0xff]  ;;  %s14504_s8 = sshll.u32 %s15253_s15, 2 }
  0x26   : > { %v15293_v12 = vld [vmem:[%s15229_s11 + $0x48] sm:$0xff]  ;;  %v15300_v13 = vld [vmem:[%s15229_s11 + $0x60] sm:$0xff]  ;;  %v15303_v14 = vld [vmem:[%s15229_s11 + $0x58] sm:$0xff] }
  0x27   : > { %1025 = vrot.lane.b32.xlu1 %v15247_v3, %s15131_s12  ;;  %1021 = vrot.lane.b32.xlu0 %v15250_v4, %s15131_s12  ;;  %v15310_v15 = vld [vmem:[%s15229_s11 + $0x70] sm:$0xff]  ;;  %v15313_v16 = vld [vmem:[%s15229_s11 + $0x68] sm:$0xff] }
  0x28   : > { %v15320_v17 = vld [vmem:[%s15229_s11 + $0x80] sm:$0xff]  ;;  %v15323_v18 = vld [vmem:[%s15229_s11 + $0x78] sm:$0xff]  ;;  %v15330_v19 = vld [vmem:[%s15229_s11 + $0x90] sm:$0xff] }
  0x29   : > { %v15333_v20 = vld [vmem:[%s15229_s11 + $0x88] sm:$0xff]  ;;  %v15340_v21 = vld [vmem:[%s15229_s11 + $0xa0] sm:$0xff]  ;;  %v15343_v22 = vld [vmem:[%s15229_s11 + $0x98] sm:$0xff] }
  0x2a   : > { %v15350_v23 = vld [vmem:[%s15229_s11 + $0xb0] sm:$0xff]  ;;  %v15353_v24 = vld [vmem:[%s15229_s11 + $0xa8] sm:$0xff]  ;;  %v15360_v25 = vld [vmem:[%s15229_s11 + $0xc0] sm:$0xff] }
  0x2b   : > { %1027 = vrot.lane.b32.xlu1 %v15260_v5, %s15131_s12  ;;  %1081 = vrot.lane.b32.xlu0 %v15263_v6, %s15131_s12  ;;  %v15363_v26 = vld [vmem:[%s15229_s11 + $0xb8] sm:$0xff]  ;;  %v15370_v27 = vld [vmem:[%s15229_s11 + $0xd0] sm:$0xff] }
  0x2c   : > { %v15373_v28 = vld [vmem:[%s15229_s11 + $0xc8] sm:$0xff]  ;;  %v15380_v29 = vld [vmem:[%s15229_s11 + $0xe0] sm:$0xff]  ;;  %v15383_v30 = vld [vmem:[%s15229_s11 + $0xd8] sm:$0xff] }
  0x2d   : > { %v15390_v31 = vld [vmem:[%s15229_s11 + $0xf0] sm:$0xff]  ;;  %v15393_v32 = vld [vmem:[%s15229_s11 + $0xe8] sm:$0xff]  ;;  %v15487_v44 = vld [vmem:[%s15474_s23 + $0x4] sm:$0xf] }
  0x2f   : > { %1031 = vrot.lane.b32.xlu1 %v15270_v7, %s15131_s12  ;;  %1029 = vrot.lane.b32.xlu0 %v15273_v8, %s15131_s12 }
  0x33   : > { %1035 = vrot.lane.b32.xlu1 %v15280_v9, %s15131_s12  ;;  %1033 = vrot.lane.b32.xlu0 %v15283_v10, %s15131_s12 }
  0x37   : > { %1039 = vrot.lane.b32.xlu1 %v15290_v11, %s15131_s12  ;;  %1037 = vrot.lane.b32.xlu0 %v15293_v12, %s15131_s12 }
  0x3b   : > { %1043 = vrot.lane.b32.xlu1 %v15300_v13, %s15131_s12  ;;  %1041 = vrot.lane.b32.xlu0 %v15303_v14, %s15131_s12 }
  0x3f   : > { %1047 = vrot.lane.b32.xlu1 %v15310_v15, %s15131_s12  ;;  %1045 = vrot.lane.b32.xlu0 %v15313_v16, %s15131_s12 }
  0x43   : > { %1051 = vrot.lane.b32.xlu1 %v15320_v17, %s15131_s12  ;;  %1049 = vrot.lane.b32.xlu0 %v15323_v18, %s15131_s12 }
  0x47   : > { %1055 = vrot.lane.b32.xlu1 %v15330_v19, %s15131_s12  ;;  %1053 = vrot.lane.b32.xlu0 %v15333_v20, %s15131_s12 }
  0x4b   : > { %1059 = vrot.lane.b32.xlu1 %v15340_v21, %s15131_s12  ;;  %1057 = vrot.lane.b32.xlu0 %v15343_v22, %s15131_s12 }
  0x4f   : > { %1063 = vrot.lane.b32.xlu1 %v15350_v23, %s15131_s12  ;;  %1061 = vrot.lane.b32.xlu0 %v15353_v24, %s15131_s12 }
  0x53   : > { %1067 = vrot.lane.b32.xlu1 %v15360_v25, %s15131_s12  ;;  %1065 = vrot.lane.b32.xlu0 %v15363_v26, %s15131_s12 }
  0x57   : > { %1071 = vrot.lane.b32.xlu1 %v15370_v27, %s15131_s12  ;;  %1069 = vrot.lane.b32.xlu0 %v15373_v28, %s15131_s12 }
  0x5b   : > { %1075 = vrot.lane.b32.xlu1 %v15380_v29, %s15131_s12  ;;  %1073 = vrot.lane.b32.xlu0 %v15383_v30, %s15131_s12 }
  0x5f   : > { %1079 = vrot.lane.b32.xlu1 %v15390_v31, %s15131_s12  ;;  %1077 = vrot.lane.b32.xlu0 %v15393_v32, %s15131_s12 }
  0x63   : > { %731 = vrot.lane.b32.xlu1 %v15250_v4, %s15132_s16  ;;  %729 = vrot.lane.b32.xlu0 %v15235_v1, %s15132_s16 }
  0x67   : > { %735 = vrot.lane.b32.xlu1 %v15247_v3, %s15132_s16  ;;  %733 = vrot.lane.b32.xlu0 %v15232_v0, %s15132_s16 }
  0x6b   : > { %737 = vrot.lane.b32.xlu1 %v15260_v5, %s15132_s16  ;;  %791 = vrot.lane.b32.xlu0 %v15263_v6, %s15132_s16 }
  0x6f   : > { %741 = vrot.lane.b32.xlu1 %v15270_v7, %s15132_s16  ;;  %739 = vrot.lane.b32.xlu0 %v15273_v8, %s15132_s16 }
  0x73   : > { %745 = vrot.lane.b32.xlu1 %v15280_v9, %s15132_s16  ;;  %743 = vrot.lane.b32.xlu0 %v15283_v10, %s15132_s16 }
  0x77   : > { %749 = vrot.lane.b32.xlu1 %v15290_v11, %s15132_s16  ;;  %747 = vrot.lane.b32.xlu0 %v15293_v12, %s15132_s16 }
  0x7b   : > { %753 = vrot.lane.b32.xlu1 %v15300_v13, %s15132_s16  ;;  %751 = vrot.lane.b32.xlu0 %v15303_v14, %s15132_s16 }
  0x7f   : > { %757 = vrot.lane.b32.xlu1 %v15310_v15, %s15132_s16  ;;  %755 = vrot.lane.b32.xlu0 %v15313_v16, %s15132_s16 }
  0x83   : > { %761 = vrot.lane.b32.xlu1 %v15320_v17, %s15132_s16  ;;  %759 = vrot.lane.b32.xlu0 %v15323_v18, %s15132_s16 }
  0x87   : > { %765 = vrot.lane.b32.xlu1 %v15330_v19, %s15132_s16  ;;  %763 = vrot.lane.b32.xlu0 %v15333_v20, %s15132_s16 }
  0x8b   : > { %769 = vrot.lane.b32.xlu1 %v15340_v21, %s15132_s16  ;;  %767 = vrot.lane.b32.xlu0 %v15343_v22, %s15132_s16 }
  0x8f   : > { %773 = vrot.lane.b32.xlu1 %v15350_v23, %s15132_s16  ;;  %771 = vrot.lane.b32.xlu0 %v15353_v24, %s15132_s16 }
  0x93   : > { %777 = vrot.lane.b32.xlu1 %v15360_v25, %s15132_s16  ;;  %775 = vrot.lane.b32.xlu0 %v15363_v26, %s15132_s16 }
  0x95   : > { %v1024_v35 = vpop.permute.xlu1 %1023  ;;  %v1020_v36 = vpop.permute.xlu0 %1019 }
  0x97   : > { %781 = vrot.lane.b32.xlu1 %v15370_v27, %s15132_s16  ;;  %779 = vrot.lane.b32.xlu0 %v15373_v28, %s15132_s16 }
  0x99   : > { %v1026_v37 = vpop.permute.xlu1 %1025  ;;  %v1022_v38 = vpop.permute.xlu0 %1021 }
  0x9a   : > { %v15461_v39 = vsel %vm1083_vm0, %v1024_v35, %v1026_v37  ;;  %v15465_v40 = vsel %vm1083_vm0, %v1020_v36, %v1022_v38  ;;  %v15469_v41 = vsel %vm1083_vm0, %v1022_v38, %v1024_v35 }
  0x9b   : > { %19661 = vst [vmem:[#allocation5_spill] sm:$0xff] %v15461_v39  ;;  %19662 = vst [vmem:[#allocation6_spill] sm:$0xff] %v15465_v40  ;;  %1319 = vmatprep.subr.mxu1 %v15461_v39  ;;  %785 = vrot.lane.b32.xlu1 %v15380_v29, %s15132_s16  ;;  %v19717_v39 = vmov 0 }
  0x9c   : > { %19663 = vst [vmem:[#allocation7_spill] sm:$0xff] %v15469_v41  ;;  %783 = vrot.lane.b32.xlu0 %v15383_v30, %s15132_s16  ;;  %1248 = vmatprep.subr.mxu0 %v15465_v40  ;;  %v15866_v40 = vadd.s32 1024, %v15451_v34 }
  0x9d   : > { %1320 = vmatpush1.msra.mxu1 %v15469_v41  ;;  %v1028_v42 = vpop.permute.xlu1 %1027  ;;  %v15484_v43 = vpop.permute.xlu0 %1081 }
  0x9e   : > { %v15492_v45 = vsel %vm1083_vm0, %v15484_v43, %v1020_v36  ;;  %14508 = vmatmul.mubr.msk.f32.vlgmr.msra.gmra.mxu1 %vm19392_vm2, %v15487_v44  ;;  %v15516_v49 = vsel %vm1083_vm0, %v1026_v37, %v1028_v42 }
  0x9f   : > { %19664 = vst [vmem:[#allocation8_spill] sm:$0xff] %v15492_v45  ;;  %789 = vrot.lane.b32.xlu1 %v15390_v31, %s15132_s16  ;;  %14506 = vmatpush1.msk.msra.mxu0 %vm19390_vm1, %v15492_v45  ;;  %19666 = vst [vmem:[#allocation10_spill] sm:$0xff] %v15516_v49  ;;  %v19684_v45 = vmov 0.0  }
  0xa0   : > { %787 = vrot.lane.b32.xlu0 %v15393_v32, %s15132_s16  ;;  %14507 = vmatmul.mubr.msk.f32.vlgmr.msra.gmra.mxu0 %vm19392_vm2, %v15487_v44 }
  0xa1   : > { %v1032_v46 = vpop.permute.xlu1 %1031  ;;  %v1030_v47 = vpop.permute.xlu0 %1029  ;;  %1424 = vmatprep.mubr.f32.mxu0 %v19339_v2  ;;  %1495 = vmatprep.mubr.f32.mxu1 %v19339_v2 }
  0xa2   : > { %v15509_v48 = vsel %vm1083_vm0, %v1028_v42, %v1030_v47  ;;  %v15533_v53 = vsel %vm1083_vm0, %v1030_v47, %v1032_v46 }
  0xa3   : > { %19665 = vst [vmem:[#allocation9_spill] sm:$0xff] %v15509_v48  ;;  %3495 = vrot.lane.b32.xlu1 %v15250_v4, %s15133_s26  ;;  %1390 = vmatprep.subr.mxu0 %v15509_v48  ;;  %19668 = vst [vmem:[#allocation12_spill] sm:$0xff] %v15533_v53 }
  0xa4   : > { %3493 = vrot.lane.b32.xlu0 %v15235_v1, %s15133_s26  ;;  %1391 = vmatpush1.msra.mxu0 %v15516_v49 }
  0xa5   : > { %v1036_v50 = vpop.permute.xlu1 %1035  ;;  %v1034_v51 = vpop.permute.xlu0 %1033  ;;  %14509 = vmatmul.mubr.msk.f32.vlgmr.msra.gmra.mxu0 %vm19392_vm2, %v15487_v44 }
  0xa6   : > { %v15525_v52 = vsel %vm1083_vm0, %v1032_v46, %v1034_v51  ;;  %1566 = vmatprep.mubr.f32.mxu0 %v19339_v2  ;;  %v15550_v57 = vsel %vm1083_vm0, %v1034_v51, %v1036_v50 }
  0xa7   : > { %19667 = vst [vmem:[#allocation11_spill] sm:$0xff] %v15525_v52  ;;  %3499 = vrot.lane.b32.xlu1 %v15247_v3, %s15133_s26  ;;  %1461 = vmatprep.subr.mxu1 %v15525_v52  ;;  %19670 = vst [vmem:[#allocation14_spill] sm:$0xff] %v15550_v57  ;;  %v15855_v52 = vadd.s32 1152, %v15451_v34 }
  0xa8   : > { %3497 = vrot.lane.b32.xlu0 %v15232_v0, %s15133_s26  ;;  %1462 = vmatpush1.msra.mxu1 %v15533_v53 }
  0xa9   : > { %v1040_v54 = vpop.permute.xlu1 %1039  ;;  %v1038_v55 = vpop.permute.xlu0 %1037  ;;  %14510 = vmatmul.mubr.msk.f32.vlgmr.msra.gmra.mxu1 %vm19392_vm2, %v15487_v44 }
  0xaa   : > { %v15542_v56 = vsel %vm1083_vm0, %v1036_v50, %v1038_v55  ;;  %1637 = vmatprep.mubr.f32.mxu1 %v19339_v2  ;;  %v15567_v61 = vsel %vm1083_vm0, %v1038_v55, %v1040_v54 }
  0xab   : > { %19669 = vst [vmem:[#allocation13_spill] sm:$0xff] %v15542_v56  ;;  %3501 = vrot.lane.b32.xlu1 %v15260_v5, %s15133_s26  ;;  %1532 = vmatprep.subr.mxu0 %v15542_v56  ;;  %19672 = vst [vmem:[#allocation16_spill] sm:$0xff] %v15567_v61 }
  0xac   : > { %3555 = vrot.lane.b32.xlu0 %v15263_v6, %s15133_s26  ;;  %1533 = vmatpush1.msra.mxu0 %v15550_v57 }
  0xad   : > { %v1044_v58 = vpop.permute.xlu1 %1043  ;;  %v1042_v59 = vpop.permute.xlu0 %1041  ;;  %14511 = vmatmul.mubr.msk.f32.vlgmr.msra.gmra.mxu0 %vm19392_vm2, %v15487_v44 }
  0xae   : > { %v15559_v60 = vsel %vm1083_vm0, %v1040_v54, %v1042_v59  ;;  %1708 = vmatprep.mubr.f32.mxu0 %v19339_v2  ;;  %v15584_v35 = vsel %vm1083_vm0, %v1042_v59, %v1044_v58 }
  0xaf   : > { %19671 = vst [vmem:[#allocation15_spill] sm:$0xff] %v15559_v60  ;;  %3505 = vrot.lane.b32.xlu1 %v15270_v7, %s15133_s26  ;;  %1603 = vmatprep.subr.mxu1 %v15559_v60  ;;  %19674 = vst [vmem:[#allocation18_spill] sm:$0xff] %v15584_v35 }
  0xb0   : > { %3503 = vrot.lane.b32.xlu0 %v15273_v8, %s15133_s26  ;;  %1604 = vmatpush1.msra.mxu1 %v15567_v61  ;;  %v19713_v61 = vmov 0 }
  0xb1   : > { %v1048_v62 = vpop.permute.xlu1 %1047  ;;  %v1046_v63 = vpop.permute.xlu0 %1045  ;;  %14512 = vmatmul.mubr.msk.f32.vlgmr.msra.gmra.mxu1 %vm19392_vm2, %v15487_v44 }
  0xb2   : > { %v15576_v33 = vsel %vm1083_vm0, %v1044_v58, %v1046_v63  ;;  %1779 = vmatprep.mubr.f32.mxu1 %v19339_v2  ;;  %v15601_v42 = vsel %vm1083_vm0, %v1046_v63, %v1048_v62 }
  0xb3   : > { %19673 = vst [vmem:[#allocation17_spill] sm:$0xff] %v15576_v33  ;;  %3509 = vrot.lane.b32.xlu1 %v15280_v9, %s15133_s26  ;;  %1674 = vmatprep.subr.mxu0 %v15576_v33  ;;  %19676 = vst [vmem:[#allocation20_spill] sm:$0xff] %v15601_v42  ;;  %v15794_v33 = vadd.s32 512, %v15451_v34 }
  0xb4   : > { %3507 = vrot.lane.b32.xlu0 %v15283_v10, %s15133_s26  ;;  %1675 = vmatpush1.msra.mxu0 %v15584_v35  ;;  %v15832_v35 = vadd.s32 768, %v15451_v34 }
  0xb5   : > { %v1052_v36 = vpop.permute.xlu1 %1051  ;;  %v1050_v37 = vpop.permute.xlu0 %1049  ;;  %14513 = vmatmul.mubr.msk.f32.vlgmr.msra.gmra.mxu0 %vm19392_vm2, %v15487_v44  ;;  %v19716_v53 = vand.u32 63, %v15794_v33 }
  0xb6   : > { %v15593_v38 = vsel %vm1083_vm0, %v1048_v62, %v1050_v37  ;;  %1850 = vmatprep.mubr.f32.mxu0 %v19339_v2  ;;  %v15618_v51 = vsel %vm1083_vm0, %v1050_v37, %v1052_v36 }
  0xb7   : > { %19675 = vst [vmem:[#allocation19_spill] sm:$0xff] %v15593_v38  ;;  %3513 = vrot.lane.b32.xlu1 %v15290_v11, %s15133_s26  ;;  %1745 = vmatprep.subr.mxu1 %v15593_v38  ;;  %19678 = vst [vmem:[#allocation22_spill] sm:$0xff] %v15618_v51  ;;  %vm15859_vm10 = vcmp.ge.s32.totalorder %v19716_v53, 1 }
  0xb8   : > { %3511 = vrot.lane.b32.xlu0 %v15293_v12, %s15133_s26  ;;  %1746 = vmatpush1.msra.mxu1 %v15601_v42  ;;  %v19718_v39 = vsel %vm15859_vm10, 4294967295, %v19717_v39 }
  0xb9   : > { %v1056_v46 = vpop.permute.xlu1 %1055  ;;  %v1054_v47 = vpop.permute.xlu0 %1053  ;;  %14514 = vmatmul.mubr.msk.f32.vlgmr.msra.gmra.mxu1 %vm19392_vm2, %v15487_v44  ;;  %19719 = vst [vmem:[#allocation46_spill] sm:$0xff] %v19718_v39 }
  0xba   : > { %v15610_v50 = vsel %vm1083_vm0, %v1052_v36, %v1054_v47  ;;  %1921 = vmatprep.mubr.f32.mxu1 %v19339_v2  ;;  %v15635_v59 = vsel %vm1083_vm0, %v1054_v47, %v1056_v46 }
  0xbb   : > { %19677 = vst [vmem:[#allocation21_spill] sm:$0xff] %v15610_v50  ;;  %3517 = vrot.lane.b32.xlu1 %v15300_v13, %s15133_s26  ;;  %1816 = vmatprep.subr.mxu0 %v15610_v50  ;;  %19680 = vst [vmem:[#allocation24_spill] sm:$0xff] %v15635_v59 }
  0xbc   : > { %3515 = vrot.lane.b32.xlu0 %v15303_v14, %s15133_s26  ;;  %1817 = vmatpush1.msra.mxu0 %v15618_v51 }
  0xbd   : > { %v1060_v54 = vpop.permute.xlu1 %1059  ;;  %v1058_v55 = vpop.permute.xlu0 %1057  ;;  %14515 = vmatmul.mubr.msk.f32.vlgmr.msra.gmra.mxu0 %vm19392_vm2, %v15487_v44 }
  0xbe   : > { %v15627_v58 = vsel %vm1083_vm0, %v1056_v46, %v1058_v55  ;;  %1992 = vmatprep.mubr.f32.mxu0 %v19339_v2  ;;  %v15652_v37 = vsel %vm1083_vm0, %v1058_v55, %v1060_v54 }
  0xbf   : > { %19679 = vst [vmem:[#allocation23_spill] sm:$0xff] %v15627_v58  ;;  %3521 = vrot.lane.b32.xlu1 %v15310_v15, %s15133_s26  ;;  %1887 = vmatprep.subr.mxu1 %v15627_v58  ;;  %19682 = vst [vmem:[#allocation26_spill] sm:$0xff] %v15652_v37 }
  0xc0   : > { %3519 = vrot.lane.b32.xlu0 %v15313_v16, %s15133_s26  ;;  %1888 = vmatpush1.msra.mxu1 %v15635_v59 }
  0xc1   : > { %v1064_v62 = vpop.permute.xlu1 %1063  ;;  %v1062_v63 = vpop.permute.xlu0 %1061  ;;  %14516 = vmatmul.mubr.msk.f32.vlgmr.msra.gmra.mxu1 %vm19392_vm2, %v15487_v44 }
  0xc2   : > { %v15644_v36 = vsel %vm1083_vm0, %v1060_v54, %v1062_v63  ;;  %2063 = vmatprep.mubr.f32.mxu1 %v19339_v2  ;;  %v15669_v54 = vsel %vm1083_vm0, %v1062_v63, %v1064_v62  ;;  %v15692_v63 = vadd.s32 128, %v15451_v34 }
  0xc3   : > { %19681 = vst [vmem:[#allocation25_spill] sm:$0xff] %v15644_v36  ;;  %3525 = vrot.lane.b32.xlu1 %v15320_v17, %s15133_s26  ;;  %1958 = vmatprep.subr.mxu0 %v15644_v36  ;;  %19685 = vst [vmem:[#allocation28_spill] sm:$0xff] %v15669_v54 }
  0xc4   : > { %3523 = vrot.lane.b32.xlu0 %v15323_v18, %s15133_s26  ;;  %1959 = vmatpush1.msra.mxu0 %v15652_v37 }
  0xc5   : > { %v1068_v46 = vpop.permute.xlu1 %1067  ;;  %v1066_v47 = vpop.permute.xlu0 %1065  ;;  %14517 = vmatmul.mubr.msk.f32.vlgmr.msra.gmra.mxu0 %vm19392_vm2, %v15487_v44 }
  0xc6   : > { %v15661_v2 = vsel %vm1083_vm0, %v1064_v62, %v1066_v47  ;;  %2134 = vmatprep.mubr.f32.mxu0 %v19684_v45  ;;  %v15686_v62 = vsel %vm1083_vm0, %v1066_v47, %v1068_v46 }
  0xc7   : > { %19683 = vst [vmem:[#allocation27_spill] sm:$0xff] %v15661_v2  ;;  %3529 = vrot.lane.b32.xlu1 %v15330_v19, %s15133_s26  ;;  %2029 = vmatprep.subr.mxu1 %v15661_v2  ;;  %19687 = vst [vmem:[#allocation30_spill] sm:$0xff] %v15686_v62 }
  0xc8   : > { %3527 = vrot.lane.b32.xlu0 %v15333_v20, %s15133_s26  ;;  %2030 = vmatpush1.msra.mxu1 %v15669_v54 }
  0xc9   : > { %v1072_v55 = vpop.permute.xlu1 %1071  ;;  %v1070_v36 = vpop.permute.xlu0 %1069  ;;  %14518 = vmatmul.mubr.msk.f32.vlgmr.msra.gmra.mxu1 %vm19392_vm2, %v15487_v44 }
  0xca   : > { %v15678_v58 = vsel %vm1083_vm0, %v1068_v46, %v1070_v36  ;;  %2205 = vmatprep.mubr.f32.mxu1 %v19684_v45  ;;  %v15706_v46 = vsel %vm1083_vm0, %v1070_v36, %v1072_v55 }
  0xcb   : > { %19686 = vst [vmem:[#allocation29_spill] sm:$0xff] %v15678_v58  ;;  %3533 = vrot.lane.b32.xlu1 %v15340_v21, %s15133_s26  ;;  %2100 = vmatprep.subr.mxu0 %v15678_v58  ;;  %19689 = vst [vmem:[#allocation32_spill] sm:$0xff] %v15706_v46 }
  0xcc   : > { %3531 = vrot.lane.b32.xlu0 %v15343_v22, %s15133_s26  ;;  %2101 = vmatpush1.msra.mxu0 %v15686_v62  ;;  %v15713_v62 = vadd.s32 384, %v15451_v34 }
  0xcd   : > { %v1076_v2 = vpop.permute.xlu1 %1075  ;;  %v1074_v54 = vpop.permute.xlu0 %1073  ;;  %14519 = vmatmul.mubr.msk.f32.vlgmr.msra.gmra.mxu0 %vm19392_vm2, %v15487_v44 }
  0xce   : > { %v15698_v58 = vsel %vm1083_vm0, %v1072_v55, %v1074_v54  ;;  %2276 = vmatprep.mubr.f32.mxu0 %v19684_v45 }
  0xcf   : > { %19688 = vst [vmem:[#allocation31_spill] sm:$0xff] %v15698_v58  ;;  %3537 = vrot.lane.b32.xlu1 %v15350_v23, %s15133_s26  ;;  %2171 = vmatprep.subr.mxu1 %v15698_v58  ;;  %v15718_v58 = vadd.s32 256, %v15451_v34 }
  0xd0   : > { %3535 = vrot.lane.b32.xlu0 %v15353_v24, %s15133_s26  ;;  %2172 = vmatpush1.msra.mxu1 %v15706_v46  ;;  %v19358_v46 = vand.u32 63, %v15713_v62 }
  0xd1   : > { %v1080_v50 = vpop.permute.xlu1 %1079  ;;  %v1078_v37 = vpop.permute.xlu0 %1077  ;;  %14520 = vmatmul.mubr.msk.f32.vlgmr.msra.gmra.mxu1 %vm19392_vm2, %v15487_v44 }
  0xd2   : > { %v15722_v36 = vsel %vm1083_vm0, %v1076_v2, %v1078_v37  ;;  %v15727_v55 = vsel %vm1083_vm0, %v1080_v50, %v15484_v43  ;;  %v15731_v47 = vsel %vm1083_vm0, %v1078_v37, %v1080_v50  ;;  %2347 = vmatprep.mubr.f32.mxu1 %v19684_v45  ;;  %v15743_v43 = vsel %vm1083_vm0, %v1074_v54, %v1076_v2 }
  0xd3   : > { %19690 = vst [vmem:[#allocation33_spill] sm:$0xff] %v15722_v36  ;;  %19691 = vst [vmem:[#allocation34_spill] sm:$0xff] %v15727_v55  ;;  %3541 = vrot.lane.b32.xlu1 %v15360_v25, %s15133_s26  ;;  %2242 = vmatprep.subr.mxu0 %v15722_v36  ;;  %v19694_v50 = vand.u32 63, %v15692_v63  ;;  %v19695_v37 = vmov 0  ;;  %v19361_v36 = vand.u32 63, %v15451_v34  ;;  %vm15773_vm5 = vcmp.ge.s32.totalorder %v19358_v46, 1 }
  0xd4   : > { %19692 = vst [vmem:[#allocation35_spill] sm:$0xff] %v15731_v47  ;;  %3539 = vrot.lane.b32.xlu0 %v15363_v26, %s15133_s26  ;;  %2313 = vmatprep.subr.mxu1 %v15727_v55  ;;  %19693 = vst [vmem:[#allocation36_spill] sm:$0xff] %v15743_v43  ;;  %v19699_v54 = vmov 0  ;;  %v19706_v46 = vmov 0 }
  0xd5   : > { %vm15747_vm4 = vcmp.ge.s32.totalorder %v19694_v50, 1  ;;  %2243 = vmatpush1.msra.mxu0 %v15743_v43  ;;  %2314 = vmatpush1.msra.mxu1 %v15731_v47  ;;  %v732_v59 = vpop.permute.xlu1 %731  ;;  %v730_v55 = vpop.permute.xlu0 %729  ;;  %v19700_v54 = vsel %vm15773_vm5, 4294967295, %v19699_v54  ;;  %vm15783_vm6 = vcmp.ge.s32.totalorder %v19361_v36, 1  ;;  %v19702_v50 = vmov 0 }
  0xd6   : > { %v19696_v37 = vsel %vm15747_vm4, 4294967295, %v19695_v37  ;;  %v15758_v2 = vsel %vm19398_vm3, %v730_v55, %v732_v59  ;;  %14522 = vmatmul.mubr.msk.f32.vlgmr.msra.gmra.mxu1 %vm19392_vm2, %v15487_v44  ;;  %14521 = vmatmul.mubr.msk.f32.vlgmr.msra.gmra.mxu0 %vm19392_vm2, %v15487_v44  ;;  %19701 = vst [vmem:[#allocation39_spill] sm:$0xff] %v19700_v54  ;;  %v15779_v44 = vadd.s32 640, %v15451_v34  ;;  %v19703_v50 = vsel %vm15783_vm6, 4294967295, %v19702_v50  ;;  %vm890_vm8 = vmand %vm19390_vm1, %vm15783_vm6 }
  0xd7   : > { %19697 = vst [vmem:[#allocation37_spill] sm:$0xff] %v19696_v37  ;;  %19698 = vst [vmem:[#allocation38_spill] sm:$0xff] %v15758_v2  ;;  %3545 = vrot.lane.b32.xlu1 %v15370_v27, %s15133_s26  ;;  %14523 = vmatprep.subr.msk.mxu0 %vm15747_vm4, %v15758_v2  ;;  %v19705_v43 = vand.u32 63, %v15718_v58  ;;  %v19736_v2 = vand.u32 63, %v15866_v40 }
  0xd8   : > { %3543 = vrot.lane.b32.xlu0 %v15373_v28, %s15133_s26  ;;  %2421 = vmatprep.mubr.f32.mxu0 %v19684_v45  ;;  %19704 = vst [vmem:[#allocation40_spill] sm:$0xff] %v19703_v50  ;;  %v19712_v56 = vand.u32 63, %v15779_v44 }
  0xd9   : > { %v736_v38 = vpop.permute.xlu1 %735  ;;  %v734_v47 = vpop.permute.xlu0 %733  ;;  %vm15789_vm7 = vcmp.ge.s32.totalorder %v19705_v43, 1  ;;  %2492 = vmatprep.mubr.f32.mxu1 %v19684_v45  ;;  %v15824_v43 = vadd.s32 896, %v15451_v34  ;;  %vm15939_vm14 = vcmp.ge.s32.totalorder %v19736_v2, 1 }
  0xda   : > { %v19707_v46 = vsel %vm15789_vm7, 4294967295, %v19706_v46  ;;  %v15799_v51 = vsel %vm19398_vm3, %v732_v59, %v734_v47  ;;  %v15803_v36 = vsel %vm19398_vm3, %v734_v47, %v736_v38  ;;  %v15821_v47 = vld [vmem:[%s15474_s23] sm:$0xf]  ;;  %vm15847_vm9 = vcmp.ge.s32.totalorder %v19712_v56, 1 }
  0xdb   : > { %19708 = vst [vmem:[#allocation41_spill] sm:$0xff] %v19707_v46  ;;  %19709 = vst [vmem:[#allocation42_spill] sm:$0xff] %v15799_v51  ;;  %3549 = vrot.lane.b32.xlu1 %v15380_v29, %s15133_s26  ;;  %14526 = vmatprep.subr.msk.mxu1 %vm15773_vm5, %v15803_v36  ;;  %v19714_v61 = vsel %vm15847_vm9, 4294967295, %v19713_v61  ;;  %v19722_v53 = vand.u32 63, %v15824_v43 }
  0xdc   : > { %19710 = vst [vmem:[#allocation43_spill] sm:$0xff] %v15803_v36  ;;  %3547 = vrot.lane.b32.xlu0 %v15383_v30, %s15133_s26  ;;  %14527 = vmatpush1.msk.msra.mxu1 %vm15789_vm7, %v15799_v51  ;;  %19715 = vst [vmem:[#allocation45_spill] sm:$0xff] %v19714_v61  ;;  %v19733_v36 = vmov 0 }
  0xdd   : > { %v738_v42 = vpop.permute.xlu1 %737  ;;  %v15826_v60 = vpop.permute.xlu0 %791  ;;  %14528 = vmatmul.mubr.msk.f32.vlgmr.msra.gmra.mxu1 %vm19392_vm2, %v15821_v47  ;;  %vm15888_vm11 = vcmp.ge.s32.totalorder %v19722_v53, 1  ;;  %v19732_v53 = vand.u32 63, %v15855_v52 }
  0xde   : > { %v15837_v59 = vsel %vm19398_vm3, %v15826_v60, %v730_v55  ;;  %2634 = vmatprep.mubr.f32.mxu1 %v19684_v45  ;;  %v15874_v49 = vsel %vm19398_vm3, %v736_v38, %v738_v42  ;;  %v19723_v38 = vmov 0 }
  0xdf   : > { %19711 = vst [vmem:[#allocation44_spill] sm:$0xff] %v15837_v59  ;;  %3553 = vrot.lane.b32.xlu1 %v15390_v31, %s15133_s26  ;;  %14524 = vmatpush1.msk.msra.mxu0 %vm890_vm8, %v15837_v59  ;;  %19721 = vst [vmem:[#allocation48_spill] sm:$0xff] %v15874_v49  ;;  %v19724_v38 = vsel %vm15888_vm11, 4294967295, %v19723_v38  ;;  %v19726_v59 = vand.u32 63, %v15832_v35  ;;  %vm15929_vm13 = vcmp.ge.s32.totalorder %v19732_v53, 1 }
  0xe0   : > { %3551 = vrot.lane.b32.xlu0 %v15393_v32, %s15133_s26  ;;  %14525 = vmatmul.mubr.msk.f32.vlgmr.msra.gmra.mxu0 %vm19392_vm2, %v15821_v47  ;;  %19725 = vst [vmem:[#allocation49_spill] sm:$0xff] %v19724_v38  ;;  %v19734_v36 = vsel %vm15929_vm13, 4294967295, %v19733_v36 }
  0xe1   : > { %v742_v48 = vpop.permute.xlu1 %741  ;;  %v740_v57 = vpop.permute.xlu0 %739  ;;  %2563 = vmatprep.mubr.f32.mxu0 %v19684_v45  ;;  %vm15898_vm12 = vcmp.ge.s32.totalorder %v19726_v59, 1  ;;  %19735 = vst [vmem:[#allocation53_spill] sm:$0xff] %v19734_v36  ;;  %v16286_v36 = vadd.s32 3840, %v15451_v34 }
  0xe2   : > { %v15870_v55 = vsel %vm19398_vm3, %v738_v42, %v740_v57  ;;  %v15915_v59 = vsel %vm19398_vm3, %v740_v57, %v742_v48 }
  0xe3   : > { %19720 = vst [vmem:[#allocation47_spill] sm:$0xff] %v15870_v55  ;;  %4925 = vrot.lane.b32.xlu1 %v15250_v4, %s15134_s27  ;;  %14529 = vmatprep.subr.msk.mxu0 %vm15847_vm9, %v15870_v55  ;;  %v15894_v4 = vadd.s32 1408, %v15451_v34  ;;  %v15906_v55 = vadd.s32 1280, %v15451_v34  ;;  %19731 = vst [vmem:[#allocation52_spill] sm:$0xff] %v15915_v59 }
  0xe4   : > { %4923 = vrot.lane.b32.xlu0 %v15235_v1, %s15134_s27  ;;  %14530 = vmatpush1.msk.msra.mxu0 %vm15859_vm10, %v15874_v49  ;;  %v19727_v1 = vmov 0  ;;  %v19743_v49 = vmov 0 }
  0xe5   : > { %v746_v56 = vpop.permute.xlu1 %745  ;;  %v744_v41 = vpop.permute.xlu0 %743  ;;  %v19728_v1 = vsel %vm15898_vm12, 4294967295, %v19727_v1  ;;  %14531 = vmatmul.mubr.msk.f32.vlgmr.msra.gmra.mxu0 %vm19392_vm2, %v15821_v47  ;;  %v19742_v53 = vand.u32 63, %v15894_v4  ;;  %v19746_v51 = vand.u32 63, %v15906_v55 }
  0xe6   : > { %19729 = vst [vmem:[#allocation50_spill] sm:$0xff] %v19728_v1  ;;  %v15910_v42 = vsel %vm19398_vm3, %v742_v48, %v744_v41  ;;  %2705 = vmatprep.mubr.f32.mxu0 %v19684_v45  ;;  %v15956_v2 = vsel %vm19398_vm3, %v744_v41, %v746_v56 }
  0xe7   : > { %19730 = vst [vmem:[#allocation51_spill] sm:$0xff] %v15910_v42  ;;  %4929 = vrot.lane.b32.xlu1 %v15247_v3, %s15134_s27  ;;  %14532 = vmatprep.subr.msk.mxu1 %vm15888_vm11, %v15910_v42  ;;  %v15935_v3 = vadd.s32 1664, %v15451_v34  ;;  %19741 = vst [vmem:[#allocation56_spill] sm:$0xff] %v15956_v2  ;;  %vm15970_vm15 = vcmp.ge.s32.totalorder %v19742_v53, 1  ;;  %vm15980_vm0 = vcmp.ge.s32.totalorder %v19746_v51, 1 }
  0xe8   : > { %4927 = vrot.lane.b32.xlu0 %v15232_v0, %s15134_s27  ;;  %14533 = vmatpush1.msk.msra.mxu1 %vm15898_vm12, %v15915_v59  ;;  %v19737_v0 = vmov 0  ;;  %v15947_v59 = vadd.s32 1536, %v15451_v34  ;;  %v19744_v49 = vsel %vm15970_vm15, 4294967295, %v19743_v49 }
  0xe9   : > { %v750_v57 = vpop.permute.xlu1 %749  ;;  %v748_v42 = vpop.permute.xlu0 %747  ;;  %v19738_v0 = vsel %vm15939_vm14, 4294967295, %v19737_v0  ;;  %14534 = vmatmul.mubr.msk.f32.vlgmr.msra.gmra.mxu1 %vm19392_vm2, %v15821_v47  ;;  %19745 = vst [vmem:[#allocation57_spill] sm:$0xff] %v19744_v49  ;;  %v19752_v53 = vand.u32 63, %v15935_v3 }
  0xea   : > { %19739 = vst [vmem:[#allocation54_spill] sm:$0xff] %v19738_v0  ;;  %v15951_v48 = vsel %vm19398_vm3, %v746_v56, %v748_v42  ;;  %2776 = vmatprep.mubr.f32.mxu1 %v19684_v45  ;;  %v15997_v51 = vsel %vm19398_vm3, %v748_v42, %v750_v57  ;;  %v19753_v0 = vmov 0  ;;  %v19756_v49 = vand.u32 63, %v15947_v59 }
  0xeb   : > { %19740 = vst [vmem:[#allocation55_spill] sm:$0xff] %v15951_v48  ;;  %4931 = vrot.lane.b32.xlu1 %v15260_v5, %s15134_s27  ;;  %14535 = vmatprep.subr.msk.mxu0 %vm15929_vm13, %v15951_v48  ;;  %v15976_v5 = vadd.s32 1920, %v15451_v34  ;;  %19751 = vst [vmem:[#allocation60_spill] sm:$0xff] %v15997_v51  ;;  %vm16011_vm8 = vcmp.ge.s32.totalorder %v19752_v53, 1 }
  0xec   : > { %4985 = vrot.lane.b32.xlu0 %v15263_v6, %s15134_s27  ;;  %14536 = vmatpush1.msk.msra.mxu0 %vm15939_vm14, %v15956_v2  ;;  %v19747_v6 = vmov 0  ;;  %v15988_v2 = vadd.s32 1792, %v15451_v34  ;;  %v19754_v0 = vsel %vm16011_vm8, 4294967295, %v19753_v0  ;;  %vm16021_vm1 = vcmp.ge.s32.totalorder %v19756_v49, 1 }
  0xed   : > { %v754_v56 = vpop.permute.xlu1 %753  ;;  %v752_v48 = vpop.permute.xlu0 %751  ;;  %v19748_v6 = vsel %vm15980_vm0, 4294967295, %v19747_v6  ;;  %14537 = vmatmul.mubr.msk.f32.vlgmr.msra.gmra.mxu0 %vm19392_vm2, %v15821_v47  ;;  %19755 = vst [vmem:[#allocation61_spill] sm:$0xff] %v19754_v0  ;;  %v19762_v53 = vand.u32 63, %v15976_v5 }
  0xee   : > { %19749 = vst [vmem:[#allocation58_spill] sm:$0xff] %v19748_v6  ;;  %v15992_v41 = vsel %vm19398_vm3, %v750_v57, %v752_v48  ;;  %2847 = vmatprep.mubr.f32.mxu0 %v19684_v45  ;;  %v16038_v49 = vsel %vm19398_vm3, %v752_v48, %v754_v56  ;;  %v19763_v6 = vmov 0  ;;  %v19766_v0 = vand.u32 63, %v15988_v2 }
  0xef   : > { %19750 = vst [vmem:[#allocation59_spill] sm:$0xff] %v15992_v41  ;;  %4935 = vrot.lane.b32.xlu1 %v15270_v7, %s15134_s27  ;;  %14538 = vmatprep.subr.msk.mxu1 %vm15970_vm15, %v15992_v41  ;;  %v16017_v7 = vadd.s32 2176, %v15451_v34  ;;  %19761 = vst [vmem:[#allocation64_spill] sm:$0xff] %v16038_v49 }
  0xf0   : > { %4933 = vrot.lane.b32.xlu0 %v15273_v8, %s15134_s27  ;;  %14539 = vmatpush1.msk.msra.mxu1 %vm15980_vm0, %v15997_v51  ;;  %v19757_v8 = vmov 0  ;;  %v16029_v51 = vadd.s32 2048, %v15451_v34 }
  0xf1   : > { %v758_v57 = vpop.permute.xlu1 %757  ;;  %v756_v41 = vpop.permute.xlu0 %755  ;;  %v19758_v8 = vsel %vm16021_vm1, 4294967295, %v19757_v8  ;;  %14540 = vmatmul.mubr.msk.f32.vlgmr.msra.gmra.mxu1 %vm19392_vm2, %v15821_v47  ;;  %vm16052_vm2 = vcmp.ge.s32.totalorder %v19762_v53, 1  ;;  %v19775_v53 = vand.u32 63, %v16017_v7 }
  0xf2   : > { %19759 = vst [vmem:[#allocation62_spill] sm:$0xff] %v19758_v8  ;;  %v16033_v42 = vsel %vm19398_vm3, %v754_v56, %v756_v41  ;;  %2918 = vmatprep.mubr.f32.mxu1 %v19684_v45  ;;  %v19764_v6 = vsel %vm16052_vm2, 4294967295, %v19763_v6  ;;  %vm16062_vm3 = vcmp.ge.s32.totalorder %v19766_v0, 1  ;;  %v19776_v8 = vmov 0 }
  0xf3   : > { %19760 = vst [vmem:[#allocation63_spill] sm:$0xff] %v16033_v42  ;;  %4939 = vrot.lane.b32.xlu1 %v15280_v9, %s15134_s27  ;;  %14541 = vmatprep.subr.msk.mxu0 %vm16011_vm8, %v16033_v42  ;;  %19765 = vst [vmem:[#allocation65_spill] sm:$0xff] %v19764_v6  ;;  %v16058_v9 = vadd.s32 2432, %v15451_v34  ;;  %vm19771_vm8 = vcmp.lt.s32.totalorder %v15451_v34, 65  ;;  %v19779_v6 = vand.u32 63, %v16029_v51 }
  0xf4   : > { %4937 = vrot.lane.b32.xlu0 %v15283_v10, %s15134_s27  ;;  %14542 = vmatpush1.msk.msra.mxu0 %vm16021_vm1, %v16038_v49  ;;  %v19767_v10 = vmov 0  ;;  %vm19770_vm1 = vcmask 64512   ;;  %v16070_v49 = vadd.s32 2304, %v15451_v34  ;;  %vm19773_vm0 = vmmov %vm19771_vm8 }
  0xf5   : > { %v762_v56 = vpop.permute.xlu1 %761  ;;  %v760_v42 = vpop.permute.xlu0 %759  ;;  %v19768_v10 = vsel %vm16062_vm3, 4294967295, %v19767_v10  ;;  %14543 = vmatmul.mubr.msk.f32.vlgmr.msra.gmra.mxu0 %vm19770_vm1, %v15821_v47  ;;  %v16079_v0 = vsel %vm19773_vm0, %v756_v41, %v758_v57  ;;  %vm16093_vm1 = vcmp.ge.s32.totalorder %v19775_v53, 1  ;;  %vm16103_vm0 = vcmp.ge.s32.totalorder %v19779_v6, 1 }
  0xf6   : > { %19769 = vst [vmem:[#allocation66_spill] sm:$0xff] %v19768_v10  ;;  %v16074_v48 = vsel %vm19771_vm8, %v758_v57, %v760_v42  ;;  %2989 = vmatprep.mubr.f32.mxu0 %v19684_v45  ;;  %19774 = vst [vmem:[#allocation68_spill] sm:$0xff] %v16079_v0  ;;  %v19777_v8 = vsel %vm16093_vm1, 4294967295, %v19776_v8  ;;  %vm19783_vm8 = vcmask 64512   ;;  %v19788_v53 = vand.u32 63, %v16058_v9 }
  0xf7   : > { %19772 = vst [vmem:[#allocation67_spill] sm:$0xff] %v16074_v48  ;;  %4943 = vrot.lane.b32.xlu1 %v15290_v11, %s15134_s27  ;;  %14544 = vmatprep.subr.msk.mxu1 %vm16052_vm2, %v16074_v48  ;;  %19778 = vst [vmem:[#allocation69_spill] sm:$0xff] %v19777_v8  ;;  %v16099_v11 = vadd.s32 2688, %v15451_v34  ;;  %v19789_v10 = vmov 0  ;;  %v19792_v8 = vand.u32 63, %v16070_v49 }
  0xf8   : > { %4941 = vrot.lane.b32.xlu0 %v15293_v12, %s15134_s27  ;;  %14545 = vmatpush1.msk.msra.mxu1 %vm16062_vm3, %v16079_v0  ;;  %v19780_v12 = vmov 0  ;;  %v16111_v0 = vadd.s32 2560, %v15451_v34  ;;  %vm19784_vm3 = vcmp.lt.s32.totalorder %v15451_v34, 65 }
  0xf9   : > { %v766_v57 = vpop.permute.xlu1 %765  ;;  %v764_v48 = vpop.permute.xlu0 %763  ;;  %v19781_v12 = vsel %vm16103_vm0, 4294967295, %v19780_v12  ;;  %14546 = vmatmul.mubr.msk.f32.vlgmr.msra.gmra.mxu1 %vm19783_vm8, %v15821_v47  ;;  %vm19786_vm2 = vmmov %vm19784_vm3 }
  0xfa   : > { %19782 = vst [vmem:[#allocation70_spill] sm:$0xff] %v19781_v12  ;;  %v16115_v41 = vsel %vm19784_vm3, %v762_v56, %v764_v48  ;;  %3060 = vmatprep.mubr.f32.mxu1 %v19684_v45  ;;  %v16120_v6 = vsel %vm19786_vm2, %v760_v42, %v762_v56  ;;  %vm16134_vm3 = vcmp.ge.s32.totalorder %v19788_v53, 1  ;;  %vm16144_vm2 = vcmp.ge.s32.totalorder %v19792_v8, 1 }
  0xfb   : > { %19785 = vst [vmem:[#allocation71_spill] sm:$0xff] %v16115_v41  ;;  %19787 = vst [vmem:[#allocation72_spill] sm:$0xff] %v16120_v6  ;;  %4947 = vrot.lane.b32.xlu1 %v15300_v13, %s15134_s27  ;;  %14547 = vmatprep.subr.msk.mxu0 %vm16093_vm1, %v16115_v41  ;;  %v19790_v10 = vsel %vm16134_vm3, 4294967295, %v19789_v10  ;;  %v16140_v13 = vadd.s32 2944, %v15451_v34  ;;  %v19800_v53 = vand.u32 63, %v16099_v11  ;;  %v19801_v12 = vmov 0 }
  0xfc   : > { %4945 = vrot.lane.b32.xlu0 %v15303_v14, %s15134_s27  ;;  %14548 = vmatpush1.msk.msra.mxu0 %vm16103_vm0, %v16120_v6  ;;  %19791 = vst [vmem:[#allocation73_spill] sm:$0xff] %v19790_v10  ;;  %v19793_v14 = vmov 0  ;;  %v16152_v6 = vadd.s32 2816, %v15451_v34  ;;  %vm19796_vm0 = vcmp.lt.s32.totalorder %v15451_v34, 65  ;;  %v19804_v10 = vand.u32 63, %v16111_v0 }
  0xfd   : > { %v770_v56 = vpop.permute.xlu1 %769  ;;  %v768_v41 = vpop.permute.xlu0 %767  ;;  %v19794_v14 = vsel %vm16144_vm2, 4294967295, %v19793_v14  ;;  %14549 = vmatmul.mubr.msk.f32.vlgmr.msra.gmra.mxu0 %vm19783_vm8, %v15821_v47  ;;  %vm19798_vm1 = vmmov %vm19796_vm0 }
  0xfe   : > { %19795 = vst [vmem:[#allocation74_spill] sm:$0xff] %v19794_v14  ;;  %v16156_v42 = vsel %vm19796_vm0, %v766_v57, %v768_v41  ;;  %3131 = vmatprep.mubr.f32.mxu0 %v19684_v45  ;;  %v16161_v8 = vsel %vm19798_vm1, %v764_v48, %v766_v57  ;;  %vm16175_vm0 = vcmp.ge.s32.totalorder %v19800_v53, 1  ;;  %vm16185_vm1 = vcmp.ge.s32.totalorder %v19804_v10, 1 }
  0xff   : > { %19797 = vst [vmem:[#allocation75_spill] sm:$0xff] %v16156_v42  ;;  %19799 = vst [vmem:[#allocation76_spill] sm:$0xff] %v16161_v8  ;;  %4951 = vrot.lane.b32.xlu1 %v15310_v15, %s15134_s27  ;;  %14550 = vmatprep.subr.msk.mxu1 %vm16134_vm3, %v16156_v42  ;;  %v19802_v12 = vsel %vm16175_vm0, 4294967295, %v19801_v12  ;;  %v16181_v15 = vadd.s32 3200, %v15451_v34  ;;  %v19812_v53 = vand.u32 63, %v16140_v13  ;;  %v19813_v14 = vmov 0 }
 0x100   : > { %4949 = vrot.lane.b32.xlu0 %v15313_v16, %s15134_s27  ;;  %14551 = vmatpush1.msk.msra.mxu1 %vm16144_vm2, %v16161_v8  ;;  %19803 = vst [vmem:[#allocation77_spill] sm:$0xff] %v19802_v12  ;;  %v19805_v16 = vmov 0  ;;  %v16193_v8 = vadd.s32 3072, %v15451_v34  ;;  %vm19808_vm2 = vcmp.lt.s32.totalorder %v15451_v34, 65  ;;  %v19816_v12 = vand.u32 63, %v16152_v6 }
 0x101   : > { %v774_v57 = vpop.permute.xlu1 %773  ;;  %v772_v42 = vpop.permute.xlu0 %771  ;;  %v19806_v16 = vsel %vm16185_vm1, 4294967295, %v19805_v16  ;;  %14552 = vmatmul.mubr.msk.f32.vlgmr.msra.gmra.mxu1 %vm19783_vm8, %v15821_v47  ;;  %vm19810_vm3 = vmmov %vm19808_vm2 }
 0x102   : > { %19807 = vst [vmem:[#allocation78_spill] sm:$0xff] %v19806_v16  ;;  %v16197_v48 = vsel %vm19808_vm2, %v770_v56, %v772_v42  ;;  %3202 = vmatprep.mubr.f32.mxu1 %v19684_v45  ;;  %v16202_v10 = vsel %vm19810_vm3, %v768_v41, %v770_v56  ;;  %vm16216_vm2 = vcmp.ge.s32.totalorder %v19812_v53, 1  ;;  %vm16223_vm3 = vcmp.ge.s32.totalorder %v19816_v12, 1 }
 0x103   : > { %19809 = vst [vmem:[#allocation79_spill] sm:$0xff] %v16197_v48  ;;  %19811 = vst [vmem:[#allocation80_spill] sm:$0xff] %v16202_v10  ;;  %4955 = vrot.lane.b32.xlu1 %v15320_v17, %s15134_s27  ;;  %14553 = vmatprep.subr.msk.mxu0 %vm16175_vm0, %v16197_v48  ;;  %v19814_v14 = vsel %vm16216_vm2, 4294967295, %v19813_v14  ;;  %v19817_v48 = vmov 0  ;;  %v16231_v53 = vadd.s32 3456, %v15451_v34  ;;  %v16238_v41 = vadd.s32 3328, %v15451_v34 }
 0x104   : > { %4953 = vrot.lane.b32.xlu0 %v15323_v18, %s15134_s27  ;;  %14554 = vmatpush1.msk.msra.mxu0 %vm16185_vm1, %v16202_v10  ;;  %19815 = vst [vmem:[#allocation81_spill] sm:$0xff] %v19814_v14  ;;  %v19818_v48 = vsel %vm16223_vm3, 4294967295, %v19817_v48  ;;  %vm19820_vm1 = vcmp.lt.s32.totalorder %v15451_v34, 65  ;;  %v19824_v18 = vand.u32 63, %v16181_v15  ;;  %v19825_v16 = vmov 0 }
 0x105   : > { %v778_v17 = vpop.permute.xlu1 %777  ;;  %v776_v56 = vpop.permute.xlu0 %775  ;;  %19819 = vst [vmem:[#allocation82_spill] sm:$0xff] %v19818_v48  ;;  %14555 = vmatmul.mubr.msk.f32.vlgmr.msra.gmra.mxu0 %vm19783_vm8, %v15821_v47  ;;  %vm19822_vm0 = vmmov %vm19820_vm1  ;;  %v19829_v14 = vmov 0 }
 0x106   : > { %v16235_v10 = vsel %vm19820_vm1, %v774_v57, %v776_v56  ;;  %3273 = vmatprep.mubr.f32.mxu0 %v19684_v45  ;;  %v16243_v12 = vsel %vm19822_vm0, %v772_v42, %v774_v57  ;;  %vm16257_vm1 = vcmp.ge.s32.totalorder %v19824_v18, 1  ;;  %v16262_v42 = vadd.s32 3968, %v15451_v34 }
 0x107   : > { %19821 = vst [vmem:[#allocation83_spill] sm:$0xff] %v16235_v10  ;;  %19823 = vst [vmem:[#allocation84_spill] sm:$0xff] %v16243_v12  ;;  %4959 = vrot.lane.b32.xlu1 %v15330_v19, %s15134_s27  ;;  %14556 = vmatprep.subr.msk.mxu1 %vm16216_vm2, %v16235_v10  ;;  %v19826_v16 = vsel %vm16257_vm1, 4294967295, %v19825_v16  ;;  %v19828_v10 = vand.u32 63, %v16193_v8  ;;  %v16274_v18 = vadd.s32 3712, %v15451_v34 }
 0x108   : > { %4957 = vrot.lane.b32.xlu0 %v15333_v20, %s15134_s27  ;;  %14557 = vmatpush1.msk.msra.mxu1 %vm16223_vm3, %v16243_v12  ;;  %19827 = vst [vmem:[#allocation85_spill] sm:$0xff] %v16262_v42  ;;  %vm19832_vm3 = vcmp.lt.s32.totalorder %v15451_v34, 65 }
 0x109   : > { %v782_v19 = vpop.permute.xlu1 %781  ;;  %v780_v57 = vpop.permute.xlu0 %779  ;;  %vm16266_vm0 = vcmp.ge.s32.totalorder %v19828_v10, 1  ;;  %14558 = vmatmul.mubr.msk.f32.vlgmr.msra.gmra.mxu1 %vm19783_vm8, %v15821_v47  ;;  %v16283_v10 = vadd.s32 3584, %v15451_v34  ;;  %vm19834_vm2 = vmmov %vm19832_vm3 }
 0x10a   : > { %v19830_v14 = vsel %vm16266_vm0, 4294967295, %v19829_v14  ;;  %v16278_v12 = vsel %vm19832_vm3, %v778_v17, %v780_v57  ;;  %3344 = vmatprep.mubr.f32.mxu1 %v19684_v45  ;;  %v16290_v20 = vsel %vm19834_vm2, %v776_v56, %v778_v17  ;;  %v19836_v17 = vand.u32 63, %v16231_v53  ;;  %vm19839_vm3 = vmmov %vm19783_vm8 }
 0x10b   : > { %19831 = vst [vmem:[#allocation86_spill] sm:$0xff] %v19830_v14  ;;  %19833 = vst [vmem:[#allocation87_spill] sm:$0xff] %v16278_v12  ;;  %4963 = vrot.lane.b32.xlu1 %v15340_v21, %s15134_s27  ;;  %14559 = vmatprep.subr.msk.mxu0 %vm16257_vm1, %v16278_v12  ;;  %v19837_v56 = vmov 0  ;;  %v19841_v14 = vmov 0 }
 0x10c   : > { %19835 = vst [vmem:[#allocation88_spill] sm:$0xff] %v16290_v20  ;;  %4961 = vrot.lane.b32.xlu0 %v15343_v22, %s15134_s27  ;;  %14560 = vmatpush1.msk.msra.mxu0 %vm16266_vm0, %v16290_v20  ;;  %vm16305_vm2 = vcmp.ge.s32.totalorder %v19836_v17, 1  ;;  %v19840_v22 = vand.u32 63, %v16238_v41  ;;  %vm19844_vm0 = vcmp.lt.s32.totalorder %v15451_v34, 65  ;;  %v19849_v20 = vmov 0 }
 0x10d   : > { %v786_v1 = vpop.permute.xlu1 %785  ;;  %v19838_v56 = vsel %vm16305_vm2, 4294967295, %v19837_v56  ;;  %14561 = vmatmul.mubr.msk.f32.vlgmr.msra.gmra.mxu0 %vm19839_vm3, %v15821_v47  ;;  %vm19846_vm3 = vmmov %vm19844_vm0 }
 0x10e   : > { %v784_v12 = vpop.permute.xlu0 %783  ;;  %vm16314_vm8 = vcmp.ge.s32.totalorder %v19840_v22, 1  ;;  %3415 = vmatprep.mubr.f32.mxu0 %v19684_v45  ;;  %v16329_v21 = vsel %vm19846_vm3, %v780_v57, %v782_v19  ;;  %v19848_v22 = vand.u32 63, %v16262_v42  ;;  %v19852_v57 = vmov 0  ;;  %vm19862_vm14 = vmmov %vm19846_vm3 }
 0x10f   : > { %v19842_v14 = vsel %vm16314_vm8, 4294967295, %v19841_v14  ;;  %4967 = vrot.lane.b32.xlu1 %v15350_v23, %s15134_s27  ;;  %v16325_v17 = vsel %vm19844_vm0, %v782_v19, %v784_v12  ;;  %19847 = vst [vmem:[#allocation91_spill] sm:$0xff] %v16329_v21  ;;  %v19851_v19 = vand.u32 63, %v16274_v18 }
 0x110   : > { %19843 = vst [vmem:[#allocation89_spill] sm:$0xff] %v19842_v14  ;;  %19845 = vst [vmem:[#allocation90_spill] sm:$0xff] %v16325_v17  ;;  %4965 = vrot.lane.b32.xlu0 %v15353_v24, %s15134_s27  ;;  %14562 = vmatprep.subr.msk.mxu1 %vm16305_vm2, %v16325_v17  ;;  %vm16338_vm1 = vcmp.ge.s32.totalorder %v19848_v22, 1  ;;  %vm19855_vm2 = vcmask 64512   ;;  %v19856_v22 = vand.u32 63, %v16283_v10  ;;  %v19857_v17 = vmov 0 }
 0x111   : > { %v19850_v20 = vsel %vm16338_vm1, 4294967295, %v19849_v20  ;;  %14563 = vmatpush1.msk.msra.mxu1 %vm16314_vm8, %v16329_v21  ;;  %v790_v23 = vpop.permute.xlu1 %789  ;;  %vm16347_vm0 = vcmp.ge.s32.totalorder %v19851_v19, 1  ;;  %v19859_v19 = vand.u32 63, %v16286_v36  ;;  %v19860_v21 = vmov 0 }
 0x112   : > { %v19853_v57 = vsel %vm16347_vm0, 4294967295, %v19852_v57  ;;  %v788_v24 = vpop.permute.xlu0 %787  ;;  %v16354_v48 = vsel %vm19846_vm3, %v790_v23, %v15826_v60  ;;  %14564 = vmatmul.mubr.msk.f32.vlgmr.msra.gmra.mxu1 %vm19855_vm2, %v15821_v47  ;;  %vm16360_vm15 = vcmp.ge.s32.totalorder %v19856_v22, 1  ;;  %vm19864_vm2 = vmmov %vm19846_vm3 }
 0x113   : > { %19854 = vst [vmem:[#allocation92_spill] sm:$0xff] %v16354_v48  ;;  %v19858_v17 = vsel %vm16360_vm15, 4294967295, %v19857_v17  ;;  %vm16366_vm8 = vcmp.ge.s32.totalorder %v19859_v19, 1  ;;  %v16372_v14 = vsel %vm19862_vm14, %v788_v24, %v790_v23  ;;  %4971 = vrot.lane.b32.xlu1 %v15360_v25, %s15134_s27  ;;  %v16378_v60 = vsel %vm19864_vm2, %v786_v1, %v788_v24  ;;  %14568 = vmatprep.subr.msk.mxu1 %vm16338_vm1, %v16354_v48  ;;  %vm19866_vm3 = vmmov %vm19864_vm2 }
 0x114   : > { %v19861_v21 = vsel %vm16366_vm8, 4294967295, %v19860_v21  ;;  %19863 = vst [vmem:[#allocation93_spill] sm:$0xff] %v16372_v14  ;;  %19865 = vst [vmem:[#allocation94_spill] sm:$0xff] %v16378_v60  ;;  %v16385_v22 = vsel %vm19866_vm3, %v784_v12, %v786_v1  ;;  %4969 = vrot.lane.b32.xlu0 %v15363_v26, %s15134_s27  ;;  %14565 = vmatprep.subr.msk.mxu0 %vm16347_vm0, %v16378_v60  ;;  %vm19484_vm14 = vcmp.lt.s32.totalorder %v15451_v34, 63  ;;  %v19868_v1 = vand.u32 63, %v15692_v63 }
 0x115   : > { %19867 = vst [vmem:[#allocation95_spill] sm:$0xff] %v16385_v22  ;;  %14566 = vmatpush1.msk.msra.mxu0 %vm16360_vm15, %v16385_v22  ;;  %14569 = vmatpush1.msk.msra.mxu1 %vm16366_vm8, %v16372_v14  ;;  %v3496_v25 = vpop.permute.xlu1 %3495  ;;  %v19869_v12 = vmov 0  ;;  %vm19871_vm3 = vcmask 64512   ;;  %v19874_v24 = vand.u32 63, %v15713_v62  ;;  %v19875_v19 = vmov 0 }
 0x116   : > { %vm16401_vm2 = vcmp.lt.s32.totalorder %v19868_v1, 63  ;;  %v3494_v26 = vpop.permute.xlu0 %3493  ;;  %3486 = vmatprep.mubr.f32.mxu1 %v19684_v45  ;;  %14567 = vmatmul.mubr.msk.f32.vlgmr.msra.gmra.mxu0 %vm19871_vm3, %v15821_v47  ;;  %vm19873_vm15 = vmmov %vm19871_vm3  ;;  %v19881_v1 = vand.u32 63, %v15718_v58  ;;  %vm19891_vm1 = vcmp.lt.s32.totalorder %v15451_v34, 63  ;;  %v19912_v48 = vmov 0 }
 0x117   : > { %v19870_v12 = vsel %vm16401_vm2, 4294967295, %v19869_v12  ;;  %v16410_v23 = vsel %vm19484_vm14, %v3494_v26, %v3496_v25  ;;  %4975 = vrot.lane.b32.xlu1 %v15370_v27, %s15134_s27  ;;  %14570 = vmatmul.mubr.msk.f32.vlgmr.msra.gmra.mxu1 %vm19873_vm15, %v15821_v47  ;;  %vm16423_vm3 = vcmp.lt.s32.totalorder %v19874_v24, 63  ;;  %v19877_v27 = vand.u32 63, %v15451_v34 }
 0x118   : > { %19872 = vst [vmem:[#allocation96_spill] sm:$0xff] %v16410_v23  ;;  %4973 = vrot.lane.b32.xlu0 %v15373_v28, %s15134_s27  ;;  %14572 = vmatprep.subr.msk.mxu0 %vm16401_vm2, %v16410_v23  ;;  %v19876_v19 = vsel %vm16423_vm3, 4294967295, %v19875_v19  ;;  %v19878_v47 = vmov 0  ;;  %vm16437_vm14 = vcmp.lt.s32.totalorder %v19881_v1, 63  ;;  %v19882_v23 = vmov 0 }
 0x119   : > { %v3500_v63 = vpop.permute.xlu1 %3499  ;;  %3890 = vmatprep.mubr.f32.mxu1 %v19684_v45  ;;  %3819 = vmatprep.mubr.f32.mxu0 %v19684_v45  ;;  %vm16431_vm15 = vcmp.lt.s32.totalorder %v19877_v27, 63  ;;  %v19883_v23 = vsel %vm16437_vm14, 4294967295, %v19882_v23  ;;  %vm19885_vm2 = vcmp.lt.s32.totalorder %v15451_v34, 63  ;;  %v16452_v27 = vld [vmem:[%s15474_s23 + $0x8] sm:$0xf]  ;;  %v19920_v60 = vmov 0 }
 0x11a   : > { %v19879_v47 = vsel %vm16431_vm15, 4294967295, %v19878_v47  ;;  %v3498_v28 = vpop.permute.xlu0 %3497  ;;  %19884 = vst [vmem:[#allocation98_spill] sm:$0xff] %v19883_v23  ;;  %vm19887_vm8 = vmmov %vm19885_vm2  ;;  %v19925_v14 = vmov 0  ;;  %v19933_v22 = vmov 0 }
 0x11b   : > { %19880 = vst [vmem:[#allocation97_spill] sm:$0xff] %v19879_v47  ;;  %v16443_v62 = vsel %vm19885_vm2, %v3498_v28, %v3500_v63  ;;  %v16447_v24 = vsel %vm19887_vm8, %v3496_v25, %v3498_v28  ;;  %4979 = vrot.lane.b32.xlu1 %v15380_v29, %s15134_s27  ;;  %vm19889_vm2 = vcmp.ge.s32.totalorder %v15451_v34, 64  ;;  %vm19890_vm8 = vcmask 64512  }
 0x11c   : > { %19886 = vst [vmem:[#allocation99_spill] sm:$0xff] %v16443_v62  ;;  %19888 = vst [vmem:[#allocation100_spill] sm:$0xff] %v16447_v24  ;;  %4977 = vrot.lane.b32.xlu0 %v15383_v30, %s15134_s27  ;;  %14575 = vmatprep.subr.msk.mxu1 %vm16423_vm3, %v16443_v62  ;;  %v19894_v28 = vand.u32 63, %v15779_v44  ;;  %v19899_v62 = vmov 0  ;;  %v16510_v44 = vld [vmem:[%s15229_s11 + $0x8] sm:$0xff] }
 0x11d   : > { %vm3622_vm0 = vmand %vm19889_vm2, %vm16431_vm15  ;;  %14576 = vmatpush1.msk.msra.mxu1 %vm16437_vm14, %v16447_v24  ;;  %v3502_v29 = vpop.permute.xlu1 %3501  ;;  %v19907_v24 = vmov 0 }
 0x11e   : > { %14577 = vmatmul.mubr.msk.f32.vlgmr.msra.gmra.mxu1 %vm19890_vm8, %v16452_v27  ;;  %v16468_v58 = vpop.permute.xlu0 %3555  ;;  %vm19893_vm2 = vmmov %vm19890_vm8  ;;  %vm16485_vm8 = vcmp.lt.s32.totalorder %v19894_v28, 63 }
 0x11f   : > { %v16473_v30 = vsel %vm19891_vm1, %v16468_v58, %v3494_v26  ;;  %4983 = vrot.lane.b32.xlu1 %v15390_v31, %s15134_s27  ;;  %4032 = vmatprep.mubr.f32.mxu1 %v19684_v45  ;;  %v19895_v26 = vmov 0  ;;  %v19898_v31 = vand.u32 63, %v15794_v33 }
 0x120   : > { %19892 = vst [vmem:[#allocation101_spill] sm:$0xff] %v16473_v30  ;;  %4981 = vrot.lane.b32.xlu0 %v15393_v32, %s15134_s27  ;;  %14573 = vmatpush1.msk.msra.mxu0 %vm3622_vm0, %v16473_v30  ;;  %v19896_v26 = vsel %vm16485_vm8, 4294967295, %v19895_v26  ;;  %vm19902_vm0 = vcmp.lt.s32.totalorder %v15451_v34, 63  ;;  %v16501_v30 = vld [vmem:[%s15229_s11 + $0x10] sm:$0xff] }
 0x121   : > { %14574 = vmatmul.mubr.msk.f32.vlgmr.msra.gmra.mxu0 %vm19893_vm2, %v16452_v27  ;;  %v3506_v25 = vpop.permute.xlu1 %3505  ;;  %19897 = vst [vmem:[#allocation102_spill] sm:$0xff] %v19896_v26  ;;  %vm16491_vm1 = vcmp.lt.s32.totalorder %v19898_v31, 63  ;;  %vm19904_vm2 = vmmov %vm19902_vm0  ;;  %v19906_v31 = vand.u32 63, %v15824_v43  ;;  %v16539_v43 = vld [vmem:[%s15229_s11 + $0x20] sm:$0xff] }
 0x122   : > { %v3504_v1 = vpop.permute.xlu0 %3503  ;;  %v19900_v62 = vsel %vm16491_vm1, 4294967295, %v19899_v62  ;;  %3961 = vmatprep.mubr.f32.mxu0 %v19684_v45  ;;  %v16507_v33 = vsel %vm19904_vm2, %v3500_v63, %v3502_v29  ;;  %vm19910_vm2 = vcmask 64512  }
 0x123   : > { %19901 = vst [vmem:[#allocation103_spill] sm:$0xff] %v19900_v62  ;;  %v16498_v32 = vsel %vm19902_vm0, %v3502_v29, %v3504_v1  ;;  %7466 = vrot.lane.b32.xlu1 %v16501_v30, %s15135_s28  ;;  %19905 = vst [vmem:[#allocation105_spill] sm:$0xff] %v16507_v33  ;;  %vm16522_vm0 = vcmp.lt.s32.totalorder %v19906_v31, 63  ;;  %v19911_v29 = vand.u32 63, %v15832_v35  ;;  %v16549_v31 = vld [vmem:[%s15229_s11 + $0x18] sm:$0xff] }
 0x124   : > { %19903 = vst [vmem:[#allocation104_spill] sm:$0xff] %v16498_v32  ;;  %7464 = vrot.lane.b32.xlu0 %v16510_v44, %s15135_s28  ;;  %14578 = vmatprep.subr.msk.mxu0 %vm16485_vm8, %v16498_v32  ;;  %v19908_v24 = vsel %vm16522_vm0, 4294967295, %v19907_v24  ;;  %vm19915_vm8 = vcmp.lt.s32.totalorder %v15451_v34, 63 }
 0x125   : > { %14579 = vmatpush1.msk.msra.mxu0 %vm16491_vm1, %v16507_v33  ;;  %v3510_v28 = vpop.permute.xlu1 %3509  ;;  %19909 = vst [vmem:[#allocation106_spill] sm:$0xff] %v19908_v24  ;;  %vm16530_vm14 = vcmp.lt.s32.totalorder %v19911_v29, 63  ;;  %v19919_v33 = vand.u32 63, %v15855_v52  ;;  %v16578_v52 = vld [vmem:[%s15229_s11 + $0x28] sm:$0xff] }
 0x126   : > { %14580 = vmatmul.mubr.msk.f32.vlgmr.msra.gmra.mxu0 %vm19910_vm2, %v16452_v27  ;;  %v3508_v63 = vpop.permute.xlu0 %3507  ;;  %v19913_v48 = vsel %vm16530_vm14, 4294967295, %v19912_v48  ;;  %vm19917_vm2 = vmmov %vm19915_vm8 }
 0x127   : > { %19914 = vst [vmem:[#allocation107_spill] sm:$0xff] %v19913_v48  ;;  %v16536_v32 = vsel %vm19915_vm8, %v3506_v25, %v3508_v63  ;;  %7470 = vrot.lane.b32.xlu1 %v16539_v43, %s15135_s28  ;;  %4103 = vmatprep.mubr.f32.mxu0 %v19684_v45  ;;  %v16546_v35 = vsel %vm19917_vm2, %v3504_v1, %v3506_v25  ;;  %vm16561_vm8 = vcmp.lt.s32.totalorder %v19919_v33, 63  ;;  %vm19923_vm2 = vcmask 64512   ;;  %v16588_v33 = vld [vmem:[%s15229_s11] sm:$0xff] }
 0x128   : > { %19916 = vst [vmem:[#allocation108_spill] sm:$0xff] %v16536_v32  ;;  %19918 = vst [vmem:[#allocation109_spill] sm:$0xff] %v16546_v35  ;;  %7468 = vrot.lane.b32.xlu0 %v16549_v31, %s15135_s28  ;;  %14581 = vmatprep.subr.msk.mxu1 %vm16522_vm0, %v16536_v32  ;;  %v19921_v60 = vsel %vm16561_vm8, 4294967295, %v19920_v60  ;;  %v19924_v1 = vand.u32 63, %v15866_v40  ;;  %vm19928_vm0 = vcmp.lt.s32.totalorder %v15451_v34, 63 }
 0x129   : > { %14582 = vmatpush1.msk.msra.mxu1 %vm16530_vm14, %v16546_v35  ;;  %v3514_v29 = vpop.permute.xlu1 %3513  ;;  %19922 = vst [vmem:[#allocation110_spill] sm:$0xff] %v19921_v60  ;;  %v19932_v35 = vand.u32 63, %v15894_v4  ;;  %v19938_v60 = vmov 0  ;;  %v16617_v4 = vld [vmem:[%s15229_s11 + $0x38] sm:$0xff] }
 0x12a   : > { %14583 = vmatmul.mubr.msk.f32.vlgmr.msra.gmra.mxu1 %vm19923_vm2, %v16452_v27  ;;  %v3512_v25 = vpop.permute.xlu0 %3511  ;;  %vm16569_vm1 = vcmp.lt.s32.totalorder %v19924_v1, 63  ;;  %vm19930_vm2 = vmmov %vm19928_vm0 }
 0x12b   : > { %v19926_v14 = vsel %vm16569_vm1, 4294967295, %v19925_v14  ;;  %v16575_v32 = vsel %vm19928_vm0, %v3510_v28, %v3512_v25  ;;  %7472 = vrot.lane.b32.xlu1 %v16578_v52, %s15135_s28  ;;  %4174 = vmatprep.mubr.f32.mxu1 %v19684_v45  ;;  %v16585_v40 = vsel %vm19930_vm2, %v3508_v63, %v3510_v28  ;;  %vm16600_vm0 = vcmp.lt.s32.totalorder %v19932_v35, 63  ;;  %v16627_v35 = vld [vmem:[%s15229_s11 + $0x30] sm:$0xff] }
 0x12c   : > { %19927 = vst [vmem:[#allocation111_spill] sm:$0xff] %v19926_v14  ;;  %19929 = vst [vmem:[#allocation112_spill] sm:$0xff] %v16575_v32  ;;  %7462 = vrot.lane.b32.xlu0 %v16588_v33, %s15135_s28  ;;  %14584 = vmatprep.subr.msk.mxu0 %vm16561_vm8, %v16575_v32  ;;  %v19934_v22 = vsel %vm16600_vm0, 4294967295, %v19933_v22  ;;  %vm19936_vm2 = vcmask 64512   ;;  %v19937_v63 = vand.u32 63, %v15906_v55  ;;  %vm19941_vm8 = vcmp.lt.s32.totalorder %v15451_v34, 63 }
 0x12d   : > { %19931 = vst [vmem:[#allocation113_spill] sm:$0xff] %v16585_v40  ;;  %14585 = vmatpush1.msk.msra.mxu0 %vm16569_vm1, %v16585_v40  ;;  %v3518_v1 = vpop.permute.xlu1 %3517  ;;  %19935 = vst [vmem:[#allocation114_spill] sm:$0xff] %v19934_v22  ;;  %v19945_v40 = vand.u32 63, %v15935_v3  ;;  %v19946_v14 = vmov 0  ;;  %v19951_v22 = vmov 0  ;;  %v16656_v3 = vld [vmem:[%s15229_s11 + $0x48] sm:$0xff] }
 0x12e   : > { %14586 = vmatmul.mubr.msk.f32.vlgmr.msra.gmra.mxu0 %vm19936_vm2, %v16452_v27  ;;  %v3516_v28 = vpop.permute.xlu0 %3515  ;;  %vm16608_vm14 = vcmp.lt.s32.totalorder %v19937_v63, 63  ;;  %vm19943_vm2 = vmmov %vm19941_vm8 }
 0x12f   : > { %v19939_v60 = vsel %vm16608_vm14, 4294967295, %v19938_v60  ;;  %v16614_v32 = vsel %vm19941_vm8, %v3514_v29, %v3516_v28  ;;  %7476 = vrot.lane.b32.xlu1 %v16617_v4, %s15135_s28  ;;  %4245 = vmatprep.mubr.f32.mxu0 %v19684_v45  ;;  %v16624_v55 = vsel %vm19943_vm2, %v3512_v25, %v3514_v29  ;;  %vm16639_vm8 = vcmp.lt.s32.totalorder %v19945_v40, 63  ;;  %v16666_v40 = vld [vmem:[%s15229_s11 + $0x40] sm:$0xff] }
 0x130   : > { %19940 = vst [vmem:[#allocation115_spill] sm:$0xff] %v19939_v60  ;;  %19942 = vst [vmem:[#allocation116_spill] sm:$0xff] %v16614_v32  ;;  %7474 = vrot.lane.b32.xlu0 %v16627_v35, %s15135_s28  ;;  %14587 = vmatprep.subr.msk.mxu1 %vm16600_vm0, %v16614_v32  ;;  %v19947_v14 = vsel %vm16639_vm8, 4294967295, %v19946_v14  ;;  %vm19949_vm2 = vcmask 64512   ;;  %v19950_v25 = vand.u32 63, %v15947_v59  ;;  %vm19954_vm0 = vcmp.lt.s32.totalorder %v15451_v34, 63 }
 0x131   : > { %19944 = vst [vmem:[#allocation117_spill] sm:$0xff] %v16624_v55  ;;  %14588 = vmatpush1.msk.msra.mxu1 %vm16608_vm14, %v16624_v55  ;;  %v3522_v63 = vpop.permute.xlu1 %3521  ;;  %19948 = vst [vmem:[#allocation118_spill] sm:$0xff] %v19947_v14  ;;  %v19958_v55 = vand.u32 63, %v15976_v5  ;;  %v19959_v60 = vmov 0  ;;  %v19964_v14 = vmov 0  ;;  %v16695_v5 = vld [vmem:[%s15229_s11 + $0x58] sm:$0xff] }
 0x132   : > { %14589 = vmatmul.mubr.msk.f32.vlgmr.msra.gmra.mxu1 %vm19949_vm2, %v16452_v27  ;;  %v3520_v29 = vpop.permute.xlu0 %3519  ;;  %vm16647_vm1 = vcmp.lt.s32.totalorder %v19950_v25, 63  ;;  %vm19956_vm2 = vmmov %vm19954_vm0 }
 0x133   : > { %v19952_v22 = vsel %vm16647_vm1, 4294967295, %v19951_v22  ;;  %v16653_v32 = vsel %vm19954_vm0, %v3518_v1, %v3520_v29  ;;  %7480 = vrot.lane.b32.xlu1 %v16656_v3, %s15135_s28  ;;  %4316 = vmatprep.mubr.f32.mxu1 %v19684_v45  ;;  %v16663_v59 = vsel %vm19956_vm2, %v3516_v28, %v3518_v1  ;;  %vm16678_vm0 = vcmp.lt.s32.totalorder %v19958_v55, 63  ;;  %v16705_v55 = vld [vmem:[%s15229_s11 + $0x50] sm:$0xff] }
 0x134   : > { %19953 = vst [vmem:[#allocation119_spill] sm:$0xff] %v19952_v22  ;;  %19955 = vst [vmem:[#allocation120_spill] sm:$0xff] %v16653_v32  ;;  %7478 = vrot.lane.b32.xlu0 %v16666_v40, %s15135_s28  ;;  %14590 = vmatprep.subr.msk.mxu0 %vm16639_vm8, %v16653_v32  ;;  %v19960_v60 = vsel %vm16678_vm0, 4294967295, %v19959_v60  ;;  %vm19962_vm2 = vcmask 64512   ;;  %v19963_v28 = vand.u32 63, %v15988_v2  ;;  %vm19967_vm8 = vcmp.lt.s32.totalorder %v15451_v34, 63 }
 0x135   : > { %19957 = vst [vmem:[#allocation121_spill] sm:$0xff] %v16663_v59  ;;  %14591 = vmatpush1.msk.msra.mxu0 %vm16647_vm1, %v16663_v59  ;;  %v3526_v25 = vpop.permute.xlu1 %3525  ;;  %19961 = vst [vmem:[#allocation122_spill] sm:$0xff] %v19960_v60  ;;  %v19971_v59 = vand.u32 63, %v16017_v7  ;;  %v19972_v22 = vmov 0  ;;  %v19977_v60 = vmov 0  ;;  %v16734_v7 = vld [vmem:[%s15229_s11 + $0x68] sm:$0xff] }
 0x136   : > { %14592 = vmatmul.mubr.msk.f32.vlgmr.msra.gmra.mxu0 %vm19962_vm2, %v16452_v27  ;;  %v3524_v1 = vpop.permute.xlu0 %3523  ;;  %vm16686_vm14 = vcmp.lt.s32.totalorder %v19963_v28, 63  ;;  %vm19969_vm2 = vmmov %vm19967_vm8 }
 0x137   : > { %v19965_v14 = vsel %vm16686_vm14, 4294967295, %v19964_v14  ;;  %v16692_v32 = vsel %vm19967_vm8, %v3522_v63, %v3524_v1  ;;  %7484 = vrot.lane.b32.xlu1 %v16695_v5, %s15135_s28  ;;  %4387 = vmatprep.mubr.f32.mxu0 %v19684_v45  ;;  %v16702_v2 = vsel %vm19969_vm2, %v3520_v29, %v3522_v63  ;;  %vm16717_vm8 = vcmp.lt.s32.totalorder %v19971_v59, 63  ;;  %v16744_v59 = vld [vmem:[%s15229_s11 + $0x60] sm:$0xff] }
 0x138   : > { %19966 = vst [vmem:[#allocation123_spill] sm:$0xff] %v19965_v14  ;;  %19968 = vst [vmem:[#allocation124_spill] sm:$0xff] %v16692_v32  ;;  %7482 = vrot.lane.b32.xlu0 %v16705_v55, %s15135_s28  ;;  %14593 = vmatprep.subr.msk.mxu1 %vm16678_vm0, %v16692_v32  ;;  %v19973_v22 = vsel %vm16717_vm8, 4294967295, %v19972_v22  ;;  %vm19975_vm2 = vcmask 64512   ;;  %v19976_v29 = vand.u32 63, %v16029_v51  ;;  %vm19980_vm0 = vcmp.lt.s32.totalorder %v15451_v34, 63 }
 0x139   : > { %19970 = vst [vmem:[#allocation125_spill] sm:$0xff] %v16702_v2  ;;  %14594 = vmatpush1.msk.msra.mxu1 %vm16686_vm14, %v16702_v2  ;;  %v3530_v28 = vpop.permute.xlu1 %3529  ;;  %19974 = vst [vmem:[#allocation126_spill] sm:$0xff] %v19973_v22  ;;  %v19984_v2 = vand.u32 63, %v16058_v9  ;;  %v19985_v14 = vmov 0  ;;  %v19990_v22 = vmov 0  ;;  %v16773_v9 = vld [vmem:[%s15229_s11 + $0x78] sm:$0xff] }
 0x13a   : > { %14595 = vmatmul.mubr.msk.f32.vlgmr.msra.gmra.mxu1 %vm19975_vm2, %v16452_v27  ;;  %v3528_v63 = vpop.permute.xlu0 %3527  ;;  %vm16725_vm1 = vcmp.lt.s32.totalorder %v19976_v29, 63  ;;  %vm19982_vm2 = vmmov %vm19980_vm0 }
 0x13b   : > { %v19978_v60 = vsel %vm16725_vm1, 4294967295, %v19977_v60  ;;  %v16731_v32 = vsel %vm19980_vm0, %v3526_v25, %v3528_v63  ;;  %7488 = vrot.lane.b32.xlu1 %v16734_v7, %s15135_s28  ;;  %4458 = vmatprep.mubr.f32.mxu1 %v19684_v45  ;;  %v16741_v51 = vsel %vm19982_vm2, %v3524_v1, %v3526_v25  ;;  %vm16756_vm0 = vcmp.lt.s32.totalorder %v19984_v2, 63  ;;  %v16783_v2 = vld [vmem:[%s15229_s11 + $0x70] sm:$0xff] }
 0x13c   : > { %19979 = vst [vmem:[#allocation127_spill] sm:$0xff] %v19978_v60  ;;  %19981 = vst [vmem:[#allocation128_spill] sm:$0xff] %v16731_v32  ;;  %7486 = vrot.lane.b32.xlu0 %v16744_v59, %s15135_s28  ;;  %14596 = vmatprep.subr.msk.mxu0 %vm16717_vm8, %v16731_v32  ;;  %v19986_v14 = vsel %vm16756_vm0, 4294967295, %v19985_v14  ;;  %vm19988_vm2 = vcmask 64512   ;;  %v19989_v1 = vand.u32 63, %v16070_v49  ;;  %vm19993_vm8 = vcmp.lt.s32.totalorder %v15451_v34, 63 }
 0x13d   : > { %19983 = vst [vmem:[#allocation129_spill] sm:$0xff] %v16741_v51  ;;  %14597 = vmatpush1.msk.msra.mxu0 %vm16725_vm1, %v16741_v51  ;;  %v3534_v29 = vpop.permute.xlu1 %3533  ;;  %19987 = vst [vmem:[#allocation130_spill] sm:$0xff] %v19986_v14  ;;  %v19997_v51 = vand.u32 63, %v16099_v11  ;;  %v19998_v60 = vmov 0  ;;  %v20003_v14 = vmov 0  ;;  %v16812_v11 = vld [vmem:[%s15229_s11 + $0x88] sm:$0xff] }
 0x13e   : > { %14598 = vmatmul.mubr.msk.f32.vlgmr.msra.gmra.mxu0 %vm19988_vm2, %v16452_v27  ;;  %v3532_v25 = vpop.permute.xlu0 %3531  ;;  %vm16764_vm14 = vcmp.lt.s32.totalorder %v19989_v1, 63  ;;  %vm19995_vm2 = vmmov %vm19993_vm8 }
 0x13f   : > { %v19991_v22 = vsel %vm16764_vm14, 4294967295, %v19990_v22  ;;  %v16770_v32 = vsel %vm19993_vm8, %v3530_v28, %v3532_v25  ;;  %7492 = vrot.lane.b32.xlu1 %v16773_v9, %s15135_s28  ;;  %4529 = vmatprep.mubr.f32.mxu0 %v19684_v45  ;;  %v16780_v49 = vsel %vm19995_vm2, %v3528_v63, %v3530_v28  ;;  %vm16795_vm8 = vcmp.lt.s32.totalorder %v19997_v51, 63  ;;  %v16822_v51 = vld [vmem:[%s15229_s11 + $0x80] sm:$0xff] }
 0x140   : > { %19992 = vst [vmem:[#allocation131_spill] sm:$0xff] %v19991_v22  ;;  %19994 = vst [vmem:[#allocation132_spill] sm:$0xff] %v16770_v32  ;;  %7490 = vrot.lane.b32.xlu0 %v16783_v2, %s15135_s28  ;;  %14599 = vmatprep.subr.msk.mxu1 %vm16756_vm0, %v16770_v32  ;;  %v19999_v60 = vsel %vm16795_vm8, 4294967295, %v19998_v60  ;;  %vm20001_vm2 = vcmask 64512   ;;  %v20002_v63 = vand.u32 63, %v16111_v0  ;;  %vm20006_vm0 = vcmp.lt.s32.totalorder %v15451_v34, 63 }
 0x141   : > { %19996 = vst [vmem:[#allocation133_spill] sm:$0xff] %v16780_v49  ;;  %14600 = vmatpush1.msk.msra.mxu1 %vm16764_vm14, %v16780_v49  ;;  %v3538_v1 = vpop.permute.xlu1 %3537  ;;  %20000 = vst [vmem:[#allocation134_spill] sm:$0xff] %v19999_v60  ;;  %v20010_v49 = vand.u32 63, %v16140_v13  ;;  %v20011_v22 = vmov 0  ;;  %v20016_v60 = vmov 0  ;;  %v16851_v13 = vld [vmem:[%s15229_s11 + $0x98] sm:$0xff] }
 0x142   : > { %14601 = vmatmul.mubr.msk.f32.vlgmr.msra.gmra.mxu1 %vm20001_vm2, %v16452_v27  ;;  %v3536_v28 = vpop.permute.xlu0 %3535  ;;  %vm16803_vm1 = vcmp.lt.s32.totalorder %v20002_v63, 63  ;;  %vm20008_vm2 = vmmov %vm20006_vm0 }
 0x143   : > { %v20004_v14 = vsel %vm16803_vm1, 4294967295, %v20003_v14  ;;  %v16809_v32 = vsel %vm20006_vm0, %v3534_v29, %v3536_v28  ;;  %7496 = vrot.lane.b32.xlu1 %v16812_v11, %s15135_s28  ;;  %4600 = vmatprep.mubr.f32.mxu1 %v19684_v45  ;;  %v16819_v0 = vsel %vm20008_vm2, %v3532_v25, %v3534_v29  ;;  %vm16834_vm0 = vcmp.lt.s32.totalorder %v20010_v49, 63  ;;  %v16861_v49 = vld [vmem:[%s15229_s11 + $0x90] sm:$0xff] }
 0x144   : > { %20005 = vst [vmem:[#allocation135_spill] sm:$0xff] %v20004_v14  ;;  %20007 = vst [vmem:[#allocation136_spill] sm:$0xff] %v16809_v32  ;;  %7494 = vrot.lane.b32.xlu0 %v16822_v51, %s15135_s28  ;;  %14602 = vmatprep.subr.msk.mxu0 %vm16795_vm8, %v16809_v32  ;;  %v20012_v22 = vsel %vm16834_vm0, 4294967295, %v20011_v22  ;;  %vm20014_vm2 = vcmask 64512   ;;  %v20015_v25 = vand.u32 63, %v16152_v6  ;;  %vm20019_vm8 = vcmp.lt.s32.totalorder %v15451_v34, 63 }
 0x145   : > { %20009 = vst [vmem:[#allocation137_spill] sm:$0xff] %v16819_v0  ;;  %14603 = vmatpush1.msk.msra.mxu0 %vm16803_vm1, %v16819_v0  ;;  %v3542_v63 = vpop.permute.xlu1 %3541  ;;  %20013 = vst [vmem:[#allocation138_spill] sm:$0xff] %v20012_v22  ;;  %v20023_v0 = vand.u32 63, %v16181_v15  ;;  %v20024_v14 = vmov 0  ;;  %v20029_v22 = vmov 0  ;;  %v16890_v15 = vld [vmem:[%s15229_s11 + $0xa8] sm:$0xff] }
 0x146   : > { %14604 = vmatmul.mubr.msk.f32.vlgmr.msra.gmra.mxu0 %vm20014_vm2, %v16452_v27  ;;  %v3540_v29 = vpop.permute.xlu0 %3539  ;;  %vm16842_vm14 = vcmp.lt.s32.totalorder %v20015_v25, 63  ;;  %vm20021_vm2 = vmmov %vm20019_vm8 }
 0x147   : > { %v20017_v60 = vsel %vm16842_vm14, 4294967295, %v20016_v60  ;;  %v16848_v32 = vsel %vm20019_vm8, %v3538_v1, %v3540_v29  ;;  %7500 = vrot.lane.b32.xlu1 %v16851_v13, %s15135_s28  ;;  %4671 = vmatprep.mubr.f32.mxu0 %v19684_v45  ;;  %v16858_v6 = vsel %vm20021_vm2, %v3536_v28, %v3538_v1  ;;  %vm16873_vm8 = vcmp.lt.s32.totalorder %v20023_v0, 63  ;;  %v16900_v0 = vld [vmem:[%s15229_s11 + $0xa0] sm:$0xff] }
 0x148   : > { %20018 = vst [vmem:[#allocation139_spill] sm:$0xff] %v20017_v60  ;;  %20020 = vst [vmem:[#allocation140_spill] sm:$0xff] %v16848_v32  ;;  %7498 = vrot.lane.b32.xlu0 %v16861_v49, %s15135_s28  ;;  %14605 = vmatprep.subr.msk.mxu1 %vm16834_vm0, %v16848_v32  ;;  %v20025_v14 = vsel %vm16873_vm8, 4294967295, %v20024_v14  ;;  %vm20027_vm2 = vcmask 64512   ;;  %v20028_v28 = vand.u32 63, %v16193_v8  ;;  %vm20032_vm0 = vcmp.lt.s32.totalorder %v15451_v34, 63 }
 0x149   : > { %20022 = vst [vmem:[#allocation141_spill] sm:$0xff] %v16858_v6  ;;  %14606 = vmatpush1.msk.msra.mxu1 %vm16842_vm14, %v16858_v6  ;;  %v3546_v25 = vpop.permute.xlu1 %3545  ;;  %20026 = vst [vmem:[#allocation142_spill] sm:$0xff] %v20025_v14  ;;  %v20036_v6 = vand.u32 63, %v16231_v53  ;;  %v20037_v60 = vmov 0  ;;  %v20042_v14 = vmov 0 }
 0x14a   : > { %14607 = vmatmul.mubr.msk.f32.vlgmr.msra.gmra.mxu1 %vm20027_vm2, %v16452_v27  ;;  %v3544_v1 = vpop.permute.xlu0 %3543  ;;  %vm16881_vm1 = vcmp.lt.s32.totalorder %v20028_v28, 63  ;;  %vm20034_vm2 = vmmov %vm20032_vm0 }
 0x14b   : > { %v20030_v22 = vsel %vm16881_vm1, 4294967295, %v20029_v22  ;;  %v16887_v32 = vsel %vm20032_vm0, %v3542_v63, %v3544_v1  ;;  %7504 = vrot.lane.b32.xlu1 %v16890_v15, %s15135_s28  ;;  %4742 = vmatprep.mubr.f32.mxu1 %v19684_v45  ;;  %v16897_v8 = vsel %vm20034_vm2, %v3540_v29, %v3542_v63  ;;  %vm16912_vm0 = vcmp.lt.s32.totalorder %v20036_v6, 63 }
 0x14c   : > { %20031 = vst [vmem:[#allocation143_spill] sm:$0xff] %v20030_v22  ;;  %20033 = vst [vmem:[#allocation144_spill] sm:$0xff] %v16887_v32  ;;  %7502 = vrot.lane.b32.xlu0 %v16900_v0, %s15135_s28  ;;  %14608 = vmatprep.subr.msk.mxu0 %vm16873_vm8, %v16887_v32  ;;  %v20038_v60 = vsel %vm16912_vm0, 4294967295, %v20037_v60  ;;  %vm20040_vm2 = vcmask 64512   ;;  %v20041_v29 = vand.u32 63, %v16238_v41  ;;  %vm20045_vm8 = vcmp.lt.s32.totalorder %v15451_v34, 63 }
 0x14d   : > { %20035 = vst [vmem:[#allocation145_spill] sm:$0xff] %v16897_v8  ;;  %14609 = vmatpush1.msk.msra.mxu0 %vm16881_vm1, %v16897_v8  ;;  %v3550_v28 = vpop.permute.xlu1 %3549  ;;  %20039 = vst [vmem:[#allocation146_spill] sm:$0xff] %v20038_v60  ;;  %v16929_v8 = vld [vmem:[%s15229_s11 + $0xb8] sm:$0xff]  ;;  %v16939_v41 = vld [vmem:[%s15229_s11 + $0xb0] sm:$0xff]  ;;  %v20049_v6 = vand.u32 63, %v16262_v42  ;;  %v20054_v22 = vmov 0 }
 0x14e   : > { %14610 = vmatmul.mubr.msk.f32.vlgmr.msra.gmra.mxu0 %vm20040_vm2, %v16452_v27  ;;  %v3548_v63 = vpop.permute.xlu0 %3547  ;;  %vm16920_vm14 = vcmp.lt.s32.totalorder %v20041_v29, 63  ;;  %vm20047_vm2 = vmmov %vm20045_vm8  ;;  %v20050_v29 = vmov 0  ;;  %vm20059_vm1 = vcmask 64512   ;;  %v20060_v42 = vand.u32 63, %v16283_v10  ;;  %v16989_v60 = vld [vmem:[%s15229_s11 + $0xc8] sm:$0xff] }
 0x14f   : > { %v20043_v14 = vsel %vm16920_vm14, 4294967295, %v20042_v14  ;;  %v16926_v32 = vsel %vm20045_vm8, %v3546_v25, %v3548_v63  ;;  %7508 = vrot.lane.b32.xlu1 %v16929_v8, %s15135_s28  ;;  %4813 = vmatprep.mubr.f32.mxu0 %v19684_v45  ;;  %v16936_v53 = vsel %vm20047_vm2, %v3544_v1, %v3546_v25  ;;  %vm16948_vm8 = vcmp.lt.s32.totalorder %v20049_v6, 63 }
 0x150   : > { %20044 = vst [vmem:[#allocation147_spill] sm:$0xff] %v20043_v14  ;;  %20046 = vst [vmem:[#allocation148_spill] sm:$0xff] %v16926_v32  ;;  %7506 = vrot.lane.b32.xlu0 %v16939_v41, %s15135_s28  ;;  %14611 = vmatprep.subr.msk.mxu1 %vm16912_vm0, %v16926_v32  ;;  %v20051_v29 = vsel %vm16948_vm8, 4294967295, %v20050_v29  ;;  %v20053_v1 = vand.u32 63, %v16274_v18  ;;  %vm20057_vm0 = vcmp.lt.s32.totalorder %v15451_v34, 63  ;;  %vm16970_vm15 = vcmp.lt.s32.totalorder %v20060_v42, 63 }
 0x151   : > { %20048 = vst [vmem:[#allocation149_spill] sm:$0xff] %v16936_v53  ;;  %20052 = vst [vmem:[#allocation150_spill] sm:$0xff] %v20051_v29  ;;  %14612 = vmatpush1.msk.msra.mxu1 %vm16920_vm14, %v16936_v53  ;;  %v3554_v25 = vpop.permute.xlu1 %3553  ;;  %v20061_v53 = vmov 0  ;;  %v20064_v18 = vand.u32 63, %v16286_v36  ;;  %v17001_v42 = vld [vmem:[%s15229_s11 + $0xc0] sm:$0xff] }
 0x152   : > { %vm16957_vm2 = vcmp.lt.s32.totalorder %v20053_v1, 63  ;;  %v16964_v32 = vsel %vm20057_vm0, %v3554_v25, %v16468_v58  ;;  %14613 = vmatmul.mubr.msk.f32.vlgmr.msra.gmra.mxu1 %vm20059_vm1, %v16452_v27  ;;  %v3552_v6 = vpop.permute.xlu0 %3551  ;;  %v20062_v53 = vsel %vm16970_vm15, 4294967295, %v20061_v53  ;;  %v20065_v1 = vmov 0  ;;  %vm20068_vm3 = vmmov %vm20057_vm0 }
 0x153   : > { %v20055_v22 = vsel %vm16957_vm2, 4294967295, %v20054_v22  ;;  %20058 = vst [vmem:[#allocation152_spill] sm:$0xff] %v16964_v32  ;;  %20063 = vst [vmem:[#allocation153_spill] sm:$0xff] %v20062_v53  ;;  %vm16976_vm14 = vcmp.lt.s32.totalorder %v20064_v18, 63  ;;  %v16982_v58 = vsel %vm20068_vm3, %v3552_v6, %v3554_v25  ;;  %v16986_v14 = vsel %vm20057_vm0, %v3550_v28, %v3552_v6  ;;  %7512 = vrot.lane.b32.xlu1 %v16989_v60, %s15135_s28  ;;  %v17023_v25 = vld [vmem:[%s15229_s11 + $0xd8] sm:$0xff]  ;;  %v17028_v6 = vld [vmem:[%s15229_s11 + $0xd0] sm:$0xff] }
 0x154   : > { %20056 = vst [vmem:[#allocation151_spill] sm:$0xff] %v20055_v22  ;;  %v20066_v1 = vsel %vm16976_vm14, 4294967295, %v20065_v1  ;;  %20069 = vst [vmem:[#allocation155_spill] sm:$0xff] %v16982_v58  ;;  %14617 = vmatprep.subr.msk.mxu1 %vm16948_vm8, %v16964_v32  ;;  %7510 = vrot.lane.b32.xlu0 %v17001_v42, %s15135_s28  ;;  %vm4987_vm3 = vcmp.lt.s32.totalorder %v15451_v34, 1 }
 0x155   : > { %20067 = vst [vmem:[#allocation154_spill] sm:$0xff] %v20066_v1  ;;  %20070 = vst [vmem:[#allocation156_spill] sm:$0xff] %v16986_v14  ;;  %14614 = vmatprep.subr.msk.mxu0 %vm16957_vm2, %v16986_v14  ;;  %14618 = vmatpush1.msk.msra.mxu1 %vm16976_vm14, %v16982_v58  ;;  %v4926_v10 = vpop.permute.xlu1 %4925  ;;  %v17041_v58 = vld [vmem:[%s15229_s11 + $0xe8] sm:$0xff]  ;;  %v17065_v1 = vld [vmem:[%s15229_s11 + $0xf8] sm:$0xff] }
 0x156   : > { %vm20071_vm1 = vmmov %vm20057_vm0  ;;  %4884 = vmatprep.mubr.f32.mxu1 %v19684_v45  ;;  %vm20073_vm0 = vcmask 64512  }
 0x157   : > { %v16998_v36 = vsel %vm20071_vm1, %v3548_v63, %v3550_v28  ;;  %v4924_v28 = vpop.permute.xlu0 %4923  ;;  %vm20074_vm1 = vmmov %vm20073_vm0  ;;  %7516 = vrot.lane.b32.xlu1 %v17023_v25, %s15135_s28 }
 0x158   : > { %20072 = vst [vmem:[#allocation157_spill] sm:$0xff] %v16998_v36  ;;  %14615 = vmatpush1.msk.msra.mxu0 %vm16970_vm15, %v16998_v36  ;;  %14619 = vmatmul.mubr.msk.f32.vlgmr.msra.gmra.mxu1 %vm20074_vm1, %v16452_v27  ;;  %v5018_v63 = vsel %vm4987_vm3, %v4924_v28, %v4926_v10  ;;  %v17049_v36 = vld [vmem:[%s15229_s11 + $0xe0] sm:$0xff]  ;;  %vm20075_vm1 = vmmov %vm20073_vm0 }
 0x159   : > { %14616 = vmatmul.mubr.msk.f32.vlgmr.msra.gmra.mxu0 %vm20073_vm0, %v16452_v27  ;;  %7514 = vrot.lane.b32.xlu0 %v17028_v6, %s15135_s28  ;;  %v4930_v18 = vpop.permute.xlu1 %4929 }
 0x15a   : > { %14621 = vmatprep.subr.msk.mxu0 %vm15747_vm4, %v5018_v63  ;;  %5256 = vmatprep.mubr.f32.mxu1 %v19684_v45  ;;  %v17046_v63 = vld [vmem:[%s15474_s23 + $0xc] sm:$0xf] }
 0x15b   : > { %5185 = vmatprep.mubr.f32.mxu0 %v19684_v45  ;;  %v4928_v27 = vpop.permute.xlu0 %4927  ;;  %7520 = vrot.lane.b32.xlu1 %v17041_v58, %s15135_s28 }
 0x15c   : > { %v5016_v32 = vsel %vm4987_vm3, %v4928_v27, %v4930_v18  ;;  %v5017_v14 = vsel %vm4987_vm3, %v4926_v10, %v4928_v27 }
 0x15d   : > { %7518 = vrot.lane.b32.xlu0 %v17049_v36, %s15135_s28  ;;  %14624 = vmatprep.subr.msk.mxu1 %vm15773_vm5, %v5016_v32  ;;  %v4932_v37 = vpop.permute.xlu1 %4931  ;;  %v17071_v32 = vld [vmem:[%s15229_s11 + $0xf0] sm:$0xff]  ;;  %s19025_s11 = scalar_lea.vmem %s19338_s5, %s14504_s8 }
 0x15e   : > { %14625 = vmatpush1.msk.msra.mxu1 %vm15789_vm7, %v5017_v14  ;;  %v17081_v46 = vpop.f32.mrf.mxu1  ;;  %v5015_v22 = vsel %vm4987_vm3, %v4930_v18, %v4932_v37 }
 0x15f   : > { %14626 = vmatmul.mubr.msk.f32.vlgmr.msra.gmra.mxu1 %vm20073_vm0, %v17046_v63  ;;  %v17059_v10 = vpop.permute.xlu0 %4985  ;;  %7524 = vrot.lane.b32.xlu1 %v17065_v1, %s15135_s28 }
 0x160   : > { %v5019_v27 = vsel %vm4987_vm3, %v17059_v10, %v4924_v28  ;;  %5398 = vmatprep.mubr.f32.mxu1 %v19684_v45  ;;  %v17077_v14 = vpop.f32.mrf.mxu0  ;;  %v17094_v29 = vpop.f32.mrf.mxu1 }
 0x161   : > { %7522 = vrot.lane.b32.xlu0 %v17071_v32, %s15135_s28  ;;  %14622 = vmatpush1.msk.msra.mxu0 %vm15783_vm6, %v5019_v27  ;;  %v4936_v28 = vpop.permute.xlu1 %4935  ;;  %20077 = vst [vmem:[#allocation159_spill] sm:$0xff] %v17094_v29 }
 0x162   : > { %14623 = vmatmul.mubr.msk.f32.vlgmr.msra.gmra.mxu0 %vm20075_vm1, %v17046_v63  ;;  %v17090_v27 = vpop.f32.mrf.mxu0  ;;  %vm20079_vm1 = vmmov %vm20073_vm0 }
 0x163   : > { %v4934_v54 = vpop.permute.xlu0 %4933  ;;  %5327 = vmatprep.mubr.f32.mxu0 %v19684_v45  ;;  %20076 = vst [vmem:[#allocation158_spill] sm:$0xff] %v17090_v27 }
 0x164   : > { %v5014_v53 = vsel %vm4987_vm3, %v4932_v37, %v4934_v54  ;;  %v5013_v37 = vsel %vm4987_vm3, %v4934_v54, %v4936_v28 }
 0x165   : > { %14627 = vmatprep.subr.msk.mxu0 %vm15847_vm9, %v5014_v53  ;;  %v4940_v50 = vpop.permute.xlu1 %4939  ;;  %v17105_v53 = vpop.f32.mrf.mxu0 }
 0x166   : > { %14628 = vmatpush1.msk.msra.mxu0 %vm15859_vm10, %v5015_v22 }
 0x167   : > { %14629 = vmatmul.mubr.msk.f32.vlgmr.msra.gmra.mxu0 %vm20073_vm0, %v17046_v63  ;;  %v4938_v48 = vpop.permute.xlu0 %4937 }
 0x168   : > { %v5012_v62 = vsel %vm4987_vm3, %v4936_v28, %v4938_v48  ;;  %5469 = vmatprep.mubr.f32.mxu0 %v19684_v45  ;;  %v5011_v54 = vsel %vm4987_vm3, %v4938_v48, %v4940_v50  ;;  %v17120_v28 = vpop.f32.mrf.mxu0 }
 0x169   : > { %14630 = vmatprep.subr.msk.mxu1 %vm15888_vm11, %v5012_v62  ;;  %v4944_v18 = vpop.permute.xlu1 %4943  ;;  %v17109_v27 = vpop.f32.mrf.mxu1  ;;  %20081 = vst [vmem:[#allocation160_spill] sm:$0xff] %v17120_v28 }
 0x16a   : > { %14631 = vmatpush1.msk.msra.mxu1 %vm15898_vm12, %v5013_v37  ;;  %v20082_v37 = vld [vmem:[#allocation54_spill] sm:$0xff]  ;;  %vm20136_vm12 = vnez %v19858_v17 }
 0x16b   : > { %14632 = vmatmul.mubr.msk.f32.vlgmr.msra.gmra.mxu1 %vm20079_vm1, %v17046_v63  ;;  %v4942_v29 = vpop.permute.xlu0 %4941  ;;  %vm20083_vm0 = vnez %v20082_v37  ;;  %v17124_v38 = vpop.f32.mrf.mxu1 }
 0x16c   : > { %v5010_v39 = vsel %vm4987_vm3, %v4940_v50, %v4942_v29  ;;  %5540 = vmatprep.mubr.f32.mxu1 %v19684_v45  ;;  %20084 = vst [vmem:[#allocation161_spill] sm:$0xff] %v17124_v38  ;;  %v20085_v50 = vld [vmem:[#allocation57_spill] sm:$0xff] }
 0x16d   : > { %14633 = vmatprep.subr.msk.mxu0 %vm15929_vm13, %v5010_v39  ;;  %v4948_v22 = vpop.permute.xlu1 %4947  ;;  %v5009_v39 = vsel %vm4987_vm3, %v4942_v29, %v4944_v18  ;;  %vm20086_vm13 = vnez %v20085_v50  ;;  %v17135_v48 = vpop.f32.mrf.mxu0  ;;  %v20089_v29 = vld [vmem:[#allocation61_spill] sm:$0xff] }
 0x16e   : > { %14634 = vmatpush1.msk.msra.mxu0 %vm20083_vm0, %v5011_v54  ;;  %v20087_v54 = vld [vmem:[#allocation58_spill] sm:$0xff] }
 0x16f   : > { %14635 = vmatmul.mubr.msk.f32.vlgmr.msra.gmra.mxu0 %vm20079_vm1, %v17046_v63  ;;  %v4946_v61 = vpop.permute.xlu0 %4945  ;;  %vm20088_vm0 = vnez %v20087_v54 }
 0x170   : > { %v5008_v24 = vsel %vm4987_vm3, %v4944_v18, %v4946_v61  ;;  %5611 = vmatprep.mubr.f32.mxu0 %v19684_v45  ;;  %v17150_v18 = vpop.f32.mrf.mxu0 }
 0x171   : > { %14636 = vmatprep.subr.msk.mxu1 %vm20086_vm13, %v5008_v24  ;;  %v4952_v28 = vpop.permute.xlu1 %4951  ;;  %v17139_v38 = vpop.f32.mrf.mxu1  ;;  %v5007_v24 = vsel %vm4987_vm3, %v4946_v61, %v4948_v22  ;;  %vm20090_vm13 = vnez %v20089_v29  ;;  %20091 = vst [vmem:[#allocation162_spill] sm:$0xff] %v17150_v18 }
 0x172   : > { %14637 = vmatpush1.msk.msra.mxu1 %vm20088_vm0, %v5009_v39  ;;  %v20092_v39 = vld [vmem:[#allocation62_spill] sm:$0xff] }
 0x173   : > { %14638 = vmatmul.mubr.msk.f32.vlgmr.msra.gmra.mxu1 %vm20079_vm1, %v17046_v63  ;;  %v4950_v37 = vpop.permute.xlu0 %4949  ;;  %vm20093_vm0 = vnez %v20092_v39  ;;  %v17154_v50 = vpop.f32.mrf.mxu1 }
 0x174   : > { %v5006_v62 = vsel %vm4987_vm3, %v4948_v22, %v4950_v37  ;;  %5682 = vmatprep.mubr.f32.mxu1 %v19684_v45  ;;  %20094 = vst [vmem:[#allocation163_spill] sm:$0xff] %v17154_v50  ;;  %v5005_v61 = vsel %vm4987_vm3, %v4950_v37, %v4952_v28  ;;  %v20095_v22 = vld [vmem:[#allocation65_spill] sm:$0xff] }
 0x175   : > { %14639 = vmatprep.subr.msk.mxu0 %vm20090_vm13, %v5006_v62  ;;  %v4956_v54 = vpop.permute.xlu1 %4955  ;;  %vm20096_vm13 = vnez %v20095_v22  ;;  %v17165_v62 = vpop.f32.mrf.mxu0 }
 0x176   : > { %14640 = vmatpush1.msk.msra.mxu0 %vm20093_vm0, %v5007_v24  ;;  %v20097_v24 = vld [vmem:[#allocation66_spill] sm:$0xff] }
 0x177   : > { %14641 = vmatmul.mubr.msk.f32.vlgmr.msra.gmra.mxu0 %vm20079_vm1, %v17046_v63  ;;  %v4954_v26 = vpop.permute.xlu0 %4953  ;;  %vm20098_vm0 = vnez %v20097_v24  ;;  %v17180_v37 = vpop.f32.mrf.mxu0 }
 0x178   : > { %v5004_v23 = vsel %vm4987_vm3, %v4952_v28, %v4954_v26  ;;  %5753 = vmatprep.mubr.f32.mxu0 %v19684_v45  ;;  %v20100_v28 = vld [vmem:[#allocation69_spill] sm:$0xff]  ;;  %20102 = vst [vmem:[#allocation165_spill] sm:$0xff] %v17180_v37 }
 0x179   : > { %14642 = vmatprep.subr.msk.mxu1 %vm20096_vm13, %v5004_v23  ;;  %v4960_v18 = vpop.permute.xlu1 %4959  ;;  %v17169_v50 = vpop.f32.mrf.mxu1  ;;  %v5003_v23 = vsel %vm4987_vm3, %v4954_v26, %v4956_v54  ;;  %vm20101_vm13 = vnez %v20100_v28 }
 0x17a   : > { %14643 = vmatpush1.msk.msra.mxu1 %vm20098_vm0, %v5005_v61  ;;  %20099 = vst [vmem:[#allocation164_spill] sm:$0xff] %v17169_v50  ;;  %v20103_v61 = vld [vmem:[#allocation70_spill] sm:$0xff] }
 0x17b   : > { %14644 = vmatmul.mubr.msk.f32.vlgmr.msra.gmra.mxu1 %vm20079_vm1, %v17046_v63  ;;  %v4958_v39 = vpop.permute.xlu0 %4957  ;;  %vm20104_vm0 = vnez %v20103_v61  ;;  %v17184_v22 = vpop.f32.mrf.mxu1 }
 0x17c   : > { %v5002_v29 = vsel %vm4987_vm3, %v4956_v54, %v4958_v39  ;;  %5824 = vmatprep.mubr.f32.mxu1 %v19684_v45  ;;  %20105 = vst [vmem:[#allocation166_spill] sm:$0xff] %v17184_v22  ;;  %v5001_v26 = vsel %vm4987_vm3, %v4958_v39, %v4960_v18  ;;  %v20106_v54 = vld [vmem:[#allocation73_spill] sm:$0xff] }
 0x17d   : > { %14645 = vmatprep.subr.msk.mxu0 %vm20101_vm13, %v5002_v29  ;;  %v4964_v24 = vpop.permute.xlu1 %4963  ;;  %vm20107_vm13 = vnez %v20106_v54  ;;  %v17195_v29 = vpop.f32.mrf.mxu0 }
 0x17e   : > { %14646 = vmatpush1.msk.msra.mxu0 %vm20104_vm0, %v5003_v23  ;;  %20108 = vst [vmem:[#allocation167_spill] sm:$0xff] %v17195_v29  ;;  %v20109_v23 = vld [vmem:[#allocation74_spill] sm:$0xff] }
 0x17f   : > { %14647 = vmatmul.mubr.msk.f32.vlgmr.msra.gmra.mxu0 %vm20079_vm1, %v17046_v63  ;;  %v4962_v50 = vpop.permute.xlu0 %4961  ;;  %vm20110_vm0 = vnez %v20109_v23  ;;  %v17210_v39 = vpop.f32.mrf.mxu0 }
 0x180   : > { %v5000_v47 = vsel %vm4987_vm3, %v4960_v18, %v4962_v50  ;;  %5895 = vmatprep.mubr.f32.mxu0 %v19684_v45  ;;  %v20112_v18 = vld [vmem:[#allocation77_spill] sm:$0xff]  ;;  %20114 = vst [vmem:[#allocation169_spill] sm:$0xff] %v17210_v39 }
 0x181   : > { %14648 = vmatprep.subr.msk.mxu1 %vm20107_vm13, %v5000_v47  ;;  %v4968_v37 = vpop.permute.xlu1 %4967  ;;  %v17199_v22 = vpop.f32.mrf.mxu1  ;;  %v4999_v47 = vsel %vm4987_vm3, %v4962_v50, %v4964_v24  ;;  %vm20113_vm13 = vnez %v20112_v18 }
 0x182   : > { %14649 = vmatpush1.msk.msra.mxu1 %vm20110_vm0, %v5001_v26  ;;  %20111 = vst [vmem:[#allocation168_spill] sm:$0xff] %v17199_v22  ;;  %v20115_v26 = vld [vmem:[#allocation78_spill] sm:$0xff] }
 0x183   : > { %14650 = vmatmul.mubr.msk.f32.vlgmr.msra.gmra.mxu1 %vm20079_vm1, %v17046_v63  ;;  %v4966_v61 = vpop.permute.xlu0 %4965  ;;  %vm20116_vm0 = vnez %v20115_v26  ;;  %v17214_v54 = vpop.f32.mrf.mxu1 }
 0x184   : > { %v4998_v28 = vsel %vm4987_vm3, %v4964_v24, %v4966_v61  ;;  %5966 = vmatprep.mubr.f32.mxu1 %v19684_v45  ;;  %20117 = vst [vmem:[#allocation170_spill] sm:$0xff] %v17214_v54  ;;  %v4997_v50 = vsel %vm4987_vm3, %v4966_v61, %v4968_v37  ;;  %v20118_v24 = vld [vmem:[#allocation81_spill] sm:$0xff] }
 0x185   : > { %14651 = vmatprep.subr.msk.mxu0 %vm20113_vm13, %v4998_v28  ;;  %v4972_v23 = vpop.permute.xlu1 %4971  ;;  %vm20119_vm13 = vnez %v20118_v24  ;;  %v17225_v28 = vpop.f32.mrf.mxu0 }
 0x186   : > { %14652 = vmatpush1.msk.msra.mxu0 %vm20116_vm0, %v4999_v47  ;;  %v20120_v47 = vld [vmem:[#allocation82_spill] sm:$0xff] }
 0x187   : > { %14653 = vmatmul.mubr.msk.f32.vlgmr.msra.gmra.mxu0 %vm20079_vm1, %v17046_v63  ;;  %v4970_v22 = vpop.permute.xlu0 %4969  ;;  %vm20121_vm0 = vnez %v20120_v47  ;;  %v17240_v61 = vpop.f32.mrf.mxu0 }
 0x188   : > { %v4996_v29 = vsel %vm4987_vm3, %v4968_v37, %v4970_v22  ;;  %6037 = vmatprep.mubr.f32.mxu0 %v19684_v45  ;;  %v4995_v37 = vsel %vm4987_vm3, %v4970_v22, %v4972_v23  ;;  %20124 = vst [vmem:[#allocation172_spill] sm:$0xff] %v17240_v61 }
 0x189   : > { %14654 = vmatprep.subr.msk.mxu1 %vm20119_vm13, %v4996_v29  ;;  %v4976_v39 = vpop.permute.xlu1 %4975  ;;  %v17229_v54 = vpop.f32.mrf.mxu1  ;;  %vm20123_vm13 = vnez %v19826_v16  ;;  %v20125_v29 = vld [vmem:[#allocation86_spill] sm:$0xff] }
 0x18a   : > { %14655 = vmatpush1.msk.msra.mxu1 %vm20121_vm0, %v4997_v50  ;;  %20122 = vst [vmem:[#allocation171_spill] sm:$0xff] %v17229_v54  ;;  %vm20126_vm0 = vnez %v20125_v29 }
 0x18b   : > { %14656 = vmatmul.mubr.msk.f32.vlgmr.msra.gmra.mxu1 %vm20079_vm1, %v17046_v63  ;;  %v4974_v26 = vpop.permute.xlu0 %4973  ;;  %v17244_v47 = vpop.f32.mrf.mxu1 }
 0x18c   : > { %v4994_v18 = vsel %vm4987_vm3, %v4972_v23, %v4974_v26  ;;  %6108 = vmatprep.mubr.f32.mxu1 %v19684_v45  ;;  %20127 = vst [vmem:[#allocation173_spill] sm:$0xff] %v17244_v47  ;;  %v4993_v22 = vsel %vm4987_vm3, %v4974_v26, %v4976_v39 }
 0x18d   : > { %14657 = vmatprep.subr.msk.mxu0 %vm20123_vm13, %v4994_v18  ;;  %v4980_v50 = vpop.permute.xlu1 %4979  ;;  %vm20128_vm13 = vnez %v19838_v56  ;;  %v17255_v23 = vpop.f32.mrf.mxu0  ;;  %v20129_v18 = vld [vmem:[#allocation89_spill] sm:$0xff] }
 0x18e   : > { %14658 = vmatpush1.msk.msra.mxu0 %vm20126_vm0, %v4995_v37  ;;  %vm20130_vm0 = vnez %v20129_v18 }
 0x18f   : > { %14659 = vmatmul.mubr.msk.f32.vlgmr.msra.gmra.mxu0 %vm20079_vm1, %v17046_v63  ;;  %v4978_v24 = vpop.permute.xlu0 %4977 }
 0x190   : > { %v4992_v54 = vsel %vm4987_vm3, %v4976_v39, %v4978_v24  ;;  %6179 = vmatprep.mubr.f32.mxu0 %v19684_v45 }
 0x191   : > { %14660 = vmatprep.subr.msk.mxu1 %vm20128_vm13, %v4992_v54  ;;  %v4984_v37 = vpop.permute.xlu1 %4983  ;;  %v17259_v61 = vpop.f32.mrf.mxu1  ;;  %vm20131_vm13 = vnez %v19850_v20 }
 0x192   : > { %14661 = vmatpush1.msk.msra.mxu1 %vm20130_vm0, %v4993_v22  ;;  %v4988_v47 = vsel %vm4987_vm3, %v4984_v37, %v17059_v10  ;;  %v4991_v10 = vsel %vm4987_vm3, %v4978_v24, %v4980_v50  ;;  %vm20134_vm0 = vnez %v19861_v21  ;;  %v17281_v22 = vpop.f32.mrf.mxu0 }
 0x193   : > { %14662 = vmatmul.mubr.msk.f32.vlgmr.msra.gmra.mxu1 %vm20079_vm1, %v17046_v63  ;;  %v4982_v29 = vpop.permute.xlu0 %4981  ;;  %14666 = vmatprep.subr.msk.mxu1 %vm20131_vm13, %v4988_v47  ;;  %v17273_v26 = vpop.f32.mrf.mxu1  ;;  %vm20133_vm1 = vnez %v19853_v57  ;;  %20135 = vst [vmem:[#allocation174_spill] sm:$0xff] %v17281_v22  ;;  %vm20137_vm13 = vcmask 64512  }
 0x194   : > { %v4989_v39 = vsel %vm4987_vm3, %v4982_v29, %v4984_v37  ;;  %v4990_v54 = vsel %vm4987_vm3, %v4980_v50, %v4982_v29  ;;  %6250 = vmatprep.mubr.f32.mxu1 %v19684_v45  ;;  %20132 = vst [vmem:[#allocation89_spill] sm:$0xff] %v17273_v26  ;;  %vm20138_vm3 = vmmov %vm20137_vm13  ;;  %v17299_v50 = vld [vmem:[%s15474_s23 + $0x10] sm:$0xf] }
 0x195   : > { %14663 = vmatprep.subr.msk.mxu0 %vm20133_vm1, %v4990_v54  ;;  %14667 = vmatpush1.msk.msra.mxu1 %vm20134_vm0, %v4989_v39  ;;  %v17285_v47 = vpop.permute.xlu1 %7466  ;;  %vm7526_vm0 = vcmp.lt.s32.totalorder %v15451_v34, 127 }
 0x196   : > { %14664 = vmatpush1.msk.msra.mxu0 %vm20136_vm12, %v4991_v10  ;;  %6395 = vmatprep.subr.mxu1 %v16549_v31  ;;  %v17294_v29 = vpop.f32.mrf.mxu1  ;;  %v17303_v31 = vpop.f32.mrf.mxu0  ;;  %vm20155_vm12 = vnez %v19876_v19 }
 0x197   : > { %14665 = vmatmul.mubr.msk.f32.vlgmr.msra.gmra.mxu0 %vm20137_vm13, %v17046_v63  ;;  %14668 = vmatmul.mubr.msk.f32.vlgmr.msra.gmra.mxu1 %vm20138_vm3, %v17046_v63  ;;  %v17292_v24 = vpop.permute.xlu0 %7464  ;;  %vm20140_vm13 = vmmov %vm20138_vm3 }
 0x198   : > { %6324 = vmatprep.subr.mxu0 %v16510_v44  ;;  %6358 = vmatprep.mubr.f32.mxu0 %v19684_v45  ;;  %v17309_v63 = vpop.f32.mrf.mxu1 }
 0x199   : > { %6325 = vmatpush1.msra.mxu0 %v16588_v33  ;;  %6396 = vmatpush1.msra.mxu1 %v16501_v30  ;;  %v17306_v37 = vpop.permute.xlu1 %7470  ;;  %20139 = vst [vmem:[#allocation175_spill] sm:$0xff] %v17309_v63  ;;  %v17321_v30 = vpop.f32.mrf.mxu0 }
 0x19a   : > { %6429 = vmatprep.mubr.f32.mxu1 %v19684_v45  ;;  %6466 = vmatprep.subr.mxu0 %v16578_v52  ;;  %20141 = vst [vmem:[#allocation176_spill] sm:$0xff] %v17321_v30 }
 0x19b   : > { %14670 = vmatmul.mubr.msk.f32.vlgmr.msra.gmra.mxu0 %vm20140_vm13, %v17299_v50  ;;  %14671 = vmatmul.mubr.msk.f32.vlgmr.msra.gmra.mxu1 %vm20138_vm3, %v17299_v50  ;;  %v17315_v44 = vpop.permute.xlu0 %7468  ;;  %vm20142_vm13 = vmmov %vm20138_vm3 }
 0x19c   : > { %6537 = vmatprep.subr.mxu1 %v16617_v4  ;;  %6467 = vmatpush1.msra.mxu0 %v16539_v43  ;;  %v7555_v10 = vsel %vm7526_vm0, %v17285_v47, %v17315_v44 }
 0x19d   : > { %6500 = vmatprep.mubr.f32.mxu0 %v19684_v45  ;;  %6538 = vmatpush1.msra.mxu1 %v16627_v35  ;;  %v17324_v52 = vpop.permute.xlu1 %7472  ;;  %v2494_v33 = vpop.f32.mrf.mxu1 }
 0x19e   : > { %6571 = vmatprep.mubr.f32.mxu1 %v19684_v45  ;;  %6608 = vmatprep.subr.mxu0 %v16656_v3  ;;  %v17334_v4 = vadd.f32 %v2494_v33, %v17081_v46  ;;  %v20157_v33 = vld [vmem:[#allocation97_spill] sm:$0xff] }
 0x19f   : > { %14672 = vmatmul.mubr.msk.f32.vlgmr.msra.gmra.mxu0 %vm20142_vm13, %v17299_v50  ;;  %14673 = vmatmul.mubr.msk.f32.vlgmr.msra.gmra.mxu1 %vm20138_vm3, %v17299_v50  ;;  %v17331_v43 = vpop.permute.xlu0 %7462  ;;  %vm20143_vm13 = vmmov %vm20138_vm3 }
 0x1a0   : > { %6679 = vmatprep.subr.mxu1 %v16695_v5  ;;  %6609 = vmatpush1.msra.mxu0 %v16666_v40  ;;  %v2423_v35 = vpop.f32.mrf.mxu0  ;;  %v17359_v5 = vpop.f32.mrf.mxu1 }
 0x1a1   : > { %6642 = vmatprep.mubr.f32.mxu0 %v19684_v45  ;;  %6680 = vmatpush1.msra.mxu1 %v16705_v55  ;;  %v17341_v3 = vpop.permute.xlu1 %7476  ;;  %v17345_v39 = vadd.f32 %v2423_v35, %v17077_v14  ;;  %20145 = vst [vmem:[#allocation178_spill] sm:$0xff] %v17359_v5  ;;  %v17477_v35 = vld [vmem:[%s15474_s23 + $0x14] sm:$0xf] }
 0x1a2   : > { %6713 = vmatprep.mubr.f32.mxu1 %v19684_v45  ;;  %6750 = vmatprep.subr.mxu0 %v16734_v7  ;;  %v17353_v40 = vpop.f32.mrf.mxu0 }
 0x1a3   : > { %14674 = vmatmul.mubr.msk.f32.vlgmr.msra.gmra.mxu0 %vm20143_vm13, %v17299_v50  ;;  %14675 = vmatmul.mubr.msk.f32.vlgmr.msra.gmra.mxu1 %vm20138_vm3, %v17299_v50  ;;  %v17351_v46 = vpop.permute.xlu0 %7474  ;;  %20144 = vst [vmem:[#allocation177_spill] sm:$0xff] %v17353_v40  ;;  %vm20146_vm13 = vmmov %vm20138_vm3  ;;  %v20216_v40 = vld [vmem:[#allocation142_spill] sm:$0xff] }
 0x1a4   : > { %6821 = vmatprep.subr.mxu1 %v16773_v9  ;;  %6751 = vmatpush1.msra.mxu0 %v16744_v59 }
 0x1a5   : > { %6784 = vmatprep.mubr.f32.mxu0 %v19684_v45  ;;  %6822 = vmatpush1.msra.mxu1 %v16783_v2  ;;  %v17362_v55 = vpop.permute.xlu1 %7480  ;;  %v2565_v7 = vpop.f32.mrf.mxu0 }
 0x1a6   : > { %6855 = vmatprep.mubr.f32.mxu1 %v19684_v45  ;;  %6892 = vmatprep.subr.mxu0 %v16812_v11  ;;  %v17372_v9 = vadd.f32 %v2565_v7, %v17105_v53  ;;  %v20159_v7 = vld [vmem:[#allocation98_spill] sm:$0xff] }
 0x1a7   : > { %14676 = vmatmul.mubr.msk.f32.vlgmr.msra.gmra.mxu0 %vm20146_vm13, %v17299_v50  ;;  %14677 = vmatmul.mubr.msk.f32.vlgmr.msra.gmra.mxu1 %vm20138_vm3, %v17299_v50  ;;  %v17369_v59 = vpop.permute.xlu0 %7478  ;;  %v17378_v2 = vpop.f32.mrf.mxu0  ;;  %vm20148_vm13 = vmmov %vm20138_vm3 }
 0x1a8   : > { %6963 = vmatprep.subr.mxu1 %v16851_v13  ;;  %6893 = vmatpush1.msra.mxu0 %v16822_v51  ;;  %20147 = vst [vmem:[#allocation179_spill] sm:$0xff] %v17378_v2 }
 0x1a9   : > { %6926 = vmatprep.mubr.f32.mxu0 %v19684_v45  ;;  %6964 = vmatpush1.msra.mxu1 %v16861_v49  ;;  %v17381_v11 = vpop.permute.xlu1 %7484  ;;  %v2636_v14 = vpop.f32.mrf.mxu1 }
 0x1aa   : > { %6997 = vmatprep.mubr.f32.mxu1 %v19684_v45  ;;  %7034 = vmatprep.subr.mxu0 %v16890_v15  ;;  %v17391_v13 = vadd.f32 %v2636_v14, %v17109_v27  ;;  %v20164_v14 = vld [vmem:[#allocation106_spill] sm:$0xff] }
 0x1ab   : > { %14678 = vmatmul.mubr.msk.f32.vlgmr.msra.gmra.mxu0 %vm20148_vm13, %v17299_v50  ;;  %14679 = vmatmul.mubr.msk.f32.vlgmr.msra.gmra.mxu1 %vm20138_vm3, %v17299_v50  ;;  %v17388_v51 = vpop.permute.xlu0 %7482  ;;  %v17397_v49 = vpop.f32.mrf.mxu1  ;;  %vm20150_vm13 = vmmov %vm20138_vm3 }
 0x1ac   : > { %7105 = vmatprep.subr.mxu1 %v16929_v8  ;;  %7035 = vmatpush1.msra.mxu0 %v16900_v0  ;;  %20149 = vst [vmem:[#allocation180_spill] sm:$0xff] %v17397_v49  ;;  %v20210_v49 = vld [vmem:[#allocation171_spill] sm:$0xff] }
 0x1ad   : > { %7068 = vmatprep.mubr.f32.mxu0 %v19684_v45  ;;  %7106 = vmatpush1.msra.mxu1 %v16939_v41  ;;  %v17400_v15 = vpop.permute.xlu1 %7488  ;;  %v2707_v53 = vpop.f32.mrf.mxu0 }
 0x1ae   : > { %7139 = vmatprep.mubr.f32.mxu1 %v19684_v45  ;;  %7176 = vmatprep.subr.mxu0 %v16989_v60  ;;  %v17410_v0 = vadd.f32 %v2707_v53, %v17135_v48  ;;  %v7557_v48 = vsel %vm7526_vm0, %v17331_v43, %v17292_v24 }
 0x1af   : > { %14680 = vmatmul.mubr.msk.f32.vlgmr.msra.gmra.mxu0 %vm20150_vm13, %v17299_v50  ;;  %14681 = vmatmul.mubr.msk.f32.vlgmr.msra.gmra.mxu1 %vm20138_vm3, %v17299_v50  ;;  %v17407_v8 = vpop.permute.xlu0 %7486  ;;  %v17417_v60 = vpop.f32.mrf.mxu0  ;;  %vm20152_vm13 = vmmov %vm20138_vm3 }
 0x1b0   : > { %7247 = vmatprep.subr.mxu1 %v17023_v25  ;;  %7177 = vmatpush1.msra.mxu0 %v17001_v42  ;;  %20151 = vst [vmem:[#allocation181_spill] sm:$0xff] %v17417_v60  ;;  %v7545_v22 = vsel %vm7526_vm0, %v17407_v8, %v17400_v15 }
 0x1b1   : > { %7248 = vmatpush1.msra.mxu1 %v17028_v6  ;;  %7210 = vmatprep.mubr.f32.mxu0 %v19684_v45  ;;  %v17421_v41 = vpop.permute.xlu1 %7492  ;;  %v2778_v27 = vpop.f32.mrf.mxu1  ;;  %v7556_v6 = vsel %vm7526_vm0, %v17292_v24, %v17285_v47  ;;  %v7552_v24 = vsel %vm7526_vm0, %v17324_v52, %v17351_v46  ;;  %v20161_v47 = vld [vmem:[#allocation102_spill] sm:$0xff] }
 0x1b2   : > { %7281 = vmatprep.mubr.f32.mxu1 %v19684_v45  ;;  %7318 = vmatprep.subr.mxu0 %v17041_v58  ;;  %v17429_v25 = vadd.f32 %v2778_v27, %v17139_v38  ;;  %vm20162_vm1 = vnez %v20161_v47  ;;  %v7553_v27 = vsel %vm7526_vm0, %v17306_v37, %v17324_v52  ;;  %v7546_v52 = vsel %vm7526_vm0, %v17381_v11, %v17407_v8 }
 0x1b3   : > { %7389 = vmatprep.subr.mxu1 %v17065_v1  ;;  %14682 = vmatmul.mubr.msk.f32.vlgmr.msra.gmra.mxu0 %vm20152_vm13, %v17299_v50  ;;  %v17426_v42 = vpop.permute.xlu0 %7490  ;;  %v7554_v1 = vsel %vm7526_vm0, %v17315_v44, %v17306_v37  ;;  %vm20153_vm13 = vnez %v19870_v12  ;;  %v17445_v38 = vpop.f32.mrf.mxu1  ;;  %v20169_v37 = vld [vmem:[#allocation103_spill] sm:$0xff] }
 0x1b4   : > { %14683 = vmatmul.mubr.msk.f32.vlgmr.msra.gmra.mxu1 %vm20138_vm3, %v17299_v50  ;;  %7319 = vmatpush1.msra.mxu0 %v17049_v36  ;;  %20154 = vst [vmem:[#allocation182_spill] sm:$0xff] %v17445_v38  ;;  %v7544_v30 = vsel %vm7526_vm0, %v17400_v15, %v17426_v42  ;;  %v20191_v15 = vld [vmem:[#allocation119_spill] sm:$0xff] }
 0x1b5   : > { %7390 = vmatpush1.msra.mxu1 %v17071_v32  ;;  %14687 = vmatprep.subr.msk.mxu0 %vm20153_vm13, %v7556_v6  ;;  %v17450_v58 = vpop.permute.xlu1 %7496  ;;  %v2849_v36 = vpop.f32.mrf.mxu0  ;;  %vm20160_vm13 = vnez %v20159_v7  ;;  %v20201_v38 = vld [vmem:[#allocation127_spill] sm:$0xff] }
 0x1b6   : > { %14690 = vmatprep.subr.msk.mxu1 %vm20155_vm12, %v7554_v1  ;;  %7352 = vmatprep.mubr.f32.mxu0 %v19684_v45  ;;  %v17462_v54 = vadd.f32 %v2849_v36, %v17165_v62  ;;  %vm20156_vm12 = vmmov %vm20138_vm3  ;;  %v7550_v62 = vsel %vm7526_vm0, %v17341_v3, %v17369_v59  ;;  %v20167_v1 = vld [vmem:[#allocation164_spill] sm:$0xff] }
 0x1b7   : > { %7423 = vmatprep.mubr.f32.mxu1 %v19684_v45  ;;  %14684 = vmatmul.mubr.msk.f32.vlgmr.msra.gmra.mxu0 %vm20138_vm3, %v17299_v50  ;;  %v17459_v32 = vpop.permute.xlu0 %7494  ;;  %vm20158_vm3 = vnez %v20157_v33  ;;  %v17487_v44 = vpop.f32.mrf.mxu0 }
 0x1b8   : > { %14685 = vmatmul.mubr.msk.f32.vlgmr.msra.gmra.mxu1 %vm20156_vm12, %v17299_v50  ;;  %14688 = vmatpush1.msk.msra.mxu0 %vm20158_vm3, %v7557_v48  ;;  %20163 = vst [vmem:[#allocation97_spill] sm:$0xff] %v17487_v44  ;;  %vm20165_vm12 = vnez %v20164_v14  ;;  %v7551_v48 = vsel %vm7526_vm0, %v17351_v46, %v17341_v3  ;;  %v20173_v3 = vld [vmem:[#allocation110_spill] sm:$0xff] }
 0x1b9   : > { %14691 = vmatpush1.msk.msra.mxu1 %vm20160_vm13, %v7555_v10  ;;  %14693 = vmatprep.subr.msk.mxu0 %vm20162_vm1, %v7552_v24  ;;  %v7501_v50 = vpop.permute.xlu1 %7500  ;;  %v2920_v53 = vpop.f32.mrf.mxu1  ;;  %vm20166_vm13 = vcmask 64512   ;;  %v7548_v10 = vsel %vm7526_vm0, %v17362_v55, %v17388_v51  ;;  %vm20170_vm1 = vnez %v20169_v37  ;;  %v20171_v24 = vld [vmem:[#allocation107_spill] sm:$0xff]  ;;  %vm20174_vm3 = vnez %v20173_v3 }
 0x1ba   : > { %14696 = vmatprep.subr.msk.mxu1 %vm20165_vm12, %v7550_v62  ;;  %7724 = vmatprep.mubr.f32.mxu0 %v19684_v45  ;;  %v17500_v36 = vadd.f32 %v2920_v53, %v20167_v1  ;;  %vm20168_vm12 = vmmov %vm20166_vm13  ;;  %v20176_v62 = vld [vmem:[#allocation114_spill] sm:$0xff]  ;;  %v7549_v1 = vsel %vm7526_vm0, %v17369_v59, %v17362_v55  ;;  %v20180_v55 = vld [vmem:[#allocation111_spill] sm:$0xff]  ;;  %v7542_v59 = vsel %vm7526_vm0, %v17421_v41, %v17459_v32 }
 0x1bb   : > { %7795 = vmatprep.mubr.f32.mxu1 %v19684_v45  ;;  %14689 = vmatmul.mubr.msk.f32.vlgmr.msra.gmra.mxu0 %vm20166_vm13, %v17477_v35  ;;  %v7499_v6 = vpop.permute.xlu0 %7498  ;;  %vm20172_vm13 = vnez %v20171_v24  ;;  %v17522_v46 = vpop.f32.mrf.mxu1  ;;  %vm20177_vm10 = vnez %v20176_v62 }
 0x1bc   : > { %14692 = vmatmul.mubr.msk.f32.vlgmr.msra.gmra.mxu1 %vm20168_vm12, %v17477_v35  ;;  %14694 = vmatpush1.msk.msra.mxu0 %vm20170_vm1, %v7553_v27  ;;  %20175 = vst [vmem:[#allocation98_spill] sm:$0xff] %v17522_v46  ;;  %v7540_v44 = vsel %vm7526_vm0, %v17450_v58, %v7499_v6 }
 0x1bd   : > { %14697 = vmatpush1.msk.msra.mxu1 %vm20172_vm13, %v7551_v48  ;;  %14699 = vmatprep.subr.msk.mxu0 %vm20174_vm3, %v7548_v10  ;;  %v7505_v53 = vpop.permute.xlu1 %7504  ;;  %v2991_v27 = vpop.f32.mrf.mxu0  ;;  %v20178_v10 = vld [vmem:[#allocation167_spill] sm:$0xff]  ;;  %vm20181_vm3 = vnez %v20180_v55 }
 0x1be   : > { %14702 = vmatprep.subr.msk.mxu1 %vm20177_vm10, %v7546_v52  ;;  %7866 = vmatprep.mubr.f32.mxu0 %v19684_v45  ;;  %v17535_v63 = vadd.f32 %v2991_v27, %v20178_v10  ;;  %v7547_v52 = vsel %vm7526_vm0, %v17388_v51, %v17381_v11  ;;  %vm20179_vm10 = vmmov %vm20168_vm12  ;;  %v20182_v27 = vld [vmem:[#allocation115_spill] sm:$0xff]  ;;  %v20184_v11 = vld [vmem:[#allocation118_spill] sm:$0xff] }
 0x1bf   : > { %7937 = vmatprep.mubr.f32.mxu1 %v19684_v45  ;;  %14695 = vmatmul.mubr.msk.f32.vlgmr.msra.gmra.mxu0 %vm20168_vm12, %v17477_v35  ;;  %v7503_v48 = vpop.permute.xlu0 %7502  ;;  %vm20183_vm12 = vnez %v20182_v27  ;;  %vm20185_vm13 = vnez %v20184_v11  ;;  %v17557_v51 = vpop.f32.mrf.mxu0  ;;  %v20187_v10 = vld [vmem:[#allocation122_spill] sm:$0xff] }
 0x1c0   : > { %14698 = vmatmul.mubr.msk.f32.vlgmr.msra.gmra.mxu1 %vm20179_vm10, %v17477_v35  ;;  %14700 = vmatpush1.msk.msra.mxu0 %vm20181_vm3, %v7549_v1  ;;  %20186 = vst [vmem:[#allocation102_spill] sm:$0xff] %v17557_v51  ;;  %vm20188_vm1 = vnez %v20187_v10  ;;  %v7538_v8 = vsel %vm7526_vm0, %v7501_v50, %v7503_v48 }
 0x1c1   : > { %14703 = vmatpush1.msk.msra.mxu1 %vm20183_vm12, %v7547_v52  ;;  %14705 = vmatprep.subr.msk.mxu0 %vm20185_vm13, %v7544_v30  ;;  %v7509_v26 = vpop.permute.xlu1 %7508  ;;  %v3062_v1 = vpop.f32.mrf.mxu1  ;;  %v20189_v52 = vld [vmem:[#allocation168_spill] sm:$0xff]  ;;  %vm20192_vm13 = vnez %v20191_v15 }
 0x1c2   : > { %14708 = vmatprep.subr.msk.mxu1 %vm20188_vm1, %v7542_v59  ;;  %8008 = vmatprep.mubr.f32.mxu0 %v19684_v45  ;;  %v17570_v51 = vadd.f32 %v3062_v1, %v20189_v52  ;;  %v7543_v59 = vsel %vm7526_vm0, %v17426_v42, %v17421_v41  ;;  %vm20190_vm1 = vmmov %vm20179_vm10  ;;  %v20193_v1 = vld [vmem:[#allocation123_spill] sm:$0xff]  ;;  %v20195_v52 = vld [vmem:[#allocation126_spill] sm:$0xff] }
 0x1c3   : > { %8079 = vmatprep.mubr.f32.mxu1 %v19684_v45  ;;  %14701 = vmatmul.mubr.msk.f32.vlgmr.msra.gmra.mxu0 %vm20179_vm10, %v17477_v35  ;;  %v7507_v30 = vpop.permute.xlu0 %7506  ;;  %vm20194_vm10 = vnez %v20193_v1  ;;  %vm20196_vm12 = vnez %v20195_v52  ;;  %v17589_v41 = vpop.f32.mrf.mxu1  ;;  %v20198_v42 = vld [vmem:[#allocation130_spill] sm:$0xff] }
 0x1c4   : > { %14704 = vmatmul.mubr.msk.f32.vlgmr.msra.gmra.mxu1 %vm20190_vm1, %v17477_v35  ;;  %14706 = vmatpush1.msk.msra.mxu0 %vm20192_vm13, %v7545_v22  ;;  %20197 = vst [vmem:[#allocation106_spill] sm:$0xff] %v17589_v41  ;;  %vm20199_vm3 = vnez %v20198_v42  ;;  %v7541_v22 = vsel %vm7526_vm0, %v17459_v32, %v17450_v58  ;;  %v7536_v41 = vsel %vm7526_vm0, %v7505_v53, %v7507_v30  ;;  %v20203_v32 = vld [vmem:[#allocation131_spill] sm:$0xff] }
 0x1c5   : > { %14709 = vmatpush1.msk.msra.mxu1 %vm20194_vm10, %v7543_v59  ;;  %14711 = vmatprep.subr.msk.mxu0 %vm20196_vm12, %v7540_v44  ;;  %v7513_v46 = vpop.permute.xlu1 %7512  ;;  %v3133_v60 = vpop.f32.mrf.mxu0  ;;  %vm20202_vm12 = vnez %v20201_v38 }
 0x1c6   : > { %14714 = vmatprep.subr.msk.mxu1 %vm20199_vm3, %v7538_v8  ;;  %8150 = vmatprep.mubr.f32.mxu0 %v19684_v45  ;;  %v17602_v59 = vadd.f32 %v3133_v60, %v17225_v28  ;;  %v7539_v8 = vsel %vm7526_vm0, %v7499_v6, %v7501_v50  ;;  %vm20200_vm3 = vmmov %vm20190_vm1  ;;  %v20205_v28 = vld [vmem:[#allocation134_spill] sm:$0xff] }
 0x1c7   : > { %8221 = vmatprep.mubr.f32.mxu1 %v19684_v45  ;;  %14707 = vmatmul.mubr.msk.f32.vlgmr.msra.gmra.mxu0 %vm20190_vm1, %v17477_v35  ;;  %v7511_v44 = vpop.permute.xlu0 %7510  ;;  %vm20204_vm1 = vnez %v20203_v32  ;;  %vm20206_vm10 = vnez %v20205_v28  ;;  %v17618_v60 = vpop.f32.mrf.mxu0  ;;  %v20208_v50 = vld [vmem:[#allocation138_spill] sm:$0xff] }
 0x1c8   : > { %14710 = vmatmul.mubr.msk.f32.vlgmr.msra.gmra.mxu1 %vm20200_vm3, %v17477_v35  ;;  %14712 = vmatpush1.msk.msra.mxu0 %vm20202_vm12, %v7541_v22  ;;  %v7534_v58 = vsel %vm7526_vm0, %v7509_v26, %v7511_v44  ;;  %20207 = vst [vmem:[#allocation164_spill] sm:$0xff] %v17618_v60  ;;  %vm20209_vm13 = vnez %v20208_v50  ;;  %v7537_v22 = vsel %vm7526_vm0, %v7503_v48, %v7505_v53  ;;  %v20214_v48 = vld [vmem:[#allocation139_spill] sm:$0xff] }
 0x1c9   : > { %14715 = vmatpush1.msk.msra.mxu1 %vm20204_vm1, %v7539_v8  ;;  %14717 = vmatprep.subr.msk.mxu0 %vm20206_vm10, %v7536_v41  ;;  %v7517_v6 = vpop.permute.xlu1 %7516  ;;  %v3204_v2 = vpop.f32.mrf.mxu1  ;;  %v7535_v60 = vsel %vm7526_vm0, %v7507_v30, %v7509_v26  ;;  %vm20215_vm1 = vnez %v20214_v48 }
 0x1ca   : > { %14720 = vmatprep.subr.msk.mxu1 %vm20209_vm13, %v7534_v58  ;;  %8292 = vmatprep.mubr.f32.mxu0 %v19684_v45  ;;  %v17629_v41 = vadd.f32 %v3204_v2, %v20210_v49  ;;  %vm20211_vm13 = vmmov %vm20200_vm3  ;;  %v20212_v58 = vld [vmem:[#allocation135_spill] sm:$0xff]  ;;  %v7533_v49 = vsel %vm7526_vm0, %v7511_v44, %v7513_v46  ;;  %v20222_v44 = vld [vmem:[#allocation146_spill] sm:$0xff] }
 0x1cb   : > { %8363 = vmatprep.mubr.f32.mxu1 %v19684_v45  ;;  %14713 = vmatmul.mubr.msk.f32.vlgmr.msra.gmra.mxu0 %vm20200_vm3, %v17477_v35  ;;  %v7515_v8 = vpop.permute.xlu0 %7514  ;;  %vm20213_vm10 = vnez %v20212_v58  ;;  %vm20217_vm3 = vnez %v20216_v40 }
 0x1cc   : > { %14716 = vmatmul.mubr.msk.f32.vlgmr.msra.gmra.mxu1 %vm20211_vm13, %v17477_v35  ;;  %14718 = vmatpush1.msk.msra.mxu0 %vm20213_vm10, %v7537_v22  ;;  %v7532_v53 = vsel %vm7526_vm0, %v7513_v46, %v7515_v8  ;;  %v17649_v22 = vpop.f32.mrf.mxu1  ;;  %v7531_v46 = vsel %vm7526_vm0, %v7515_v8, %v7517_v6 }
 0x1cd   : > { %14721 = vmatpush1.msk.msra.mxu1 %vm20215_vm1, %v7535_v60  ;;  %14723 = vmatprep.subr.msk.mxu0 %vm20217_vm3, %v7532_v53  ;;  %v7521_v26 = vpop.permute.xlu1 %7520  ;;  %v3275_v2 = vpop.f32.mrf.mxu0  ;;  %20218 = vst [vmem:[#allocation103_spill] sm:$0xff] %v17649_v22  ;;  %vm20219_vm3 = vmmov %vm20211_vm13  ;;  %v20220_v53 = vld [vmem:[#allocation143_spill] sm:$0xff] }
 0x1ce   : > { %8434 = vmatprep.mubr.f32.mxu0 %v19684_v45  ;;  %8505 = vmatprep.mubr.f32.mxu1 %v19684_v45  ;;  %v17652_v60 = vadd.f32 %v3275_v2, %v17255_v23  ;;  %vm20221_vm1 = vnez %v20220_v53  ;;  %v20224_v22 = vld [vmem:[#allocation147_spill] sm:$0xff]  ;;  %v20456_v53 = vld [vmem:[#allocation156_spill] sm:$0xff] }
 0x1cf   : > { %14719 = vmatmul.mubr.msk.f32.vlgmr.msra.gmra.mxu0 %vm20211_vm13, %v17477_v35  ;;  %v7519_v30 = vpop.permute.xlu0 %7518  ;;  %vm20223_vm13 = vnez %v20222_v44  ;;  %vm20225_vm10 = vnez %v20224_v22  ;;  %v17668_v2 = vpop.f32.mrf.mxu0  ;;  %v20453_v22 = vld [vmem:[#allocation101_spill] sm:$0xff] }
 0x1d0   : > { %14722 = vmatmul.mubr.msk.f32.vlgmr.msra.gmra.mxu1 %vm20219_vm3, %v17477_v35  ;;  %14724 = vmatpush1.msk.msra.mxu0 %vm20221_vm1, %v7533_v49  ;;  %v7530_v5 = vsel %vm7526_vm0, %v7517_v6, %v7519_v30  ;;  %20226 = vst [vmem:[#allocation107_spill] sm:$0xff] %v17668_v2  ;;  %vm20227_vm1 = vmmov %vm20219_vm3 }
 0x1d1   : > { %14726 = vmatprep.subr.msk.mxu1 %vm20223_vm13, %v7530_v5  ;;  %8576 = vmatprep.mubr.f32.mxu0 %v19684_v45  ;;  %v7525_v23 = vpop.permute.xlu1 %7524 }
 0x1d2   : > { %14727 = vmatpush1.msk.msra.mxu1 %vm20225_vm10, %v7531_v46  ;;  %8647 = vmatprep.mubr.f32.mxu1 %v19684_v45  ;;  %v7558_v49 = vsel %vm7526_vm0, %v7525_v23, %v17331_v43  ;;  %v3346_v8 = vpop.f32.mrf.mxu1  ;;  %v7529_v43 = vsel %vm7526_vm0, %v7519_v30, %v7521_v26 }
 0x1d3   : > { %14725 = vmatmul.mubr.msk.f32.vlgmr.msra.gmra.mxu0 %vm20219_vm3, %v17477_v35  ;;  %v7523_v6 = vpop.permute.xlu0 %7522  ;;  %14732 = vmatprep.subr.msk.mxu1 %vm16948_vm8, %v7558_v49  ;;  %v17684_v2 = vadd.f32 %v3346_v8, %v17259_v61  ;;  %v20234_v61 = vld [vmem:[#allocation42_spill] sm:$0xff]  ;;  %v20236_v8 = vld [vmem:[#allocation48_spill] sm:$0xff] }
 0x1d4   : > { %14728 = vmatmul.mubr.msk.f32.vlgmr.msra.gmra.mxu1 %vm20227_vm1, %v17477_v35  ;;  %v7527_v5 = vsel %vm7526_vm0, %v7523_v6, %v7525_v23  ;;  %v7528_v46 = vsel %vm7526_vm0, %v7521_v26, %v7523_v6  ;;  %8718 = vmatprep.mubr.f32.mxu0 %v19684_v45  ;;  %v17691_v44 = vpop.f32.mrf.mxu1  ;;  %vm20233_vm0 = vmmov %vm20227_vm1  ;;  %v20240_v6 = vld [vmem:[#allocation43_spill] sm:$0xff]  ;;  %v20256_v26 = vld [vmem:[#allocation53_spill] sm:$0xff] }
 0x1d5   : > { %14729 = vmatprep.subr.msk.mxu0 %vm16957_vm2, %v7528_v46  ;;  %20230 = vst [vmem:[#allocation110_spill] sm:$0xff] %v17691_v44  ;;  %14733 = vmatpush1.msk.msra.mxu1 %vm16976_vm14, %v7527_v5  ;;  %v20238_v5 = vld [vmem:[#allocation38_spill] sm:$0xff]  ;;  %vm20262_vm3 = vmmov %vm20233_vm0 }
 0x1d6   : > { %14730 = vmatpush1.msk.msra.mxu0 %vm16970_vm15, %v7529_v43  ;;  %8789 = vmatprep.mubr.f32.mxu1 %v19684_v45  ;;  %v3417_v34 = vpop.f32.mrf.mxu0  ;;  %v20255_v43 = vld [vmem:[#allocation60_spill] sm:$0xff] }
 0x1d7   : > { %14731 = vmatmul.mubr.msk.f32.vlgmr.msra.gmra.mxu0 %vm20227_vm1, %v17477_v35  ;;  %14736 = vmatprep.subr.msk.mxu0 %vm15747_vm4, %v20234_v61  ;;  %v3488_v30 = vpop.f32.mrf.mxu1  ;;  %v17706_v49 = vadd.f32 %v3417_v34, %v17303_v31  ;;  %v20242_v61 = vld [vmem:[#allocation52_spill] sm:$0xff]  ;;  %vm20247_vm4 = vmmov %vm20233_vm0 }
 0x1d8   : > { %14734 = vmatmul.mubr.msk.f32.vlgmr.msra.gmra.mxu1 %vm20233_vm0, %v17477_v35  ;;  %14739 = vmatprep.subr.msk.mxu1 %vm15773_vm5, %v20236_v8  ;;  %v17715_v44 = vadd.f32 %v3488_v30, %v17294_v29  ;;  %v17718_v35 = vld [vmem:[%s15474_s23 + $0x18] sm:$0xf]  ;;  %v20244_v34 = vld [vmem:[#allocation56_spill] sm:$0xff]  ;;  %vm20248_vm5 = vmmov %vm20233_vm0 }
 0x1d9   : > { %14737 = vmatpush1.msk.msra.mxu0 %vm15783_vm6, %v20238_v5  ;;  %14740 = vmatpush1.msk.msra.mxu1 %vm15789_vm7, %v20240_v6  ;;  %v17730_v8 = vpop.f32.mrf.mxu1  ;;  %v20249_v29 = vld [vmem:[#allocation47_spill] sm:$0xff]  ;;  %v20250_v6 = vld [vmem:[#allocation46_spill] sm:$0xff]  ;;  %v20259_v31 = vld [vmem:[#allocation64_spill] sm:$0xff] }
 0x1da   : > { %14742 = vmatprep.subr.msk.mxu0 %vm15847_vm9, %v20242_v61  ;;  %14745 = vmatprep.subr.msk.mxu1 %vm15888_vm11, %v20244_v34  ;;  %20246 = vst [vmem:[#allocation114_spill] sm:$0xff] %v17730_v8  ;;  %vm20251_vm6 = vnez %v20250_v6  ;;  %v20252_v30 = vld [vmem:[#allocation51_spill] sm:$0xff]  ;;  %v20253_v5 = vld [vmem:[#allocation50_spill] sm:$0xff]  ;;  %vm20257_vm9 = vnez %v20256_v26  ;;  %v17746_v61 = vpop.f32.mrf.mxu0  ;;  %v20260_v34 = vld [vmem:[#allocation57_spill] sm:$0xff] }
 0x1db   : > { %9057 = vmatprep.mubr.f32.mxu0 %v19684_v45  ;;  %9128 = vmatprep.mubr.f32.mxu1 %v19684_v45  ;;  %vm20254_vm7 = vnez %v20253_v5  ;;  %20258 = vst [vmem:[#allocation167_spill] sm:$0xff] %v17746_v61  ;;  %vm20261_vm11 = vnez %v20260_v34  ;;  %vm20263_vm1 = vmmov %vm20233_vm0  ;;  %v20264_v6 = vld [vmem:[#allocation55_spill] sm:$0xff]  ;;  %v20270_v26 = vld [vmem:[#allocation68_spill] sm:$0xff] }
 0x1dc   : > { %14738 = vmatmul.mubr.msk.f32.vlgmr.msra.gmra.mxu0 %vm20247_vm4, %v17718_v35  ;;  %14741 = vmatmul.mubr.msk.f32.vlgmr.msra.gmra.mxu1 %vm20248_vm5, %v17718_v35  ;;  %v20267_v5 = vld [vmem:[#allocation59_spill] sm:$0xff]  ;;  %v20273_v34 = vld [vmem:[#allocation72_spill] sm:$0xff] }
 0x1dd   : > { %14743 = vmatpush1.msk.msra.mxu0 %vm20251_vm6, %v20249_v29  ;;  %14746 = vmatpush1.msk.msra.mxu1 %vm20254_vm7, %v20252_v30  ;;  %v20265_v30 = vld [vmem:[#allocation54_spill] sm:$0xff]  ;;  %vm20276_vm7 = vmmov %vm20263_vm1 }
 0x1de   : > { %14748 = vmatprep.subr.msk.mxu0 %vm20257_vm9, %v20255_v43  ;;  %14751 = vmatprep.subr.msk.mxu1 %vm20261_vm11, %v20259_v31  ;;  %v3892_v46 = vpop.f32.mrf.mxu1  ;;  %vm20266_vm0 = vnez %v20265_v30  ;;  %v20268_v43 = vld [vmem:[#allocation58_spill] sm:$0xff]  ;;  %v20271_v31 = vld [vmem:[#allocation61_spill] sm:$0xff]  ;;  %vm20277_vm9 = vmmov %vm20263_vm1 }
 0x1df   : > { %9199 = vmatprep.mubr.f32.mxu0 %v19684_v45  ;;  %9270 = vmatprep.mubr.f32.mxu1 %v19684_v45  ;;  %v17754_v29 = vadd.f32 %v3892_v46, %v17334_v4  ;;  %vm20269_vm4 = vnez %v20268_v43  ;;  %vm20272_vm5 = vnez %v20271_v31  ;;  %v20274_v46 = vld [vmem:[#allocation65_spill] sm:$0xff]  ;;  %v20278_v30 = vld [vmem:[#allocation63_spill] sm:$0xff] }
 0x1e0   : > { %14744 = vmatmul.mubr.msk.f32.vlgmr.msra.gmra.mxu0 %vm20262_vm3, %v17718_v35  ;;  %14747 = vmatmul.mubr.msk.f32.vlgmr.msra.gmra.mxu1 %vm20263_vm1, %v17718_v35  ;;  %vm20275_vm6 = vnez %v20274_v46  ;;  %v20281_v43 = vld [vmem:[#allocation67_spill] sm:$0xff]  ;;  %v20285_v31 = vld [vmem:[#allocation69_spill] sm:$0xff] }
 0x1e1   : > { %14749 = vmatpush1.msk.msra.mxu0 %vm20266_vm0, %v20264_v6  ;;  %14752 = vmatpush1.msk.msra.mxu1 %vm20269_vm4, %v20267_v5  ;;  %v3821_v4 = vpop.f32.mrf.mxu0  ;;  %v20279_v5 = vld [vmem:[#allocation62_spill] sm:$0xff]  ;;  %vm20286_vm1 = vnez %v20285_v31  ;;  %vm20290_vm4 = vmmov %vm20276_vm7 }
 0x1e2   : > { %14754 = vmatprep.subr.msk.mxu0 %vm20272_vm5, %v20270_v26  ;;  %14757 = vmatprep.subr.msk.mxu1 %vm20275_vm6, %v20273_v34  ;;  %v17773_v8 = vadd.f32 %v3821_v4, %v17345_v39  ;;  %vm20280_vm11 = vnez %v20279_v5  ;;  %v20282_v26 = vld [vmem:[#allocation66_spill] sm:$0xff]  ;;  %v20284_v39 = vld [vmem:[#allocation76_spill] sm:$0xff]  ;;  %v20288_v34 = vld [vmem:[#allocation73_spill] sm:$0xff] }
 0x1e3   : > { %9341 = vmatprep.mubr.f32.mxu0 %v19684_v45  ;;  %9412 = vmatprep.mubr.f32.mxu1 %v19684_v45  ;;  %v17779_v6 = vpop.f32.mrf.mxu0  ;;  %vm20283_vm3 = vnez %v20282_v26  ;;  %v20287_v4 = vld [vmem:[#allocation80_spill] sm:$0xff]  ;;  %vm20289_vm0 = vnez %v20288_v34  ;;  %vm20291_vm5 = vmmov %vm20290_vm4  ;;  %v20293_v26 = vld [vmem:[#allocation70_spill] sm:$0xff] }
 0x1e4   : > { %14750 = vmatmul.mubr.msk.f32.vlgmr.msra.gmra.mxu0 %vm20276_vm7, %v17718_v35  ;;  %14753 = vmatmul.mubr.msk.f32.vlgmr.msra.gmra.mxu1 %vm20277_vm9, %v17718_v35  ;;  %vm20294_vm6 = vnez %v20293_v26  ;;  %v20296_v31 = vld [vmem:[#allocation74_spill] sm:$0xff]  ;;  %v20299_v34 = vld [vmem:[#allocation77_spill] sm:$0xff] }
 0x1e5   : > { %14755 = vmatpush1.msk.msra.mxu0 %vm20280_vm11, %v20278_v30  ;;  %14758 = vmatpush1.msk.msra.mxu1 %vm20283_vm3, %v20281_v43  ;;  %v17802_v30 = vpop.f32.mrf.mxu1  ;;  %v20292_v43 = vld [vmem:[#allocation71_spill] sm:$0xff]  ;;  %vm20297_vm7 = vnez %v20296_v31  ;;  %vm20300_vm9 = vnez %v20299_v34  ;;  %vm20304_vm3 = vmmov %vm20290_vm4  ;;  %v20307_v31 = vld [vmem:[#allocation78_spill] sm:$0xff] }
 0x1e6   : > { %14760 = vmatprep.subr.msk.mxu0 %vm20286_vm1, %v20284_v39  ;;  %14763 = vmatprep.subr.msk.mxu1 %vm20289_vm0, %v20287_v4  ;;  %v3963_v46 = vpop.f32.mrf.mxu0  ;;  %v20295_v39 = vld [vmem:[#allocation75_spill] sm:$0xff]  ;;  %v20298_v4 = vld [vmem:[#allocation84_spill] sm:$0xff]  ;;  %vm20305_vm1 = vmmov %vm20304_vm3  ;;  %vm20308_vm0 = vnez %v20307_v31 }
 0x1e7   : > { %9483 = vmatprep.mubr.f32.mxu0 %v19684_v45  ;;  %9554 = vmatprep.mubr.f32.mxu1 %v19684_v45  ;;  %v17798_v5 = vadd.f32 %v3963_v46, %v17372_v9  ;;  %v20301_v9 = vld [vmem:[#allocation88_spill] sm:$0xff]  ;;  %v20302_v46 = vld [vmem:[#allocation81_spill] sm:$0xff]  ;;  %v20310_v34 = vld [vmem:[#allocation83_spill] sm:$0xff] }
 0x1e8   : > { %14756 = vmatmul.mubr.msk.f32.vlgmr.msra.gmra.mxu0 %vm20290_vm4, %v17718_v35  ;;  %14759 = vmatmul.mubr.msk.f32.vlgmr.msra.gmra.mxu1 %vm20291_vm5, %v17718_v35  ;;  %vm20303_vm11 = vnez %v20302_v46  ;;  %v20320_v31 = vld [vmem:[#allocation86_spill] sm:$0xff] }
 0x1e9   : > { %14761 = vmatpush1.msk.msra.mxu0 %vm20294_vm6, %v20292_v43  ;;  %14764 = vmatpush1.msk.msra.mxu1 %vm20297_vm7, %v20295_v39  ;;  %v17825_v43 = vpop.f32.mrf.mxu0  ;;  %v20306_v39 = vld [vmem:[#allocation79_spill] sm:$0xff]  ;;  %vm20314_vm6 = vnez %v19826_v16  ;;  %vm20316_vm7 = vnez %v19838_v56 }
 0x1ea   : > { %14766 = vmatprep.subr.msk.mxu0 %vm20300_vm9, %v20298_v4  ;;  %14769 = vmatprep.subr.msk.mxu1 %vm20303_vm11, %v20301_v9  ;;  %v4034_v61 = vpop.f32.mrf.mxu1  ;;  %v20309_v4 = vld [vmem:[#allocation85_spill] sm:$0xff]  ;;  %v20311_v9 = vld [vmem:[#allocation82_spill] sm:$0xff]  ;;  %vm20317_vm9 = vmmov %vm20305_vm1  ;;  %vm20318_vm11 = vnez %v19850_v20 }
 0x1eb   : > { %9625 = vmatprep.mubr.f32.mxu0 %v19684_v45  ;;  %9696 = vmatprep.mubr.f32.mxu1 %v19684_v45  ;;  %v17821_v26 = vadd.f32 %v4034_v61, %v17391_v13  ;;  %vm8859_vm4 = vcmp.lt.s32.totalorder %v20309_v4, 4032  ;;  %vm20312_vm5 = vnez %v20311_v9  ;;  %v20313_v13 = vld [vmem:[#allocation91_spill] sm:$0xff]  ;;  %v20326_v20 = vld [vmem:[#allocation44_spill] sm:$0xff] }
 0x1ec   : > { %14762 = vmatmul.mubr.msk.f32.vlgmr.msra.gmra.mxu0 %vm20304_vm3, %v17718_v35  ;;  %14765 = vmatmul.mubr.msk.f32.vlgmr.msra.gmra.mxu1 %vm20305_vm1, %v17718_v35  ;;  %v20315_v61 = vld [vmem:[#allocation95_spill] sm:$0xff]  ;;  %vm8891_vm3 = vmand %vm8859_vm4, %vm20318_vm11  ;;  %v17853_v16 = vpop.f32.mrf.mxu1  ;;  %vm20330_vm11 = vnez %v19858_v17 }
 0x1ed   : > { %14767 = vmatpush1.msk.msra.mxu0 %vm20308_vm0, %v20306_v39  ;;  %14770 = vmatpush1.msk.msra.mxu1 %vm20312_vm5, %v20310_v34  ;;  %v20319_v56 = vld [vmem:[#allocation87_spill] sm:$0xff]  ;;  %vm20321_vm0 = vnez %v20320_v31  ;;  %v20322_v34 = vld [vmem:[#allocation90_spill] sm:$0xff]  ;;  %vm20323_vm5 = vnez %v20129_v18 }
 0x1ee   : > { %14772 = vmatprep.subr.msk.mxu0 %vm20314_vm6, %v20313_v13  ;;  %14775 = vmatprep.subr.msk.mxu1 %vm20316_vm7, %v20315_v61  ;;  %v4105_v46 = vpop.f32.mrf.mxu0  ;;  %vm20325_vm6 = vnez %v19853_v57  ;;  %vm20327_vm7 = vmmov %vm20305_vm1  ;;  %v20329_v57 = vld [vmem:[#allocation94_spill] sm:$0xff]  ;;  %v20331_v61 = vld [vmem:[#allocation92_spill] sm:$0xff] }
 0x1ef   : > { %9767 = vmatprep.mubr.f32.mxu0 %v19684_v45  ;;  %9838 = vmatprep.mubr.f32.mxu1 %v19684_v45  ;;  %v17845_v39 = vadd.f32 %v4105_v46, %v17410_v0  ;;  %v20324_v0 = vld [vmem:[#allocation93_spill] sm:$0xff]  ;;  %v20333_v46 = vld [vmem:[#allocation7_spill] sm:$0xff] }
 0x1f0   : > { %14768 = vmatmul.mubr.msk.f32.vlgmr.msra.gmra.mxu0 %vm20317_vm9, %v17718_v35  ;;  %14771 = vmatmul.mubr.msk.f32.vlgmr.msra.gmra.mxu1 %vm20305_vm1, %v17718_v35  ;;  %v17874_v18 = vpop.f32.mrf.mxu0  ;;  %vm20328_vm9 = vmmov %vm20305_vm1 }
 0x1f1   : > { %14773 = vmatpush1.msk.msra.mxu0 %vm20321_vm0, %v20319_v56  ;;  %14776 = vmatpush1.msk.msra.mxu1 %vm20323_vm5, %v20322_v34  ;;  %vm20335_vm0 = vmmov %vm20305_vm1  ;;  %v17899_v34 = vld [vmem:[%s15474_s23 + $0x1c] sm:$0xf] }
 0x1f2   : > { %14778 = vmatprep.subr.msk.mxu0 %vm20325_vm6, %v20324_v0  ;;  %14781 = vmatprep.subr.msk.mxu1 %vm8891_vm3, %v20326_v20  ;;  %v4176_v9 = vpop.f32.mrf.mxu1  ;;  %vm20332_vm3 = vnez %v19861_v21  ;;  %v20336_v21 = vld [vmem:[#allocation6_spill] sm:$0xff]  ;;  %v20337_v0 = vld [vmem:[#allocation5_spill] sm:$0xff]  ;;  %v20338_v20 = vld [vmem:[#allocation12_spill] sm:$0xff] }
 0x1f3   : > { %9909 = vmatprep.mubr.f32.mxu0 %v19684_v45  ;;  %9980 = vmatprep.mubr.f32.mxu1 %v19684_v45  ;;  %v17870_v13 = vadd.f32 %v4176_v9, %v17429_v25  ;;  %v20334_v25 = vld [vmem:[#allocation10_spill] sm:$0xff]  ;;  %vm20340_vm5 = vmmov %vm20335_vm0 }
 0x1f4   : > { %14774 = vmatmul.mubr.msk.f32.vlgmr.msra.gmra.mxu0 %vm20327_vm7, %v17718_v35  ;;  %14777 = vmatmul.mubr.msk.f32.vlgmr.msra.gmra.mxu1 %vm20328_vm9, %v17718_v35  ;;  %v17893_v17 = vpop.f32.mrf.mxu1  ;;  %v20339_v9 = vld [vmem:[#allocation14_spill] sm:$0xff]  ;;  %vm20341_vm6 = vmmov %vm20335_vm0 }
 0x1f5   : > { %14779 = vmatpush1.msk.msra.mxu0 %vm20330_vm11, %v20329_v57  ;;  %14782 = vmatpush1.msk.msra.mxu1 %vm20332_vm3, %v20331_v61  ;;  %v20342_v61 = vld [vmem:[#allocation9_spill] sm:$0xff]  ;;  %vm20346_vm7 = vmmov %vm20335_vm0 }
 0x1f6   : > { %10292 = vmatprep.subr.mxu0 %v20333_v46  ;;  %10363 = vmatprep.subr.mxu1 %v20334_v25  ;;  %v4247_v56 = vpop.f32.mrf.mxu0  ;;  %v20343_v46 = vld [vmem:[#allocation11_spill] sm:$0xff]  ;;  %v20344_v25 = vld [vmem:[#allocation16_spill] sm:$0xff]  ;;  %vm20347_vm9 = vmmov %vm20335_vm0 }
 0x1f7   : > { %10051 = vmatprep.mubr.f32.mxu0 %v19684_v45  ;;  %10122 = vmatprep.mubr.f32.mxu1 %v19684_v45  ;;  %v17889_v31 = vadd.f32 %v4247_v56, %v17462_v54  ;;  %v20345_v56 = vld [vmem:[#allocation18_spill] sm:$0xff]  ;;  %vm20352_vm11 = vmmov %vm20335_vm0 }
 0x1f8   : > { %14780 = vmatmul.mubr.msk.f32.vlgmr.msra.gmra.mxu0 %vm20305_vm1, %v17718_v35  ;;  %14783 = vmatmul.mubr.msk.f32.vlgmr.msra.gmra.mxu1 %vm20335_vm0, %v17718_v35  ;;  %v17911_v35 = vpop.f32.mrf.mxu0  ;;  %vm20353_vm3 = vmmov %vm20335_vm0 }
 0x1f9   : > { %10293 = vmatpush1.msra.mxu0 %v20336_v21  ;;  %10364 = vmatpush1.msra.mxu1 %v20337_v0  ;;  %vm20358_vm1 = vmmov %vm20335_vm0 }
 0x1fa   : > { %10434 = vmatprep.subr.mxu0 %v20338_v20  ;;  %10505 = vmatprep.subr.mxu1 %v20339_v9  ;;  %v4318_v54 = vpop.f32.mrf.mxu1  ;;  %v20348_v20 = vld [vmem:[#allocation13_spill] sm:$0xff]  ;;  %v20349_v9 = vld [vmem:[#allocation15_spill] sm:$0xff] }
 0x1fb   : > { %10326 = vmatprep.mubr.f32.mxu0 %v19684_v45  ;;  %10397 = vmatprep.mubr.f32.mxu1 %v19684_v45  ;;  %v17907_v57 = vadd.f32 %v4318_v54, %v17500_v36  ;;  %v20350_v54 = vld [vmem:[#allocation20_spill] sm:$0xff] }
 0x1fc   : > { %14785 = vmatmul.mubr.msk.f32.vlgmr.msra.gmra.mxu0 %vm20340_vm5, %v17899_v34  ;;  %14786 = vmatmul.mubr.msk.f32.vlgmr.msra.gmra.mxu1 %vm20341_vm6, %v17899_v34  ;;  %v17926_v0 = vpop.f32.mrf.mxu1  ;;  %vm20363_vm5 = vmmov %vm20335_vm0 }
 0x1fd   : > { %10435 = vmatpush1.msra.mxu0 %v20342_v61  ;;  %10506 = vmatpush1.msra.mxu1 %v20343_v46  ;;  %v20351_v61 = vld [vmem:[#allocation22_spill] sm:$0xff]  ;;  %vm20365_vm6 = vmmov %vm20335_vm0 }
 0x1fe   : > { %10576 = vmatprep.subr.mxu0 %v20344_v25  ;;  %10647 = vmatprep.subr.mxu1 %v20345_v56  ;;  %v4389_v36 = vpop.f32.mrf.mxu0  ;;  %v20354_v56 = vld [vmem:[#allocation17_spill] sm:$0xff] }
 0x1ff   : > { %10468 = vmatprep.mubr.f32.mxu0 %v19684_v45  ;;  %10539 = vmatprep.mubr.f32.mxu1 %v19684_v45  ;;  %v17922_v21 = vadd.f32 %v4389_v36, %v17535_v63  ;;  %v20355_v36 = vld [vmem:[#allocation19_spill] sm:$0xff] }
 0x200   : > { %14787 = vmatmul.mubr.msk.f32.vlgmr.msra.gmra.mxu0 %vm20346_vm7, %v17899_v34  ;;  %14788 = vmatmul.mubr.msk.f32.vlgmr.msra.gmra.mxu1 %vm20347_vm9, %v17899_v34  ;;  %v17941_v25 = vpop.f32.mrf.mxu0  ;;  %vm20370_vm7 = vmmov %vm20335_vm0 }
 0x201   : > { %10577 = vmatpush1.msra.mxu0 %v20348_v20  ;;  %10648 = vmatpush1.msra.mxu1 %v20349_v9  ;;  %v20356_v20 = vld [vmem:[#allocation24_spill] sm:$0xff]  ;;  %v20357_v9 = vld [vmem:[#allocation26_spill] sm:$0xff]  ;;  %vm20372_vm9 = vmmov %vm20335_vm0 }
 0x202   : > { %10718 = vmatprep.subr.mxu0 %v20350_v54  ;;  %10789 = vmatprep.subr.mxu1 %v20351_v61  ;;  %v4460_v63 = vpop.f32.mrf.mxu1 }
 0x203   : > { %10610 = vmatprep.mubr.f32.mxu0 %v19684_v45  ;;  %10681 = vmatprep.mubr.f32.mxu1 %v19684_v45  ;;  %v17937_v46 = vadd.f32 %v4460_v63, %v17570_v51  ;;  %v20359_v63 = vld [vmem:[#allocation21_spill] sm:$0xff] }
 0x204   : > { %14789 = vmatmul.mubr.msk.f32.vlgmr.msra.gmra.mxu0 %vm20352_vm11, %v17899_v34  ;;  %14790 = vmatmul.mubr.msk.f32.vlgmr.msra.gmra.mxu1 %vm20353_vm3, %v17899_v34  ;;  %v17956_v61 = vpop.f32.mrf.mxu1  ;;  %vm20377_vm11 = vmmov %vm20335_vm0 }
 0x205   : > { %10719 = vmatpush1.msra.mxu0 %v20354_v56  ;;  %10790 = vmatpush1.msra.mxu1 %v20355_v36  ;;  %v20360_v56 = vld [vmem:[#allocation23_spill] sm:$0xff]  ;;  %v20361_v36 = vld [vmem:[#allocation28_spill] sm:$0xff]  ;;  %vm20379_vm3 = vmmov %vm20335_vm0 }
 0x206   : > { %10860 = vmatprep.subr.mxu0 %v20356_v20  ;;  %10931 = vmatprep.subr.mxu1 %v20357_v9  ;;  %v4531_v51 = vpop.f32.mrf.mxu0  ;;  %v20362_v20 = vld [vmem:[#allocation30_spill] sm:$0xff] }
 0x207   : > { %10752 = vmatprep.mubr.f32.mxu0 %v19684_v45  ;;  %10823 = vmatprep.mubr.f32.mxu1 %v19684_v45  ;;  %v17952_v54 = vadd.f32 %v4531_v51, %v17602_v59 }
 0x208   : > { %14791 = vmatmul.mubr.msk.f32.vlgmr.msra.gmra.mxu0 %vm20358_vm1, %v17899_v34  ;;  %14792 = vmatmul.mubr.msk.f32.vlgmr.msra.gmra.mxu1 %vm20335_vm0, %v17899_v34  ;;  %v17971_v51 = vpop.f32.mrf.mxu0  ;;  %vm20383_vm1 = vnez %v19870_v12  ;;  %vm20385_vm0 = vnez %v19876_v19  ;;  %v20388_v12 = vld [vmem:[#allocation96_spill] sm:$0xff] }
 0x209   : > { %10861 = vmatpush1.msra.mxu0 %v20359_v63  ;;  %10932 = vmatpush1.msra.mxu1 %v20360_v56  ;;  %20364 = vst [vmem:[#allocation111_spill] sm:$0xff] %v17971_v51  ;;  %v20366_v63 = vld [vmem:[#allocation25_spill] sm:$0xff]  ;;  %v20367_v56 = vld [vmem:[#allocation27_spill] sm:$0xff]  ;;  %v18033_v19 = vld [vmem:[%s15474_s23 + $0x20] sm:$0xf] }
 0x20a   : > { %11002 = vmatprep.subr.mxu0 %v20361_v36  ;;  %11073 = vmatprep.subr.mxu1 %v20362_v20  ;;  %v4602_v59 = vpop.f32.mrf.mxu1  ;;  %v20368_v36 = vld [vmem:[#allocation32_spill] sm:$0xff] }
 0x20b   : > { %10894 = vmatprep.mubr.f32.mxu0 %v19684_v45  ;;  %10965 = vmatprep.mubr.f32.mxu1 %v19684_v45  ;;  %v17967_v9 = vadd.f32 %v4602_v59, %v17629_v41  ;;  %v20369_v20 = vld [vmem:[#allocation36_spill] sm:$0xff] }
 0x20c   : > { %14793 = vmatmul.mubr.msk.f32.vlgmr.msra.gmra.mxu0 %vm20363_vm5, %v17899_v34  ;;  %14794 = vmatmul.mubr.msk.f32.vlgmr.msra.gmra.mxu1 %vm20365_vm6, %v17899_v34  ;;  %v17986_v51 = vpop.f32.mrf.mxu1  ;;  %vm20386_vm5 = vmmov %vm20379_vm3 }
 0x20d   : > { %11003 = vmatpush1.msra.mxu0 %v20366_v63  ;;  %11074 = vmatpush1.msra.mxu1 %v20367_v56  ;;  %20371 = vst [vmem:[#allocation115_spill] sm:$0xff] %v17986_v51  ;;  %v20373_v63 = vld [vmem:[#allocation29_spill] sm:$0xff]  ;;  %v20374_v56 = vld [vmem:[#allocation31_spill] sm:$0xff]  ;;  %v20382_v51 = vld [vmem:[#allocation100_spill] sm:$0xff] }
 0x20e   : > { %11144 = vmatprep.subr.mxu0 %v20368_v36  ;;  %11215 = vmatprep.subr.mxu1 %v20369_v20  ;;  %v4673_v41 = vpop.f32.mrf.mxu0  ;;  %v20375_v36 = vld [vmem:[#allocation35_spill] sm:$0xff]  ;;  %v20376_v20 = vld [vmem:[#allocation8_spill] sm:$0xff]  ;;  %vm20387_vm6 = vmmov %vm20379_vm3 }
 0x20f   : > { %11036 = vmatprep.mubr.f32.mxu0 %v19684_v45  ;;  %11107 = vmatprep.mubr.f32.mxu1 %v19684_v45  ;;  %v17982_v59 = vadd.f32 %v4673_v41, %v17652_v60 }
 0x210   : > { %14795 = vmatmul.mubr.msk.f32.vlgmr.msra.gmra.mxu0 %vm20370_vm7, %v17899_v34  ;;  %14796 = vmatmul.mubr.msk.f32.vlgmr.msra.gmra.mxu1 %vm20372_vm9, %v17899_v34  ;;  %vm20389_vm7 = vnez %v20157_v33  ;;  %vm20391_vm9 = vnez %v20159_v7  ;;  %v20398_v7 = vld [vmem:[#allocation104_spill] sm:$0xff] }
 0x211   : > { %11145 = vmatpush1.msra.mxu0 %v20373_v63  ;;  %11216 = vmatpush1.msra.mxu1 %v20374_v56  ;;  %v18003_v63 = vpop.f32.mrf.mxu0  ;;  %v20380_v56 = vld [vmem:[#allocation33_spill] sm:$0xff] }
 0x212   : > { %11286 = vmatprep.subr.mxu0 %v20375_v36  ;;  %14800 = vmatprep.subr.msk.mxu1 %vm8859_vm4, %v20376_v20  ;;  %v4744_v60 = vpop.f32.mrf.mxu1  ;;  %20378 = vst [vmem:[#allocation118_spill] sm:$0xff] %v18003_v63  ;;  %v20381_v20 = vld [vmem:[#allocation34_spill] sm:$0xff] }
 0x213   : > { %11178 = vmatprep.mubr.f32.mxu0 %v19684_v45  ;;  %11249 = vmatprep.mubr.f32.mxu1 %v19684_v45  ;;  %v17999_v41 = vadd.f32 %v4744_v60, %v17684_v2  ;;  %v20384_v2 = vld [vmem:[#allocation105_spill] sm:$0xff] }
 0x214   : > { %14797 = vmatmul.mubr.msk.f32.vlgmr.msra.gmra.mxu0 %vm20377_vm11, %v17899_v34  ;;  %14798 = vmatmul.mubr.msk.f32.vlgmr.msra.gmra.mxu1 %vm20379_vm3, %v17899_v34  ;;  %v18008_v36 = vpop.f32.mrf.mxu1  ;;  %vm20393_vm11 = vnez %v20161_v47  ;;  %vm20395_vm3 = vnez %v20164_v14  ;;  %v20400_v47 = vld [vmem:[#allocation108_spill] sm:$0xff]  ;;  %v20402_v14 = vld [vmem:[#allocation117_spill] sm:$0xff] }
 0x215   : > { %11287 = vmatpush1.msra.mxu0 %v20380_v56  ;;  %11358 = vmatpush1.msra.mxu1 %v20381_v20 }
 0x216   : > { %14803 = vmatprep.subr.msk.mxu0 %vm20383_vm1, %v20382_v51  ;;  %14806 = vmatprep.subr.msk.mxu1 %vm20385_vm0, %v20384_v2  ;;  %v20390_v51 = vld [vmem:[#allocation99_spill] sm:$0xff]  ;;  %v20394_v2 = vld [vmem:[#allocation113_spill] sm:$0xff]  ;;  %vm20396_vm1 = vmmov %vm20386_vm5 }
 0x217   : > { %11320 = vmatprep.mubr.f32.mxu0 %v19684_v45  ;;  %11391 = vmatprep.mubr.f32.mxu1 %v19684_v45  ;;  %vm20397_vm0 = vmmov %vm20396_vm1 }
 0x218   : > { %v4886_v56 = vpop.f32.mrf.mxu1  ;;  %14799 = vmatmul.mubr.msk.f32.vlgmr.msra.gmra.mxu0 %vm20386_vm5, %v17899_v34  ;;  %14801 = vmatmul.mubr.msk.f32.vlgmr.msra.gmra.mxu1 %vm20387_vm6, %v17899_v34  ;;  %vm20399_vm5 = vnez %v20169_v37  ;;  %vm20401_vm6 = vnez %v20171_v24  ;;  %v20408_v24 = vld [vmem:[#allocation112_spill] sm:$0xff] }
 0x219   : > { %v4815_v60 = vpop.f32.mrf.mxu0  ;;  %v18025_v20 = vadd.f32 %v4886_v56, %v17715_v44  ;;  %14804 = vmatpush1.msk.msra.mxu0 %vm20389_vm7, %v20388_v12  ;;  %14807 = vmatpush1.msk.msra.mxu1 %vm20391_vm9, %v20390_v51  ;;  %vm20403_vm7 = vnez %v20173_v3  ;;  %v20404_v44 = vld [vmem:[#allocation121_spill] sm:$0xff]  ;;  %vm20405_vm9 = vnez %v20176_v62  ;;  %v20410_v3 = vld [vmem:[#allocation116_spill] sm:$0xff] }
 0x21a   : > { %v18020_v63 = vadd.f32 %v4815_v60, %v17706_v49  ;;  %v20392_v49 = vld [vmem:[#allocation109_spill] sm:$0xff]  ;;  %14812 = vmatprep.subr.msk.mxu1 %vm20395_vm3, %v20394_v2  ;;  %11627 = vmatprep.mubr.f32.mxu0 %v19684_v45  ;;  %v18048_v33 = vpop.f32.mrf.mxu1  ;;  %vm20407_vm3 = vmmov %vm20397_vm0 }
 0x21b   : > { %14809 = vmatprep.subr.msk.mxu0 %vm20393_vm11, %v20392_v49  ;;  %11698 = vmatprep.mubr.f32.mxu1 %v19684_v45  ;;  %v18065_v60 = vpop.f32.mrf.mxu0  ;;  %vm20406_vm11 = vmmov %vm20397_vm0  ;;  %v20412_v62 = vld [vmem:[#allocation125_spill] sm:$0xff] }
 0x21c   : > { %14805 = vmatmul.mubr.msk.f32.vlgmr.msra.gmra.mxu0 %vm20396_vm1, %v18033_v19  ;;  %14808 = vmatmul.mubr.msk.f32.vlgmr.msra.gmra.mxu1 %vm20397_vm0, %v18033_v19  ;;  %vm20409_vm1 = vnez %v20180_v55  ;;  %vm20411_vm0 = vnez %v20182_v27  ;;  %v20414_v56 = vld [vmem:[#allocation129_spill] sm:$0xff]  ;;  %v20418_v27 = vld [vmem:[#allocation120_spill] sm:$0xff] }
 0x21d   : > { %14810 = vmatpush1.msk.msra.mxu0 %vm20399_vm5, %v20398_v7  ;;  %14813 = vmatpush1.msk.msra.mxu1 %vm20401_vm6, %v20400_v47  ;;  %vm20413_vm5 = vnez %v20184_v11  ;;  %vm20415_vm6 = vnez %v20187_v10  ;;  %v20420_v11 = vld [vmem:[#allocation124_spill] sm:$0xff]  ;;  %v20422_v10 = vld [vmem:[#allocation133_spill] sm:$0xff] }
 0x21e   : > { %14815 = vmatprep.subr.msk.mxu0 %vm20403_vm7, %v20402_v14  ;;  %14818 = vmatprep.subr.msk.mxu1 %vm20405_vm9, %v20404_v44  ;;  %vm20416_vm7 = vmmov %vm20407_vm3  ;;  %v20431_v49 = vld [vmem:[#allocation141_spill] sm:$0xff]  ;;  %v20448_v44 = vld [vmem:[#allocation143_spill] sm:$0xff] }
 0x21f   : > { %11769 = vmatprep.mubr.f32.mxu0 %v19684_v45  ;;  %v5258_v34 = vpop.f32.mrf.mxu1  ;;  %11840 = vmatprep.mubr.f32.mxu1 %v19684_v45  ;;  %vm20417_vm9 = vmmov %vm20407_vm3  ;;  %v20441_v7 = vld [vmem:[#allocation149_spill] sm:$0xff] }
 0x220   : > { %v18069_v37 = vadd.f32 %v5258_v34, %v17754_v29  ;;  %14811 = vmatmul.mubr.msk.f32.vlgmr.msra.gmra.mxu0 %vm20406_vm11, %v18033_v19  ;;  %14814 = vmatmul.mubr.msk.f32.vlgmr.msra.gmra.mxu1 %vm20407_vm3, %v18033_v19  ;;  %vm20419_vm11 = vnez %v20191_v15  ;;  %vm20421_vm3 = vnez %v20193_v1  ;;  %v20450_v34 = vld [vmem:[#allocation148_spill] sm:$0xff] }
 0x221   : > { %14816 = vmatpush1.msk.msra.mxu0 %vm20409_vm1, %v20408_v24  ;;  %14819 = vmatpush1.msk.msra.mxu1 %vm20411_vm0, %v20410_v3  ;;  %vm20423_vm1 = vnez %v20195_v52  ;;  %vm20425_vm0 = vnez %v20198_v42  ;;  %v18117_v1 = vpop.f32.mrf.mxu1  ;;  %v20428_v52 = vld [vmem:[#allocation128_spill] sm:$0xff]  ;;  %v20452_v24 = vld [vmem:[#allocation155_spill] sm:$0xff] }
 0x222   : > { %14821 = vmatprep.subr.msk.mxu0 %vm20413_vm5, %v20412_v62  ;;  %v5187_v29 = vpop.f32.mrf.mxu0  ;;  %14824 = vmatprep.subr.msk.mxu1 %vm20415_vm6, %v20414_v56  ;;  %vm20426_vm5 = vmmov %vm20416_vm7  ;;  %v20429_v42 = vld [vmem:[#allocation132_spill] sm:$0xff] }
 0x223   : > { %v18088_v12 = vadd.f32 %v5187_v29, %v17773_v8  ;;  %11911 = vmatprep.mubr.f32.mxu0 %v19684_v45  ;;  %11982 = vmatprep.mubr.f32.mxu1 %v19684_v45  ;;  %v20424_v8 = vld [vmem:[#allocation137_spill] sm:$0xff]  ;;  %vm20427_vm6 = vmmov %vm20426_vm5  ;;  %v12731_v29 = vld [vmem:[%s19334_s1] sm:$0xf] }
 0x224   : > { %14817 = vmatmul.mubr.msk.f32.vlgmr.msra.gmra.mxu0 %vm20416_vm7, %v18033_v19  ;;  %v18094_v55 = vpop.f32.mrf.mxu0  ;;  %14820 = vmatmul.mubr.msk.f32.vlgmr.msra.gmra.mxu1 %vm20417_vm9, %v18033_v19  ;;  %vm20430_vm7 = vnez %v20203_v32  ;;  %vm20432_vm9 = vnez %v20205_v28  ;;  %v20437_v28 = vld [vmem:[#allocation136_spill] sm:$0xff] }
 0x225   : > { %14822 = vmatpush1.msk.msra.mxu0 %vm20419_vm11, %v20418_v27  ;;  %14825 = vmatpush1.msk.msra.mxu1 %vm20421_vm3, %v20420_v11  ;;  %vm20434_vm11 = vnez %v20208_v50  ;;  %vm20436_vm3 = vmmov %vm20426_vm5  ;;  %v20439_v50 = vld [vmem:[#allocation140_spill] sm:$0xff]  ;;  %v15136_v11 = vmov 0  }
 0x226   : > { %14827 = vmatprep.subr.msk.mxu0 %vm20423_vm1, %v20422_v10  ;;  %14830 = vmatprep.subr.msk.mxu1 %vm20425_vm0, %v20424_v8  ;;  %vm20438_vm1 = vnez %v20212_v58  ;;  %vm20440_vm0 = vnez %v20214_v48  ;;  %v20447_v48 = vld [vmem:[#allocation144_spill] sm:$0xff] }
 0x227   : > { %12053 = vmatprep.mubr.f32.mxu0 %v19684_v45  ;;  %v5329_v51 = vpop.f32.mrf.mxu0  ;;  %12124 = vmatprep.mubr.f32.mxu1 %v19684_v45  ;;  %v20457_v56 = vld [vmem:[#allocation152_spill] sm:$0xff] }
 0x228   : > { %v18113_v15 = vadd.f32 %v5329_v51, %v17798_v5  ;;  %14823 = vmatmul.mubr.msk.f32.vlgmr.msra.gmra.mxu0 %vm20426_vm5, %v18033_v19  ;;  %14826 = vmatmul.mubr.msk.f32.vlgmr.msra.gmra.mxu1 %vm20427_vm6, %v18033_v19  ;;  %v20433_v5 = vld [vmem:[#allocation145_spill] sm:$0xff]  ;;  %vm20445_vm6 = vmmov %vm20436_vm3 }
 0x229   : > { %14828 = vmatpush1.msk.msra.mxu0 %vm20202_vm12, %v20428_v52  ;;  %14831 = vmatpush1.msk.msra.mxu1 %vm20430_vm7, %v20429_v42  ;;  %vm20435_vm12 = vmmov %vm20426_vm5  ;;  %v18140_v32 = vpop.f32.mrf.mxu0  ;;  %vm20442_vm5 = vnez %v20216_v40 }
 0x22a   : > { %14833 = vmatprep.subr.msk.mxu0 %vm20432_vm9, %v20431_v49  ;;  %14836 = vmatprep.subr.msk.mxu1 %vm20434_vm11, %v20433_v5  ;;  %vm11461_vm7 = vmand %vm8859_vm4, %vm16948_vm8  ;;  %vm20449_vm9 = vnez %v20448_v44  ;;  %vm12808_vm4 = vcmask 31744  }
 0x22b   : > { %12195 = vmatprep.mubr.f32.mxu0 %v19684_v45  ;;  %v5400_v2 = vpop.f32.mrf.mxu1  ;;  %12266 = vmatprep.mubr.f32.mxu1 %v19684_v45  ;;  %vm20454_vm8 = vmmov %vm20436_vm3 }
 0x22c   : > { %v18136_v38 = vadd.f32 %v5400_v2, %v17821_v26  ;;  %14829 = vmatmul.mubr.msk.f32.vlgmr.msra.gmra.mxu0 %vm20435_vm12, %v18033_v19  ;;  %14832 = vmatmul.mubr.msk.f32.vlgmr.msra.gmra.mxu1 %vm20436_vm3, %v18033_v19  ;;  %v20443_v26 = vld [vmem:[#allocation157_spill] sm:$0xff] }
 0x22d   : > { %14834 = vmatpush1.msk.msra.mxu0 %vm20438_vm1, %v20437_v28  ;;  %14837 = vmatpush1.msk.msra.mxu1 %vm20440_vm0, %v20439_v50  ;;  %v18167_v40 = vpop.f32.mrf.mxu1 }
 0x22e   : > { %14839 = vmatprep.subr.msk.mxu0 %vm20442_vm5, %v20441_v7  ;;  %14842 = vmatprep.subr.msk.mxu1 %vm20223_vm13, %v20443_v26  ;;  %vm20446_vm13 = vmmov %vm20436_vm3 }
 0x22f   : > { %12337 = vmatprep.mubr.f32.mxu0 %v19684_v45  ;;  %v5471_v14 = vpop.f32.mrf.mxu0  ;;  %12408 = vmatprep.mubr.f32.mxu1 %v19684_v45 }
 0x230   : > { %v18159_v58 = vadd.f32 %v5471_v14, %v17845_v39  ;;  %14835 = vmatmul.mubr.msk.f32.vlgmr.msra.gmra.mxu0 %vm20445_vm6, %v18033_v19  ;;  %14838 = vmatmul.mubr.msk.f32.vlgmr.msra.gmra.mxu1 %vm20446_vm13, %v18033_v19 }
 0x231   : > { %14840 = vmatpush1.msk.msra.mxu0 %vm20449_vm9, %v20447_v48  ;;  %14843 = vmatpush1.msk.msra.mxu1 %vm20225_vm10, %v20450_v34  ;;  %v18188_v62 = vpop.f32.mrf.mxu0  ;;  %vm20455_vm10 = vmmov %vm20436_vm3 }
 0x232   : > { %14845 = vmatprep.subr.msk.mxu0 %vm16957_vm2, %v20452_v24  ;;  %14848 = vmatprep.subr.msk.mxu1 %vm11461_vm7, %v20453_v22  ;;  %vm20460_vm2 = vmmov %vm20436_vm3  ;;  %v20462_v22 = vld [vmem:[#allocation178_spill] sm:$0xff] }
 0x233   : > { %12479 = vmatprep.mubr.f32.mxu0 %v19684_v45  ;;  %v5542_v4 = vpop.f32.mrf.mxu1  ;;  %12550 = vmatprep.mubr.f32.mxu1 %v19684_v45 }
 0x234   : > { %v18184_v3 = vadd.f32 %v5542_v4, %v17870_v13  ;;  %14841 = vmatmul.mubr.msk.f32.vlgmr.msra.gmra.mxu0 %vm20454_vm8, %v18033_v19  ;;  %14844 = vmatmul.mubr.msk.f32.vlgmr.msra.gmra.mxu1 %vm20455_vm10, %v18033_v19 }
 0x235   : > { %14846 = vmatpush1.msk.msra.mxu0 %vm16970_vm15, %v20456_v53  ;;  %14849 = vmatpush1.msk.msra.mxu1 %vm16976_vm14, %v20457_v56  ;;  %vm20459_vm15 = vmmov %vm20436_vm3  ;;  %v18208_v23 = vpop.f32.mrf.mxu1  ;;  %v20463_v53 = vld [vmem:[#allocation158_spill] sm:$0xff]  ;;  %vm12812_vm14 = vcmask 1043456  }
 0x236   : > { %12621 = vmatprep.mubr.f32.mxu0 %v19684_v45  ;;  %12692 = vmatprep.mubr.f32.mxu1 %v19684_v45 }
 0x237   : > { %v5613_v13 = vpop.f32.mrf.mxu0  ;;  %14961 = vset.pattern.permute.xlu0 %v15136_v11  ;;  %14962 = vset.pattern.permute.xlu1 %v15136_v11 }
 0x238   : > { %v18204_v10 = vadd.f32 %v5613_v13, %v17889_v31  ;;  %14847 = vmatmul.mubr.msk.f32.vlgmr.msra.gmra.mxu0 %vm20459_vm15, %v18033_v19  ;;  %12734 = vperm.xlu0 %14961, %v12731_v29   ;;  %v20464_v29 = vld [vmem:[#allocation177_spill] sm:$0xff] }
 0x239   : > { %14850 = vmatmul.mubr.msk.f32.vlgmr.msra.gmra.mxu1 %vm20460_vm2, %v18033_v19  ;;  %12973 = vmatprep.mubr.f32.mxu0 %v19684_v45  ;;  %v18217_v31 = vpop.f32.mrf.mxu0  ;;  %v2426_v56 = vadd.f32 %v20464_v29, %v20463_v53 }
 0x23a   : > { %13044 = vmatprep.mubr.f32.mxu1 %v19684_v45 }
 0x23b   : > { %v5684_v8 = vpop.f32.mrf.mxu1 }
 0x23c   : > { %v18215_v51 = vadd.f32 %v5684_v8, %v17907_v57  ;;  %v4892_v8 = vadd.f32 %v17779_v6, %v2426_v56 }
 0x23d   : > { %v18222_v49 = vpop.f32.mrf.mxu1 }
 0x23f   : > { %v5755_v52 = vpop.f32.mrf.mxu0 }
 0x240   : > { %v18220_v42 = vadd.f32 %v5755_v52, %v17922_v21  ;;  %v20465_v52 = vld [vmem:[#allocation161_spill] sm:$0xff] }
 0x241   : > { %v18227_v2 = vpop.f32.mrf.mxu0 }
 0x243   : > { %v5826_v5 = vpop.f32.mrf.mxu1 }
 0x244   : > { %v18225_v19 = vadd.f32 %v5826_v5, %v17937_v46  ;;  %v20466_v5 = vld [vmem:[#allocation180_spill] sm:$0xff] }
 0x245   : > { %v18232_v57 = vpop.f32.mrf.mxu1 }
 0x247   : > { %v5897_v28 = vpop.f32.mrf.mxu0 }
 0x248   : > { %v18230_v50 = vadd.f32 %v5897_v28, %v17952_v54  ;;  %v2639_v28 = vadd.f32 %v20466_v5, %v20465_v52  ;;  %v20469_v52 = vld [vmem:[#allocation163_spill] sm:$0xff] }
 0x249   : > { %v18237_v21 = vpop.f32.mrf.mxu0 }
 0x24a   : > { %v4898_v53 = vadd.f32 %v17853_v16, %v2639_v28 }
 0x24b   : > { %v5968_v7 = vpop.f32.mrf.mxu1 }
 0x24c   : > { %v18235_v26 = vadd.f32 %v5968_v7, %v17967_v9  ;;  %v20461_v9 = vld [vmem:[#allocation159_spill] sm:$0xff]  ;;  %v20467_v7 = vld [vmem:[#allocation160_spill] sm:$0xff] }
 0x24d   : > { %v18242_v46 = vpop.f32.mrf.mxu1  ;;  %v2497_v4 = vadd.f32 %v20462_v22, %v20461_v9 }
 0x24f   : > { %v6039_v47 = vpop.f32.mrf.mxu0  ;;  %v4894_v11 = vadd.f32 %v17802_v30, %v2497_v4 }
 0x250   : > { %v18240_v14 = vadd.f32 %v6039_v47, %v17982_v59  ;;  %v20468_v47 = vld [vmem:[#allocation179_spill] sm:$0xff] }
 0x251   : > { %v18247_v54 = vpop.f32.mrf.mxu0 }
 0x253   : > { %v6110_v48 = vpop.f32.mrf.mxu1 }
 0x254   : > { %v18245_v44 = vadd.f32 %v6110_v48, %v17999_v41  ;;  %v2568_v48 = vadd.f32 %v20468_v47, %v20467_v7  ;;  %v6264_v47 = vadd.f32 %v18167_v40, %v4898_v53  ;;  %v20475_v40 = vld [vmem:[#allocation165_spill] sm:$0xff] }
 0x255   : > { %v18249_v34 = vpop.f32.mrf.mxu1 }
 0x256   : > { %v4896_v4 = vadd.f32 %v17825_v43, %v2568_v48 }
 0x257   : > { %v6181_v39 = vpop.f32.mrf.mxu0  ;;  %v6252_v24 = vpop.f32.mrf.mxu1 }
 0x258   : > { %v18256_v59 = vadd.f32 %v6181_v39, %v18020_v63  ;;  %v18259_v27 = vadd.f32 %v6252_v24, %v18025_v20  ;;  %v6260_v39 = vadd.f32 %v18117_v1, %v4894_v11  ;;  %v6258_v20 = vadd.f32 %v18094_v55, %v4892_v8  ;;  %v20470_v1 = vld [vmem:[#allocation182_spill] sm:$0xff]  ;;  %v20472_v8 = vld [vmem:[#allocation181_spill] sm:$0xff] }
 0x259   : > { %v18261_v41 = vpop.f32.mrf.mxu0  ;;  %v18263_v13 = vpop.f32.mrf.mxu1  ;;  %v2781_v11 = vadd.f32 %v20470_v1, %v20469_v52  ;;  %v20471_v55 = vld [vmem:[#allocation162_spill] sm:$0xff] }
 0x25b   : > { %v6360_v9 = vpop.f32.mrf.mxu0  ;;  %v6431_v63 = vpop.f32.mrf.mxu1 }
 0x25c   : > { %v18274_v24 = vadd.f32 %v6360_v9, %v18088_v12  ;;  %v18277_v22 = vadd.f32 %v6431_v63, %v18069_v37  ;;  %v2710_v12 = vadd.f32 %v20472_v8, %v20471_v55  ;;  %v6262_v37 = vadd.f32 %v18140_v32, %v4896_v4  ;;  %v20474_v32 = vld [vmem:[#allocation98_spill] sm:$0xff]  ;;  %v20476_v4 = vld [vmem:[#allocation97_spill] sm:$0xff] }
 0x25d   : > { %v6362_v30 = vpop.f32.mrf.mxu0  ;;  %v6433_v6 = vpop.f32.mrf.mxu1  ;;  %v4902_v63 = vadd.f32 %v17893_v17, %v2781_v11 }
 0x25e   : > { %v18281_v29 = vadd.f32 %v6362_v30, %v6258_v20  ;;  %v18283_v56 = vadd.f32 %v6433_v6, %v6260_v39  ;;  %v4900_v9 = vadd.f32 %v17874_v18, %v2710_v12  ;;  %v20473_v30 = vld [vmem:[#allocation166_spill] sm:$0xff] }
 0x25f   : > { %v6502_v5 = vpop.f32.mrf.mxu0  ;;  %v6573_v7 = vpop.f32.mrf.mxu1  ;;  %v2923_v6 = vadd.f32 %v20474_v32, %v20473_v30  ;;  %v6268_v1 = vadd.f32 %v18208_v23, %v4902_v63  ;;  %v20479_v23 = vld [vmem:[#allocation169_spill] sm:$0xff] }
 0x260   : > { %v18292_v43 = vadd.f32 %v6502_v5, %v18113_v15  ;;  %v18295_v16 = vadd.f32 %v6573_v7, %v18136_v38  ;;  %v2852_v15 = vadd.f32 %v20476_v4, %v20475_v40  ;;  %v6266_v38 = vadd.f32 %v18188_v62, %v4900_v9  ;;  %v20478_v62 = vld [vmem:[#allocation106_spill] sm:$0xff] }
 0x261   : > { %v6504_v28 = vpop.f32.mrf.mxu0  ;;  %v6575_v48 = vpop.f32.mrf.mxu1  ;;  %v4906_v12 = vadd.f32 %v17926_v0, %v2923_v6 }
 0x262   : > { %v18299_v39 = vadd.f32 %v6504_v28, %v6262_v37  ;;  %v18301_v20 = vadd.f32 %v6575_v48, %v6264_v47  ;;  %v4904_v8 = vadd.f32 %v17911_v35, %v2852_v15  ;;  %v20477_v37 = vld [vmem:[#allocation170_spill] sm:$0xff] }
 0x263   : > { %v6644_v53 = vpop.f32.mrf.mxu0  ;;  %v6715_v52 = vpop.f32.mrf.mxu1  ;;  %v3065_v47 = vadd.f32 %v20478_v62, %v20477_v37  ;;  %v20480_v28 = vld [vmem:[#allocation102_spill] sm:$0xff]  ;;  %v6272_v63 = vadd.f32 %v18222_v49, %v4906_v12  ;;  %v20483_v49 = vld [vmem:[#allocation172_spill] sm:$0xff]  ;;  %v20485_v37 = vld [vmem:[#allocation111_spill] sm:$0xff] }
 0x264   : > { %v18310_v18 = vadd.f32 %v6644_v53, %v18159_v58  ;;  %v18313_v17 = vadd.f32 %v6715_v52, %v18184_v3  ;;  %v2994_v58 = vadd.f32 %v20480_v28, %v20479_v23  ;;  %v6270_v3 = vadd.f32 %v18217_v31, %v4904_v8  ;;  %v20481_v53 = vld [vmem:[#allocation173_spill] sm:$0xff]  ;;  %v20482_v31 = vld [vmem:[#allocation103_spill] sm:$0xff] }
 0x265   : > { %v6646_v11 = vpop.f32.mrf.mxu0  ;;  %v6717_v55 = vpop.f32.mrf.mxu1  ;;  %v4910_v40 = vadd.f32 %v17956_v61, %v3065_v47  ;;  %v3207_v52 = vadd.f32 %v20482_v31, %v20481_v53  ;;  %v20486_v47 = vld [vmem:[#allocation115_spill] sm:$0xff] }
 0x266   : > { %v18317_v5 = vadd.f32 %v6646_v11, %v6266_v38  ;;  %v18319_v7 = vadd.f32 %v6717_v55, %v6268_v1  ;;  %v4908_v6 = vadd.f32 %v17941_v25, %v2994_v58  ;;  %v20484_v38 = vld [vmem:[#allocation164_spill] sm:$0xff] }
 0x267   : > { %v6786_v48 = vpop.f32.mrf.mxu0  ;;  %v6857_v9 = vpop.f32.mrf.mxu1  ;;  %v6276_v55 = vadd.f32 %v18232_v57, %v4910_v40  ;;  %v4914_v23 = vadd.f32 %v20486_v47, %v3207_v52  ;;  %v20491_v52 = vld [vmem:[#allocation118_spill] sm:$0xff] }
 0x268   : > { %v18328_v35 = vadd.f32 %v6786_v48, %v18204_v10  ;;  %v18331_v0 = vadd.f32 %v6857_v9, %v18215_v51  ;;  %v3136_v10 = vadd.f32 %v20484_v38, %v20483_v49  ;;  %v6274_v51 = vadd.f32 %v18227_v2, %v4908_v6  ;;  %v20487_v48 = vld [vmem:[#allocation174_spill] sm:$0xff]  ;;  %v20488_v2 = vld [vmem:[#allocation107_spill] sm:$0xff] }
 0x269   : > { %v6788_v30 = vpop.f32.mrf.mxu0  ;;  %v6859_v32 = vpop.f32.mrf.mxu1  ;;  %v3278_v9 = vadd.f32 %v20488_v2, %v20487_v48  ;;  %v20490_v6 = vld [vmem:[#allocation110_spill] sm:$0xff] }
 0x26a   : > { %v18335_v4 = vadd.f32 %v6788_v30, %v6270_v3  ;;  %v18337_v15 = vadd.f32 %v6859_v32, %v6272_v63  ;;  %v4912_v62 = vadd.f32 %v20485_v37, %v3136_v10  ;;  %v20489_v32 = vld [vmem:[#allocation89_spill] sm:$0xff] }
 0x26b   : > { %v6928_v1 = vpop.f32.mrf.mxu0  ;;  %v6999_v11 = vpop.f32.mrf.mxu1  ;;  %v3349_v40 = vadd.f32 %v20490_v6, %v20489_v32  ;;  %v4916_v49 = vadd.f32 %v20491_v52, %v3278_v9 }
 0x26c   : > { %v18346_v25 = vadd.f32 %v6928_v1, %v18220_v42  ;;  %v18349_v61 = vadd.f32 %v6999_v11, %v18225_v19  ;;  %v6278_v42 = vadd.f32 %v18237_v21, %v4912_v62  ;;  %v6280_v19 = vadd.f32 %v18242_v46, %v4914_v23  ;;  %v20492_v1 = vld [vmem:[#allocation176_spill] sm:$0xff] }
 0x26d   : > { %v6930_v8 = vpop.f32.mrf.mxu0  ;;  %v7001_v12 = vpop.f32.mrf.mxu1  ;;  %v4918_v21 = vadd.f32 %v18008_v36, %v3349_v40 }
 0x26e   : > { %v18353_v28 = vadd.f32 %v6930_v8, %v6274_v51  ;;  %v18355_v58 = vadd.f32 %v7001_v12, %v6276_v55  ;;  %v20494_v8 = vld [vmem:[#allocation175_spill] sm:$0xff]  ;;  %v20495_v12 = vld [vmem:[#allocation114_spill] sm:$0xff] }
 0x26f   : > { %v7070_v57 = vpop.f32.mrf.mxu0  ;;  %v7141_v3 = vpop.f32.mrf.mxu1  ;;  %v3491_v37 = vadd.f32 %v20495_v12, %v20494_v8  ;;  %v6284_v62 = vadd.f32 %v18249_v34, %v4918_v21 }
 0x270   : > { %v18362_v63 = vadd.f32 %v7070_v57, %v18230_v50  ;;  %v18365_v30 = vadd.f32 %v7141_v3, %v18235_v26  ;;  %v20493_v50 = vld [vmem:[#allocation167_spill] sm:$0xff]  ;;  %v6282_v26 = vadd.f32 %v18247_v54, %v4916_v49 }
 0x271   : > { %v7072_v53 = vpop.f32.mrf.mxu0  ;;  %v7143_v31 = vpop.f32.mrf.mxu1  ;;  %v3420_v11 = vadd.f32 %v20493_v50, %v20492_v1  ;;  %v4922_v54 = vadd.f32 %v18048_v33, %v3491_v37 }
 0x272   : > { %v18370_v38 = vadd.f32 %v7072_v53, %v6278_v42  ;;  %v18372_v10 = vadd.f32 %v7143_v31, %v6280_v19 }
 0x273   : > { %v7212_v46 = vpop.f32.mrf.mxu0  ;;  %v4920_v36 = vadd.f32 %v18065_v60, %v3420_v11 }
 0x274   : > { %v18379_v51 = vadd.f32 %v7212_v46, %v18240_v14  ;;  %v7283_v55 = vpop.f32.mrf.mxu1 }
 0x275   : > { %v18385_v47 = vadd.f32 %v7283_v55, %v18245_v44  ;;  %v7214_v23 = vpop.f32.mrf.mxu0  ;;  %v6286_v57 = vadd.f32 %v18261_v41, %v4920_v36  ;;  %v6288_v44 = vadd.f32 %v18263_v13, %v4922_v54 }
 0x276   : > { %v18388_v48 = vadd.f32 %v7214_v23, %v6282_v26  ;;  %v7285_v2 = vpop.f32.mrf.mxu1 }
 0x277   : > { %v18391_v9 = vadd.f32 %v7285_v2, %v6284_v62  ;;  %v7354_v14 = vpop.f32.mrf.mxu0 }
 0x278   : > { %v18395_v3 = vadd.f32 %v7354_v14, %v18256_v59  ;;  %v7425_v34 = vpop.f32.mrf.mxu1 }
 0x279   : > { %v18399_v42 = vadd.f32 %v7425_v34, %v18259_v27  ;;  %v7356_v60 = vpop.f32.mrf.mxu0 }
 0x27a   : > { %v18401_v19 = vadd.f32 %v7356_v60, %v6286_v57  ;;  %v7427_v32 = vpop.f32.mrf.mxu1 }
 0x27b   : > { %v18403_v6 = vadd.f32 %v7427_v32, %v6288_v44  ;;  %v7726_v33 = vpop.f32.mrf.mxu0 }
 0x27c   : > { %v18406_v40 = vadd.f32 %v7726_v33, %v18274_v24  ;;  %v7797_v41 = vpop.f32.mrf.mxu1 }
 0x27d   : > { %v18409_v59 = vadd.f32 %v7797_v41, %v18277_v22  ;;  %v7728_v53 = vpop.f32.mrf.mxu0 }
 0x27e   : > { %v18412_v13 = vadd.f32 %v7728_v53, %v18281_v29  ;;  %v7799_v27 = vpop.f32.mrf.mxu1 }
 0x27f   : > { %v18415_v31 = vadd.f32 %v7799_v27, %v18283_v56  ;;  %v7868_v52 = vpop.f32.mrf.mxu0 }
 0x280   : > { %v18418_v49 = vadd.f32 %v7868_v52, %v18292_v43  ;;  %v7939_v21 = vpop.f32.mrf.mxu1  ;;  %v12802_v43 = vld [vmem:[%s19336_s3] sm:$0xf] }
 0x281   : > { %v18421_v24 = vadd.f32 %v7939_v21, %v18295_v16  ;;  %v7870_v46 = vpop.f32.mrf.mxu0  ;;  %12805 = vperm.xlu1 %14962, %v12802_v43  }
 0x282   : > { %v18424_v22 = vadd.f32 %v7870_v46, %v18299_v39  ;;  %v7941_v1 = vpop.f32.mrf.mxu1 }
 0x283   : > { %v18427_v29 = vadd.f32 %v7941_v1, %v18301_v20  ;;  %v8010_v50 = vpop.f32.mrf.mxu0 }
 0x284   : > { %v18430_v56 = vadd.f32 %v8010_v50, %v18310_v18  ;;  %v8081_v11 = vpop.f32.mrf.mxu1 }
 0x285   : > { %v18436_v16 = vadd.f32 %v8081_v11, %v18313_v17  ;;  %v8012_v26 = vpop.f32.mrf.mxu0 }
 0x286   : > { %v18439_v39 = vadd.f32 %v8012_v26, %v18317_v5  ;;  %v8083_v55 = vpop.f32.mrf.mxu1 }
 0x287   : > { %v18442_v20 = vadd.f32 %v8083_v55, %v18319_v7  ;;  %v8152_v8 = vpop.f32.mrf.mxu0 }
 0x288   : > { %v18445_v18 = vadd.f32 %v8152_v8, %v18328_v35  ;;  %v8223_v12 = vpop.f32.mrf.mxu1 }
 0x289   : > { %v18448_v37 = vadd.f32 %v8223_v12, %v18331_v0  ;;  %v8154_v62 = vpop.f32.mrf.mxu0 }
 0x28a   : > { %v18451_v17 = vadd.f32 %v8154_v62, %v18335_v4  ;;  %v8225_v23 = vpop.f32.mrf.mxu1 }
 0x28b   : > { %v18454_v5 = vadd.f32 %v8225_v23, %v18337_v15  ;;  %v8294_v36 = vpop.f32.mrf.mxu0 }
 0x28c   : > { %20496 = vst [vmem:[#allocation122_spill] sm:$0xff] %v18451_v17  ;;  %v18457_v7 = vadd.f32 %v8294_v36, %v18346_v25  ;;  %v8365_v2 = vpop.f32.mrf.mxu1 }
 0x28d   : > { %20497 = vst [vmem:[#allocation168_spill] sm:$0xff] %v18454_v5  ;;  %v18460_v35 = vadd.f32 %v8365_v2, %v18349_v61  ;;  %v8296_v54 = vpop.f32.mrf.mxu0 }
 0x28e   : > { %20498 = vst [vmem:[#allocation119_spill] sm:$0xff] %v18457_v7  ;;  %v18463_v0 = vadd.f32 %v8296_v54, %v18353_v28  ;;  %v8367_v14 = vpop.f32.mrf.mxu1 }
 0x28f   : > { %20499 = vst [vmem:[#allocation123_spill] sm:$0xff] %v18460_v35  ;;  %v18466_v4 = vadd.f32 %v8367_v14, %v18355_v58  ;;  %v8436_v57 = vpop.f32.mrf.mxu0 }
 0x290   : > { %20500 = vst [vmem:[#allocation126_spill] sm:$0xff] %v18463_v0  ;;  %v18469_v15 = vadd.f32 %v8436_v57, %v18362_v63  ;;  %v8507_v34 = vpop.f32.mrf.mxu1 }
 0x291   : > { %20501 = vst [vmem:[#allocation130_spill] sm:$0xff] %v18466_v4  ;;  %v18472_v25 = vadd.f32 %v8507_v34, %v18365_v30  ;;  %v8438_v44 = vpop.f32.mrf.mxu0 }
 0x292   : > { %20502 = vst [vmem:[#allocation127_spill] sm:$0xff] %v18469_v15  ;;  %v18475_v61 = vadd.f32 %v8438_v44, %v18370_v38  ;;  %v8509_v60 = vpop.f32.mrf.mxu1 }
 0x293   : > { %20503 = vst [vmem:[#allocation131_spill] sm:$0xff] %v18472_v25  ;;  %v18478_v28 = vadd.f32 %v8509_v60, %v18372_v10  ;;  %v8578_v32 = vpop.f32.mrf.mxu0 }
 0x294   : > { %20504 = vst [vmem:[#allocation134_spill] sm:$0xff] %v18475_v61  ;;  %v18481_v58 = vadd.f32 %v8578_v32, %v18379_v51  ;;  %v8649_v33 = vpop.f32.mrf.mxu1 }
 0x295   : > { %20505 = vst [vmem:[#allocation138_spill] sm:$0xff] %v18478_v28  ;;  %v18484_v63 = vadd.f32 %v8649_v33, %v18385_v47  ;;  %v8580_v41 = vpop.f32.mrf.mxu0 }
 0x296   : > { %20506 = vst [vmem:[#allocation171_spill] sm:$0xff] %v18481_v58  ;;  %v18487_v30 = vadd.f32 %v8580_v41, %v18388_v48  ;;  %v8651_v53 = vpop.f32.mrf.mxu1 }
 0x297   : > { %20507 = vst [vmem:[#allocation135_spill] sm:$0xff] %v18484_v63  ;;  %v18490_v38 = vadd.f32 %v8651_v53, %v18391_v9  ;;  %v8720_v27 = vpop.f32.mrf.mxu0 }
 0x298   : > { %20508 = vst [vmem:[#allocation139_spill] sm:$0xff] %v18487_v30  ;;  %v18493_v10 = vadd.f32 %v8720_v27, %v18395_v3  ;;  %v8791_v52 = vpop.f32.mrf.mxu1 }
 0x299   : > { %20509 = vst [vmem:[#allocation142_spill] sm:$0xff] %v18490_v38  ;;  %v18496_v51 = vadd.f32 %v8791_v52, %v18399_v42  ;;  %v8722_v21 = vpop.f32.mrf.mxu0 }
 0x29a   : > { %20510 = vst [vmem:[#allocation150_spill] sm:$0xff] %v18493_v10  ;;  %v18499_v47 = vadd.f32 %v8722_v21, %v18401_v19  ;;  %v8793_v46 = vpop.f32.mrf.mxu1 }
 0x29b   : > { %20511 = vst [vmem:[#allocation151_spill] sm:$0xff] %v18496_v51  ;;  %v18502_v48 = vadd.f32 %v8793_v46, %v18403_v6 }
 0x29c   : > { %20512 = vst [vmem:[#allocation153_spill] sm:$0xff] %v18499_v47  ;;  %v9059_v1 = vpop.f32.mrf.mxu0  ;;  %v9130_v50 = vpop.f32.mrf.mxu1 }
 0x29d   : > { %20513 = vst [vmem:[#allocation42_spill] sm:$0xff] %v18502_v48 }
 0x29e   : > { %v9061_v9 = vpop.f32.mrf.mxu0  ;;  %v9132_v11 = vpop.f32.mrf.mxu1 }
 0x2a0   : > { %v9201_v43 = vpop.f32.mrf.mxu0  ;;  %v9272_v26 = vpop.f32.mrf.mxu1 }
 0x2a2   : > { %v9203_v3 = vpop.f32.mrf.mxu0  ;;  %v9274_v55 = vpop.f32.mrf.mxu1 }
 0x2a4   : > { %v9343_v8 = vpop.f32.mrf.mxu0  ;;  %v9414_v12 = vpop.f32.mrf.mxu1 }
 0x2a6   : > { %v9345_v42 = vpop.f32.mrf.mxu0  ;;  %v9416_v62 = vpop.f32.mrf.mxu1 }
 0x2a8   : > { %v9485_v23 = vpop.f32.mrf.mxu0  ;;  %v9556_v36 = vpop.f32.mrf.mxu1 }
 0x2aa   : > { %v9487_v19 = vpop.f32.mrf.mxu0  ;;  %v9558_v2 = vpop.f32.mrf.mxu1 }
 0x2ac   : > { %v9627_v54 = vpop.f32.mrf.mxu0  ;;  %v9698_v14 = vpop.f32.mrf.mxu1 }
 0x2ae   : > { %v9629_v6 = vpop.f32.mrf.mxu0  ;;  %v9700_v57 = vpop.f32.mrf.mxu1 }
 0x2b0   : > { %v9769_v34 = vpop.f32.mrf.mxu0  ;;  %v9840_v44 = vpop.f32.mrf.mxu1 }
 0x2b2   : > { %v9771_v60 = vpop.f32.mrf.mxu0  ;;  %v9842_v32 = vpop.f32.mrf.mxu1 }
 0x2b4   : > { %v9911_v33 = vpop.f32.mrf.mxu0  ;;  %v9982_v41 = vpop.f32.mrf.mxu1 }
 0x2b6   : > { %v9913_v53 = vpop.f32.mrf.mxu0  ;;  %v9984_v27 = vpop.f32.mrf.mxu1 }
 0x2b8   : > { %v10053_v52 = vpop.f32.mrf.mxu0  ;;  %v10124_v21 = vpop.f32.mrf.mxu1 }
 0x2ba   : > { %v10055_v46 = vpop.f32.mrf.mxu0  ;;  %v10126_v45 = vpop.f32.mrf.mxu1 }
 0x2bc   : > { %v10328_v48 = vpop.f32.mrf.mxu0  ;;  %v10399_v47 = vpop.f32.mrf.mxu1 }
 0x2be   : > { %v10330_v51 = vpop.f32.mrf.mxu0  ;;  %v10401_v10 = vpop.f32.mrf.mxu1 }
 0x2c0   : > { %v10470_v38 = vpop.f32.mrf.mxu0  ;;  %v10541_v30 = vpop.f32.mrf.mxu1 }
 0x2c2   : > { %v10472_v63 = vpop.f32.mrf.mxu0  ;;  %v18504_v58 = vpop.f32.mrf.mxu1 }
 0x2c3   : > { %20514 = vst [vmem:[#allocation37_spill] sm:$0xff] %v18504_v58 }
 0x2c4   : > { %v18506_v28 = vpop.f32.mrf.mxu0  ;;  %v18508_v61 = vpop.f32.mrf.mxu1 }
 0x2c5   : > { %20515 = vst [vmem:[#allocation48_spill] sm:$0xff] %v18506_v28  ;;  %20516 = vst [vmem:[#allocation39_spill] sm:$0xff] %v18508_v61 }
 0x2c6   : > { %v18510_v25 = vpop.f32.mrf.mxu0  ;;  %v18512_v15 = vpop.f32.mrf.mxu1 }
 0x2c7   : > { %20517 = vst [vmem:[#allocation38_spill] sm:$0xff] %v18510_v25  ;;  %20518 = vst [vmem:[#allocation40_spill] sm:$0xff] %v18512_v15  ;;  %v10129_v15 = vadd.f32 %v9059_v1, %v18406_v40  ;;  %v10137_v40 = vadd.f32 %v9343_v8, %v18430_v56 }
 0x2c8   : > { %v18514_v4 = vpop.f32.mrf.mxu0  ;;  %v18516_v0 = vpop.f32.mrf.mxu1 }
 0x2c9   : > { %20519 = vst [vmem:[#allocation43_spill] sm:$0xff] %v18514_v4  ;;  %20520 = vst [vmem:[#allocation41_spill] sm:$0xff] %v18516_v0  ;;  %v10131_v4 = vadd.f32 %v9130_v50, %v18409_v59  ;;  %v10130_v0 = vadd.f32 %v9061_v9, %v18412_v13  ;;  %v10139_v59 = vadd.f32 %v9414_v12, %v18436_v16 }
 0x2ca   : > { %v18518_v35 = vpop.f32.mrf.mxu0  ;;  %v18520_v7 = vpop.f32.mrf.mxu1  ;;  %v10138_v13 = vadd.f32 %v9345_v42, %v18439_v39  ;;  %v10140_v50 = vadd.f32 %v9416_v62, %v18442_v20  ;;  %v20534_v39 = vld [vmem:[#allocation130_spill] sm:$0xff]  ;;  %v20535_v42 = vld [vmem:[#allocation127_spill] sm:$0xff] }
 0x2cb   : > { %20521 = vst [vmem:[#allocation52_spill] sm:$0xff] %v18518_v35  ;;  %20522 = vst [vmem:[#allocation45_spill] sm:$0xff] %v18520_v7  ;;  %v10132_v7 = vadd.f32 %v9132_v11, %v18415_v31  ;;  %v10141_v31 = vadd.f32 %v9485_v23, %v18445_v18  ;;  %v20530_v11 = vld [vmem:[#allocation168_spill] sm:$0xff]  ;;  %v10148_v12 = vadd.f32 %v9700_v57, %v20534_v39  ;;  %v20536_v62 = vld [vmem:[#allocation131_spill] sm:$0xff] }
 0x2cc   : > { %v18522_v5 = vpop.f32.mrf.mxu0  ;;  %v18524_v17 = vpop.f32.mrf.mxu1  ;;  %v10149_v20 = vadd.f32 %v9769_v34, %v20535_v42  ;;  %v10151_v18 = vadd.f32 %v9840_v44, %v20536_v62  ;;  %v20537_v23 = vld [vmem:[#allocation134_spill] sm:$0xff]  ;;  %v20544_v39 = vld [vmem:[#allocation151_spill] sm:$0xff]  ;;  %v20545_v42 = vld [vmem:[#allocation153_spill] sm:$0xff] }
 0x2cd   : > { %20523 = vst [vmem:[#allocation56_spill] sm:$0xff] %v18522_v5  ;;  %20524 = vst [vmem:[#allocation49_spill] sm:$0xff] %v18524_v17  ;;  %v10133_v5 = vadd.f32 %v9201_v43, %v18418_v49  ;;  %v10135_v17 = vadd.f32 %v9272_v26, %v18421_v24  ;;  %v10143_v49 = vadd.f32 %v9556_v36, %v18448_v37  ;;  %v20529_v24 = vld [vmem:[#allocation122_spill] sm:$0xff]  ;;  %v20531_v26 = vld [vmem:[#allocation119_spill] sm:$0xff] }
 0x2ce   : > { %v18526_v58 = vpop.f32.mrf.mxu0  ;;  %v18528_v28 = vpop.f32.mrf.mxu1  ;;  %v10142_v9 = vadd.f32 %v9487_v19, %v20529_v24  ;;  %v10144_v43 = vadd.f32 %v9558_v2, %v20530_v11  ;;  %v10150_v37 = vadd.f32 %v9771_v60, %v20537_v23  ;;  %v20538_v19 = vld [vmem:[#allocation138_spill] sm:$0xff]  ;;  %v20540_v11 = vld [vmem:[#allocation135_spill] sm:$0xff]  ;;  %v10159_v34 = vadd.f32 %v10124_v21, %v20544_v39  ;;  %v20549_v21 = vld [vmem:[#allocation48_spill] sm:$0xff] }
 0x2cf   : > { %20525 = vst [vmem:[#allocation47_spill] sm:$0xff] %v18526_v58  ;;  %v10134_v58 = vadd.f32 %v9203_v3, %v18424_v22  ;;  %v20532_v3 = vld [vmem:[#allocation123_spill] sm:$0xff]  ;;  %v10152_v24 = vadd.f32 %v9842_v32, %v20538_v19  ;;  %v18567_v44 = vadd.f32 %v10055_v46, %v20545_v42  ;;  %v20547_v62 = vld [vmem:[#allocation42_spill] sm:$0xff]  ;;  %v11398_v32 = vadd.f32 %v10328_v48, %v10129_v15 }
 0x2d0   : > { %v18530_v61 = vpop.f32.mrf.mxu0  ;;  %v18535_v25 = vpop.f32.mrf.mxu1  ;;  %v10147_v56 = vadd.f32 %v9698_v14, %v20532_v3  ;;  %v18570_v23 = vadd.f32 %v10126_v45, %v20547_v62  ;;  %v11401_v19 = vadd.f32 %v10401_v10, %v10132_v7  ;;  %v20550_v46 = vld [vmem:[#allocation39_spill] sm:$0xff]  ;;  %v20551_v42 = vld [vmem:[#allocation38_spill] sm:$0xff] }
 0x2d1   : > { %20526 = vst [vmem:[#allocation46_spill] sm:$0xff] %v18530_v61  ;;  %20527 = vst [vmem:[#allocation51_spill] sm:$0xff] %v18535_v25  ;;  %v10136_v61 = vadd.f32 %v9274_v55, %v18427_v29  ;;  %v10145_v29 = vadd.f32 %v9627_v54, %v20531_v26  ;;  %v20533_v55 = vld [vmem:[#allocation126_spill] sm:$0xff]  ;;  %v10155_v54 = vadd.f32 %v9982_v41, %v20540_v11  ;;  %v20541_v26 = vld [vmem:[#allocation139_spill] sm:$0xff] }
 0x2d2   : > { %v18541_v35 = vpop.f32.mrf.mxu0  ;;  %v11111_v1 = vpop.f32.mrf.mxu1  ;;  %v10146_v16 = vadd.f32 %v9629_v6, %v20533_v55  ;;  %v10154_v14 = vadd.f32 %v9913_v53, %v20541_v26  ;;  %v20542_v6 = vld [vmem:[#allocation142_spill] sm:$0xff]  ;;  %20546 = vst [vmem:[#allocation60_spill] sm:$0xff] %v18567_v44  ;;  %v11402_v53 = vadd.f32 %v10470_v38, %v10133_v5  ;;  %v11404_v11 = vadd.f32 %v10541_v30, %v10135_v17  ;;  %v20553_v7 = vld [vmem:[#allocation43_spill] sm:$0xff]  ;;  %v20554_v17 = vld [vmem:[#allocation41_spill] sm:$0xff] }
 0x2d3   : > { %20528 = vst [vmem:[#allocation50_spill] sm:$0xff] %v18541_v35  ;;  %v20539_v35 = vld [vmem:[#allocation171_spill] sm:$0xff]  ;;  %v10156_v55 = vadd.f32 %v9984_v27, %v20542_v6  ;;  %v20543_v25 = vld [vmem:[#allocation150_spill] sm:$0xff]  ;;  %v11403_v26 = vadd.f32 %v10472_v63, %v10134_v58  ;;  %v11406_v6 = vadd.f32 %v20549_v21, %v10137_v40  ;;  %v11408_v39 = vadd.f32 %v20550_v46, %v10139_v59  ;;  %v20555_v58 = vld [vmem:[#allocation52_spill] sm:$0xff] }
 0x2d4   : > { %v11180_v22 = vpop.f32.mrf.mxu0  ;;  %v11251_v8 = vpop.f32.mrf.mxu1  ;;  %v10153_v2 = vadd.f32 %v9911_v33, %v20539_v35  ;;  %v10157_v57 = vadd.f32 %v10053_v52, %v20543_v25  ;;  %v11400_v35 = vadd.f32 %v10399_v47, %v10131_v4  ;;  %v11399_v33 = vadd.f32 %v10330_v51, %v10130_v0  ;;  %v20548_v25 = vld [vmem:[#allocation37_spill] sm:$0xff]  ;;  %v20552_v4 = vld [vmem:[#allocation40_spill] sm:$0xff] }
 0x2d5   : > { %v11405_v52 = vadd.f32 %v20548_v25, %v10136_v61  ;;  %v18576_v44 = vadd.f32 %v20551_v42, %v10138_v13  ;;  %v18581_v0 = vadd.f32 %v20552_v4, %v10140_v50  ;;  %v18584_v5 = vadd.f32 %v20553_v7, %v10141_v31  ;;  %v20556_v30 = vld [vmem:[#allocation45_spill] sm:$0xff]  ;;  %v20557_v10 = vld [vmem:[#allocation56_spill] sm:$0xff]  ;;  %v18601_v13 = vpop.permute.xlu0 %12734 }
 0x2d6   : > { %v11182_v36 = vpop.f32.mrf.mxu0  ;;  %v11253_v3 = vpop.f32.mrf.mxu1  ;;  %v18587_v15 = vadd.f32 %v20554_v17, %v10143_v49  ;;  %v18590_v61 = vadd.f32 %v20555_v58, %v10142_v9  ;;  %v18593_v38 = vadd.f32 %v20556_v30, %v10144_v43  ;;  %v18596_v51 = vadd.f32 %v20557_v10, %v10145_v29  ;;  %v20558_v47 = vld [vmem:[#allocation49_spill] sm:$0xff]  ;;  %v20559_v50 = vld [vmem:[#allocation47_spill] sm:$0xff] }
 0x2d7   : > { %v18599_v48 = vadd.f32 %v20558_v47, %v10147_v56  ;;  %v18604_v31 = vadd.f32 %v20559_v50, %v10146_v16  ;;  %v18607_v49 = vadd.f32 %v18528_v28, %v10148_v12  ;;  %v18620_v16 = vadd.f32 %v11180_v22, %v10153_v2 }
 0x2d8   : > { %v11322_v60 = vpop.f32.mrf.mxu0  ;;  %v11393_v41 = vpop.f32.mrf.mxu1  ;;  %v20560_v9 = vld [vmem:[#allocation46_spill] sm:$0xff]  ;;  %v20561_v29 = vld [vmem:[#allocation51_spill] sm:$0xff]  ;;  %v18622_v7 = vadd.f32 %v11251_v8, %v10155_v54 }
 0x2d9   : > { %v18610_v62 = vadd.f32 %v20560_v9, %v10149_v20  ;;  %v18613_v21 = vadd.f32 %v20561_v29, %v10151_v18  ;;  %v18637_v22 = vadd.f32 %v11322_v60, %v10157_v57 }
 0x2da   : > { %v11324_v27 = vpop.f32.mrf.mxu0  ;;  %v18578_v45 = vpop.f32.mrf.mxu1  ;;  %v20562_v56 = vld [vmem:[#allocation50_spill] sm:$0xff] }
 0x2db   : > { %v18616_v46 = vadd.f32 %v20562_v56, %v10150_v37  ;;  %v20564_v56 = vmov 0.0  }
 0x2dc   : > { %v11629_v63 = vpop.f32.mrf.mxu0  ;;  %v11700_v59 = vpop.f32.mrf.mxu1 }
 0x2dd   : > { %v12699_v40 = vadd.f32 %v11629_v63, %v11398_v32  ;;  %v12701_v43 = vadd.f32 %v11700_v59, %v11400_v35  ;;  %v18618_v32 = vadd.f32 %v11111_v1, %v10152_v24  ;;  %v18627_v35 = vadd.f32 %v11182_v36, %v10154_v14 }
 0x2de   : > { %v11631_v25 = vpop.f32.mrf.mxu0  ;;  %v11702_v4 = vpop.f32.mrf.mxu1  ;;  %v18635_v24 = vadd.f32 %v11253_v3, %v10156_v55 }
 0x2df   : > { %v12700_v42 = vadd.f32 %v11631_v25, %v11399_v33  ;;  %v12702_v28 = vadd.f32 %v11702_v4, %v11401_v19  ;;  %v18625_v20 = vadd.f32 %v18601_v13, %v12699_v40  ;;  %v18633_v1 = vadd.f32 %v18601_v13, %v12701_v43 }
 0x2e0   : > { %v11771_v12 = vpop.f32.mrf.mxu0  ;;  %v11842_v17 = vpop.f32.mrf.mxu1  ;;  %v18642_v33 = vadd.f32 %v11393_v41, %v10159_v34  ;;  %v18656_v41 = vld [vmem:[#allocation2] sm:$0xf] }
 0x2e1   : > { %v12703_v18 = vadd.f32 %v11771_v12, %v11402_v53  ;;  %v18630_v37 = vadd.f32 %v18601_v13, %v12700_v42  ;;  %v12705_v8 = vadd.f32 %v11842_v17, %v11404_v11  ;;  %v18640_v54 = vadd.f32 %v18601_v13, %v12702_v28  ;;  %v20563_v11 = vld [vmem:[#allocation60_spill] sm:$0xff] }
 0x2e2   : > { %v11773_v2 = vpop.f32.mrf.mxu0  ;;  %v11844_v19 = vpop.f32.mrf.mxu1  ;;  %v12770_v34 = vmul.f32 %v18625_v20, %v18625_v20  ;;  %v18659_v58 = vadd.f32 %v11324_v27, %v20563_v11 }
 0x2e3   : > { %v18645_v36 = vadd.f32 %v18601_v13, %v12703_v18  ;;  %v12704_v14 = vadd.f32 %v11773_v2, %v11403_v26  ;;  %v12771_v53 = vmul.f32 %v18630_v37, %v18630_v37  ;;  %v18650_v3 = vadd.f32 %v18601_v13, %v12705_v8 }
 0x2e4   : > { %v12706_v55 = vadd.f32 %v11844_v19, %v11405_v52  ;;  %v11913_v57 = vpop.f32.mrf.mxu0  ;;  %v12773_v60 = vmul.f32 %v18640_v54, %v18640_v54  ;;  %v11984_v30 = vpop.f32.mrf.mxu1  ;;  %v12772_v52 = vmul.f32 %v18633_v1, %v18633_v1 }
 0x2e5   : > { %v18662_v26 = vadd.f32 %v18601_v13, %v12704_v14  ;;  %v12707_v63 = vadd.f32 %v11913_v57, %v11406_v6  ;;  %14851 = vmatprep.subr.msk.mxu0 %vm12812_vm14, %v12771_v53  ;;  %v12774_v10 = vmul.f32 %v18645_v36, %v18645_v36  ;;  %v12709_v40 = vadd.f32 %v11984_v30, %v11408_v39 }
 0x2e6   : > { %v18670_v47 = vadd.f32 %v18601_v13, %v12706_v55  ;;  %14854 = vmatprep.subr.msk.mxu1 %vm12812_vm14, %v12773_v60  ;;  %v11915_v27 = vpop.f32.mrf.mxu0  ;;  %14852 = vmatpush1.msk.msra.mxu0 %vm12812_vm14, %v12770_v34  ;;  %v11986_v9 = vpop.f32.mrf.mxu1  ;;  %v12776_v39 = vmul.f32 %v18650_v3, %v18650_v3 }
 0x2e7   : > { %v12775_v6 = vmul.f32 %v18662_v26, %v18662_v26  ;;  %v18677_v59 = vadd.f32 %v18601_v13, %v12707_v63  ;;  %v12708_v50 = vadd.f32 %v11915_v27, %v18576_v44  ;;  %14855 = vmatpush1.msk.msra.mxu1 %vm12812_vm14, %v12772_v52  ;;  %14853 = vmatmul.mubr.msk.f32.vlgmr.msra.gmra.mxu0 %vm12808_vm4, %v18656_v41 }
 0x2e8   : > { %v12777_v43 = vmul.f32 %v18670_v47, %v18670_v47  ;;  %v12710_v25 = vadd.f32 %v11986_v9, %v18581_v0  ;;  %14856 = vmatmul.mubr.msk.f32.vlgmr.msra.gmra.mxu1 %vm12808_vm4, %v18656_v41  ;;  %v12055_v29 = vpop.f32.mrf.mxu0  ;;  %13115 = vmatprep.mubr.f32.mxu0 %v20564_v56  ;;  %v18692_v44 = vadd.f32 %v18601_v13, %v12709_v40  ;;  %v12126_v28 = vpop.f32.mrf.mxu1 }
 0x2e9   : > { %v18695_v42 = vadd.f32 %v18601_v13, %v12708_v50  ;;  %v12711_v4 = vadd.f32 %v12055_v29, %v18584_v5  ;;  %14857 = vmatprep.subr.msk.mxu0 %vm12812_vm14, %v12775_v6  ;;  %13186 = vmatprep.mubr.f32.mxu1 %v20564_v56  ;;  %v12778_v0 = vmul.f32 %v18677_v59, %v18677_v59 }
 0x2ea   : > { %v18703_v12 = vadd.f32 %v18601_v13, %v12710_v25  ;;  %v12713_v18 = vadd.f32 %v12126_v28, %v18587_v15  ;;  %14860 = vmatprep.subr.msk.mxu1 %vm12812_vm14, %v12777_v43  ;;  %v12057_v17 = vpop.f32.mrf.mxu0  ;;  %14858 = vmatpush1.msk.msra.mxu0 %vm12812_vm14, %v12774_v10  ;;  %v12128_v14 = vpop.f32.mrf.mxu1 }
 0x2eb   : > { %v12779_v5 = vmul.f32 %v18695_v42, %v18695_v42  ;;  %v18711_v8 = vadd.f32 %v18601_v13, %v12711_v4  ;;  %v12712_v2 = vadd.f32 %v12057_v17, %v18590_v61  ;;  %14861 = vmatpush1.msk.msra.mxu1 %vm12812_vm14, %v12776_v39  ;;  %14859 = vmatmul.mubr.msk.f32.vlgmr.msra.gmra.mxu0 %vm12808_vm4, %v18656_v41 }
 0x2ec   : > { %v12781_v15 = vmul.f32 %v18703_v12, %v18703_v12  ;;  %v18720_v19 = vadd.f32 %v18601_v13, %v12713_v18  ;;  %v12714_v53 = vadd.f32 %v12128_v14, %v18593_v38  ;;  %14862 = vmatmul.mubr.msk.f32.vlgmr.msra.gmra.mxu1 %vm12808_vm4, %v18656_v41  ;;  %v12197_v55 = vpop.f32.mrf.mxu0  ;;  %13257 = vmatprep.mubr.f32.mxu0 %v20564_v56  ;;  %v12268_v34 = vpop.f32.mrf.mxu1 }
 0x2ed   : > { %v12780_v61 = vmul.f32 %v18692_v44, %v18692_v44  ;;  %v18729_v57 = vadd.f32 %v18601_v13, %v12712_v2  ;;  %v12715_v60 = vadd.f32 %v12197_v55, %v18596_v51  ;;  %14863 = vmatprep.subr.msk.mxu0 %vm12812_vm14, %v12779_v5  ;;  %13328 = vmatprep.mubr.f32.mxu1 %v20564_v56 }
 0x2ee   : > { %v12782_v38 = vmul.f32 %v18711_v8, %v18711_v8  ;;  %v18737_v11 = vadd.f32 %v18601_v13, %v12714_v53  ;;  %v12717_v63 = vadd.f32 %v12268_v34, %v18599_v48  ;;  %14866 = vmatprep.subr.msk.mxu1 %vm12812_vm14, %v12781_v15  ;;  %v12199_v30 = vpop.f32.mrf.mxu0  ;;  %14864 = vmatpush1.msk.msra.mxu0 %vm12812_vm14, %v12778_v0  ;;  %v12270_v40 = vpop.f32.mrf.mxu1 }
 0x2ef   : > { %v12783_v51 = vmul.f32 %v18729_v57, %v18729_v57  ;;  %v18745_v52 = vadd.f32 %v18601_v13, %v12715_v60  ;;  %v12716_v10 = vadd.f32 %v12199_v30, %v18604_v31  ;;  %14867 = vmatpush1.msk.msra.mxu1 %vm12812_vm14, %v12780_v61  ;;  %14865 = vmatmul.mubr.msk.f32.vlgmr.msra.gmra.mxu0 %vm12808_vm4, %v18656_v41 }
 0x2f0   : > { %v12784_v48 = vmul.f32 %v18720_v19, %v18720_v19  ;;  %v12785_v27 = vmul.f32 %v18737_v11, %v18737_v11  ;;  %v12718_v6 = vadd.f32 %v12270_v40, %v18607_v49  ;;  %14868 = vmatmul.mubr.msk.f32.vlgmr.msra.gmra.mxu1 %vm12808_vm4, %v18656_v41  ;;  %v12339_v50 = vpop.f32.mrf.mxu0  ;;  %13399 = vmatprep.mubr.f32.mxu0 %v20564_v56  ;;  %v12410_v43 = vpop.f32.mrf.mxu1 }
 0x2f1   : > { %v18760_v31 = vadd.f32 %v18601_v13, %v12717_v63  ;;  %v18763_v9 = vadd.f32 %v18601_v13, %v12716_v10  ;;  %v12719_v39 = vadd.f32 %v12339_v50, %v18610_v62  ;;  %14869 = vmatprep.subr.msk.mxu0 %vm12812_vm14, %v12783_v51  ;;  %13470 = vmatprep.mubr.f32.mxu1 %v20564_v56 }
 0x2f2   : > { %v12786_v49 = vmul.f32 %v18745_v52, %v18745_v52  ;;  %v18771_v25 = vadd.f32 %v18601_v13, %v12718_v6  ;;  %v12721_v29 = vadd.f32 %v12410_v43, %v18613_v21  ;;  %14872 = vmatprep.subr.msk.mxu1 %vm12812_vm14, %v12785_v27  ;;  %v12341_v4 = vpop.f32.mrf.mxu0  ;;  %14870 = vmatpush1.msk.msra.mxu0 %vm12812_vm14, %v12782_v38  ;;  %v12412_v18 = vpop.f32.mrf.mxu1 }
 0x2f3   : > { %v12787_v62 = vmul.f32 %v18763_v9, %v18763_v9  ;;  %v18779_v28 = vadd.f32 %v18601_v13, %v12719_v39  ;;  %v12720_v0 = vadd.f32 %v12341_v4, %v18616_v46  ;;  %14873 = vmatpush1.msk.msra.mxu1 %vm12812_vm14, %v12784_v48  ;;  %14871 = vmatmul.mubr.msk.f32.vlgmr.msra.gmra.mxu0 %vm12808_vm4, %v18656_v41 }
 0x2f4   : > { %v12789_v21 = vmul.f32 %v18771_v25, %v18771_v25  ;;  %v18788_v17 = vadd.f32 %v18601_v13, %v12721_v29  ;;  %v12722_v5 = vadd.f32 %v12412_v18, %v18618_v32  ;;  %14874 = vmatmul.mubr.msk.f32.vlgmr.msra.gmra.mxu1 %vm12808_vm4, %v18656_v41  ;;  %v12481_v2 = vpop.f32.mrf.mxu0  ;;  %13541 = vmatprep.mubr.f32.mxu0 %v20564_v56  ;;  %v12552_v53 = vpop.f32.mrf.mxu1 }
 0x2f5   : > { %v12788_v46 = vmul.f32 %v18760_v31, %v18760_v31  ;;  %v18797_v14 = vadd.f32 %v18601_v13, %v12720_v0  ;;  %v12723_v15 = vadd.f32 %v12481_v2, %v18620_v16  ;;  %14875 = vmatprep.subr.msk.mxu0 %vm12812_vm14, %v12787_v62  ;;  %13612 = vmatprep.mubr.f32.mxu1 %v20564_v56 }
 0x2f6   : > { %v12790_v32 = vmul.f32 %v18779_v28, %v18779_v28  ;;  %v18805_v55 = vadd.f32 %v18601_v13, %v12722_v5  ;;  %v12725_v61 = vadd.f32 %v12552_v53, %v18622_v7  ;;  %14878 = vmatprep.subr.msk.mxu1 %vm12812_vm14, %v12789_v21  ;;  %v12483_v60 = vpop.f32.mrf.mxu0  ;;  %14876 = vmatpush1.msk.msra.mxu0 %vm12812_vm14, %v12786_v49  ;;  %v12554_v63 = vpop.f32.mrf.mxu1 }
 0x2f7   : > { %v12791_v16 = vmul.f32 %v18797_v14, %v18797_v14  ;;  %v18813_v34 = vadd.f32 %v18601_v13, %v12723_v15  ;;  %v12724_v38 = vadd.f32 %v12483_v60, %v18627_v35  ;;  %14879 = vmatpush1.msk.msra.mxu1 %vm12812_vm14, %v12788_v46  ;;  %14877 = vmatmul.mubr.msk.f32.vlgmr.msra.gmra.mxu0 %vm12808_vm4, %v18656_v41 }
 0x2f8   : > { %v12792_v7 = vmul.f32 %v18788_v17, %v18788_v17  ;;  %v12793_v30 = vmul.f32 %v18805_v55, %v18805_v55  ;;  %v12726_v51 = vadd.f32 %v12554_v63, %v18635_v24  ;;  %14880 = vmatmul.mubr.msk.f32.vlgmr.msra.gmra.mxu1 %vm12808_vm4, %v18656_v41  ;;  %v12623_v10 = vpop.f32.mrf.mxu0  ;;  %13683 = vmatprep.mubr.f32.mxu0 %v20564_v56 }
 0x2f9   : > { %v18828_v35 = vadd.f32 %v18601_v13, %v12725_v61  ;;  %v18831_v40 = vadd.f32 %v18601_v13, %v12724_v38  ;;  %v12727_v48 = vadd.f32 %v12623_v10, %v18637_v22  ;;  %v12694_v27 = vpop.f32.mrf.mxu1  ;;  %14881 = vmatprep.subr.msk.mxu0 %vm12812_vm14, %v12791_v16  ;;  %13754 = vmatprep.mubr.f32.mxu1 %v20564_v56 }
 0x2fa   : > { %v11429_v24 = vadd.f32 %v18578_v45, %v18570_v23  ;;  %v18839_v6 = vadd.f32 %v18601_v13, %v12726_v51  ;;  %v12729_v50 = vadd.f32 %v12694_v27, %v18642_v33  ;;  %14884 = vmatprep.subr.msk.mxu1 %vm12812_vm14, %v12793_v30  ;;  %v12625_v39 = vpop.f32.mrf.mxu0  ;;  %14882 = vmatpush1.msk.msra.mxu0 %vm12812_vm14, %v12790_v32 }
 0x2fb   : > { %v12794_v22 = vmul.f32 %v18813_v34, %v18813_v34  ;;  %v12795_v43 = vmul.f32 %v18831_v40, %v18831_v40  ;;  %v12728_v49 = vadd.f32 %v12625_v39, %v18659_v58  ;;  %v12696_v29 = vpop.f32.mrf.mxu1  ;;  %14885 = vmatpush1.msk.msra.mxu1 %vm12812_vm14, %v12792_v7  ;;  %14883 = vmatmul.mubr.msk.f32.vlgmr.msra.gmra.mxu0 %vm12808_vm4, %v18656_v41 }
 0x2fc   : > { %v12797_v23 = vmul.f32 %v18839_v6, %v18839_v6  ;;  %v18855_v45 = vadd.f32 %v18601_v13, %v12727_v48  ;;  %v12730_v33 = vadd.f32 %v12696_v29, %v11429_v24  ;;  %14886 = vmatmul.mubr.msk.f32.vlgmr.msra.gmra.mxu1 %vm12808_vm4, %v18656_v41  ;;  %13825 = vmatprep.mubr.f32.mxu0 %v20564_v56  ;;  %v18898_v2 = vpop.permute.xlu1 %12805 }
 0x2fd   : > { %v12796_v58 = vmul.f32 %v18828_v35, %v18828_v35  ;;  %v18863_v4 = vadd.f32 %v18601_v13, %v12729_v50  ;;  %v18866_v62 = vadd.f32 %v18601_v13, %v12728_v49  ;;  %14887 = vmatprep.subr.msk.mxu0 %vm12812_vm14, %v12795_v43  ;;  %13896 = vmatprep.mubr.f32.mxu1 %v20564_v56 }
 0x2fe   : > { %v18871_v0 = vadd.f32 %v18601_v13, %v12730_v33  ;;  %14890 = vmatprep.subr.msk.mxu1 %vm12812_vm14, %v12797_v23  ;;  %14888 = vmatpush1.msk.msra.mxu0 %vm12812_vm14, %v12794_v22  ;;  %v12798_v21 = vmul.f32 %v18855_v45, %v18855_v45 }
 0x2ff   : > { %20565 = vst [vmem:[#allocation53_spill] sm:$0xff] %v18863_v4  ;;  %20566 = vst [vmem:[#allocation64_spill] sm:$0xff] %v18866_v62  ;;  %v12799_v18 = vmul.f32 %v18866_v62, %v18866_v62  ;;  %14891 = vmatpush1.msk.msra.mxu1 %vm12812_vm14, %v12796_v58  ;;  %14889 = vmatmul.mubr.msk.f32.vlgmr.msra.gmra.mxu0 %vm12808_vm4, %v18656_v41  ;;  %v12800_v13 = vmul.f32 %v18863_v4, %v18863_v4 }
 0x300   : > { %20567 = vst [vmem:[#allocation57_spill] sm:$0xff] %v18871_v0  ;;  %v12801_v5 = vmul.f32 %v18871_v0, %v18871_v0  ;;  %14892 = vmatmul.mubr.msk.f32.vlgmr.msra.gmra.mxu1 %vm12808_vm4, %v18656_v41  ;;  %13967 = vmatprep.mubr.f32.mxu0 %v20564_v56 }
 0x301   : > { %14893 = vmatprep.subr.msk.mxu0 %vm12812_vm14, %v12799_v18  ;;  %14038 = vmatprep.mubr.f32.mxu1 %v20564_v56 }
 0x302   : > { %14896 = vmatprep.subr.msk.mxu1 %vm12812_vm14, %v12801_v5  ;;  %14894 = vmatpush1.msk.msra.mxu0 %vm12812_vm14, %v12798_v21 }
 0x303   : > { %14897 = vmatpush1.msk.msra.mxu1 %vm12812_vm14, %v12800_v13  ;;  %14895 = vmatmul.mubr.msk.f32.vlgmr.msra.gmra.mxu0 %vm12808_vm4, %v18656_v41 }
 0x304   : > { %14898 = vmatmul.mubr.msk.f32.vlgmr.msra.gmra.mxu1 %vm12808_vm4, %v18656_v41 }
 0x3a7   : > { %v12975_v46 = vpop.f32.mrf.mxu0 }
 0x3a8   : > { %v18901_v15 = vadd.f32 %v12975_v46, %v18898_v2  ;;  %v13046_v53 = vpop.f32.mrf.mxu1 }
 0x3a9   : > { %v18904_v56 = vadd.f32 %v13046_v53, %v18898_v2  ;;  %v12977_v32 = vpop.f32.mrf.mxu0 }
 0x3aa   : > { %14963 = vrsqrt.f32 %v18901_v15  ;;  %v13048_v61 = vpop.f32.mrf.mxu1  ;;  %v18909_v16 = vadd.f32 %v12977_v32, %v18898_v2  ;;  %vm14047_vm11 = vcmp.eq.f32.partialorder %v18901_v15, inf  ;;  %vm14049_vm12 = vcmp.eq.f32.partialorder %v18901_v15, 0.0 }
 0x3ab   : > { %14965 = vrsqrt.f32 %v18904_v56  ;;  %v13117_v60 = vpop.f32.mrf.mxu0  ;;  %v18912_v41 = vadd.f32 %v13048_v61, %v18898_v2  ;;  %v14050_v49 = vand.u32 2147483648, %v18901_v15  ;;  %vm14061_vm3 = vcmp.eq.f32.partialorder %v18904_v56, inf }
 0x3ac   : > { %v18915_v38 = vadd.f32 %v13117_v60, %v18898_v2  ;;  %v13188_v63 = vpop.f32.mrf.mxu1  ;;  %14967 = vrsqrt.f32 %v18909_v16  ;;  %vm14063_vm1 = vcmp.eq.f32.partialorder %v18904_v56, 0.0  ;;  %v14064_v23 = vand.u32 2147483648, %v18904_v56 }
 0x3ad   : > { %v18918_v7 = vadd.f32 %v13188_v63, %v18898_v2  ;;  %v13119_v30 = vpop.f32.mrf.mxu0  ;;  %14969 = vrsqrt.f32 %v18912_v41  ;;  %vm14054_vm0 = vcmp.eq.f32.partialorder %v18909_v16, inf  ;;  %vm14056_vm5 = vcmp.eq.f32.partialorder %v18909_v16, 0.0 }
 0x3ae   : > { %v13190_v51 = vpop.f32.mrf.mxu1  ;;  %14971 = vrsqrt.f32 %v18915_v38  ;;  %v18925_v24 = vadd.f32 %v13119_v30, %v18898_v2  ;;  %v14057_v58 = vand.u32 2147483648, %v18909_v16  ;;  %vm14068_vm6 = vcmp.eq.f32.partialorder %v18912_v41, inf }
 0x3af   : > { %v13259_v10 = vpop.f32.mrf.mxu0  ;;  %14973 = vrsqrt.f32 %v18918_v7  ;;  %v18928_v50 = vadd.f32 %v13190_v51, %v18898_v2  ;;  %vm14070_vm7 = vcmp.eq.f32.partialorder %v18912_v41, 0.0  ;;  %v14071_v21 = vand.u32 2147483648, %v18912_v41 }
 0x3b0   : > { %v13330_v48 = vpop.f32.mrf.mxu1  ;;  %v18931_v39 = vadd.f32 %v13259_v10, %v18898_v2  ;;  %14975 = vrsqrt.f32 %v18925_v24  ;;  %vm14075_vm13 = vcmp.eq.f32.partialorder %v18915_v38, inf  ;;  %vm14077_vm9 = vcmp.eq.f32.partialorder %v18915_v38, 0.0 }
 0x3b1   : > { %v13261_v27 = vpop.f32.mrf.mxu0  ;;  %v18935_v43 = vadd.f32 %v13330_v48, %v18898_v2  ;;  %14977 = vrsqrt.f32 %v18928_v50  ;;  %v14078_v61 = vand.u32 2147483648, %v18915_v38  ;;  %vm14089_vm8 = vcmp.eq.f32.partialorder %v18918_v7, inf }
 0x3b2   : > { %v13332_v22 = vpop.f32.mrf.mxu1  ;;  %v18942_v29 = vadd.f32 %v13261_v27, %v18898_v2  ;;  %14979 = vrsqrt.f32 %v18931_v39  ;;  %vm14091_vm10 = vcmp.eq.f32.partialorder %v18918_v7, 0.0  ;;  %v14092_v63 = vand.u32 2147483648, %v18918_v7 }
 0x3b3   : > { %v18948_v33 = vadd.f32 %v13332_v22, %v18898_v2  ;;  %14981 = vrsqrt.f32 %v18935_v43  ;;  %v13401_v5 = vpop.f32.mrf.mxu0  ;;  %vm14082_vm15 = vcmp.eq.f32.partialorder %v18925_v24, inf  ;;  %v14085_v48 = vand.u32 2147483648, %v18925_v24 }
 0x3b4   : > { %14983 = vrsqrt.f32 %v18942_v29  ;;  %v13472_v53 = vpop.f32.mrf.mxu1  ;;  %v18972_v30 = vadd.f32 %v13401_v5, %v18898_v2  ;;  %vm14084_vm2 = vcmp.eq.f32.partialorder %v18925_v24, 0.0  ;;  %vm14096_vm14 = vcmp.eq.f32.partialorder %v18928_v50, inf }
 0x3b5   : > { %14985 = vrsqrt.f32 %v18948_v33  ;;  %v18980_v27 = vadd.f32 %v13472_v53, %v18898_v2  ;;  %v14099_v5 = vand.u32 2147483648, %v18928_v50  ;;  %vm14098_vm4 = vcmp.eq.f32.partialorder %v18928_v50, 0.0 }
 0x3b6   : > { %14987 = vrsqrt.f32 %v18972_v30  ;;  %v14120_v0 = vand.u32 2147483648, %v18935_v43 }
 0x3b7   : > { %v14964_v18 = vpop.eup %14963  ;;  %14989 = vrsqrt.f32 %v18980_v27 }
 0x3b8   : > { %v14966_v13 = vpop.eup %14965  ;;  %v14046_v46 = vmul.f32 %v14964_v18, %v18901_v15 }
 0x3b9   : > { %v14060_v32 = vmul.f32 %v14966_v13, %v18904_v56  ;;  %v14968_v51 = vpop.eup %14967  ;;  %v13403_v13 = vpop.f32.mrf.mxu0 }
 0x3ba   : > { %v14048_v60 = vsel %vm14047_vm11, %v18901_v15, %v14046_v46  ;;  %v14970_v22 = vpop.eup %14969  ;;  %v14053_v18 = vmul.f32 %v14968_v51, %v18909_v16  ;;  %vm14103_vm11 = vcmp.eq.f32.partialorder %v18931_v39, inf  ;;  %v14106_v51 = vand.u32 2147483648, %v18931_v39 }
 0x3bb   : > { %v14062_v10 = vsel %vm14061_vm3, %v18904_v56, %v14060_v32  ;;  %v14972_v46 = vpop.eup %14971  ;;  %v14051_v32 = vsel %vm14049_vm12, %v14050_v49, %v14048_v60  ;;  %v14067_v53 = vmul.f32 %v14970_v22, %v18912_v41  ;;  %vm14105_vm12 = vcmp.eq.f32.partialorder %v18931_v39, 0.0 }
 0x3bc   : > { %v14974_v4 = vpop.eup %14973  ;;  %v14065_v62 = vsel %vm14063_vm1, %v14064_v23, %v14062_v10  ;;  %v14055_v15 = vsel %vm14054_vm0, %v18909_v16, %v14053_v18  ;;  %v14074_v49 = vmul.f32 %v14972_v46, %v18915_v38  ;;  %vm14117_vm3 = vcmp.eq.f32.partialorder %v18935_v43, inf }
 0x3bd   : > { %v14058_v60 = vsel %vm14056_vm5, %v14057_v58, %v14055_v15  ;;  %v14069_v56 = vsel %vm14068_vm6, %v18912_v41, %v14067_v53  ;;  %v14088_v23 = vmul.f32 %v14974_v4, %v18918_v7  ;;  %vm14119_vm1 = vcmp.eq.f32.partialorder %v18935_v43, 0.0  ;;  %v14976_v46 = vpop.eup %14975  ;;  %v13474_v41 = vpop.f32.mrf.mxu1 }
 0x3be   : > { %vm14110_vm0 = vcmp.eq.f32.partialorder %v18942_v29, inf  ;;  %v19013_v10 = vadd.f32 %v13403_v13, %v18898_v2  ;;  %v14269_v22 = vmul.f32 %v14051_v32, %v18625_v20  ;;  %v14270_v18 = vmul.f32 %v14058_v60, %v18630_v37 }
 0x3bf   : > { %v14072_v16 = vsel %vm14070_vm7, %v14071_v21, %v14069_v56  ;;  %v14076_v58 = vsel %vm14075_vm13, %v18915_v38, %v14074_v49  ;;  %v14271_v4 = vmul.f32 %v14065_v62, %v18633_v1  ;;  %v14090_v37 = vsel %vm14089_vm8, %v18918_v7, %v14088_v23  ;;  %v14978_v21 = vpop.eup %14977 }
 0x3c0   : > { %v14272_v13 = vmul.f32 %v14072_v16, %v18640_v54  ;;  %v14079_v20 = vsel %vm14077_vm9, %v14078_v61, %v14076_v58  ;;  %v14333_v32 = vcombine.low %v14269_v22, %v14270_v18  ;;  %v14093_v53 = vsel %vm14091_vm10, %v14092_v63, %v14090_v37  ;;  %v14980_v1 = vpop.eup %14979  ;;  %v13543_v61 = vpop.f32.mrf.mxu0 }
 0x3c1   : > { %v14081_v15 = vmul.f32 %v14976_v46, %v18925_v24  ;;  %vm14112_vm5 = vcmp.eq.f32.partialorder %v18942_v29, 0.0  ;;  %v14095_v62 = vmul.f32 %v14978_v21, %v18928_v50  ;;  %v14113_v38 = vand.u32 2147483648, %v18942_v29  ;;  %v14982_v49 = vpop.eup %14981  ;;  %v13614_v16 = vpop.f32.mrf.mxu1 }
 0x3c2   : > { %v14334_v54 = vcombine.low %v14271_v4, %v14272_v13  ;;  %14991 = vrsqrt.f32 %v19013_v10  ;;  %14365 = vst [vmem:[%s19025_s11] sm:$0xff] %v14333_v32  ;;  %v14273_v60 = vmul.f32 %v14079_v20, %v18645_v36  ;;  %v14102_v63 = vmul.f32 %v14980_v1, %v18931_v39  ;;  %v14984_v56 = vpop.eup %14983 }
 0x3c3   : > { %v14083_v7 = vsel %vm14082_vm15, %v18925_v24, %v14081_v15  ;;  %vm14124_vm6 = vcmp.eq.f32.partialorder %v18948_v33, inf  ;;  %v14275_v23 = vmul.f32 %v14093_v53, %v18650_v3  ;;  %v14097_v18 = vsel %vm14096_vm14, %v18928_v50, %v14095_v62  ;;  %v14986_v58 = vpop.eup %14985  ;;  %v13545_v50 = vpop.f32.mrf.mxu0 }
 0x3c4   : > { %14366 = vst [vmem:[%s19025_s11 + $0x8] sm:$0xff] %v14334_v54  ;;  %v14086_v22 = vsel %vm14084_vm2, %v14085_v48, %v14083_v7  ;;  %v14116_v36 = vmul.f32 %v14982_v49, %v18935_v43  ;;  %v14100_v4 = vsel %vm14098_vm4, %v14099_v5, %v14097_v18  ;;  %v14104_v3 = vsel %vm14103_vm11, %v18931_v39, %v14102_v63  ;;  %v14988_v39 = vpop.eup %14987 }
 0x3c5   : > { %v14274_v46 = vmul.f32 %v14086_v22, %v18662_v26  ;;  %v14109_v24 = vmul.f32 %v14984_v56, %v18942_v29  ;;  %v14276_v48 = vmul.f32 %v14100_v4, %v18670_v47  ;;  %v14107_v13 = vsel %vm14105_vm12, %v14106_v51, %v14104_v3  ;;  %v14990_v62 = vpop.eup %14989 }
 0x3c6   : > { %v14118_v20 = vsel %vm14117_vm3, %v18935_v43, %v14116_v36  ;;  %v14123_v26 = vmul.f32 %v14986_v58, %v18948_v33  ;;  %v14127_v47 = vand.u32 2147483648, %v18948_v33  ;;  %vm14126_vm7 = vcmp.eq.f32.partialorder %v18948_v33, 0.0  ;;  %v13616_v43 = vpop.f32.mrf.mxu1 }
 0x3c7   : > { %v14335_v5 = vcombine.low %v14273_v60, %v14274_v46  ;;  %v14121_v37 = vsel %vm14119_vm1, %v14120_v0, %v14118_v20  ;;  %v14111_v21 = vsel %vm14110_vm0, %v18942_v29, %v14109_v24  ;;  %v14336_v51 = vcombine.low %v14275_v23, %v14276_v48 }
 0x3c8   : > { %v14114_v32 = vsel %vm14112_vm5, %v14113_v38, %v14111_v21  ;;  %v14125_v53 = vsel %vm14124_vm6, %v18948_v33, %v14123_v26  ;;  %v14277_v0 = vmul.f32 %v14107_v13, %v18677_v59  ;;  %v19086_v54 = vadd.f32 %v13474_v41, %v18898_v2  ;;  %v13685_v59 = vpop.f32.mrf.mxu0  ;;  %v13756_v63 = vpop.f32.mrf.mxu1 }
 0x3c9   : > { %14367 = vst [vmem:[%s19025_s11 + $0x10] sm:$0xff] %v14335_v5  ;;  %v14278_v15 = vmul.f32 %v14114_v32, %v18695_v42  ;;  %v14128_v1 = vsel %vm14126_vm7, %v14127_v47, %v14125_v53  ;;  %14368 = vst [vmem:[%s19025_s11 + $0x18] sm:$0xff] %v14336_v51  ;;  %v14279_v29 = vmul.f32 %v14121_v37, %v18692_v44  ;;  %vm14131_vm13 = vcmp.eq.f32.partialorder %v18972_v30, inf }
 0x3ca   : > { %v14280_v38 = vmul.f32 %v14128_v1, %v18703_v12  ;;  %v14130_v33 = vmul.f32 %v14988_v39, %v18972_v30  ;;  %v19093_v49 = vadd.f32 %v13543_v61, %v18898_v2  ;;  %14993 = vrsqrt.f32 %v19086_v54  ;;  %v13687_v56 = vpop.f32.mrf.mxu0 }
 0x3cb   : > { %v14337_v60 = vcombine.low %v14277_v0, %v14278_v15  ;;  %v19097_v42 = vadd.f32 %v13614_v16, %v18898_v2  ;;  %v19100_v7 = vadd.f32 %v13545_v50, %v18898_v2  ;;  %v14144_v44 = vmul.f32 %v14990_v62, %v18980_v27  ;;  %v13758_v16 = vpop.f32.mrf.mxu1 }
 0x3cc   : > { %v14338_v41 = vcombine.low %v14279_v29, %v14280_v38  ;;  %14995 = vrsqrt.f32 %v19093_v49  ;;  %v14132_v12 = vsel %vm14131_vm13, %v18972_v30, %v14130_v33  ;;  %vm14133_vm9 = vcmp.eq.f32.partialorder %v18972_v30, 0.0  ;;  %v13827_v13 = vpop.f32.mrf.mxu0 }
 0x3cd   : > { %14369 = vst [vmem:[%s19025_s11 + $0x20] sm:$0xff] %v14337_v60  ;;  %v14134_v61 = vand.u32 2147483648, %v18972_v30  ;;  %vm14145_vm8 = vcmp.eq.f32.partialorder %v18980_v27, inf  ;;  %vm14147_vm10 = vcmp.eq.f32.partialorder %v18980_v27, 0.0  ;;  %v14148_v22 = vand.u32 2147483648, %v18980_v27  ;;  %v13898_v37 = vpop.f32.mrf.mxu1 }
 0x3ce   : > { %14370 = vst [vmem:[%s19025_s11 + $0x28] sm:$0xff] %v14338_v41  ;;  %14997 = vrsqrt.f32 %v19097_v42  ;;  %vm14138_vm15 = vcmp.eq.f32.partialorder %v19013_v10, inf  ;;  %v14141_v36 = vand.u32 2147483648, %v19013_v10  ;;  %v14146_v58 = vsel %vm14145_vm8, %v18980_v27, %v14144_v44 }
 0x3cf   : > { %v14992_v23 = vpop.eup %14991  ;;  %14999 = vrsqrt.f32 %v19100_v7  ;;  %v14135_v30 = vsel %vm14133_vm9, %v14134_v61, %v14132_v12  ;;  %v19120_v46 = vadd.f32 %v13616_v43, %v18898_v2  ;;  %v19123_v4 = vadd.f32 %v13685_v59, %v18898_v2  ;;  %v13900_v53 = vpop.f32.mrf.mxu1 }
 0x3d0   : > { %v14137_v18 = vmul.f32 %v14992_v23, %v19013_v10  ;;  %vm14140_vm2 = vcmp.eq.f32.partialorder %v19013_v10, 0.0  ;;  %v19128_v24 = vadd.f32 %v13756_v63, %v18898_v2  ;;  %v19131_v48 = vadd.f32 %v13687_v56, %v18898_v2 }
 0x3d1   : > { %vm14152_vm14 = vcmp.eq.f32.partialorder %v19086_v54, inf  ;;  %15001 = vrsqrt.f32 %v19120_v46  ;;  %v19136_v26 = vadd.f32 %v13758_v16, %v18898_v2  ;;  %v14281_v50 = vmul.f32 %v14135_v30, %v18711_v8 }
 0x3d2   : > { %v14139_v3 = vsel %vm14138_vm15, %v19013_v10, %v14137_v18  ;;  %v14149_v10 = vsel %vm14147_vm10, %v14148_v22, %v14146_v58  ;;  %15003 = vrsqrt.f32 %v19123_v4  ;;  %vm14154_vm4 = vcmp.eq.f32.partialorder %v19086_v54, 0.0 }
 0x3d3   : > { %v14142_v20 = vsel %vm14140_vm2, %v14141_v36, %v14139_v3  ;;  %v14155_v21 = vand.u32 2147483648, %v19086_v54  ;;  %vm14159_vm11 = vcmp.eq.f32.partialorder %v19093_v49, inf  ;;  %15005 = vrsqrt.f32 %v19128_v24 }
 0x3d4   : > { %v14282_v5 = vmul.f32 %v14142_v20, %v18729_v57  ;;  %vm14161_vm12 = vcmp.eq.f32.partialorder %v19093_v49, 0.0  ;;  %v14162_v8 = vand.u32 2147483648, %v19093_v49  ;;  %15007 = vrsqrt.f32 %v19131_v48  ;;  %v13829_v57 = vpop.f32.mrf.mxu0 }
 0x3d5   : > { %v14283_v27 = vmul.f32 %v14149_v10, %v18720_v19  ;;  %vm14173_vm3 = vcmp.eq.f32.partialorder %v19097_v42, inf  ;;  %vm14175_vm1 = vcmp.eq.f32.partialorder %v19097_v42, 0.0  ;;  %15009 = vrsqrt.f32 %v19136_v26 }
 0x3d6   : > { %v14339_v47 = vcombine.low %v14281_v50, %v14282_v5  ;;  %v14176_v51 = vand.u32 2147483648, %v19097_v42  ;;  %vm14166_vm0 = vcmp.eq.f32.partialorder %v19100_v7, inf  ;;  %vm14168_vm5 = vcmp.eq.f32.partialorder %v19100_v7, 0.0  ;;  %v13969_v36 = vpop.f32.mrf.mxu0 }
 0x3d7   : > { %v14994_v39 = vpop.eup %14993  ;;  %v19159_v32 = vadd.f32 %v13827_v13, %v18898_v2  ;;  %v14169_v43 = vand.u32 2147483648, %v19100_v7  ;;  %v19164_v0 = vadd.f32 %v13898_v37, %v18898_v2  ;;  %v19167_v15 = vadd.f32 %v13829_v57, %v18898_v2 }
 0x3d8   : > { %14371 = vst [vmem:[%s19025_s11 + $0x30] sm:$0xff] %v14339_v47  ;;  %v14151_v19 = vmul.f32 %v14994_v39, %v19086_v54  ;;  %vm14180_vm6 = vcmp.eq.f32.partialorder %v19120_v46, inf  ;;  %v14183_v62 = vand.u32 2147483648, %v19120_v46  ;;  %v14190_v29 = vand.u32 2147483648, %v19123_v4 }
 0x3d9   : > { %v14996_v1 = vpop.eup %14995  ;;  %15011 = vrsqrt.f32 %v19159_v32  ;;  %vm14182_vm7 = vcmp.eq.f32.partialorder %v19120_v46, 0.0  ;;  %vm14187_vm13 = vcmp.eq.f32.partialorder %v19123_v4, inf  ;;  %v19181_v59 = vadd.f32 %v13900_v53, %v18898_v2 }
 0x3da   : > { %v14153_v38 = vsel %vm14152_vm14, %v19086_v54, %v14151_v19  ;;  %v14158_v33 = vmul.f32 %v14996_v1, %v19093_v49  ;;  %15013 = vrsqrt.f32 %v19164_v0  ;;  %vm14189_vm9 = vcmp.eq.f32.partialorder %v19123_v4, 0.0 }
 0x3db   : > { %v14998_v60 = vpop.eup %14997  ;;  %v14156_v41 = vsel %vm14154_vm4, %v14155_v21, %v14153_v38  ;;  %vm14201_vm8 = vcmp.eq.f32.partialorder %v19128_v24, inf  ;;  %v14204_v63 = vand.u32 2147483648, %v19128_v24  ;;  %15015 = vrsqrt.f32 %v19167_v15 }
 0x3dc   : > { %v15000_v44 = vpop.eup %14999  ;;  %v14284_v12 = vmul.f32 %v14156_v41, %v18737_v11  ;;  %v14160_v61 = vsel %vm14159_vm11, %v19093_v49, %v14158_v33  ;;  %v14172_v56 = vmul.f32 %v14998_v60, %v19097_v42  ;;  %vm14203_vm10 = vcmp.eq.f32.partialorder %v19128_v24, 0.0 }
 0x3dd   : > { %vm14194_vm15 = vcmp.eq.f32.partialorder %v19131_v48, inf  ;;  %v14165_v54 = vmul.f32 %v15000_v44, %v19100_v7  ;;  %vm14196_vm2 = vcmp.eq.f32.partialorder %v19131_v48, 0.0  ;;  %v14197_v23 = vand.u32 2147483648, %v19131_v48 }
 0x3de   : > { %vm14208_vm14 = vcmp.eq.f32.partialorder %v19136_v26, inf  ;;  %v14340_v11 = vcombine.low %v14283_v27, %v14284_v12  ;;  %v14163_v22 = vsel %vm14161_vm12, %v14162_v8, %v14160_v61  ;;  %v14174_v18 = vsel %vm14173_vm3, %v19097_v42, %v14172_v56  ;;  %v15002_v16 = vpop.eup %15001 }
 0x3df   : > { %15017 = vrsqrt.f32 %v19181_v59  ;;  %v14177_v30 = vsel %vm14175_vm1, %v14176_v51, %v14174_v18  ;;  %v14167_v58 = vsel %vm14166_vm0, %v19100_v7, %v14165_v54  ;;  %vm14210_vm4 = vcmp.eq.f32.partialorder %v19136_v26, 0.0  ;;  %v15004_v3 = vpop.eup %15003 }
 0x3e0   : > { %v14211_v49 = vand.u32 2147483648, %v19136_v26  ;;  %14372 = vst [vmem:[%s19025_s11 + $0x38] sm:$0xff] %v14340_v11  ;;  %v14170_v13 = vsel %vm14168_vm5, %v14169_v43, %v14167_v58  ;;  %v14179_v20 = vmul.f32 %v15002_v16, %v19120_v46  ;;  %vm14215_vm11 = vcmp.eq.f32.partialorder %v19159_v32, inf  ;;  %v15006_v50 = vpop.eup %15005 }
 0x3e1   : > { %v14218_v42 = vand.u32 2147483648, %v19159_v32  ;;  %v14285_v10 = vmul.f32 %v14163_v22, %v18745_v52  ;;  %v14286_v5 = vmul.f32 %v14170_v13, %v18763_v9  ;;  %v14186_v37 = vmul.f32 %v15004_v3, %v19123_v4  ;;  %v15008_v21 = vpop.eup %15007  ;;  %v14040_v9 = vpop.f32.mrf.mxu1 }
 0x3e2   : > { %vm14217_vm12 = vcmp.eq.f32.partialorder %v19159_v32, 0.0  ;;  %vm14229_vm3 = vcmp.eq.f32.partialorder %v19164_v0, inf  ;;  %v19225_v7 = vadd.f32 %v13969_v36, %v18898_v2  ;;  %v14287_v47 = vmul.f32 %v14177_v30, %v18760_v31  ;;  %v15010_v57 = vpop.eup %15009 }
 0x3e3   : > { %v14181_v8 = vsel %vm14180_vm6, %v19120_v46, %v14179_v20  ;;  %v14200_v52 = vmul.f32 %v15006_v50, %v19128_v24  ;;  %vm14222_vm1 = vcmp.eq.f32.partialorder %v19167_v15, inf  ;;  %v14341_v27 = vcombine.low %v14285_v10, %v14286_v5  ;;  %v14042_v56 = vpop.f32.mrf.mxu1 }
 0x3e4   : > { %v14184_v39 = vsel %vm14182_vm7, %v14183_v62, %v14181_v8  ;;  %v14188_v51 = vsel %vm14187_vm13, %v19123_v4, %v14186_v37  ;;  %v14193_v31 = vmul.f32 %v15008_v21, %v19131_v48  ;;  %v14207_v1 = vmul.f32 %v15010_v57, %v19136_v26  ;;  %v13971_v4 = vpop.f32.mrf.mxu0 }
 0x3e5   : > { %v14288_v53 = vmul.f32 %v14184_v39, %v18771_v25  ;;  %v14191_v19 = vsel %vm14189_vm9, %v14190_v29, %v14188_v51  ;;  %v14202_v43 = vsel %vm14201_vm8, %v19128_v24, %v14200_v52  ;;  %14373 = vst [vmem:[%s19025_s11 + $0x40] sm:$0xff] %v14341_v27  ;;  %15019 = vrsqrt.f32 %v19225_v7 }
 0x3e6   : > { %v14205_v46 = vsel %vm14203_vm10, %v14204_v63, %v14202_v43  ;;  %v14195_v62 = vsel %vm14194_vm15, %v19131_v48, %v14193_v31  ;;  %v19254_v25 = vadd.f32 %v14040_v9, %v18898_v2  ;;  %v15012_v29 = vpop.eup %15011  ;;  %v14209_v24 = vsel %vm14208_vm14, %v19136_v26, %v14207_v1  ;;  %v20568_v1 = vld [vmem:[#allocation64_spill] sm:$0xff] }
 0x3e7   : > { %v14342_v38 = vcombine.low %v14287_v47, %v14288_v53  ;;  %v14198_v33 = vsel %vm14196_vm2, %v14197_v23, %v14195_v62  ;;  %v14225_v60 = vand.u32 2147483648, %v19167_v15  ;;  %v15014_v41 = vpop.eup %15013  ;;  %v14289_v63 = vmul.f32 %v14191_v19, %v18779_v28 }
 0x3e8   : > { %v14290_v44 = vmul.f32 %v14198_v33, %v18797_v14  ;;  %v14212_v12 = vsel %vm14210_vm4, %v14211_v49, %v14209_v24  ;;  %v14214_v61 = vmul.f32 %v15012_v29, %v19159_v32  ;;  %v15016_v48 = vpop.eup %15015  ;;  %v14291_v54 = vmul.f32 %v14205_v46, %v18788_v17  ;;  %v20570_v29 = vld [vmem:[#allocation57_spill] sm:$0xff] }
 0x3e9   : > { %14374 = vst [vmem:[%s19025_s11 + $0x48] sm:$0xff] %v14342_v38  ;;  %v14292_v23 = vmul.f32 %v14212_v12, %v18805_v55  ;;  %v14228_v11 = vmul.f32 %v15014_v41, %v19164_v0  ;;  %v13972_v28 = vadd.f32 %v13971_v4, %v18898_v2  ;;  %v14221_v26 = vmul.f32 %v15016_v48, %v19167_v15 }
 0x3ea   : > { %v14343_v22 = vcombine.low %v14289_v63, %v14290_v44  ;;  %v14216_v14 = vsel %vm14215_vm11, %v19159_v32, %v14214_v61  ;;  %15021 = vrsqrt.f32 %v19254_v25  ;;  %v14043_v36 = vadd.f32 %v14042_v56, %v18898_v2 }
 0x3eb   : > { %v14344_v18 = vcombine.low %v14291_v54, %v14292_v23  ;;  %v14219_v17 = vsel %vm14217_vm12, %v14218_v42, %v14216_v14  ;;  %v14230_v55 = vsel %vm14229_vm3, %v19164_v0, %v14228_v11  ;;  %vm14231_vm0 = vcmp.eq.f32.partialorder %v19164_v0, 0.0 }
 0x3ec   : > { %v15018_v16 = vpop.eup %15017  ;;  %14375 = vst [vmem:[%s19025_s11 + $0x50] sm:$0xff] %v14343_v22  ;;  %v14232_v30 = vand.u32 2147483648, %v19164_v0  ;;  %v14223_v58 = vsel %vm14222_vm1, %v19167_v15, %v14221_v26  ;;  %vm14224_vm5 = vcmp.eq.f32.partialorder %v19167_v15, 0.0  ;;  %vm14236_vm6 = vcmp.eq.f32.partialorder %v19181_v59, inf }
 0x3ed   : > { %14376 = vst [vmem:[%s19025_s11 + $0x58] sm:$0xff] %v14344_v18  ;;  %v14226_v32 = vsel %vm14224_vm5, %v14225_v60, %v14223_v58  ;;  %v14235_v49 = vmul.f32 %v15018_v16, %v19181_v59  ;;  %v14239_v2 = vand.u32 2147483648, %v19181_v59  ;;  %v14293_v3 = vmul.f32 %v14219_v17, %v18813_v34 }
 0x3ee   : > { %v14233_v13 = vsel %vm14231_vm0, %v14232_v30, %v14230_v55  ;;  %v14294_v0 = vmul.f32 %v14226_v32, %v18831_v40  ;;  %15023 = vrsqrt.f32 %v13972_v28  ;;  %vm14238_vm7 = vcmp.eq.f32.partialorder %v19181_v59, 0.0 }
 0x3ef   : > { %v14237_v20 = vsel %vm14236_vm6, %v19181_v59, %v14235_v49  ;;  %15025 = vrsqrt.f32 %v14043_v36  ;;  %v14295_v50 = vmul.f32 %v14233_v13, %v18828_v35  ;;  %vm14243_vm13 = vcmp.eq.f32.partialorder %v19225_v7, inf }
 0x3f0   : > { %v14345_v15 = vcombine.low %v14293_v3, %v14294_v0  ;;  %v14240_v42 = vsel %vm14238_vm7, %v14239_v2, %v14237_v20  ;;  %vm14257_vm9 = vcmp.eq.f32.partialorder %v19254_v25, inf  ;;  %vm14245_vm8 = vcmp.eq.f32.partialorder %v19225_v7, 0.0 }
 0x3f1   : > { %v14296_v10 = vmul.f32 %v14240_v42, %v18839_v6  ;;  %v14246_v35 = vand.u32 2147483648, %v19225_v7  ;;  %vm14259_vm10 = vcmp.eq.f32.partialorder %v19254_v25, 0.0  ;;  %v14260_v52 = vand.u32 2147483648, %v19254_v25 }
 0x3f2   : > { %14377 = vst [vmem:[%s19025_s11 + $0x60] sm:$0xff] %v14345_v15  ;;  %v15020_v5 = vpop.eup %15019  ;;  %vm14250_vm15 = vcmp.eq.f32.partialorder %v13972_v28, inf  ;;  %vm14252_vm2 = vcmp.eq.f32.partialorder %v13972_v28, 0.0  ;;  %v14253_v27 = vand.u32 2147483648, %v13972_v28  ;;  %vm14264_vm14 = vcmp.eq.f32.partialorder %v14043_v36, inf }
 0x3f3   : > { %v14346_v37 = vcombine.low %v14295_v50, %v14296_v10  ;;  %v14242_v34 = vmul.f32 %v15020_v5, %v19225_v7  ;;  %v14267_v53 = vand.u32 2147483648, %v14043_v36  ;;  %vm14266_vm4 = vcmp.eq.f32.partialorder %v14043_v36, 0.0 }
 0x3f5   : > { %14378 = vst [vmem:[%s19025_s11 + $0x68] sm:$0xff] %v14346_v37  ;;  %v14244_v59 = vsel %vm14243_vm13, %v19225_v7, %v14242_v34 }
 0x3f6   : > { %v14247_v57 = vsel %vm14245_vm8, %v14246_v35, %v14244_v59 }
 0x3f7   : > { %v15022_v21 = vpop.eup %15021  ;;  %v14297_v43 = vmul.f32 %v14247_v57, %v18855_v45 }
 0x3f8   : > { %v14256_v40 = vmul.f32 %v15022_v21, %v19254_v25 }
 0x3fa   : > { %v14258_v6 = vsel %vm14257_vm9, %v19254_v25, %v14256_v40  ;;  %v20569_v25 = vld [vmem:[#allocation53_spill] sm:$0xff] }
 0x3fb   : > { %v15024_v47 = vpop.eup %15023  ;;  %v14261_v51 = vsel %vm14259_vm10, %v14260_v52, %v14258_v6 }
 0x3fc   : > { %v15026_v8 = vpop.eup %15025  ;;  %v14249_v9 = vmul.f32 %v15024_v47, %v13972_v28  ;;  %v14299_v4 = vmul.f32 %v14261_v51, %v20569_v25 }
 0x3fd   : > { %v14263_v39 = vmul.f32 %v15026_v8, %v14043_v36 }
 0x3fe   : > { %v14251_v31 = vsel %vm14250_vm15, %v13972_v28, %v14249_v9 }
 0x3ff   : > { %v14254_v7 = vsel %vm14252_vm2, %v14253_v27, %v14251_v31  ;;  %v14265_v19 = vsel %vm14264_vm14, %v14043_v36, %v14263_v39 }
 0x400   : > { %v14298_v46 = vmul.f32 %v14254_v7, %v20568_v1  ;;  %v14268_v62 = vsel %vm14266_vm4, %v14267_v53, %v14265_v19 }
 0x401   : > { %v14300_v38 = vmul.f32 %v14268_v62, %v20570_v29 }
 0x402   : > { %v14347_v33 = vcombine.low %v14297_v43, %v14298_v46 }
 0x403   : > { %v14348_v24 = vcombine.low %v14299_v4, %v14300_v38 }
 0x404   : > { %14379 = vst [vmem:[%s19025_s11 + $0x70] sm:$0xff] %v14347_v33 }
 0x405   : > { %14380 = vst [vmem:[%s19025_s11 + $0x78] sm:$0xff] %v14348_v24 }
 0x406 PF: > { %s16_s22 = sadd.s32 1, %s15127_s22   ;;  %s20571_s18 = smov %s15119_s20 }
 0x407   : > { %p13_p3 = scmp.ge.s32.totalorder %s16_s22, 10   ;;  %s20572_s19 = smov %s15123_s21 }
 0x408   : > { %s20573_s20 = smov %s20576_s24  ;;  %s20574_s21 = smov %s20580_s25 }
 0x409   :  { %15 = sbr.rel (!%p13_p3) target bundleno = 3 (0x3), region = 86 }
 0x40e   :  { %14410 = vsyncpa [#allocation3], 1 }
 0x40f   :  { %14412 = vsyncpa [#allocation3 + $0x1], 1 }

</bundles_post_ra>
